<compile_context>
chip_gen: v5e
topology: v5e:2x2
jax: 0.10.0
libtpu: 0.0.40
codegen_flags: <defaults>
</compile_context>

<pallas_src>
import functools

import jax
import jax.numpy as jnp
from jax.experimental import pallas as pl
from jax.experimental.pallas import tpu as pltpu


# ----------------------------- activation helpers -----------------------------

def _erf_poly(x):
    """Abramowitz & Stegun 7.1.26 erf approximation, |err| <= 1.5e-7.

    Built only from abs/mul/add/div/exp/where so it lowers on every TPU generation
    (no dependence on an erf primitive lowering)."""
    a1, a2, a3, a4, a5 = 0.254829592, -0.284496736, 1.421413741, -1.453152027, 1.061405429
    p = 0.3275911
    ax = jnp.abs(x)
    t = 1.0 / (1.0 + p * ax)
    poly = ((((a5 * t + a4) * t + a3) * t + a2) * t + a1) * t
    y = 1.0 - poly * jnp.exp(-(ax * ax))
    return jnp.where(x < 0, -y, y)


def _apply_activation(h, kind):
    if kind == "relu":                       # nn.TransformerEncoderLayer default FFN act
        return jnp.maximum(h, 0.0)
    if kind == "gelu_tanh":                  # torch GELU(approximate='tanh')
        return jax.nn.gelu(h, approximate=True)
    # "gelu_exact": matches torch.nn.GELU() default (erf-based), used by the
    # ResidualAdd blocks in Proj_eeg / RouteModel.linear.
    return 0.5 * h * (1.0 + _erf_poly(h * 0.7071067811865476))


# --------------------------------- kernel -------------------------------------

def _residual_mlp_kernel(x_ref, w1_ref, b1_ref, w2_ref, b2_ref, o_ref, acc_ref,
                         *, h_chunk, n_chunks, activation):
    """One (tm, D) row tile of:  out = x + (act(x @ W1 + b1) @ W2 + b2)."""
    x = x_ref[...]                                        # (tm, D), native (bf16) dtype
    # Fold residual + second-layer bias into the accumulator init: one pass over (tm, D),
    # no separate residual-add sweep at the end.
    acc_ref[...] = x.astype(jnp.float32) + b2_ref[...]
    # H-chunked FFN: never materializes the full (tm, H) f32 hidden activation (it would
    # spill out of the 64-vreg file into VMEM between the two matmuls).
    for k in range(n_chunks):                             # static unroll; n_chunks is small
        lo = k * h_chunk
        h = jnp.dot(x, w1_ref[:, lo:lo + h_chunk],        # bf16 x bf16 MXU, f32 accumulate
                    preferred_element_type=jnp.float32)
        h = h + b1_ref[:, lo:lo + h_chunk]
        h = _apply_activation(h, activation)              # f32 (EUP exp behind the MXU)
        acc_ref[...] += jnp.dot(h.astype(w2_ref.dtype),   # back to bf16 for full-rate MXU
                                w2_ref[lo:lo + h_chunk, :],
                                preferred_element_type=jnp.float32)
    o_ref[...] = acc_ref[...].astype(o_ref.dtype)


# --------------------------------- wrapper ------------------------------------

def _round_down(v, m):
    return (v // m) * m


def _tpu_generation_info():
    """Best-effort (vmem_capacity_bytes, device_kind, two_tensorcores_per_chip)."""
    kind = ""
    try:
        kind = jax.devices()[0].device_kind.lower()
    except Exception:
        pass
    vmem = None
    try:
        vmem = int(pltpu.get_tpu_info().vmem_capacity_bytes)
    except Exception:
        pass
    if vmem is None or vmem <= 0:
        vmem = (64 << 20) if "v7" in kind else (128 << 20)
    two_tc = "v7" in kind
    return vmem, kind, two_tc


def _pick_h_chunk(H, max_chunk=512):
    """Largest multiple of 128 <= max_chunk that divides H (fallback: H itself)."""
    if H <= max_chunk:
        return H
    for c in range(max_chunk, 0, -128):
        if H % c == 0:
            return c
    return H


def residual_add_mlp(x, w1, b1, w2, b2, *, tile_m=None, activation="gelu_exact"):
    """x: [B, S, D] -> [B, S, D], computes fn(x) + x with fn = Linear -> act -> Linear."""
    B, S, D = x.shape
    H = w1.shape[1]
    M = B * S

    x2d = x.reshape(M, D)
    b1_2d = b1.reshape(1, H).astype(jnp.float32)
    b2_2d = b2.reshape(1, D).astype(jnp.float32)

    x_item = jnp.dtype(x.dtype).itemsize
    w_item = jnp.dtype(w1.dtype).itemsize

    vmem_cap, kind, two_tc = _tpu_generation_info()
    if vmem_cap <= (64 << 20):            # v7x-class: 64 MiB per TensorCore
        vmem_budget = vmem_cap - (12 << 20)   # headroom for compiler scratch / semaphores
        default_tm = 256
    else:                                  # v5e / v6e: 128 MiB
        vmem_budget = min(vmem_cap, 128 << 20) - (24 << 20)
        default_tm = 512
    vmem_budget = max(vmem_budget, 16 << 20)

    # bf16 packs 16 rows per vreg tile; round row tiles accordingly (8 for f32).
    row_align = 16 if x_item == 2 else 8

    hc = _pick_h_chunk(H)
    n_chunks = H // hc if (hc > 0 and H % hc == 0) else 1
    if H % hc != 0:
        hc = H

    # v6e lever: when H is small the kernel is HBM-bound (intensity ~ H flops/byte is
    # below the ~640 compute/BW crossover) -> deepen the streamed-x pipeline to 3 buffers.
    x_buffers = 3 if ("v6" in kind and vmem_cap > (64 << 20) and H < 640) else 2

    w_bytes = (w1.size + w2.size) * w_item + (H + D) * 4   # bf16 weights + f32 biases

    def _select_tm(weight_buf_factor):
        tm = default_tm if tile_m is None else int(tile_m)
        tm = max(1, min(tm, M))
        # Keep >= 4 row tiles (>= 8 on 2-TC parts) so the x/out DMA pipeline has overlap
        # and both TensorCores get several tiles each.
        min_tiles = 8 if two_tc else 4
        cap = max(row_align, _round_down(pl.cdiv(M, min_tiles), row_align))
        tm = min(tm, cap)
        if tm != M:
            tm = max(row_align, _round_down(tm, row_align))

        def needed(t):
            return (weight_buf_factor * w_bytes        # resident weights/biases
                    + x_buffers * t * D * x_item       # streamed x tiles
                    + 2 * t * D * x_item               # double-buffered out tiles
                    + t * D * 4                        # f32 accumulator scratch
                    + 2 * t * hc * 4)                  # hidden chunk + activation temps

        while tm > row_align and needed(tm) > vmem_budget:
            tm = max(row_align, _round_down(tm // 2, row_align))
        # TODO(synk): if the weights alone ever exceed vmem_budget, add a grid axis over
        # D/H instead of shrinking tm further.
        vmem_limit = int(min(max(needed(tm) * 3 // 2 + (8 << 20), 32 << 20),
                             vmem_budget + (8 << 20)))
        return tm, vmem_limit

    def _build_and_call(use_pm):
        # Without pipeline_mode support the constant-index weight operands would be
        # double-buffered by default, so budget them twice in that case.
        tm, vmem_limit = _select_tm(1 if use_pm else 2)
        grid_m = pl.cdiv(M, tm)            # partial last block handled by Pallas padding

        def spec(shape, imap, bufs):
            if use_pm:
                return pl.BlockSpec(shape, imap, pipeline_mode=pl.Buffered(bufs))
            return pl.BlockSpec(shape, imap)

        kernel = functools.partial(_residual_mlp_kernel, h_chunk=hc,
                                   n_chunks=n_chunks, activation=activation)

        cost = pl.CostEstimate(
            flops=4 * M * D * H + 2 * M * (H + D),
            transcendentals=M * H,
            bytes_accessed=2 * M * D * x_item + w_bytes,
        )

        return pl.pallas_call(
            kernel,
            out_shape=jax.ShapeDtypeStruct((M, D), x.dtype),
            grid_spec=pltpu.PrefetchScalarGridSpec(
                num_scalar_prefetch=0,
                grid=(grid_m,),
                in_specs=[
                    spec((tm, D), lambda i: (i, 0), x_buffers),  # streamed x tiles
                    spec((D, H), lambda i: (0, 0), 1),           # w1 resident, 1 buffer
                    spec((1, H), lambda i: (0, 0), 1),           # b1 resident
                    spec((H, D), lambda i: (0, 0), 1),           # w2 resident
                    spec((1, D), lambda i: (0, 0), 1),           # b2 resident
                ],
                out_specs=pl.BlockSpec((tm, D), lambda i: (i, 0)),
                scratch_shapes=[pltpu.VMEM((tm, D), jnp.float32)],  # f32 accumulator
            ),
            compiler_params=pltpu.CompilerParams(
                dimension_semantics=("parallel",),   # 2-TC parts split row tiles
                vmem_limit_bytes=vmem_limit,
            ),
            cost_estimate=cost,
            # NOTE: no input_output_aliases -- donating x's HBM buffer would make x
            # unreadable to callers after this call.
        )(x2d, w1, b1_2d, w2, b2_2d)

    try:
        out = _build_and_call(use_pm=True)
    except Exception:
        # Fallback for jax versions without BlockSpec(pipeline_mode=...) support.
        out = _build_and_call(use_pm=False)

    return out.reshape(B, S, D)


# ----------------------------------- demo -------------------------------------

if __name__ == "__main__":
    # Small, lane-aligned demo shapes (D, H multiples of 128 -> unmasked vector stores).
    B, S, D = 2, 256, 128
    H = 4 * D

    key = jax.random.PRNGKey(0)
    kx, k1, k2, k3, k4 = jax.random.split(key, 5)

    # Activations and weights in bf16 (f32 biases).
    x = jax.random.normal(kx, (B, S, D), dtype=jnp.float32).astype(jnp.bfloat16)
    w1 = (jax.random.normal(k1, (D, H), dtype=jnp.float32)
          * (1.0 / jnp.sqrt(D))).astype(jnp.bfloat16)
    b1 = jax.random.normal(k2, (H,), dtype=jnp.float32) * 0.01
    w2 = (jax.random.normal(k3, (H, D), dtype=jnp.float32)
          * (1.0 / jnp.sqrt(H))).astype(jnp.bfloat16)
    b2 = jax.random.normal(k4, (D,), dtype=jnp.float32) * 0.01

    # Pure-JAX reference of ResidualAdd(fn) mirroring the kernel's casts; exact-erf GELU
    # to match torch.nn.GELU() default.
    xf = x.astype(jnp.float32)
    h_ref = jnp.dot(xf, w1.astype(jnp.float32)) + b1
    h_ref = jax.nn.gelu(h_ref, approximate=False)
    h_ref = h_ref.astype(jnp.bfloat16).astype(jnp.float32)
    ref = (jnp.dot(h_ref, w2.astype(jnp.float32)) + b2 + xf).astype(x.dtype)
    ref = jax.block_until_ready(ref)

    out = residual_add_mlp(x, w1, b1, w2, b2, activation="gelu_exact")
    out = jax.block_until_ready(out)

    assert out.shape == (B, S, D) and out.dtype == x.dtype
    assert jnp.allclose(out.astype(jnp.float32), ref.astype(jnp.float32),
                        atol=5e-2, rtol=5e-2), "mismatch vs reference"

    print("KERNEL_OK")
</pallas_src>

<mosaic_0001>
module attributes {stable_mosaic.version = 11 : i64} {
  func.func @_residual_mlp_kernel(%arg0: i32, %arg1: memref<128x128xbf16, #tpu.memory_space<vmem>>, %arg2: memref<128x512xbf16, #tpu.memory_space<vmem>>, %arg3: memref<1x512xf32, #tpu.memory_space<vmem>>, %arg4: memref<512x128xbf16, #tpu.memory_space<vmem>>, %arg5: memref<1x128xf32, #tpu.memory_space<vmem>>, %arg6: memref<128x128xbf16, #tpu.memory_space<vmem>>, %arg7: memref<128x128xf32, #tpu.memory_space<vmem>>) attributes {dimension_semantics = [#tpu.dimension_semantics<parallel>], iteration_bounds = array<i64: 4>, scalar_prefetch = 0 : i64, scratch_operands = 1 : i64, tpu.core_type = #tpu.core_type<tc>, window_params = [{pipeline_mode = #tpu.pipeline_mode<double_buffered>, transform_indices = @transform_0, window_bounds = array<i64: 128, 128>}, {pipeline_mode = #tpu.pipeline_mode<synchronous>, transform_indices = @transform_1, window_bounds = array<i64: 128, 512>}, {pipeline_mode = #tpu.pipeline_mode<synchronous>, transform_indices = @transform_2, window_bounds = array<i64: 1, 512>}, {pipeline_mode = #tpu.pipeline_mode<synchronous>, transform_indices = @transform_3, window_bounds = array<i64: 512, 128>}, {pipeline_mode = #tpu.pipeline_mode<synchronous>, transform_indices = @transform_4, window_bounds = array<i64: 1, 128>}, {transform_indices = @transform_5, window_bounds = array<i64: 128, 128>}]} {
    %c0 = arith.constant 0 : index
    %c0_0 = arith.constant 0 : index
    %0 = vector.load %arg1[%c0, %c0_0] : memref<128x128xbf16, #tpu.memory_space<vmem>>, vector<128x128xbf16>
    %1 = arith.extf %0 : vector<128x128xbf16> to vector<128x128xf32>
    %c0_1 = arith.constant 0 : index
    %c0_2 = arith.constant 0 : index
    %2 = vector.load %arg5[%c0_1, %c0_2] : memref<1x128xf32, #tpu.memory_space<vmem>>, vector<1x128xf32>
    %3 = vector.broadcast %2 : vector<1x128xf32> to vector<128x128xf32>
    %4 = arith.addf %1, %3 : vector<128x128xf32>
    %c0_3 = arith.constant 0 : index
    %c0_4 = arith.constant 0 : index
    %5 = vector.load %arg7[%c0_3, %c0_4] : memref<128x128xf32, #tpu.memory_space<vmem>>, vector<128x128xf32>
    tpu.vector_store %arg7[%c0_3, %c0_4], %4 {strides = array<i32>} : memref<128x128xf32, #tpu.memory_space<vmem>>, vector<128x128xf32>,
    %c0_5 = arith.constant 0 : index
    %c0_6 = arith.constant 0 : index
    %6 = vector.load %arg2[%c0_5, %c0_6] : memref<128x512xbf16, #tpu.memory_space<vmem>>, vector<128x512xbf16>
    %cst = arith.constant dense<0.000000e+00> : vector<128x512xf32>
    %7 = tpu.matmul %0, %6, %cst {dimension_numbers = #tpu.dot_dimension_numbers<[1], [0], [0], [1], [0, 0, 1, 1], [], []>} : vector<128x128xbf16>, vector<128x512xbf16>, vector<128x512xf32> -> vector<128x512xf32>
    %c0_7 = arith.constant 0 : index
    %c0_8 = arith.constant 0 : index
    %8 = vector.load %arg3[%c0_7, %c0_8] : memref<1x512xf32, #tpu.memory_space<vmem>>, vector<1x512xf32>
    %9 = vector.broadcast %8 : vector<1x512xf32> to vector<128x512xf32>
    %10 = arith.addf %7, %9 : vector<128x512xf32>
    %cst_9 = arith.constant 5.000000e-01 : f32
    %11 = vector.broadcast %cst_9 : f32 to vector<128x512xf32>
    %12 = arith.mulf %11, %10 : vector<128x512xf32>
    %cst_10 = arith.constant 0.707106769 : f32
    %13 = vector.broadcast %cst_10 : f32 to vector<128x512xf32>
    %14 = arith.mulf %10, %13 : vector<128x512xf32>
    %15 = math.absf %14 : vector<128x512xf32>
    %cst_11 = arith.constant 0.327591091 : f32
    %16 = vector.broadcast %cst_11 : f32 to vector<128x512xf32>
    %17 = arith.mulf %16, %15 : vector<128x512xf32>
    %cst_12 = arith.constant 1.000000e+00 : f32
    %18 = vector.broadcast %cst_12 : f32 to vector<128x512xf32>
    %19 = arith.addf %18, %17 : vector<128x512xf32>
    %cst_13 = arith.constant 1.000000e+00 : f32
    %20 = vector.broadcast %cst_13 : f32 to vector<128x512xf32>
    %21 = arith.divf %20, %19 : vector<128x512xf32>
    %cst_14 = arith.constant 1.06140542 : f32
    %22 = vector.broadcast %cst_14 : f32 to vector<128x512xf32>
    %23 = arith.mulf %22, %21 : vector<128x512xf32>
    %cst_15 = arith.constant -1.45315206 : f32
    %24 = vector.broadcast %cst_15 : f32 to vector<128x512xf32>
    %25 = arith.addf %23, %24 : vector<128x512xf32>
    %26 = arith.mulf %25, %21 : vector<128x512xf32>
    %cst_16 = arith.constant 1.42141378 : f32
    %27 = vector.broadcast %cst_16 : f32 to vector<128x512xf32>
    %28 = arith.addf %26, %27 : vector<128x512xf32>
    %29 = arith.mulf %28, %21 : vector<128x512xf32>
    %cst_17 = arith.constant -0.284496725 : f32
    %30 = vector.broadcast %cst_17 : f32 to vector<128x512xf32>
    %31 = arith.addf %29, %30 : vector<128x512xf32>
    %32 = arith.mulf %31, %21 : vector<128x512xf32>
    %cst_18 = arith.constant 0.254829586 : f32
    %33 = vector.broadcast %cst_18 : f32 to vector<128x512xf32>
    %34 = arith.addf %32, %33 : vector<128x512xf32>
    %35 = arith.mulf %34, %21 : vector<128x512xf32>
    %36 = arith.mulf %15, %15 : vector<128x512xf32>
    %cst_19 = arith.constant 0.000000e+00 : f32
    %37 = vector.broadcast %cst_19 : f32 to vector<128x512xf32>
    %38 = arith.subf %37, %36 : vector<128x512xf32>
    %39 = math.exp %38 : vector<128x512xf32>
    %40 = arith.mulf %35, %39 : vector<128x512xf32>
    %cst_20 = arith.constant 1.000000e+00 : f32
    %41 = vector.broadcast %cst_20 : f32 to vector<128x512xf32>
    %42 = arith.subf %41, %40 : vector<128x512xf32>
    %cst_21 = arith.constant 0.000000e+00 : f32
    %43 = vector.broadcast %cst_21 : f32 to vector<128x512xf32>
    %44 = arith.cmpf olt, %14, %43 : vector<128x512xf32>
    %cst_22 = arith.constant 0.000000e+00 : f32
    %45 = vector.broadcast %cst_22 : f32 to vector<128x512xf32>
    %46 = arith.subf %45, %42 : vector<128x512xf32>
    %47 = arith.select %44, %46, %42 : vector<128x512xi1>, vector<128x512xf32>
    %cst_23 = arith.constant 1.000000e+00 : f32
    %48 = vector.broadcast %cst_23 : f32 to vector<128x512xf32>
    %49 = arith.addf %48, %47 : vector<128x512xf32>
    %50 = arith.mulf %12, %49 : vector<128x512xf32>
    %c0_24 = arith.constant 0 : index
    %c0_25 = arith.constant 0 : index
    %51 = vector.load %arg7[%c0_24, %c0_25] : memref<128x128xf32, #tpu.memory_space<vmem>>, vector<128x128xf32>
    %52 = arith.truncf %50 : vector<128x512xf32> to vector<128x512xbf16>
    %c0_26 = arith.constant 0 : index
    %c0_27 = arith.constant 0 : index
    %53 = vector.load %arg4[%c0_26, %c0_27] : memref<512x128xbf16, #tpu.memory_space<vmem>>, vector<512x128xbf16>
    %cst_28 = arith.constant dense<0.000000e+00> : vector<128x128xf32>
    %54 = tpu.matmul %52, %53, %cst_28 {dimension_numbers = #tpu.dot_dimension_numbers<[1], [0], [0], [1], [0, 0, 1, 1], [], []>} : vector<128x512xbf16>, vector<512x128xbf16>, vector<128x128xf32> -> vector<128x128xf32>
    %55 = arith.addf %51, %54 : vector<128x128xf32>
    %c0_29 = arith.constant 0 : index
    %c0_30 = arith.constant 0 : index
    %56 = vector.load %arg7[%c0_29, %c0_30] : memref<128x128xf32, #tpu.memory_space<vmem>>, vector<128x128xf32>
    tpu.vector_store %arg7[%c0_29, %c0_30], %55 {strides = array<i32>} : memref<128x128xf32, #tpu.memory_space<vmem>>, vector<128x128xf32>,
    %c0_31 = arith.constant 0 : index
    %c0_32 = arith.constant 0 : index
    %57 = vector.load %arg7[%c0_31, %c0_32] : memref<128x128xf32, #tpu.memory_space<vmem>>, vector<128x128xf32>
    %58 = arith.truncf %57 : vector<128x128xf32> to vector<128x128xbf16>
    %c0_33 = arith.constant 0 : index
    %c0_34 = arith.constant 0 : index
    %59 = vector.load %arg6[%c0_33, %c0_34] : memref<128x128xbf16, #tpu.memory_space<vmem>>, vector<128x128xbf16>
    tpu.vector_store %arg6[%c0_33, %c0_34], %58 {strides = array<i32>} : memref<128x128xbf16, #tpu.memory_space<vmem>>, vector<128x128xbf16>,
    return
  }
  func.func @transform_0(%arg0: i32) -> (i32, i32) {
    %c0_i32 = arith.constant 0 : i32
    %c0_i32_0 = arith.constant 0 : i32
    return %arg0, %c0_i32 : i32, i32
  }
  func.func @transform_1(%arg0: i32) -> (i32, i32) {
    %c0_i32 = arith.constant 0 : i32
    %c0_i32_0 = arith.constant 0 : i32
    %c0_i32_1 = arith.constant 0 : i32
    return %c0_i32, %c0_i32_0 : i32, i32
  }
  func.func @transform_2(%arg0: i32) -> (i32, i32) {
    %c0_i32 = arith.constant 0 : i32
    %c0_i32_0 = arith.constant 0 : i32
    %c0_i32_1 = arith.constant 0 : i32
    return %c0_i32, %c0_i32_0 : i32, i32
  }
  func.func @transform_3(%arg0: i32) -> (i32, i32) {
    %c0_i32 = arith.constant 0 : i32
    %c0_i32_0 = arith.constant 0 : i32
    %c0_i32_1 = arith.constant 0 : i32
    return %c0_i32, %c0_i32_0 : i32, i32
  }
  func.func @transform_4(%arg0: i32) -> (i32, i32) {
    %c0_i32 = arith.constant 0 : i32
    %c0_i32_0 = arith.constant 0 : i32
    %c0_i32_1 = arith.constant 0 : i32
    return %c0_i32, %c0_i32_0 : i32, i32
  }
  func.func @transform_5(%arg0: i32) -> (i32, i32) {
    %c0_i32 = arith.constant 0 : i32
    %c0_i32_0 = arith.constant 0 : i32
    return %arg0, %c0_i32 : i32, i32
  }
}

module attributes {stable_mosaic.version = 11 : i64} {
  func.func @_residual_mlp_kernel(%arg0: i32, %arg1: memref<128x128xbf16, #tpu.memory_space<vmem>>, %arg2: memref<128x512xbf16, #tpu.memory_space<vmem>>, %arg3: memref<1x512xf32, #tpu.memory_space<vmem>>, %arg4: memref<512x128xbf16, #tpu.memory_space<vmem>>, %arg5: memref<1x128xf32, #tpu.memory_space<vmem>>, %arg6: memref<128x128xbf16, #tpu.memory_space<vmem>>, %arg7: memref<128x128xf32, #tpu.memory_space<vmem>>) attributes {dimension_semantics = [#tpu.dimension_semantics<parallel>], iteration_bounds = array<i64: 4>, scalar_prefetch = 0 : i64, scratch_operands = 1 : i64, tpu.core_type = #tpu.core_type<tc>, window_params = [{transform_indices = @transform_0, window_bounds = array<i64: 128, 128>}, {pipeline_mode = #tpu.pipeline_mode<synchronous>, transform_indices = @transform_1, window_bounds = array<i64: 128, 512>}, {pipeline_mode = #tpu.pipeline_mode<synchronous>, transform_indices = @transform_2, window_bounds = array<i64: 1, 512>}, {pipeline_mode = #tpu.pipeline_mode<synchronous>, transform_indices = @transform_3, window_bounds = array<i64: 512, 128>}, {pipeline_mode = #tpu.pipeline_mode<synchronous>, transform_indices = @transform_4, window_bounds = array<i64: 1, 128>}, {transform_indices = @transform_5, window_bounds = array<i64: 128, 128>}]} {
    %c0 = arith.constant 0 : index
    %c0_0 = arith.constant 0 : index
    %0 = vector.load %arg1[%c0, %c0_0] : memref<128x128xbf16, #tpu.memory_space<vmem>>, vector<128x128xbf16>
    %1 = arith.extf %0 : vector<128x128xbf16> to vector<128x128xf32>
    %c0_1 = arith.constant 0 : index
    %c0_2 = arith.constant 0 : index
    %2 = vector.load %arg5[%c0_1, %c0_2] : memref<1x128xf32, #tpu.memory_space<vmem>>, vector<1x128xf32>
    %3 = vector.broadcast %2 : vector<1x128xf32> to vector<128x128xf32>
    %4 = arith.addf %1, %3 : vector<128x128xf32>
    %c0_3 = arith.constant 0 : index
    %c0_4 = arith.constant 0 : index
    %5 = vector.load %arg7[%c0_3, %c0_4] : memref<128x128xf32, #tpu.memory_space<vmem>>, vector<128x128xf32>
    tpu.vector_store %arg7[%c0_3, %c0_4], %4 {strides = array<i32>} : memref<128x128xf32, #tpu.memory_space<vmem>>, vector<128x128xf32>,
    %c0_5 = arith.constant 0 : index
    %c0_6 = arith.constant 0 : index
    %6 = vector.load %arg2[%c0_5, %c0_6] : memref<128x512xbf16, #tpu.memory_space<vmem>>, vector<128x512xbf16>
    %cst = arith.constant dense<0.000000e+00> : vector<128x512xf32>
    %7 = tpu.matmul %0, %6, %cst {dimension_numbers = #tpu.dot_dimension_numbers<[1], [0], [0], [1], [0, 0, 1, 1], [], []>} : vector<128x128xbf16>, vector<128x512xbf16>, vector<128x512xf32> -> vector<128x512xf32>
    %c0_7 = arith.constant 0 : index
    %c0_8 = arith.constant 0 : index
    %8 = vector.load %arg3[%c0_7, %c0_8] : memref<1x512xf32, #tpu.memory_space<vmem>>, vector<1x512xf32>
    %9 = vector.broadcast %8 : vector<1x512xf32> to vector<128x512xf32>
    %10 = arith.addf %7, %9 : vector<128x512xf32>
    %cst_9 = arith.constant 5.000000e-01 : f32
    %11 = vector.broadcast %cst_9 : f32 to vector<128x512xf32>
    %12 = arith.mulf %11, %10 : vector<128x512xf32>
    %cst_10 = arith.constant 0.707106769 : f32
    %13 = vector.broadcast %cst_10 : f32 to vector<128x512xf32>
    %14 = arith.mulf %10, %13 : vector<128x512xf32>
    %15 = math.absf %14 : vector<128x512xf32>
    %cst_11 = arith.constant 0.327591091 : f32
    %16 = vector.broadcast %cst_11 : f32 to vector<128x512xf32>
    %17 = arith.mulf %16, %15 : vector<128x512xf32>
    %cst_12 = arith.constant 1.000000e+00 : f32
    %18 = vector.broadcast %cst_12 : f32 to vector<128x512xf32>
    %19 = arith.addf %18, %17 : vector<128x512xf32>
    %cst_13 = arith.constant 1.000000e+00 : f32
    %20 = vector.broadcast %cst_13 : f32 to vector<128x512xf32>
    %21 = arith.divf %20, %19 : vector<128x512xf32>
    %cst_14 = arith.constant 1.06140542 : f32
    %22 = vector.broadcast %cst_14 : f32 to vector<128x512xf32>
    %23 = arith.mulf %22, %21 : vector<128x512xf32>
    %cst_15 = arith.constant -1.45315206 : f32
    %24 = vector.broadcast %cst_15 : f32 to vector<128x512xf32>
    %25 = arith.addf %23, %24 : vector<128x512xf32>
    %26 = arith.mulf %25, %21 : vector<128x512xf32>
    %cst_16 = arith.constant 1.42141378 : f32
    %27 = vector.broadcast %cst_16 : f32 to vector<128x512xf32>
    %28 = arith.addf %26, %27 : vector<128x512xf32>
    %29 = arith.mulf %28, %21 : vector<128x512xf32>
    %cst_17 = arith.constant -0.284496725 : f32
    %30 = vector.broadcast %cst_17 : f32 to vector<128x512xf32>
    %31 = arith.addf %29, %30 : vector<128x512xf32>
    %32 = arith.mulf %31, %21 : vector<128x512xf32>
    %cst_18 = arith.constant 0.254829586 : f32
    %33 = vector.broadcast %cst_18 : f32 to vector<128x512xf32>
    %34 = arith.addf %32, %33 : vector<128x512xf32>
    %35 = arith.mulf %34, %21 : vector<128x512xf32>
    %36 = arith.mulf %15, %15 : vector<128x512xf32>
    %cst_19 = arith.constant 0.000000e+00 : f32
    %37 = vector.broadcast %cst_19 : f32 to vector<128x512xf32>
    %38 = arith.subf %37, %36 : vector<128x512xf32>
    %39 = math.exp %38 : vector<128x512xf32>
    %40 = arith.mulf %35, %39 : vector<128x512xf32>
    %cst_20 = arith.constant 1.000000e+00 : f32
    %41 = vector.broadcast %cst_20 : f32 to vector<128x512xf32>
    %42 = arith.subf %41, %40 : vector<128x512xf32>
    %cst_21 = arith.constant 0.000000e+00 : f32
    %43 = vector.broadcast %cst_21 : f32 to vector<128x512xf32>
    %44 = arith.cmpf olt, %14, %43 : vector<128x512xf32>
    %cst_22 = arith.constant 0.000000e+00 : f32
    %45 = vector.broadcast %cst_22 : f32 to vector<128x512xf32>
    %46 = arith.subf %45, %42 : vector<128x512xf32>
    %47 = arith.select %44, %46, %42 : vector<128x512xi1>, vector<128x512xf32>
    %cst_23 = arith.constant 1.000000e+00 : f32
    %48 = vector.broadcast %cst_23 : f32 to vector<128x512xf32>
    %49 = arith.addf %48, %47 : vector<128x512xf32>
    %50 = arith.mulf %12, %49 : vector<128x512xf32>
    %c0_24 = arith.constant 0 : index
    %c0_25 = arith.constant 0 : index
    %51 = vector.load %arg7[%c0_24, %c0_25] : memref<128x128xf32, #tpu.memory_space<vmem>>, vector<128x128xf32>
    %52 = arith.truncf %50 : vector<128x512xf32> to vector<128x512xbf16>
    %c0_26 = arith.constant 0 : index
    %c0_27 = arith.constant 0 : index
    %53 = vector.load %arg4[%c0_26, %c0_27] : memref<512x128xbf16, #tpu.memory_space<vmem>>, vector<512x128xbf16>
    %cst_28 = arith.constant dense<0.000000e+00> : vector<128x128xf32>
    %54 = tpu.matmul %52, %53, %cst_28 {dimension_numbers = #tpu.dot_dimension_numbers<[1], [0], [0], [1], [0, 0, 1, 1], [], []>} : vector<128x512xbf16>, vector<512x128xbf16>, vector<128x128xf32> -> vector<128x128xf32>
    %55 = arith.addf %51, %54 : vector<128x128xf32>
    %c0_29 = arith.constant 0 : index
    %c0_30 = arith.constant 0 : index
    %56 = vector.load %arg7[%c0_29, %c0_30] : memref<128x128xf32, #tpu.memory_space<vmem>>, vector<128x128xf32>
    tpu.vector_store %arg7[%c0_29, %c0_30], %55 {strides = array<i32>} : memref<128x128xf32, #tpu.memory_space<vmem>>, vector<128x128xf32>,
    %c0_31 = arith.constant 0 : index
    %c0_32 = arith.constant 0 : index
    %57 = vector.load %arg7[%c0_31, %c0_32] : memref<128x128xf32, #tpu.memory_space<vmem>>, vector<128x128xf32>
    %58 = arith.truncf %57 : vector<128x128xf32> to vector<128x128xbf16>
    %c0_33 = arith.constant 0 : index
    %c0_34 = arith.constant 0 : index
    %59 = vector.load %arg6[%c0_33, %c0_34] : memref<128x128xbf16, #tpu.memory_space<vmem>>, vector<128x128xbf16>
    tpu.vector_store %arg6[%c0_33, %c0_34], %58 {strides = array<i32>} : memref<128x128xbf16, #tpu.memory_space<vmem>>, vector<128x128xbf16>,
    return
  }
  func.func @transform_0(%arg0: i32) -> (i32, i32) {
    %c0_i32 = arith.constant 0 : i32
    %c0_i32_0 = arith.constant 0 : i32
    return %arg0, %c0_i32 : i32, i32
  }
  func.func @transform_1(%arg0: i32) -> (i32, i32) {
    %c0_i32 = arith.constant 0 : i32
    %c0_i32_0 = arith.constant 0 : i32
    %c0_i32_1 = arith.constant 0 : i32
    return %c0_i32, %c0_i32_0 : i32, i32
  }
  func.func @transform_2(%arg0: i32) -> (i32, i32) {
    %c0_i32 = arith.constant 0 : i32
    %c0_i32_0 = arith.constant 0 : i32
    %c0_i32_1 = arith.constant 0 : i32
    return %c0_i32, %c0_i32_0 : i32, i32
  }
  func.func @transform_3(%arg0: i32) -> (i32, i32) {
    %c0_i32 = arith.constant 0 : i32
    %c0_i32_0 = arith.constant 0 : i32
    %c0_i32_1 = arith.constant 0 : i32
    return %c0_i32, %c0_i32_0 : i32, i32
  }
  func.func @transform_4(%arg0: i32) -> (i32, i32) {
    %c0_i32 = arith.constant 0 : i32
    %c0_i32_0 = arith.constant 0 : i32
    %c0_i32_1 = arith.constant 0 : i32
    return %c0_i32, %c0_i32_0 : i32, i32
  }
  func.func @transform_5(%arg0: i32) -> (i32, i32) {
    %c0_i32 = arith.constant 0 : i32
    %c0_i32_0 = arith.constant 0 : i32
    return %arg0, %c0_i32 : i32, i32
  }
}

</mosaic_0001>

<bundles_post_ra>
// kernel: tpu_custom_call.1
= control target key start
LH: loop header
LB: loop body
LE: loop exit
PB: predicated region body
PF: predicated region fallthrough
CT: control target
= control target key end

     0   :  { %10 = vsyncpa [#allocation4], 0  ;;  %s8800_s0 = inlined_call_operand.hbm [shape: bf16[512,128], index: 0, kind: input, shape index: {}]   ;;  %s8801_s1 = inlined_call_operand.hbm [shape: bf16[128,512], index: 1, kind: input, shape index: {}]   ;;  %s8802_s2 = inlined_call_operand.hbm [shape: f32[1,512], index: 2, kind: input, shape index: {}]   ;;  %s8803_s3 = inlined_call_operand.hbm [shape: bf16[512,128], index: 3, kind: input, shape index: {}]   ;;  %s8804_s4 = inlined_call_operand.vmem [shape: f32[1,128], index: 4, kind: input, shape index: {}]   ;;  %s8805_s5 = inlined_call_operand.hbm [shape: bf16[512,128], index: 5, kind: output, shape index: {}]  }
   0x1   :  { %12 = vsyncpa [#allocation4 + $0x1], 0 }
   0x2   :  { %13 = vsyncpa [#allocation7], 0 }
   0x3   :  { %14 = vsyncpa [#allocation10], 0 }
   0x4   :  { %15 = vsyncpa [#allocation5], 0 }
   0x5   :  { %17 = vsyncpa [#allocation5 + $0x1], 0  ;;  %s5071_s18 = smov 0   ;;  %s5073_s19 = smov 0  }
   0x6   :  { %s5075_s20 = smov 0   ;;  %s5077_s21 = smov 0  }
   0x7 LB: > { %s5092_s22 = sadd.s32 4294967295, %s5030_s21   ;;  %s4067_s23 = sadd.s32 4294967294, %s5030_s21   ;;  %s5030_s21 = sphi %s5077_s21, %s9530_s21   ;;  %s5026_s20 = sphi %s5075_s20, %s9529_s20   ;;  %s5022_s19 = sphi %s5073_s19, %s9528_s19   ;;  %s5018_s18 = sphi %s5071_s18, %s9527_s18  }
   0x8   : > { %p43_p0 = scmp.ne.s32.totalorder %s5022_s19, %s5018_s18  ;;  %p44_p1 = scmp.eq.s32.totalorder %s5092_s22, 0 }
   0x9   : > { %p151_p2 = scmp.eq.s32.totalorder %s5092_s22, 3  ;;  %p157_p3 = scmp.eq.s32.totalorder %s4067_s23, 3 }
   0xa   : > { %p5101_p4 = por %p44_p1, %p43_p0  ;;  %p4068_p5 = scmp.ge.s32.totalorder %s5030_s21, 1 }
   0xb   : > { %p5106_p6 = por %p157_p3, %p43_p0  ;;  %p164_p7 = scmp.lt.s32.totalorder %s5030_s21, 5 }
   0xc   : > { %s175_s28 = sshll.u32 %s8801_s1, 4  ;;  %s5032_s30 = smov [#allocation6]   ;;  %s176_s28 = int_to_ptr.hbm [resolvable:$true] %s175_s28 }
   0xd   : > { %p5114_p8 = pnand %p4068_p5, %p164_p7  ;;  %s177_s6 = sshll.u32 %s5032_s30, 4  ;;  %s178_s6 = int_to_ptr.vmem [resolvable:$true] %s177_s6 }
   0xe   : > { %s190_s10 = sshll.u32 %s8802_s2, 4  ;;  %s5033_s11 = smov 256   ;;  %s191_s10 = int_to_ptr.hbm [resolvable:$true] %s190_s10 }
   0xf   : > { %p4512_p9 = pneg %p5114_p8  ;;  %s5034_s12 = smov 16  }
  0x10   : > { %s5035_s13 = smov [#allocation8]   ;;  %s201_s17 = sshll.u32 %s8803_s3, 4  ;;  %s202_s17 = int_to_ptr.hbm [resolvable:$true] %s201_s17 }
  0x11   : > { %p5122_p10 = pnand %p4512_p9, %p44_p1  ;;  %s192_s14 = sshll.u32 %s5035_s13, 4  ;;  %s193_s14 = int_to_ptr.vmem [resolvable:$true] %s192_s14 }
  0x12   : > { %s5036_s23 = smov [#allocation9]   ;;  %s8806_s27 = smov 64  }
  0x13   : > { %4515 = dma.hbm_to_vmem [thread:$0]  (!%p5122_p10), %s176_s28, 4096, %s178_s6, [#allocation7], %s5033_s11, %s5033_s11, %s5034_s12  }
  0x14   : > { %4518 = dma.hbm_to_vmem [thread:$0]  (!%p5122_p10), %s191_s10, 64, %s193_s14, [#allocation7]  }
  0x15   : > { %s203_s26 = sshll.u32 %s5036_s23, 4  ;;  %s5038_s28 = smov 4   ;;  %s204_s26 = int_to_ptr.vmem [resolvable:$true] %s203_s26 }
  0x16   : > { %4521 = dma.hbm_to_vmem [thread:$0]  (!%p5122_p10), %s202_s17, 4096, %s204_s26, [#allocation10], %s8806_s27, %s8806_s27, %s5038_s28  }
  0x17   : > { %s5142_s30 = sadd.s32 1, %s5030_s21   ;;  %s30_s8 = sadd.s32 1, %s5026_s20 }
  0x18   : > { %s27_s6 = ssub.s32 %s5030_s21, %s5142_s30  ;;  %p37_p12 = scmp.ne.s32.totalorder %s5026_s20, %s5022_s19 }
  0x19   : > { %p28_p11 = scmp.eq.s32.totalorder %s27_s6, 0  ;;  %p38_p13 = scmp.eq.s32.totalorder %s5030_s21, 0 }
  0x1a   : > { %p5155_p0 = por %p151_p2, %p37_p12  ;;  %p4533_p3 = scmp.lt.s32.totalorder %s5030_s21, 4 }
  0x1b   : > { %s5151_s9 = scalar_select %p28_p11, %s5026_s20, %s30_s8  }
  0x1c   : > { %s220_s7 = sand.u32 1, %s5026_s20   ;;  %s4375_s11 = sshll.u32 %s5030_s21, 6 }
  0x1d   : > { %p39_p5 = por %p38_p13, %p37_p12  ;;  %s4073_s12 = sshll.u32 %s220_s7, 6 }
  0x1e   : > { %s229_s15 = scalar_lea.hbm %s8800_s0, %s4375_s11  ;;  %s224_s17 = scalar_lea.vmem [#allocation3], %s4073_s12 }
  0x1f   : > { %s230_s16 = sshll.u32 %s229_s15, 4  ;;  %s232_s23 = sshll.u32 %s224_s17, 4  ;;  %s231_s16 = int_to_ptr.hbm [resolvable:$true] %s230_s16  ;;  %s233_s23 = int_to_ptr.vmem [resolvable:$true] %s232_s23 }
  0x20   : > { %p5165_p7 = pnand %p4533_p3, %p39_p5  ;;  %s221_s6 = scalar_lea.sflag [#allocation4], %s220_s7 }
  0x21   : > { %s4926_s8 = sshra.s32 %s231_s16, 4  ;;  %s4933_s12 = scalar_lea.hbm %s8800_s0, 256  ;;  %s4927_s8 = int_to_ptr.hbm [resolvable:$true] %s4926_s8 }
  0x22   : > { %s4928_s27 = scalar_lea.hbm %s4927_s8, 64  ;;  %p4930_p9 = pneg %p5165_p7 }
  0x23   : > { %p4929_p2 = scmp.ne.s32.totalorder %s4927_s8, %s4928_s27  ;;  %p4934_p12 = scmp.lt.s32.totalorder %s4927_s8, %s8800_s0 }
  0x24   : > { %p4935_p13 = scmp.lt.s32.totalorder %s4933_s12, %s4928_s27 }
  0x25   : > { %p4931_p10 = pnand %p4930_p9, %p4929_p2 }
  0x26   : > { %p4936_p3 = por %p4935_p13, %p4934_p12 }
  0x27   : > { %p4932_p11 = pneg %p4931_p10 }
  0x29   : > { %p4937_p5 = pnand %p4936_p3, %p4932_p11 }
  0x2b   : > { %4940 = shalt.err (!%p4937_p5)
}
  0x2c   : > { %s8970_s7 = smov 64   ;;  %244 = sbr.rel (%p5114_p8) target bundleno = 1051 (0x41b), region = 40 }
  0x2d   : > { %4525 = dma.hbm_to_vmem [thread:$0]  (!%p5165_p7), %s231_s16, 1024, %s233_s23, %s221_s6, %s8970_s7, %s8970_s7, %s5038_s28  }
  0x31   : > { %s5185_s17 = sand.u32 1, %s5022_s19  }
  0x32   : > { %s4077_s27 = sshll.u32 %s5185_s17, 6  ;;  %s247_s8 = scalar_lea.sflag [#allocation4], %s5185_s17 }
  0x33   : > { %s5191_s11 = scalar_lea.vmem [#allocation3], %s4077_s27 }
  0x34   : > { %5001 = dma.done.wait (%p5101_p4), %s247_s8, 1024  }
  0x35   : > { %5003 = vsyncadd (%p5101_p4), %s247_s8, 4294966272 }
  0x36   : > { %5005 = dma.done.wait (%p44_p1), [#allocation7], 4160  }
  0x37   : > { %5007 = vsyncadd (%p44_p1), [#allocation7], 4294963136 }
  0x38   : > { %5009 = dma.done.wait (%p44_p1), [#allocation10], 4096  }
  0x39   : > { %5011 = vsyncadd (%p44_p1), [#allocation10], 4294963200  ;;  %v4228_v0 = vld [vmem:[#allocation6 + $0xe0] sm:$0xf]  ;;  %v4414_v1 = vld [vmem:[#allocation6 + $0xec] sm:$0xf0] }
  0x3a   : > { %v4412_v2 = vld [vmem:[#allocation6 + $0xe4] sm:$0xf]  ;;  %v4229_v3 = vor.u32 %v4414_v1, %v4228_v0  ;;  %v4230_v4 = vld [vmem:[#allocation6 + $0xf0] sm:$0xf0]  ;;  %v4236_v5 = vld [vmem:[#allocation6 + $0xe8] sm:$0xf] }
  0x3b   : > { %v4415_v6 = vld [vmem:[#allocation6 + $0xf4] sm:$0xf0]  ;;  %v4233_v7 = vor.u32 %v4412_v2, %v4230_v4  ;;  %v4413_v9 = vld [vmem:[#allocation6 + $0xec] sm:$0xf]  ;;  %v4238_v10 = vld [vmem:[#allocation6 + $0xf8] sm:$0xf0] }
  0x3c   : > { %v4237_v8 = vor.u32 %v4415_v6, %v4236_v5  ;;  %v4212_v11 = vld [vmem:[#allocation6 + $0xc0] sm:$0xf]  ;;  %613 = vmatpush.bf16.msra.mxu0 %v4229_v3  ;;  %v4241_v12 = vor.u32 %v4413_v9, %v4238_v10  ;;  %v4410_v13 = vld [vmem:[#allocation6 + $0xcc] sm:$0xf0]  ;;  %v4408_v14 = vld [vmem:[#allocation6 + $0xc4] sm:$0xf] }
  0x3d   : > { %v4214_v15 = vld [vmem:[#allocation6 + $0xd0] sm:$0xf0]  ;;  %662 = vmatpush.bf16.msra.mxu1 %v4233_v7  ;;  %v4213_v16 = vor.u32 %v4410_v13, %v4212_v11  ;;  %v4220_v18 = vld [vmem:[#allocation6 + $0xc8] sm:$0xf]  ;;  %v4411_v19 = vld [vmem:[#allocation6 + $0xd4] sm:$0xf0] }
  0x3e   : > { %711 = vmatpush.bf16.msra.mxu2 %v4237_v8  ;;  %v4217_v17 = vor.u32 %v4408_v14, %v4214_v15  ;;  %v4409_v20 = vld [vmem:[#allocation6 + $0xcc] sm:$0xf]  ;;  %760 = vmatpush.bf16.msra.mxu3 %v4241_v12  ;;  %v4221_v21 = vor.u32 %v4411_v19, %v4220_v18  ;;  %v4222_v22 = vld [vmem:[#allocation6 + $0xd8] sm:$0xf0]  ;;  %v4196_v23 = vld [vmem:[#allocation6 + $0xa0] sm:$0xf] }
  0x3f   : > { %v4406_v24 = vld [vmem:[#allocation6 + $0xac] sm:$0xf0]  ;;  %v4225_v25 = vor.u32 %v4409_v20, %v4222_v22  ;;  %v4404_v26 = vld [vmem:[#allocation6 + $0xa4] sm:$0xf]  ;;  %v4198_v27 = vld [vmem:[#allocation6 + $0xb0] sm:$0xf0] }
  0x40   : > { %v4204_v28 = vld [vmem:[#allocation6 + $0xa8] sm:$0xf]  ;;  %614 = vmatpush.bf16.msra.mxu0 %v4213_v16  ;;  %v4197_v29 = vor.u32 %v4406_v24, %v4196_v23  ;;  %v4407_v30 = vld [vmem:[#allocation6 + $0xb4] sm:$0xf0]  ;;  %v4405_v31 = vld [vmem:[#allocation6 + $0xac] sm:$0xf]  ;;  %v4201_v33 = vor.u32 %v4404_v26, %v4198_v27 }
  0x41   : > { %v4206_v32 = vld [vmem:[#allocation6 + $0xb8] sm:$0xf0]  ;;  %663 = vmatpush.bf16.msra.mxu1 %v4217_v17  ;;  %v4205_v34 = vor.u32 %v4407_v30, %v4204_v28  ;;  %v4180_v35 = vld [vmem:[#allocation6 + $0x80] sm:$0xf]  ;;  %v4402_v36 = vld [vmem:[#allocation6 + $0x8c] sm:$0xf0] }
  0x42   : > { %712 = vmatpush.bf16.msra.mxu2 %v4221_v21  ;;  %v4400_v37 = vld [vmem:[#allocation6 + $0x84] sm:$0xf]  ;;  %761 = vmatpush.bf16.msra.mxu3 %v4225_v25  ;;  %v4209_v38 = vor.u32 %v4405_v31, %v4206_v32  ;;  %v4182_v39 = vld [vmem:[#allocation6 + $0x90] sm:$0xf0]  ;;  %v4188_v40 = vld [vmem:[#allocation6 + $0x88] sm:$0xf]  ;;  %v4181_v44 = vor.u32 %v4402_v36, %v4180_v35 }
  0x43   : > { %v4403_v41 = vld [vmem:[#allocation6 + $0x94] sm:$0xf0]  ;;  %v4401_v42 = vld [vmem:[#allocation6 + $0x8c] sm:$0xf]  ;;  %v4190_v43 = vld [vmem:[#allocation6 + $0x98] sm:$0xf0]  ;;  %v4185_v45 = vor.u32 %v4400_v37, %v4182_v39 }
  0x44   : > { %615 = vmatpush.bf16.msra.mxu0 %v4197_v29  ;;  %v4189_v46 = vor.u32 %v4403_v41, %v4188_v40  ;;  %v4164_v47 = vld [vmem:[#allocation6 + $0x60] sm:$0xf]  ;;  %v4398_v48 = vld [vmem:[#allocation6 + $0x6c] sm:$0xf0]  ;;  %v4396_v49 = vld [vmem:[#allocation6 + $0x64] sm:$0xf]  ;;  %v4193_v50 = vor.u32 %v4401_v42, %v4190_v43 }
  0x45   : > { %664 = vmatpush.bf16.msra.mxu1 %v4201_v33  ;;  %v4166_v51 = vld [vmem:[#allocation6 + $0x70] sm:$0xf0]  ;;  %v4172_v52 = vld [vmem:[#allocation6 + $0x68] sm:$0xf]  ;;  %v4399_v53 = vld [vmem:[#allocation6 + $0x74] sm:$0xf0]  ;;  %v4165_v56 = vor.u32 %v4398_v48, %v4164_v47 }
  0x46   : > { %713 = vmatpush.bf16.msra.mxu2 %v4205_v34  ;;  %762 = vmatpush.bf16.msra.mxu3 %v4209_v38  ;;  %v4397_v54 = vld [vmem:[#allocation6 + $0x6c] sm:$0xf]  ;;  %v4174_v55 = vld [vmem:[#allocation6 + $0x78] sm:$0xf0]  ;;  %v4169_v57 = vor.u32 %v4396_v49, %v4166_v51  ;;  %v4173_v58 = vor.u32 %v4399_v53, %v4172_v52  ;;  %v4148_v59 = vld [vmem:[#allocation6 + $0x40] sm:$0xf] }
  0x47   : > { %v4394_v60 = vld [vmem:[#allocation6 + $0x4c] sm:$0xf0]  ;;  %v4392_v61 = vld [vmem:[#allocation6 + $0x44] sm:$0xf]  ;;  %v4177_v62 = vor.u32 %v4397_v54, %v4174_v55  ;;  %v4150_v63 = vld [vmem:[#allocation6 + $0x50] sm:$0xf0] }
  0x48   : > { %616 = vmatpush.bf16.msra.mxu0 %v4181_v44  ;;  %v4156_v0 = vld [vmem:[#allocation6 + $0x48] sm:$0xf]  ;;  %v4395_v1 = vld [vmem:[#allocation6 + $0x54] sm:$0xf0]  ;;  %v4393_v2 = vld [vmem:[#allocation6 + $0x4c] sm:$0xf]  ;;  %v4149_v4 = vor.u32 %v4394_v60, %v4148_v59  ;;  %v4153_v5 = vor.u32 %v4392_v61, %v4150_v63 }
  0x49   : > { %665 = vmatpush.bf16.msra.mxu1 %v4185_v45  ;;  %v4158_v3 = vld [vmem:[#allocation6 + $0x58] sm:$0xf0]  ;;  %v4157_v6 = vor.u32 %v4395_v1, %v4156_v0  ;;  %v4132_v7 = vld [vmem:[#allocation6 + $0x20] sm:$0xf]  ;;  %v4390_v8 = vld [vmem:[#allocation6 + $0x2c] sm:$0xf0] }
  0x4a   : > { %714 = vmatpush.bf16.msra.mxu2 %v4189_v46  ;;  %763 = vmatpush.bf16.msra.mxu3 %v4193_v50  ;;  %v4388_v9 = vld [vmem:[#allocation6 + $0x24] sm:$0xf]  ;;  %v4161_v10 = vor.u32 %v4393_v2, %v4158_v3  ;;  %v4134_v11 = vld [vmem:[#allocation6 + $0x30] sm:$0xf0]  ;;  %v4140_v12 = vld [vmem:[#allocation6 + $0x28] sm:$0xf]  ;;  %v4133_v16 = vor.u32 %v4390_v8, %v4132_v7 }
  0x4b   : > { %v4391_v13 = vld [vmem:[#allocation6 + $0x34] sm:$0xf0]  ;;  %v4389_v14 = vld [vmem:[#allocation6 + $0x2c] sm:$0xf]  ;;  %v4142_v15 = vld [vmem:[#allocation6 + $0x38] sm:$0xf0]  ;;  %v4137_v17 = vor.u32 %v4388_v9, %v4134_v11 }
  0x4c   : > { %617 = vmatpush.bf16.msra.mxu0 %v4165_v56  ;;  %v4141_v18 = vor.u32 %v4391_v13, %v4140_v12  ;;  %v4116_v19 = vld [vmem:[#allocation6] sm:$0xf]  ;;  %v4386_v20 = vld [vmem:[#allocation6 + $0xc] sm:$0xf0]  ;;  %v4384_v21 = vld [vmem:[#allocation6 + $0x4] sm:$0xf]  ;;  %v4145_v22 = vor.u32 %v4389_v14, %v4142_v15 }
  0x4d   : > { %666 = vmatpush.bf16.msra.mxu1 %v4169_v57  ;;  %v4118_v23 = vld [vmem:[#allocation6 + $0x10] sm:$0xf0]  ;;  %v4124_v24 = vld [vmem:[#allocation6 + $0x8] sm:$0xf]  ;;  %v4387_v25 = vld [vmem:[#allocation6 + $0x14] sm:$0xf0]  ;;  %v4117_v28 = vor.u32 %v4386_v20, %v4116_v19 }
  0x4e   : > { %715 = vmatpush.bf16.msra.mxu2 %v4173_v58  ;;  %764 = vmatpush.bf16.msra.mxu3 %v4177_v62  ;;  %v4385_v26 = vld [vmem:[#allocation6 + $0xc] sm:$0xf]  ;;  %v4126_v27 = vld [vmem:[#allocation6 + $0x18] sm:$0xf0]  ;;  %v4121_v29 = vor.u32 %v4384_v21, %v4118_v23  ;;  %v4125_v30 = vor.u32 %v4387_v25, %v4124_v24  ;;  %v4376_v32 = vld [vmem:[%s5191_s11] sm:$0xff]  ;;  %s8734_s28 = scalar_lea.vmem [#allocation11], %s4077_s27 }
  0x4f   : > { %v4129_v31 = vor.u32 %v4385_v26, %v4126_v27  ;;  %v4377_v33 = vld [vmem:[%s5191_s11 + $0x8] sm:$0xff]  ;;  %v4378_v34 = vld [vmem:[%s5191_s11 + $0x10] sm:$0xff]  ;;  %v4439_v35 = vld [vmem:[#allocation9 + $0xb8] sm:$0xff]  ;;  %s4448_s16 = sshll.u32 %s5092_s22, 6  ;;  %s3962_s13 = sshll.u32 %s8734_s28, 4  ;;  %s3963_s13 = int_to_ptr.vmem [resolvable:$true] %s3962_s13 }
  0x50   : > { %618 = vmatpush.bf16.msra.mxu0 %v4149_v4  ;;  %v4447_v36 = vld [vmem:[#allocation9 + $0xf8] sm:$0xff]  ;;  %v4438_v40 = vld [vmem:[#allocation9 + $0xb0] sm:$0xff]  ;;  %v4437_v45 = vld [vmem:[#allocation9 + $0xa8] sm:$0xff]  ;;  %s3961_s6 = scalar_lea.hbm %s8805_s5, %s4448_s16  ;;  %s3950_s22 = scalar_lea.sflag [#allocation5], %s5185_s17 }
  0x51   : > { %667 = vmatpush.bf16.msra.mxu1 %v4153_v5  ;;  %v4423_v37 = vld [vmem:[#allocation9 + $0x38] sm:$0xff]  ;;  %v4446_v41 = vld [vmem:[#allocation9 + $0xf0] sm:$0xff]  ;;  %v4445_v46 = vld [vmem:[#allocation9 + $0xe8] sm:$0xff]  ;;  %s3964_s12 = sshll.u32 %s3961_s6, 4  ;;  %s4976_s8 = scalar_lea.hbm %s8805_s5, 256  ;;  %s3965_s12 = int_to_ptr.hbm [resolvable:$true] %s3964_s12 }
  0x52   : > { %716 = vmatpush.bf16.msra.mxu2 %v4157_v6  ;;  %765 = vmatpush.bf16.msra.mxu3 %v4161_v10  ;;  %v4431_v38 = vld [vmem:[#allocation9 + $0x78] sm:$0xff]  ;;  %v4422_v42 = vld [vmem:[#allocation9 + $0x30] sm:$0xff]  ;;  %v4421_v47 = vld [vmem:[#allocation9 + $0x28] sm:$0xff]  ;;  %s4970_s14 = sshra.s32 %s3965_s12, 4  ;;  %s4971_s14 = int_to_ptr.hbm [resolvable:$true] %s4970_s14 }
  0x53   : > { %v4379_v39 = vld [vmem:[%s5191_s11 + $0x18] sm:$0xff]  ;;  %v4380_v44 = vld [vmem:[%s5191_s11 + $0x20] sm:$0xff]  ;;  %v4429_v48 = vld [vmem:[#allocation9 + $0x68] sm:$0xff]  ;;  %s4972_s15 = scalar_lea.hbm %s4971_s14, 64  ;;  %p4977_p7 = scmp.lt.s32.totalorder %s4971_s14, %s8805_s5 }
  0x54   : > { %619 = vmatpush.bf16.msra.mxu0 %v4133_v16  ;;  %v4430_v43 = vld [vmem:[#allocation9 + $0x70] sm:$0xff]  ;;  %v4381_v49 = vld [vmem:[%s5191_s11 + $0x28] sm:$0xff]  ;;  %v395_v56 = vld [vmem:[#allocation8] sm:$0xf]  ;;  %p4973_p1 = scmp.ne.s32.totalorder %s4971_s14, %s4972_s15  ;;  %p4978_p2 = scmp.lt.s32.totalorder %s4976_s8, %s4972_s15 }
  0x55   : > { %668 = vmatpush.bf16.msra.mxu1 %v4137_v17  ;;  %v4436_v50 = vld [vmem:[#allocation9 + $0xa0] sm:$0xff]  ;;  %v4382_v54 = vld [vmem:[%s5191_s11 + $0x30] sm:$0xff]  ;;  %v4383_v55 = vld [vmem:[%s5191_s11 + $0x38] sm:$0xff]  ;;  %v5213_v57 = vperm.slane %v395_v56, 0  ;;  %v5215_v59 = vperm.slane %v395_v56, 1  ;;  %v5220_v62 = vperm.slane %v395_v56, 2 }
  0x56   : > { %717 = vmatpush.bf16.msra.mxu2 %v4141_v18  ;;  %766 = vmatpush.bf16.msra.mxu3 %v4145_v22  ;;  %v4444_v51 = vld [vmem:[#allocation9 + $0xe0] sm:$0xff]  ;;  %v5222_v0 = vperm.slane %v395_v56, 3  ;;  %v4419_v21 = vld [vmem:[#allocation9 + $0x18] sm:$0xff]  ;;  %p4974_p4 = pnand %p4973_p1, %p5155_p0  ;;  %p4979_p9 = por %p4978_p2, %p4977_p7 }
  0x57   : > { %v4420_v52 = vld [vmem:[#allocation9 + $0x20] sm:$0xff]  ;;  %v4427_v22 = vld [vmem:[#allocation9 + $0x58] sm:$0xff] }
  0x58   : > { %620 = vmatpush.bf16.msra.mxu0 %v4117_v28  ;;  %v4428_v53 = vld [vmem:[#allocation9 + $0x60] sm:$0xff]  ;;  %p4975_p8 = pneg %p4974_p4 }
  0x59   : > { %669 = vmatpush.bf16.msra.mxu1 %v4121_v29  ;;  %v4435_v29 = vld [vmem:[#allocation9 + $0x98] sm:$0xff] }
  0x5a   : > { %718 = vmatpush.bf16.msra.mxu2 %v4125_v30  ;;  %767 = vmatpush.bf16.msra.mxu3 %v4129_v31  ;;  %v4443_v30 = vld [vmem:[#allocation9 + $0xd8] sm:$0xff]  ;;  %p4980_p10 = pnand %p4979_p9, %p4975_p8 }
  0x5b   : > { %621 = vmatmul.bf16.vlgmr.msra.gmra.mxu0 %v4376_v32 }
  0x5c   : > { %670 = vmatmul.bf16.vlgmr.msra.gmra.mxu1 %v4376_v32  ;;  %3673 = vmatpush.bf16.msrb.mxu0 %v4423_v37 }
  0x5d   : > { %719 = vmatmul.bf16.vlgmr.msra.gmra.mxu2 %v4376_v32  ;;  %768 = vmatmul.bf16.vlgmr.msra.gmra.mxu3 %v4376_v32 }
  0x5e   : > { %3771 = vmatpush.bf16.msrb.mxu2 %v4439_v35  ;;  %3820 = vmatpush.bf16.msrb.mxu3 %v4447_v36 }
  0x5f   : > { %3722 = vmatpush.bf16.msrb.mxu1 %v4431_v38 }
  0x60   : > { %3674 = vmatpush.bf16.msrb.mxu0 %v4422_v42 }
  0x62   : > { %3772 = vmatpush.bf16.msrb.mxu2 %v4438_v40  ;;  %3821 = vmatpush.bf16.msrb.mxu3 %v4446_v41 }
  0x63   : > { %3723 = vmatpush.bf16.msrb.mxu1 %v4430_v43 }
  0x64   : > { %3675 = vmatpush.bf16.msrb.mxu0 %v4421_v47 }
  0x66   : > { %3773 = vmatpush.bf16.msrb.mxu2 %v4437_v45  ;;  %3822 = vmatpush.bf16.msrb.mxu3 %v4445_v46 }
  0x67   : > { %3724 = vmatpush.bf16.msrb.mxu1 %v4429_v48 }
  0x68   : > { %3676 = vmatpush.bf16.msrb.mxu0 %v4420_v52 }
  0x6a   : > { %3774 = vmatpush.bf16.msrb.mxu2 %v4436_v50  ;;  %3823 = vmatpush.bf16.msrb.mxu3 %v4444_v51 }
  0x6b   : > { %626 = vmatmul.bf16.gmra.mxu0 %v4377_v33  ;;  %3725 = vmatpush.bf16.msrb.mxu1 %v4428_v53 }
  0x6c   : > { %675 = vmatmul.bf16.gmra.mxu1 %v4377_v33  ;;  %3677 = vmatpush.bf16.msrb.mxu0 %v4419_v21 }
  0x6d   : > { %724 = vmatmul.bf16.gmra.mxu2 %v4377_v33  ;;  %773 = vmatmul.bf16.gmra.mxu3 %v4377_v33 }
  0x6e   : > { %3775 = vmatpush.bf16.msrb.mxu2 %v4435_v29  ;;  %3824 = vmatpush.bf16.msrb.mxu3 %v4443_v30 }
  0x6f   : > { %3726 = vmatpush.bf16.msrb.mxu1 %v4427_v22 }
  0x7b   : > { %631 = vmatmul.bf16.gmra.mxu0 %v4378_v34 }
  0x7c   : > { %680 = vmatmul.bf16.gmra.mxu1 %v4378_v34 }
  0x7d   : > { %729 = vmatmul.bf16.gmra.mxu2 %v4378_v34  ;;  %778 = vmatmul.bf16.gmra.mxu3 %v4378_v34 }
  0x8b   : > { %636 = vmatmul.bf16.gmra.mxu0 %v4379_v39 }
  0x8c   : > { %685 = vmatmul.bf16.gmra.mxu1 %v4379_v39 }
  0x8d   : > { %734 = vmatmul.bf16.gmra.mxu2 %v4379_v39  ;;  %783 = vmatmul.bf16.gmra.mxu3 %v4379_v39 }
  0x9b   : > { %641 = vmatmul.bf16.gmra.mxu0 %v4380_v44 }
  0x9c   : > { %690 = vmatmul.bf16.gmra.mxu1 %v4380_v44 }
  0x9d   : > { %739 = vmatmul.bf16.gmra.mxu2 %v4380_v44  ;;  %788 = vmatmul.bf16.gmra.mxu3 %v4380_v44 }
  0xab   : > { %646 = vmatmul.bf16.gmra.mxu0 %v4381_v49 }
  0xac   : > { %695 = vmatmul.bf16.gmra.mxu1 %v4381_v49 }
  0xad   : > { %744 = vmatmul.bf16.gmra.mxu2 %v4381_v49  ;;  %793 = vmatmul.bf16.gmra.mxu3 %v4381_v49 }
  0xbb   : > { %651 = vmatmul.bf16.gmra.mxu0 %v4382_v54 }
  0xbc   : > { %700 = vmatmul.bf16.gmra.mxu1 %v4382_v54 }
  0xbd   : > { %749 = vmatmul.bf16.gmra.mxu2 %v4382_v54  ;;  %798 = vmatmul.bf16.gmra.mxu3 %v4382_v54 }
  0xcb   : > { %656 = vmatmul.bf16.gmra.mxu0 %v4383_v55 }
  0xcc   : > { %705 = vmatmul.bf16.gmra.mxu1 %v4383_v55 }
  0xcd   : > { %754 = vmatmul.bf16.gmra.mxu2 %v4383_v55  ;;  %803 = vmatmul.bf16.gmra.mxu3 %v4383_v55 }
  0xd8   : > { %v622_v58 = vpop.f32.mrf.mxu0 }
  0xd9   : > { %v5218_v60 = vadd.f32 %v622_v58, %v5213_v57  ;;  %v671_v61 = vpop.f32.mrf.mxu1 }
  0xda   : > { %v5225_v2 = vadd.f32 %v671_v61, %v5215_v59 }
  0xdb   : > { %v5228_v3 = vmul.f32 0.70710677, %v5218_v60 }
  0xdc   : > { %v5237_v6 = vmul.f32 0.70710677, %v5225_v2 }
  0xdd   : > { %v5240_v7 = vand.u32 2147483647, %v5228_v3 }
  0xde   : > { %v5249_v11 = vand.u32 2147483647, %v5237_v6 }
  0xdf   : > { %v1001_v13 = vmul.f32 0.3275911, %v5240_v7 }
  0xe0   : > { %v720_v63 = vpop.f32.mrf.mxu2  ;;  %v769_v1 = vpop.f32.mrf.mxu3  ;;  %v1002_v16 = vmul.f32 0.3275911, %v5249_v11 }
  0xe1   : > { %v5231_v4 = vadd.f32 %v720_v63, %v5220_v62  ;;  %v5234_v5 = vadd.f32 %v769_v1, %v5222_v0  ;;  %v624_v9 = vpop.f32.mrf.mxu0  ;;  %v5265_v18 = vadd.f32 1.0, %v1001_v13  ;;  %v673_v20 = vpop.f32.mrf.mxu1 }
  0xe2   : > { %v5252_v12 = vadd.f32 %v624_v9, %v5213_v57  ;;  %v5269_v24 = vadd.f32 1.0, %v1002_v16  ;;  %v5275_v26 = vadd.f32 %v673_v20, %v5215_v59 }
  0xe3   : > { %v5243_v8 = vmul.f32 0.70710677, %v5231_v4  ;;  %v5246_v10 = vmul.f32 0.70710677, %v5234_v5  ;;  %4580 = vrcp.f32 %v5265_v18  ;;  %v1138_v61 = vand.u32 2147483647, %v5265_v18 }
  0xe4   : > { %v5263_v17 = vmul.f32 0.70710677, %v5252_v12  ;;  %4582 = vrcp.f32 %v5269_v24  ;;  %v5285_v32 = vmul.f32 0.70710677, %v5275_v26  ;;  %v1140_v63 = vand.u32 2147483648, %v5265_v18 }
  0xe5   : > { %v5256_v14 = vand.u32 2147483647, %v5243_v8  ;;  %v5259_v15 = vand.u32 2147483647, %v5246_v10  ;;  %vm1134_vm0 = vweird.f32 %v5265_v18  ;;  %vm5340_vm2 = vcmp.eq.f32.partialorder %v1138_v61, 8.507059e+37 }
  0xe6   : > { %v5272_v25 = vand.u32 2147483647, %v5263_v17  ;;  %v5295_v37 = vand.u32 2147483647, %v5285_v32  ;;  %vm1149_vm3 = vweird.f32 %v5269_v24  ;;  %v1155_v30 = vand.u32 2147483648, %v5269_v24 }
  0xe7   : > { %v1003_v19 = vmul.f32 0.3275911, %v5256_v14  ;;  %v1004_v23 = vmul.f32 0.3275911, %v5259_v15 }
  0xe8   : > { %v1005_v31 = vmul.f32 0.3275911, %v5272_v25  ;;  %v722_v33 = vpop.f32.mrf.mxu2  ;;  %v1006_v43 = vmul.f32 0.3275911, %v5295_v37  ;;  %v771_v49 = vpop.f32.mrf.mxu3 }
  0xe9   : > { %v5278_v27 = vadd.f32 1.0, %v1003_v19  ;;  %v5280_v28 = vadd.f32 1.0, %v1004_v23  ;;  %v4581_v34 = vpop.eup %4580  ;;  %v5290_v35 = vadd.f32 %v722_v33, %v5220_v62  ;;  %v5323_v54 = vadd.f32 %v771_v49, %v5222_v0 }
  0xea   : > { %v5292_v36 = vadd.f32 1.0, %v1005_v31  ;;  %v5297_v38 = vpop.eup %4582  ;;  %v1130_v39 = vmul.f32 %v4581_v34, %v5265_v18  ;;  %v5318_v50 = vadd.f32 1.0, %v1006_v43  ;;  %vm1135_vm1 = vweird.f32 %v4581_v34 }
  0xeb   : > { %4584 = vrcp.f32 %v5278_v27  ;;  %v5303_v41 = vmul.f32 0.70710677, %v5290_v35  ;;  %v1145_v45 = vmul.f32 %v5297_v38, %v5269_v24  ;;  %v5334_v16 = vmul.f32 0.70710677, %v5323_v54  ;;  %vm5346_vm4 = vmor %vm1134_vm0, %vm1135_vm1 }
  0xec   : > { %4586 = vrcp.f32 %v5280_v28  ;;  %v1131_v44 = vsub.f32 1.0, %v1130_v39  ;;  %v1141_v18 = vor.u32 1.1754944e-38, %v1140_v63  ;;  %v1153_v23 = vand.u32 2147483647, %v5269_v24 }
  0xed   : > { %4588 = vrcp.f32 %v5292_v36  ;;  %v5316_v48 = vand.u32 2147483647, %v5303_v41  ;;  %v1146_v53 = vsub.f32 1.0, %v1145_v45  ;;  %vm1150_vm5 = vweird.f32 %v5297_v38 }
  0xee   : > { %v1132_v52 = vmul.f32 %v4581_v34, %v1131_v44  ;;  %4590 = vrcp.f32 %v5318_v50  ;;  %v1168_v31 = vand.u32 2147483647, %v5278_v27  ;;  %v5360_v45 = vand.u32 2147483647, %v5334_v16  ;;  %vm5368_vm8 = vmor %vm1149_vm3, %vm1150_vm5 }
  0xef   : > { %v1007_v58 = vmul.f32 0.3275911, %v5316_v48  ;;  %v1147_v13 = vmul.f32 %v5297_v38, %v1146_v53  ;;  %vm1164_vm9 = vweird.f32 %v5278_v27  ;;  %v1185_v53 = vand.u32 2147483648, %v5280_v28 }
  0xf0   : > { %v1133_v9 = vadd.f32 %v4581_v34, %v1132_v52  ;;  %v1183_v52 = vand.u32 2147483647, %v5280_v28  ;;  %vm1179_vm11 = vweird.f32 %v5280_v28  ;;  %vm1154_vm12 = vcmp.eq.f32.partialorder %v1153_v23, 8.507059e+37 }
  0xf1   : > { %v5300_v40 = vpop.eup %4584  ;;  %v5338_v21 = vadd.f32 1.0, %v1007_v58  ;;  %v1148_v44 = vadd.f32 %v5297_v38, %v1147_v13  ;;  %v1008_v63 = vmul.f32 0.3275911, %v5360_v45  ;;  %vm1169_vm14 = vcmp.eq.f32.partialorder %v1168_v31, 8.507059e+37 }
  0xf2   : > { %v5305_v42 = vpop.eup %4586  ;;  %v1160_v46 = vmul.f32 %v5300_v40, %v5278_v27  ;;  %v1137_v43 = vsel %vm5346_vm4, %v4581_v34, %v1133_v9  ;;  %vm1165_vm6 = vweird.f32 %v5300_v40  ;;  %v1170_v34 = vand.u32 2147483648, %v5278_v27 }
  0xf3   : > { %v1175_v47 = vmul.f32 %v5305_v42, %v5280_v28  ;;  %v5320_v51 = vpop.eup %4588  ;;  %vm1180_vm7 = vweird.f32 %v5305_v42  ;;  %4592 = vrcp.f32 %v5338_v21  ;;  %vm5380_vm10 = vmor %vm1164_vm9, %vm1165_vm6  ;;  %v1152_v27 = vsel %vm5368_vm8, %v5297_v38, %v1148_v44 }
  0xf4   : > { %v1161_v55 = vsub.f32 1.0, %v1160_v46  ;;  %v1190_v1 = vmul.f32 %v5320_v51, %v5292_v36  ;;  %v5353_v39 = vpop.eup %4590  ;;  %vm5391_vm13 = vmor %vm1179_vm11, %vm1180_vm7  ;;  %v1171_v38 = vor.u32 1.1754944e-38, %v1170_v34  ;;  %vm1184_vm15 = vcmp.eq.f32.partialorder %v1183_v52, 8.507059e+37 }
  0xf5   : > { %v1176_v56 = vsub.f32 1.0, %v1175_v47  ;;  %v1205_v58 = vmul.f32 %v5353_v39, %v5318_v50  ;;  %vm1195_vm0 = vweird.f32 %v5320_v51  ;;  %vm1194_vm1 = vweird.f32 %v5292_v36 }
  0xf6   : > { %v1162_v19 = vmul.f32 %v5300_v40, %v1161_v55  ;;  %v1191_v33 = vsub.f32 1.0, %v1190_v1  ;;  %v5378_v55 = vsel %vm5340_vm2, %v1141_v18, %v1137_v43  ;;  %v1156_v1 = vor.u32 1.1754944e-38, %v1155_v30  ;;  %vm1196_vm2 = vmor %vm1194_vm1, %vm1195_vm0 }
  0xf7   : > { %v1177_v20 = vmul.f32 %v5305_v42, %v1176_v56  ;;  %v2089_v13 = vmul.f32 1.0614054, %v5378_v55  ;;  %v1206_v23 = vsub.f32 1.0, %v1205_v58  ;;  %v5414_v30 = vadd.f32 1.0, %v1008_v63 }
  0xf8   : > { %v1163_v46 = vadd.f32 %v5300_v40, %v1162_v19  ;;  %v1192_v24 = vmul.f32 %v5320_v51, %v1191_v33  ;;  %v1186_v19 = vor.u32 1.1754944e-38, %v1185_v53  ;;  %v5405_v22 = vsel %vm1154_vm12, %v1156_v1, %v1152_v27 }
  0xf9   : > { %v1178_v47 = vadd.f32 %v5305_v42, %v1177_v20  ;;  %v5403_v20 = vpop.eup %4592  ;;  %v1198_v31 = vand.u32 2147483647, %v5292_v36  ;;  %v2153_v33 = vadd.f32 -1.4531521, %v2089_v13  ;;  %v2090_v43 = vmul.f32 1.0614054, %v5405_v22 }
  0xfa   : > { %v1167_v28 = vsel %vm5380_vm10, %v5300_v40, %v1163_v46  ;;  %v1193_v18 = vadd.f32 %v5320_v51, %v1192_v24  ;;  %v1220_v44 = vmul.f32 %v5403_v20, %v5338_v21  ;;  %v1207_v34 = vmul.f32 %v5353_v39, %v1206_v23 }
  0xfb   : > { %v1182_v9 = vsel %vm5391_vm13, %v5305_v42, %v1178_v47  ;;  %v5409_v40 = vsel %vm1169_vm14, %v1171_v38, %v1167_v28  ;;  %v1200_v42 = vand.u32 2147483648, %v5292_v36  ;;  %4594 = vrcp.f32 %v5414_v30 }
  0xfc   : > { %v5411_v29 = vsel %vm1184_vm15, %v1186_v19, %v1182_v9  ;;  %v2091_v46 = vmul.f32 1.0614054, %v5409_v40  ;;  %v1197_v49 = vsel %vm1196_vm2, %v5320_v51, %v1193_v18  ;;  %vm1199_vm3 = vcmp.eq.f32.partialorder %v1198_v31, 8.507059e+37 }
  0xfd   : > { %v2092_v47 = vmul.f32 1.0614054, %v5411_v29  ;;  %v1201_v52 = vor.u32 1.1754944e-38, %v1200_v42  ;;  %v2217_v36 = vmul.f32 %v2153_v33, %v5378_v55  ;;  %v2154_v53 = vadd.f32 -1.4531521, %v2090_v43 }
  0xfe   : > { %v1221_v24 = vsub.f32 1.0, %v1220_v44  ;;  %v2155_v58 = vadd.f32 -1.4531521, %v2091_v46  ;;  %v1208_v61 = vadd.f32 %v5353_v39, %v1207_v34  ;;  %vm1210_vm4 = vweird.f32 %v5353_v39 }
  0xff   : > { %v5427_v56 = vsel %vm1199_vm3, %v1201_v52, %v1197_v49  ;;  %v2156_v27 = vadd.f32 -1.4531521, %v2092_v47  ;;  %v1215_v51 = vand.u32 2147483648, %v5318_v50  ;;  %vm1209_vm5 = vweird.f32 %v5318_v50  ;;  %v4434_v52 = vld [vmem:[#allocation9 + $0x90] sm:$0xff] }
 0x100   : > { %v2093_v63 = vmul.f32 1.0614054, %v5427_v56  ;;  %v1213_v1 = vand.u32 2147483647, %v5318_v50  ;;  %v2218_v9 = vmul.f32 %v2154_v53, %v5405_v22  ;;  %vm1211_vm6 = vmor %vm1209_vm5, %vm1210_vm4  ;;  %v1222_v13 = vmul.f32 %v5403_v20, %v1221_v24  ;;  %v4418_v53 = vld [vmem:[#allocation9 + $0x10] sm:$0xff]  ;;  %3776 = vmatpush.bf16.msrb.mxu2 %v4434_v52 }
 0x101   : > { %v5435_v28 = vpop.eup %4594  ;;  %v2281_v38 = vadd.f32 1.4214138, %v2217_v36  ;;  %v2219_v19 = vmul.f32 %v2155_v58, %v5409_v40  ;;  %v2220_v18 = vmul.f32 %v2156_v27, %v5411_v29  ;;  %v1212_v23 = vsel %vm1211_vm6, %v5353_v39, %v1208_v61  ;;  %v4442_v36 = vld [vmem:[#allocation9 + $0xd0] sm:$0xff]  ;;  %3678 = vmatpush.bf16.msrb.mxu0 %v4418_v53 }
 0x102   : > { %v1216_v42 = vor.u32 1.1754944e-38, %v1215_v51  ;;  %v2665_v31 = vmul.f32 %v5240_v7, %v5240_v7  ;;  %v2157_v33 = vadd.f32 -1.4531521, %v2093_v63  ;;  %vm1214_vm7 = vcmp.eq.f32.partialorder %v1213_v1, 8.507059e+37  ;;  %3825 = vmatpush.bf16.msrb.mxu3 %v4442_v36  ;;  %v4426_v1 = vld [vmem:[#allocation9 + $0x50] sm:$0xff] }
 0x103   : > { %v1235_v50 = vmul.f32 %v5435_v28, %v5414_v30  ;;  %v2282_v43 = vadd.f32 1.4214138, %v2218_v9  ;;  %v1223_v46 = vadd.f32 %v5403_v20, %v1222_v13  ;;  %vm1225_vm8 = vweird.f32 %v5403_v20  ;;  %3727 = vmatpush.bf16.msrb.mxu1 %v4426_v1 }
 0x104   : > { %v5446_v44 = vsel %vm1214_vm7, %v1216_v42, %v1212_v23  ;;  %v2345_v47 = vmul.f32 %v2281_v38, %v5378_v55  ;;  %v2283_v49 = vadd.f32 1.4214138, %v2219_v19  ;;  %v2284_v39 = vadd.f32 1.4214138, %v2220_v18 }
 0x105   : > { %v1230_v34 = vand.u32 2147483648, %v5338_v21  ;;  %vm1224_vm9 = vweird.f32 %v5338_v21  ;;  %v1228_v7 = vand.u32 2147483647, %v5338_v21  ;;  %v2221_v24 = vmul.f32 %v2157_v33, %v5427_v56 }
 0x106   : > { %v2094_v58 = vmul.f32 1.0614054, %v5446_v44  ;;  %vm5456_vm10 = vmor %vm1224_vm9, %vm1225_vm8  ;;  %v1236_v61 = vsub.f32 1.0, %v1235_v50  ;;  %v2346_v51 = vmul.f32 %v2282_v43, %v5405_v22  ;;  %v2666_v63 = vmul.f32 %v5249_v11, %v5249_v11 }
 0x107   : > { %v1227_v21 = vsel %vm5456_vm10, %v5403_v20, %v1223_v46  ;;  %v2409_v9 = vadd.f32 -0.28449672, %v2345_v47  ;;  %v2729_v13 = vsub.f32 0.0, %v2665_v31  ;;  %v2347_v38 = vmul.f32 %v2283_v49, %v5409_v40 }
 0x108   : > { %v1231_v19 = vor.u32 1.1754944e-38, %v1230_v34  ;;  %v2667_v18 = vmul.f32 %v5256_v14, %v5256_v14  ;;  %v2348_v23 = vmul.f32 %v2284_v39, %v5411_v29  ;;  %v2668_v11 = vmul.f32 %v5259_v15, %v5259_v15 }
 0x109   : > { %vm1229_vm11 = vcmp.eq.f32.partialorder %v1228_v7, 8.507059e+37  ;;  %v2285_v20 = vadd.f32 1.4214138, %v2221_v24  ;;  %v2158_v42 = vadd.f32 -1.4531521, %v2094_v58  ;;  %v1237_v31 = vmul.f32 %v5435_v28, %v1236_v61 }
 0x10a   : > { %v5472_v33 = vsel %vm1229_vm11, %v1231_v19, %v1227_v21  ;;  %v2410_v50 = vadd.f32 -0.28449672, %v2346_v51  ;;  %v2730_v43 = vsub.f32 0.0, %v2666_v63  ;;  %v2473_v46 = vmul.f32 %v2409_v9, %v5378_v55 }
 0x10b   : > { %v2793_v47 = vmul.f32 1.442695, %v2729_v13  ;;  %v2411_v49 = vadd.f32 -0.28449672, %v2347_v38  ;;  %v2731_v14 = vsub.f32 0.0, %v2667_v18  ;;  %v2732_v39 = vsub.f32 0.0, %v2668_v11 }
 0x10c   : > { %v2412_v34 = vadd.f32 -0.28449672, %v2348_v23  ;;  %v2095_v52 = vmul.f32 1.0614054, %v5472_v33  ;;  %v2349_v15 = vmul.f32 %v2285_v20, %v5427_v56  ;;  %v2222_v7 = vmul.f32 %v2158_v42, %v5446_v44 }
 0x10d   : > { %v1238_v36 = vadd.f32 %v5435_v28, %v1237_v31  ;;  %vm1240_vm12 = vweird.f32 %v5435_v28  ;;  %v2474_v53 = vmul.f32 %v2410_v50, %v5405_v22  ;;  %v2795_v24 = vmul.f32 1.442695, %v2730_v43 }
 0x10e   : > { %v2669_v58 = vmul.f32 %v5272_v25, %v5272_v25  ;;  %v1245_v27 = vand.u32 2147483648, %v5414_v30  ;;  %v2537_v61 = vadd.f32 0.2548296, %v2473_v46  ;;  %v2475_v51 = vmul.f32 %v2411_v49, %v5409_v40 }
 0x10f   : > { %vm1239_vm13 = vweird.f32 %v5414_v30  ;;  %v1243_v63 = vand.u32 2147483647, %v5414_v30  ;;  %4596 = vpow2.f32 %v2793_v47  ;;  %v2797_v21 = vmul.f32 1.442695, %v2731_v14  ;;  %v627_v30 = vpop.f32.mrf.mxu0  ;;  %v676_v47 = vpop.f32.mrf.mxu1 }
 0x110   : > { %v2476_v1 = vmul.f32 %v2412_v34, %v5411_v29  ;;  %v2159_v9 = vadd.f32 -1.4531521, %v2095_v52  ;;  %vm5489_vm14 = vmor %vm1239_vm13, %vm1240_vm12  ;;  %v2799_v38 = vmul.f32 1.442695, %v2732_v39  ;;  %v2413_v25 = vadd.f32 -0.28449672, %v2349_v15 }
 0x111   : > { %v2286_v19 = vadd.f32 1.4214138, %v2222_v7  ;;  %v1242_v18 = vsel %vm5489_vm14, %v5435_v28, %v1238_v36  ;;  %v2538_v23 = vadd.f32 0.2548296, %v2474_v53  ;;  %v2733_v11 = vsub.f32 0.0, %v2669_v58 }
 0x112   : > { %v1246_v20 = vor.u32 1.1754944e-38, %v1245_v27  ;;  %v2601_v42 = vmul.f32 %v2537_v61, %v5378_v55  ;;  %4598 = vpow2.f32 %v2795_v24  ;;  %v2539_v31 = vadd.f32 0.2548296, %v2475_v51 }
 0x113   : > { %vm1244_vm15 = vcmp.eq.f32.partialorder %v1243_v63, 8.507059e+37  ;;  %4600 = vpow2.f32 %v2797_v21  ;;  %v2540_v50 = vadd.f32 0.2548296, %v2476_v1  ;;  %v2223_v43 = vmul.f32 %v2159_v9, %v5472_v33 }
 0x114   : > { %v5498_v46 = vsel %vm1244_vm15, %v1246_v20, %v1242_v18  ;;  %4602 = vpow2.f32 %v2799_v38  ;;  %v2477_v49 = vmul.f32 %v2413_v25, %v5427_v56  ;;  %v2350_v28 = vmul.f32 %v2286_v19, %v5446_v44 }
 0x115   : > { %v5503_v14 = vadd.f32 %v627_v30, %v5213_v57  ;;  %v4597_v34 = vpop.eup %4596  ;;  %v2602_v55 = vmul.f32 %v2538_v23, %v5405_v22  ;;  %v2801_v39 = vmul.f32 1.442695, %v2733_v11  ;;  %v2670_v52 = vmul.f32 %v5295_v37, %v5295_v37 }
 0x116   : > { %v2921_v15 = vmul.f32 %v4597_v34, %v2601_v42  ;;  %v2603_v7 = vmul.f32 %v2539_v31, %v5409_v40  ;;  %v2096_v36 = vmul.f32 1.0614054, %v5498_v46  ;;  %v5511_v53 = vadd.f32 %v676_v47, %v5215_v59  ;;  %v725_v47 = vpop.f32.mrf.mxu2 }
 0x117   : > { %v2604_v24 = vmul.f32 %v2540_v50, %v5411_v29  ;;  %v2287_v58 = vadd.f32 1.4214138, %v2223_v43  ;;  %v2541_v61 = vadd.f32 0.2548296, %v2477_v49  ;;  %v2414_v51 = vadd.f32 -0.28449672, %v2350_v28 }
 0x118   : > { %v4599_v27 = vpop.eup %4598  ;;  %v5515_v22 = vmul.f32 0.70710677, %v5503_v14  ;;  %v5518_v37 = vmul.f32 0.5, %v5218_v60  ;;  %4604 = vpow2.f32 %v2801_v39  ;;  %v2734_v40 = vsub.f32 0.0, %v2670_v52 }
 0x119   : > { %v4601_v63 = vpop.eup %4600  ;;  %v2922_v21 = vmul.f32 %v4599_v27, %v2602_v55  ;;  %v2985_v9 = vsub.f32 1.0, %v2921_v15  ;;  %v2160_v38 = vadd.f32 -1.4531521, %v2096_v36  ;;  %v5521_v29 = vmul.f32 0.70710677, %v5511_v53 }
 0x11a   : > { %8985 = vst [vmem:[#allocation16_spill] sm:$0xff] %v5515_v22  ;;  %v4603_v1 = vpop.eup %4602  ;;  %v2923_v13 = vmul.f32 %v4601_v63, %v2603_v7  ;;  %v5524_v25 = vmul.f32 0.5, %v5225_v2  ;;  %v2351_v18 = vmul.f32 %v2287_v58, %v5472_v33  ;;  %v2671_v60 = vmul.f32 %v5316_v48, %v5316_v48 }
 0x11b   : > { %8986 = vst [vmem:[#allocation17_spill] sm:$0xff] %v5521_v29  ;;  %v2924_v19 = vmul.f32 %v4603_v1, %v2604_v24  ;;  %vm3049_vm0 = vcmp.lt.f32.partialorder %v5228_v3, 0.0  ;;  %v2605_v23 = vmul.f32 %v2541_v61, %v5427_v56  ;;  %v2478_v11 = vmul.f32 %v2414_v51, %v5446_v44  ;;  %v774_v24 = vpop.f32.mrf.mxu3 }
 0x11c   : > { %v945_v20 = vand.u32 2147483647, %v5515_v22  ;;  %v2986_v30 = vsub.f32 1.0, %v2922_v21  ;;  %vm3050_vm1 = vcmp.lt.f32.partialorder %v5237_v6, 0.0  ;;  %v5535_v2 = vmul.f32 0.5, %v5231_v4 }
 0x11d   : > { %v2803_v42 = vmul.f32 1.442695, %v2734_v40  ;;  %v3113_v31 = vsub.f32 0.0, %v2985_v9  ;;  %v2987_v50 = vsub.f32 1.0, %v2923_v13  ;;  %v2224_v43 = vmul.f32 %v2160_v38, %v5498_v46 }
 0x11e   : > { %v5539_v48 = vand.u32 2147483647, %v5521_v29  ;;  %v4605_v56 = vpop.eup %4604  ;;  %vm3051_vm2 = vcmp.lt.f32.partialorder %v5243_v8, 0.0  ;;  %v2988_v49 = vsub.f32 1.0, %v2924_v19  ;;  %v2415_v28 = vadd.f32 -0.28449672, %v2351_v18 }
 0x11f   : > { %v2735_v34 = vsub.f32 0.0, %v2671_v60  ;;  %v5543_v55 = vmul.f32 0.5, %v5234_v5  ;;  %v2925_v4 = vmul.f32 %v4605_v56, %v2605_v23  ;;  %v2542_v39 = vadd.f32 0.2548296, %v2478_v11  ;;  %v4417_v60 = vld [vmem:[#allocation9 + $0x8] sm:$0xff] }
 0x120   : > { %v1009_v52 = vmul.f32 0.3275911, %v945_v20  ;;  %v3114_v15 = vsub.f32 0.0, %v2986_v30  ;;  %v5546_v7 = vmul.f32 0.5, %v5252_v12  ;;  %4606 = vpow2.f32 %v2803_v42  ;;  %v4425_v23 = vld [vmem:[#allocation9 + $0x48] sm:$0xff]  ;;  %3679 = vmatpush.bf16.msrb.mxu0 %v4417_v60 }
 0x121   : > { %v5549_v36 = vadd.f32 %v725_v47, %v5220_v62  ;;  %v3177_v58 = vsel %vm3049_vm0, %v3113_v31, %v2985_v9  ;;  %v3115_v27 = vsub.f32 0.0, %v2987_v50  ;;  %v2288_v61 = vadd.f32 1.4214138, %v2224_v43  ;;  %3728 = vmatpush.bf16.msrb.mxu1 %v4425_v23 }
 0x122   : > { %v1010_v5 = vmul.f32 0.3275911, %v5539_v48  ;;  %v3116_v51 = vsub.f32 0.0, %v2988_v49  ;;  %v2479_v63 = vmul.f32 %v2415_v28, %v5472_v33  ;;  %v2805_v21 = vmul.f32 1.442695, %v2735_v34 }
 0x123   : > { %v2672_v12 = vmul.f32 %v5360_v45, %v5360_v45  ;;  %v2989_v40 = vsub.f32 1.0, %v2925_v4  ;;  %v2606_v1 = vmul.f32 %v2542_v39, %v5446_v44  ;;  %v5558_v13 = vadd.f32 1.0, %v1009_v52  ;;  %v629_v4 = vpop.f32.mrf.mxu0 }
 0x124   : > { %v5561_v38 = vadd.f32 %v774_v24, %v5222_v0  ;;  %v3241_v3 = vadd.f32 1.0, %v3177_v58  ;;  %vm3052_vm3 = vcmp.lt.f32.partialorder %v5246_v10, 0.0  ;;  %vm3053_vm4 = vcmp.lt.f32.partialorder %v5263_v17, 0.0 }
 0x125   : > { %v5566_v9 = vmul.f32 0.70710677, %v5549_v36  ;;  %v3178_v19 = vsel %vm3050_vm1, %v3114_v15, %v2986_v30  ;;  %v3179_v45 = vsel %vm3051_vm2, %v3115_v27, %v2987_v50  ;;  %v2352_v44 = vmul.f32 %v2288_v61, %v5498_v46  ;;  %v4441_v27 = vld [vmem:[#allocation9 + $0xc8] sm:$0xff] }
 0x126   : > { %v5573_v18 = vadd.f32 1.0, %v1010_v5  ;;  %v4607_v11 = vpop.eup %4606  ;;  %v3180_v42 = vsel %vm3052_vm3, %v3116_v51, %v2988_v49  ;;  %v2543_v10 = vadd.f32 0.2548296, %v2479_v63  ;;  %4608 = vpow2.f32 %v2805_v21  ;;  %3826 = vmatpush.bf16.msrb.mxu3 %v4441_v27 }
 0x127   : > { %8987 = vst [vmem:[#allocation18_spill] sm:$0xff] %v5566_v9  ;;  %v2736_v31 = vsub.f32 0.0, %v2672_v12  ;;  %v3117_v43 = vsub.f32 0.0, %v2989_v40  ;;  %v2926_v47 = vmul.f32 %v4607_v11, %v2606_v1  ;;  %4610 = vrcp.f32 %v5558_v13 }
 0x128   : > { %v5577_v6 = vmul.f32 0.70710677, %v5561_v38  ;;  %v3242_v8 = vadd.f32 1.0, %v3178_v19  ;;  %v5580_v30 = vmul.f32 0.5, %v5275_v26  ;;  %v5583_v50 = vmul.f32 0.5, %v5290_v35  ;;  %v727_v19 = vpop.f32.mrf.mxu2 }
 0x129   : > { %v947_v56 = vand.u32 2147483647, %v5566_v9  ;;  %v3243_v49 = vadd.f32 1.0, %v3179_v45  ;;  %v2416_v28 = vadd.f32 -0.28449672, %v2352_v44  ;;  %v2673_v34 = vmul.f32 %v945_v20, %v945_v20  ;;  %v4433_v20 = vld [vmem:[#allocation9 + $0x88] sm:$0xff] }
 0x12a   : > { %8988 = vst [vmem:[#allocation19_spill] sm:$0xff] %v5577_v6  ;;  %4612 = vrcp.f32 %v5573_v18  ;;  %v3244_v39 = vadd.f32 1.0, %v3180_v42  ;;  %vm3054_vm5 = vcmp.lt.f32.partialorder %v5285_v32, 0.0  ;;  %v2607_v52 = vmul.f32 %v2543_v10, %v5472_v33  ;;  %3777 = vmatpush.bf16.msrb.mxu2 %v4433_v20 }
 0x12b   : > { %v2807_v15 = vmul.f32 1.442695, %v2736_v31  ;;  %v5590_v26 = vmul.f32 %v3241_v3, %v5518_v37  ;;  %v3181_v35 = vsel %vm3053_vm4, %v3117_v43, %v2989_v40  ;;  %v2990_v24 = vsub.f32 1.0, %v2926_v47 }
 0x12c   : > { %v5595_v58 = vand.u32 2147483647, %v5577_v6  ;;  %v4609_v61 = vpop.eup %4608  ;;  %v5598_v5 = vmul.f32 %v3242_v8, %v5524_v25  ;;  %v5601_v51 = vmul.f32 0.5, %v5323_v54  ;;  %v1011_v33 = vmul.f32 0.3275911, %v947_v56  ;;  %v678_v25 = vpop.f32.mrf.mxu1 }
 0x12d   : > { %v5604_v37 = vadd.f32 %v629_v4, %v5213_v57  ;;  %v5606_v63 = vpop.eup %4610  ;;  %v5609_v17 = vmul.f32 %v3243_v49, %v5535_v2  ;;  %v2480_v21 = vmul.f32 %v2416_v28, %v5498_v46  ;;  %v5613_v12 = vmul.f32 0.5, %v5503_v14 }
 0x12e   : > { %v2737_v40 = vsub.f32 0.0, %v2673_v34  ;;  %v5616_v54 = vmul.f32 %v3244_v39, %v5543_v55  ;;  %v3245_v1 = vadd.f32 1.0, %v3181_v35  ;;  %v2927_v3 = vmul.f32 %v4609_v61, %v2607_v52  ;;  %v776_v52 = vpop.f32.mrf.mxu3 }
 0x12f   : > { %8989 = vst [vmem:[#allocation20_spill] sm:$0xff] %v5613_v12  ;;  %4614 = vpow2.f32 %v2807_v15  ;;  %v3118_v2 = vsub.f32 0.0, %v2990_v24  ;;  %v5621_v44 = vmul.f32 0.5, %v5511_v53  ;;  %v2674_v14 = vmul.f32 %v5539_v48, %v5539_v48 }
 0x130   : > { %v5618_v45 = vpop.eup %4612  ;;  %v1012_v60 = vmul.f32 0.3275911, %v5595_v58  ;;  %v1250_v23 = vmul.f32 %v5606_v63, %v5558_v13  ;;  %v5628_v55 = vadd.f32 1.0, %v1011_v33  ;;  %v5631_v11 = vmul.f32 0.70710677, %v5604_v37 }
 0x131   : > { %8990 = vst [vmem:[#allocation21_spill] sm:$0xff] %v5621_v44  ;;  %v5634_v42 = vadd.f32 %v678_v25, %v5215_v59  ;;  %vm3055_vm6 = vcmp.lt.f32.partialorder %v5303_v41, 0.0  ;;  %v2544_v53 = vadd.f32 0.2548296, %v2480_v21  ;;  %v1260_v10 = vand.u32 2147483648, %v5558_v13 }
 0x132   : > { %8991 = vst [vmem:[#allocation22_spill] sm:$0xff] %v5628_v55  ;;  %v2809_v31 = vmul.f32 1.442695, %v2737_v40  ;;  %v5639_v48 = vadd.f32 %v727_v19, %v5220_v62  ;;  %v5642_v43 = vmul.f32 %v3245_v1, %v5546_v7  ;;  %v2991_v47 = vsub.f32 1.0, %v2927_v3 }
 0x133   : > { %8992 = vst [vmem:[#allocation23_spill] sm:$0xff] %v5631_v11  ;;  %v1265_v49 = vmul.f32 %v5618_v45, %v5573_v18  ;;  %v3182_v28 = vsel %vm3054_vm5, %v3118_v2, %v2990_v24  ;;  %v2738_v34 = vsub.f32 0.0, %v2674_v14  ;;  %v2675_v4 = vmul.f32 %v947_v56, %v947_v56 }
 0x134   : > { %v5649_v39 = vadd.f32 1.0, %v1012_v60  ;;  %v1251_v35 = vsub.f32 1.0, %v1250_v23  ;;  %4616 = vrcp.f32 %v5628_v55  ;;  %v949_v7 = vand.u32 2147483647, %v5631_v11 }
 0x135   : > { %v4615_v15 = vpop.eup %4614  ;;  %v5654_v20 = vmul.f32 0.70710677, %v5634_v42  ;;  %v2608_v27 = vmul.f32 %v2544_v53, %v5498_v46  ;;  %v5657_v61 = vor.u32 1.1754944e-38, %v1260_v10  ;;  %4618 = vpow2.f32 %v2809_v31 }
 0x136   : > { %8993 = vst [vmem:[#allocation24_spill] sm:$0xff] %v5649_v39  ;;  %v5660_v32 = vmul.f32 0.70710677, %v5639_v48  ;;  %v3246_v56 = vadd.f32 1.0, %v3182_v28  ;;  %v3119_v24 = vsub.f32 0.0, %v2991_v47  ;;  %v1266_v33 = vsub.f32 1.0, %v1265_v49 }
 0x137   : > { %8994 = vst [vmem:[#allocation25_spill] sm:$0xff] %v5654_v20  ;;  %v5663_v21 = vadd.f32 %v776_v52, %v5222_v0  ;;  %v1275_v40 = vand.u32 2147483648, %v5573_v18  ;;  %v5667_v25 = vmul.f32 0.5, %v5549_v36  ;;  %v2739_v1 = vsub.f32 0.0, %v2675_v4 }
 0x138   : > { %8995 = vst [vmem:[#allocation26_spill] sm:$0xff] %v5660_v32  ;;  %4620 = vrcp.f32 %v5649_v39  ;;  %v1252_v46 = vmul.f32 %v5606_v63, %v1251_v35  ;;  %v2811_v3 = vmul.f32 1.442695, %v2738_v34  ;;  %v1013_v19 = vmul.f32 0.3275911, %v949_v7 }
 0x139   : > { %8996 = vst [vmem:[#allocation27_spill] sm:$0xff] %v5667_v25  ;;  %v950_v2 = vand.u32 2147483647, %v5654_v20  ;;  %v2928_v14 = vmul.f32 %v4615_v15, %v2608_v27  ;;  %v5674_v23 = vmul.f32 0.5, %v5561_v38  ;;  %v951_v53 = vand.u32 2147483647, %v5660_v32 }
 0x13a   : > { %v5677_v10 = vpop.eup %4616  ;;  %v5680_v36 = vmul.f32 %v3246_v56, %v5580_v30  ;;  %v3183_v31 = vsel %vm3055_vm6, %v3119_v24, %v2991_v47  ;;  %v1267_v49 = vmul.f32 %v5618_v45, %v1266_v33  ;;  %v5686_v28 = vmul.f32 0.70710677, %v5663_v21  ;;  %v632_v30 = vpop.f32.mrf.mxu0 }
 0x13b   : > { %8997 = vst [vmem:[#allocation28_spill] sm:$0xff] %v5674_v23  ;;  %v5688_v34 = vpop.eup %4618  ;;  %v5690_v4 = vor.u32 1.1754944e-38, %v1275_v40  ;;  %v1290_v38 = vand.u32 2147483648, %v5628_v55  ;;  %v2813_v52 = vmul.f32 1.442695, %v2739_v1  ;;  %v2676_v15 = vmul.f32 %v5595_v58, %v5595_v58  ;;  %v681_v1 = vpop.f32.mrf.mxu1 }
 0x13c   : > { %8998 = vst [vmem:[#allocation29_spill] sm:$0xff] %v5677_v10  ;;  %vm3056_vm7 = vcmp.lt.f32.partialorder %v5334_v16, 0.0  ;;  %v5697_v41 = vadd.f32 %v5606_v63, %v1252_v46  ;;  %4622 = vpow2.f32 %v2811_v3  ;;  %v5699_v47 = vadd.f32 1.0, %v1013_v19 }
 0x13d   : > { %8999 = vst [vmem:[#allocation30_spill] sm:$0xff] %v5686_v28  ;;  %v1014_v35 = vmul.f32 0.3275911, %v950_v2  ;;  %v3247_v56 = vadd.f32 1.0, %v3183_v31  ;;  %v2992_v24 = vsub.f32 1.0, %v2928_v14  ;;  %v1280_v33 = vmul.f32 %v5677_v10, %v5628_v55  ;;  %v4416_v55 = vld [vmem:[#allocation9] sm:$0xff] }
 0x13e   : > { %9000 = vst [vmem:[#allocation31_spill] sm:$0xff] %v5688_v34  ;;  %v5701_v27 = vpop.eup %4620  ;;  %v1015_v40 = vmul.f32 0.3275911, %v951_v53  ;;  %v5706_v58 = vadd.f32 %v5618_v45, %v1267_v49  ;;  %v2677_v46 = vmul.f32 %v949_v7, %v949_v7  ;;  %v5710_v3 = vand.u32 2147483647, %v5686_v28  ;;  %v730_v7 = vpop.f32.mrf.mxu2  ;;  %3680 = vmatpush.bf16.msrb.mxu0 %v4416_v55 }
 0x13f   : > { %9001 = vst [vmem:[#allocation32_spill] sm:$0xff] %v5690_v4  ;;  %v5712_v19 = vor.u32 1.1754944e-38, %v1290_v38  ;;  %4624 = vpow2.f32 %v2813_v52  ;;  %v2740_v8 = vsub.f32 0.0, %v2676_v15  ;;  %v5715_v14 = vadd.f32 %v632_v30, %v5213_v57 }
 0x140   : > { %9002 = vst [vmem:[#allocation33_spill] sm:$0xff] %v5701_v27  ;;  %v1295_v31 = vmul.f32 %v5701_v27, %v5649_v39  ;;  %4626 = vrcp.f32 %v5699_v47  ;;  %v5720_v49 = vadd.f32 1.0, %v1014_v35  ;;  %v5723_v60 = vadd.f32 %v681_v1, %v5215_v59 }
 0x141   : > { %9003 = vst [vmem:[#allocation34_spill] sm:$0xff] %v5706_v58  ;;  %v5726_v23 = vmul.f32 %v3247_v56, %v5583_v50  ;;  %v3120_v38 = vsub.f32 0.0, %v2992_v24  ;;  %v1281_v52 = vsub.f32 1.0, %v1280_v33  ;;  %v5728_v15 = vadd.f32 1.0, %v1015_v40 }
 0x142   : > { %9004 = vst [vmem:[#allocation35_spill] sm:$0xff] %v5712_v19  ;;  %v5730_v30 = vpop.eup %4622  ;;  %v1305_v25 = vand.u32 2147483648, %v5649_v39  ;;  %v5734_v28 = vmul.f32 0.5, %v5604_v37  ;;  %v2741_v35 = vsub.f32 0.0, %v2677_v46  ;;  %v1016_v6 = vmul.f32 0.3275911, %v5710_v3  ;;  %v634_v19 = vpop.f32.mrf.mxu0 }
 0x143   : > { %9005 = vst [vmem:[#allocation36_spill] sm:$0xff] %v5728_v15  ;;  %v2815_v32 = vmul.f32 1.442695, %v2740_v8  ;;  %v5739_v50 = vmul.f32 0.70710677, %v5715_v14  ;;  %v5742_v56 = vadd.f32 %v730_v7, %v5220_v62  ;;  %v1296_v33 = vsub.f32 1.0, %v1295_v31 }
 0x144   : > { %9006 = vst [vmem:[#allocation37_spill] sm:$0xff] %v5730_v30  ;;  %4628 = vrcp.f32 %v5720_v49  ;;  %v2678_v40 = vmul.f32 %v950_v2, %v950_v2  ;;  %v5746_v9 = vmul.f32 0.70710677, %v5723_v60  ;;  %v3184_v46 = vsel %vm3056_vm7, %v3120_v38, %v2992_v24 }
 0x145   : > { %9007 = vst [vmem:[#allocation38_spill] sm:$0xff] %v5734_v28  ;;  %v5748_v37 = vpop.eup %4624  ;;  %v1282_v8 = vmul.f32 %v5677_v10, %v1281_v52  ;;  %4630 = vrcp.f32 %v5728_v15  ;;  %v2679_v1 = vmul.f32 %v951_v53, %v951_v53  ;;  %v5756_v31 = vor.u32 1.1754944e-38, %v1305_v25  ;;  %v779_v53 = vpop.f32.mrf.mxu3  ;;  %v4424_v52 = vld [vmem:[#allocation9 + $0x40] sm:$0xff] }
 0x146   : > { %9008 = vst [vmem:[#allocation39_spill] sm:$0xff] %v5739_v50  ;;  %v5754_v7 = vpop.eup %4626  ;;  %v1320_v2 = vand.u32 2147483648, %v5699_v47  ;;  %v2817_v39 = vmul.f32 1.442695, %v2741_v35  ;;  %v5759_v44 = vadd.f32 1.0, %v1016_v6  ;;  %4632 = vpow2.f32 %v2815_v32  ;;  %3729 = vmatpush.bf16.msrb.mxu1 %v4424_v52 }
 0x147   : > { %9009 = vst [vmem:[#allocation40_spill] sm:$0xff] %v5746_v9  ;;  %v5762_v16 = vmul.f32 0.5, %v5634_v42  ;;  %v953_v24 = vand.u32 2147483647, %v5739_v50  ;;  %v5766_v38 = vmul.f32 0.70710677, %v5742_v56  ;;  %v1297_v25 = vmul.f32 %v5701_v27, %v1296_v33 }
 0x148   : > { %9010 = vst [vmem:[#allocation41_spill] sm:$0xff] %v5748_v37  ;;  %v3248_v37 = vadd.f32 1.0, %v3184_v46  ;;  %v5770_v35 = vand.u32 2147483647, %v5746_v9  ;;  %v5773_v6 = vadd.f32 %v5677_v10, %v1282_v8  ;;  %v1310_v42 = vmul.f32 %v5754_v7, %v5699_v47 }
 0x149   : > { %9011 = vst [vmem:[#allocation42_spill] sm:$0xff] %v5756_v31  ;;  %v2742_v31 = vsub.f32 0.0, %v2678_v40  ;;  %v5778_v32 = vmul.f32 0.5, %v5639_v48  ;;  %v2743_v50 = vsub.f32 0.0, %v2679_v1  ;;  %v5783_v40 = vor.u32 1.1754944e-38, %v1320_v2 }
 0x14a   : > { %9012 = vst [vmem:[#allocation43_spill] sm:$0xff] %v5759_v44  ;;  %4634 = vrcp.f32 %v5759_v44  ;;  %v5787_v55 = vadd.f32 %v779_v53, %v5222_v0  ;;  %v1335_v8 = vand.u32 2147483648, %v5720_v49  ;;  %v1017_v48 = vmul.f32 0.3275911, %v953_v24  ;;  %v4440_v53 = vld [vmem:[#allocation9 + $0xc0] sm:$0xff] }
 0x14b   : > { %9013 = vst [vmem:[#allocation44_spill] sm:$0xff] %v5762_v16  ;;  %v5780_v16 = vpop.eup %4628  ;;  %4636 = vpow2.f32 %v2817_v39  ;;  %v955_v1 = vand.u32 2147483647, %v5766_v38  ;;  %v5794_v52 = vmul.f32 %v3248_v37, %v5601_v51  ;;  %v5797_v33 = vadd.f32 %v5701_v27, %v1297_v25  ;;  %3827 = vmatpush.bf16.msrb.mxu3 %v4440_v53 }
 0x14c   : > { %9014 = vst [vmem:[#allocation45_spill] sm:$0xff] %v5766_v38  ;;  %v5789_v46 = vpop.eup %4630  ;;  %v2819_v2 = vmul.f32 1.442695, %v2742_v31  ;;  %v1018_v9 = vmul.f32 0.3275911, %v5770_v35  ;;  %v1311_v10 = vsub.f32 1.0, %v1310_v42  ;;  %v2680_v30 = vmul.f32 %v5710_v3, %v5710_v3 }
 0x14d   : > { %9015 = vst [vmem:[#allocation46_spill] sm:$0xff] %v5773_v6  ;;  %v5800_v6 = vpop.eup %4632  ;;  %v2821_v39 = vmul.f32 1.442695, %v2743_v50  ;;  %v5805_v38 = vadd.f32 %v634_v19, %v5213_v57  ;;  %v1325_v51 = vmul.f32 %v5780_v16, %v5720_v49  ;;  %v1340_v37 = vmul.f32 %v5789_v46, %v5728_v15 }
 0x14e   : > { %9016 = vst [vmem:[#allocation47_spill] sm:$0xff] %v5778_v32  ;;  %v4432_v32 = vld [vmem:[#allocation9 + $0x80] sm:$0xff]  ;;  %v5812_v31 = vmul.f32 0.5, %v5663_v21  ;;  %v5815_v25 = vmul.f32 0.70710677, %v5787_v55  ;;  %v5818_v3 = vor.u32 1.1754944e-38, %v1335_v8  ;;  %4638 = vpow2.f32 %v2819_v2 }
 0x14f   : > { %9017 = vst [vmem:[#allocation48_spill] sm:$0xff] %v5789_v46  ;;  %3778 = vmatpush.bf16.msrb.mxu2 %v4432_v32  ;;  %v5820_v19 = vadd.f32 1.0, %v1017_v48  ;;  %v1019_v42 = vmul.f32 0.3275911, %v955_v1  ;;  %v5828_v20 = vadd.f32 1.0, %v1018_v9  ;;  %v1312_v8 = vmul.f32 %v5754_v7, %v1311_v10 }
 0x150   : > { %9018 = vst [vmem:[#allocation49_spill] sm:$0xff] %v5797_v33  ;;  %v5822_v33 = vpop.f32.mrf.mxu0  ;;  %v5824_v27 = vpop.eup %4634  ;;  %4640 = vpow2.f32 %v2821_v39  ;;  %v2744_v48 = vsub.f32 0.0, %v2680_v30  ;;  %v5834_v53 = vmul.f32 0.70710677, %v5805_v38  ;;  %v1326_v50 = vsub.f32 1.0, %v1325_v51 }
 0x151   : > { %9019 = vst [vmem:[#allocation50_spill] sm:$0xff] %v5800_v6  ;;  %v683_v6 = vpop.f32.mrf.mxu1  ;;  %v5830_v32 = vpop.eup %4636  ;;  %v1341_v28 = vsub.f32 1.0, %v1340_v37  ;;  %v956_v12 = vand.u32 2147483647, %v5815_v25  ;;  %v1355_v9 = vmul.f32 %v5824_v27, %v5759_v44  ;;  %4642 = vrcp.f32 %v5820_v19 }
 0x152   : > { %9020 = vst [vmem:[#allocation51_spill] sm:$0xff] %v5812_v31  ;;  %v1350_v31 = vand.u32 2147483648, %v5728_v15  ;;  %v5838_v2 = vadd.f32 %v683_v6, %v5215_v59  ;;  %v2681_v21 = vmul.f32 %v953_v24, %v953_v24  ;;  %v5843_v15 = vadd.f32 1.0, %v1019_v42  ;;  %v732_v24 = vpop.f32.mrf.mxu2 }
 0x153   : > { %9021 = vst [vmem:[#allocation52_spill] sm:$0xff] %v5815_v25  ;;  %v1365_v39 = vand.u32 2147483648, %v5759_v44  ;;  %4644 = vrcp.f32 %v5828_v20  ;;  %v5851_v51 = vadd.f32 %v5754_v7, %v1312_v8  ;;  %v2823_v6 = vmul.f32 1.442695, %v2744_v48 }
 0x154   : > { %9022 = vst [vmem:[#allocation53_spill] sm:$0xff] %v5818_v3  ;;  %v5845_v10 = vor.u32 1.1754944e-38, %v1350_v31  ;;  %v5854_v37 = vmul.f32 0.5, %v5715_v14  ;;  %v5857_v25 = vand.u32 2147483647, %v5834_v53  ;;  %v5859_v42 = vpop.eup %4638  ;;  %v1327_v31 = vmul.f32 %v5780_v16, %v1326_v50 }
 0x155   : > { %9023 = vst [vmem:[#allocation54_spill] sm:$0xff] %v5820_v19  ;;  %v2682_v30 = vmul.f32 %v5770_v35, %v5770_v35  ;;  %v5865_v44 = vmul.f32 0.70710677, %v5838_v2  ;;  %v1342_v14 = vmul.f32 %v5789_v46, %v1341_v28  ;;  %v1356_v48 = vsub.f32 1.0, %v1355_v9 }
 0x156   : > { %9024 = vst [vmem:[#allocation55_spill] sm:$0xff] %v5824_v27  ;;  %v5867_v8 = vpop.eup %4640  ;;  %4646 = vrcp.f32 %v5843_v15  ;;  %v2683_v50 = vmul.f32 %v955_v1, %v955_v1  ;;  %v5875_v29 = vadd.f32 %v732_v24, %v5220_v62  ;;  %v5883_v28 = vmul.f32 0.5, %v5742_v56 }
 0x157   : > { %9025 = vst [vmem:[#allocation56_spill] sm:$0xff] %v5828_v20  ;;  %v5877_v35 = vpop.eup %4642  ;;  %4648 = vpow2.f32 %v2823_v6  ;;  %v5891_v1 = vadd.f32 %v5780_v16, %v1327_v31  ;;  %v2746_v24 = vsub.f32 0.0, %v2682_v30  ;;  %v958_v6 = vand.u32 2147483647, %v5865_v44 }
 0x158   : > { %9026 = vst [vmem:[#allocation57_spill] sm:$0xff] %v5830_v32  ;;  %v5880_v32 = vmul.f32 0.5, %v5723_v60  ;;  %v5886_v9 = vpop.f32.mrf.mxu0  ;;  %v5897_v60 = vadd.f32 %v5789_v46, %v1342_v14  ;;  %v1357_v56 = vmul.f32 %v5824_v27, %v1356_v48  ;;  %v1370_v34 = vmul.f32 %v5877_v35, %v5820_v19 }
 0x159   : > { %9027 = vst [vmem:[#allocation58_spill] sm:$0xff] %v5834_v53  ;;  %v5871_v53 = vor.u32 1.1754944e-38, %v1365_v39  ;;  %v5888_v39 = vpop.eup %4644  ;;  %v2747_v31 = vsub.f32 0.0, %v2683_v50  ;;  %v1022_v50 = vmul.f32 0.3275911, %v958_v6  ;;  %v2684_v46 = vmul.f32 %v956_v12, %v956_v12 }
 0x15a   : > { %9028 = vst [vmem:[#allocation59_spill] sm:$0xff] %v5843_v15  ;;  %v1385_v14 = vmul.f32 %v5888_v39, %v5828_v20  ;;  %v1371_v22 = vsub.f32 1.0, %v1370_v34 }
 0x15b   : > { %9029 = vst [vmem:[#allocation60_spill] sm:$0xff] %v5845_v10  ;;  %v1020_v10 = vmul.f32 0.3275911, %v956_v12  ;;  %v2829_v3 = vmul.f32 1.442695, %v2747_v31  ;;  %v5937_v12 = vmul.f32 0.5, %v5787_v55 }
 0x15c   : > { %9030 = vst [vmem:[#allocation61_spill] sm:$0xff] %v5854_v37  ;;  %v2745_v37 = vsub.f32 0.0, %v2681_v21  ;;  %v1021_v21 = vmul.f32 0.3275911, %v5857_v25  ;;  %v5908_v30 = vpop.eup %4646  ;;  %v5939_v34 = vadd.f32 1.0, %v1022_v50  ;;  %v2748_v31 = vsub.f32 0.0, %v2684_v46 }
 0x15d   : > { %9031 = vst [vmem:[#allocation62_spill] sm:$0xff] %v5859_v42  ;;  %v1380_v42 = vand.u32 2147483648, %v5820_v19  ;;  %v5923_v19 = vadd.f32 %v5824_v27, %v1357_v56 }
 0x15e   : > { %9032 = vst [vmem:[#allocation63_spill] sm:$0xff] %v5865_v44  ;;  %v1395_v44 = vand.u32 2147483648, %v5828_v20  ;;  %v5913_v48 = vadd.f32 1.0, %v1021_v21  ;;  %v686_v21 = vpop.f32.mrf.mxu1 }
 0x15f   : > { %9033 = vst [vmem:[#allocation64_spill] sm:$0xff] %v5867_v8  ;;  %v5893_v8 = vadd.f32 1.0, %v1020_v10  ;;  %v5903_v11 = vor.u32 1.1754944e-38, %v1380_v42  ;;  %v5906_v10 = vmul.f32 0.70710677, %v5875_v29 }
 0x160   : > { %9034 = vst [vmem:[#allocation65_spill] sm:$0xff] %v5871_v53  ;;  %v781_v53 = vpop.f32.mrf.mxu3  ;;  %v2827_v42 = vmul.f32 1.442695, %v2746_v24  ;;  %v5929_v20 = vor.u32 1.1754944e-38, %v1395_v44  ;;  %v2685_v44 = vmul.f32 %v5857_v25, %v5857_v25  ;;  %v5957_v25 = vmul.f32 0.5, %v5805_v38 }
 0x161   : > { %9035 = vst [vmem:[#allocation66_spill] sm:$0xff] %v5877_v35  ;;  %4650 = vrcp.f32 %v5893_v8  ;;  %v959_v24 = vand.u32 2147483647, %v5906_v10  ;;  %v1425_v46 = vand.u32 2147483648, %v5893_v8 }
 0x162   : > { %9036 = vst [vmem:[#allocation67_spill] sm:$0xff] %v5880_v32  ;;  %v2825_v32 = vmul.f32 1.442695, %v2745_v37  ;;  %v5916_v37 = vadd.f32 %v781_v53, %v5222_v0  ;;  %v1400_v53 = vmul.f32 %v5908_v30, %v5843_v15  ;;  %v2749_v38 = vsub.f32 0.0, %v2685_v44 }
 0x163   : > { %9037 = vst [vmem:[#allocation68_spill] sm:$0xff] %v5883_v28  ;;  %v1386_v28 = vsub.f32 1.0, %v1385_v14  ;;  %v5947_v14 = vadd.f32 %v5822_v33, %v5213_v57  ;;  %v1023_v55 = vmul.f32 0.3275911, %v959_v24  ;;  %v5987_v44 = vor.u32 1.1754944e-38, %v1425_v46 }
 0x164   : > { %9038 = vst [vmem:[#allocation69_spill] sm:$0xff] %v5888_v39  ;;  %4652 = vpow2.f32 %v2825_v32  ;;  %v5933_v56 = vmul.f32 0.70710677, %v5916_v37  ;;  %v1401_v32 = vsub.f32 1.0, %v1400_v53 }
 0x165   : > { %9039 = vst [vmem:[#allocation70_spill] sm:$0xff] %v5891_v1  ;;  %4654 = vrcp.f32 %v5913_v48 }
 0x166   : > { %9040 = vst [vmem:[#allocation71_spill] sm:$0xff] %v5893_v8  ;;  %4656 = vpow2.f32 %v2827_v42  ;;  %v1372_v42 = vmul.f32 %v5877_v35, %v1371_v22  ;;  %v960_v33 = vand.u32 2147483647, %v5933_v56  ;;  %v2686_v22 = vmul.f32 %v958_v6, %v958_v6  ;;  %v5989_v4 = vpop.f32.mrf.mxu1 }
 0x167   : > { %9041 = vst [vmem:[#allocation72_spill] sm:$0xff] %v5897_v60  ;;  %v1410_v60 = vand.u32 2147483648, %v5843_v15  ;;  %4658 = vpow2.f32 %v2829_v3  ;;  %v2831_v15 = vmul.f32 1.442695, %v2748_v31  ;;  %v1402_v6 = vmul.f32 %v5908_v30, %v1401_v32 }
 0x168   : > { %9042 = vst [vmem:[#allocation73_spill] sm:$0xff] %v5903_v11  ;;  %v5920_v11 = vpop.eup %4648  ;;  %4660 = vrcp.f32 %v5939_v34  ;;  %v784_v27 = vpop.f32.mrf.mxu3  ;;  %v2833_v31 = vmul.f32 1.442695, %v2749_v38 }
 0x169   : > { %9043 = vst [vmem:[#allocation74_spill] sm:$0xff] %v5906_v10  ;;  %v642_v10 = vpop.f32.mrf.mxu0  ;;  %4662 = vpow2.f32 %v2831_v15 }
 0x16a   : > { %9044 = vst [vmem:[#allocation75_spill] sm:$0xff] %v5908_v30  ;;  %v5965_v3 = vadd.f32 %v642_v10, %v5213_v57  ;;  %v687_v10 = vadd.f32 %v686_v21, %v5215_v59 }
 0x16b   : > { %9045 = vst [vmem:[#allocation76_spill] sm:$0xff] %v5913_v48 }
 0x16c   : > { %9046 = vst [vmem:[#allocation77_spill] sm:$0xff] %v5920_v11  ;;  %v5941_v11 = vor.u32 1.1754944e-38, %v1410_v60  ;;  %v1387_v60 = vmul.f32 %v5888_v39, %v1386_v28  ;;  %v5997_v21 = vmul.f32 0.70710677, %v5965_v3 }
 0x16d   : > { %9047 = vst [vmem:[#allocation78_spill] sm:$0xff] %v5923_v19  ;;  %v1024_v19 = vmul.f32 0.3275911, %v960_v33 }
 0x16e   : > { %9048 = vst [vmem:[#allocation79_spill] sm:$0xff] %v5929_v20  ;;  %v5949_v20 = vpop.eup %4650 }
 0x16f   : > { %9049 = vst [vmem:[#allocation80_spill] sm:$0xff] %v5933_v56  ;;  %v5952_v50 = vpop.eup %4652  ;;  %v1415_v28 = vmul.f32 %v5949_v20, %v5893_v8  ;;  %v6003_v8 = vadd.f32 %v5908_v30, %v1402_v6  ;;  %v6013_v15 = vadd.f32 1.0, %v1024_v19  ;;  %v6018_v6 = vand.u32 2147483647, %v5997_v21 }
 0x170   : > { %9050 = vst [vmem:[#allocation81_spill] sm:$0xff] %v5937_v12  ;;  %v735_v12 = vpop.f32.mrf.mxu2  ;;  %v5967_v53 = vpop.eup %4654 }
 0x171   : > { %9051 = vst [vmem:[#allocation82_spill] sm:$0xff] %v5939_v34  ;;  %v5974_v56 = vpop.eup %4656  ;;  %v1430_v32 = vmul.f32 %v5967_v53, %v5913_v48 }
 0x172   : > { %9052 = vst [vmem:[#allocation83_spill] sm:$0xff] %v5941_v11  ;;  %v5961_v11 = vmul.f32 0.5, %v5838_v2  ;;  %v5977_v2 = vadd.f32 %v5877_v35, %v1372_v42  ;;  %v1440_v42 = vand.u32 2147483648, %v5913_v48 }
 0x173   : > { %9053 = vst [vmem:[#allocation84_spill] sm:$0xff] %v5949_v20  ;;  %v1431_v38 = vsub.f32 1.0, %v1430_v32  ;;  %v6027_v32 = vadd.f32 %v735_v12, %v5220_v62  ;;  %v6043_v12 = vmul.f32 0.5, %v5947_v14 }
 0x174   : > { %9054 = vst [vmem:[#allocation85_spill] sm:$0xff] %v5952_v50  ;;  %v5984_v50 = vadd.f32 %v5888_v39, %v1387_v60  ;;  %v1416_v60 = vsub.f32 1.0, %v1415_v28  ;;  %v1455_v39 = vand.u32 2147483648, %v5939_v34  ;;  %v6011_v28 = vmul.f32 0.5, %v5875_v29 }
 0x175   : > { %9055 = vst [vmem:[#allocation86_spill] sm:$0xff] %v5957_v25  ;;  %v5972_v25 = vmul.f32 0.70710677, %v5947_v14 }
 0x176   : > { %9056 = vst [vmem:[#allocation87_spill] sm:$0xff] %v5961_v11  ;;  %v5980_v11 = vadd.f32 1.0, %v1023_v55  ;;  %v2750_v55 = vsub.f32 0.0, %v2686_v22 }
 0x177   : > { %9057 = vst [vmem:[#allocation88_spill] sm:$0xff] %v5967_v53  ;;  %v961_v46 = vand.u32 2147483647, %v5972_v25 }
 0x178   : > { %9058 = vst [vmem:[#allocation89_spill] sm:$0xff] %v5972_v25  ;;  %4664 = vrcp.f32 %v5980_v11  ;;  %v6015_v25 = vor.u32 1.1754944e-38, %v1440_v42  ;;  %v6023_v30 = vpop.f32.mrf.mxu2  ;;  %v1033_v42 = vmul.f32 0.3275911, %v6018_v6 }
 0x179   : > { %9059 = vst [vmem:[#allocation90_spill] sm:$0xff] %v5974_v56  ;;  %v5991_v56 = vpop.eup %4658  ;;  %4666 = vpow2.f32 %v2833_v31  ;;  %v2688_v31 = vmul.f32 %v960_v33, %v960_v33  ;;  %v691_v33 = vpop.f32.mrf.mxu1 }
 0x17a   : > { %9060 = vst [vmem:[#allocation91_spill] sm:$0xff] %v5977_v2  ;;  %v2835_v2 = vmul.f32 1.442695, %v2750_v55  ;;  %4668 = vrcp.f32 %v6013_v15 }
 0x17b   : > { %9061 = vst [vmem:[#allocation92_spill] sm:$0xff] %v5980_v11 }
 0x17c   : > { %9062 = vst [vmem:[#allocation93_spill] sm:$0xff] %v5984_v50  ;;  %v6006_v50 = vmul.f32 0.70710677, %v687_v10  ;;  %4670 = vpow2.f32 %v2835_v2 }
 0x17d   : > { %9063 = vst [vmem:[#allocation94_spill] sm:$0xff] %v5987_v44  ;;  %v6000_v44 = vpop.eup %4660 }
 0x17e   : > { %9064 = vst [vmem:[#allocation95_spill] sm:$0xff] %v5991_v56  ;;  %v2687_v56 = vmul.f32 %v959_v24, %v959_v24  ;;  %v1417_v24 = vmul.f32 %v5949_v20, %v1416_v60  ;;  %v1445_v22 = vmul.f32 %v6000_v44, %v5939_v34  ;;  %v962_v19 = vand.u32 2147483647, %v6006_v50  ;;  %v6030_v55 = vpop.eup %4662 }
 0x17f   : > { %9065 = vst [vmem:[#allocation96_spill] sm:$0xff] %v6000_v44  ;;  %v6033_v60 = vor.u32 1.1754944e-38, %v1455_v39  ;;  %v6048_v39 = vpop.f32.mrf.mxu3 }
 0x180   : > { %9066 = vst [vmem:[#allocation97_spill] sm:$0xff] %v6003_v8  ;;  %v1025_v8 = vmul.f32 0.3275911, %v961_v46  ;;  %v2751_v29 = vsub.f32 0.0, %v2687_v56  ;;  %v1432_v56 = vmul.f32 %v5967_v53, %v1431_v38  ;;  %v1446_v48 = vsub.f32 1.0, %v1445_v22 }
 0x181   : > { %9067 = vst [vmem:[#allocation98_spill] sm:$0xff] %v6006_v50  ;;  %v6040_v50 = vmul.f32 0.5, %v5916_v37  ;;  %v6053_v34 = vadd.f32 %v5949_v20, %v1417_v24  ;;  %v1026_v38 = vmul.f32 0.3275911, %v962_v19  ;;  %v6056_v37 = vmul.f32 0.70710677, %v6027_v32 }
 0x182   : > { %9068 = vst [vmem:[#allocation99_spill] sm:$0xff] %v6011_v28  ;;  %v6046_v28 = vadd.f32 1.0, %v1025_v8  ;;  %v2837_v2 = vmul.f32 1.442695, %v2751_v29  ;;  %v2752_v8 = vsub.f32 0.0, %v2688_v31  ;;  %v6073_v29 = vadd.f32 %v691_v33, %v5215_v59 }
 0x183   : > { %9069 = vst [vmem:[#allocation100_spill] sm:$0xff] %v6013_v15  ;;  %v1447_v20 = vmul.f32 %v6000_v44, %v1446_v48  ;;  %v6084_v24 = vadd.f32 1.0, %v1026_v38  ;;  %v740_v48 = vpop.f32.mrf.mxu2 }
 0x184   : > { %9070 = vst [vmem:[#allocation101_spill] sm:$0xff] %v6015_v25  ;;  %v6036_v25 = vpop.eup %4664 }
 0x185   : > { %9071 = vst [vmem:[#allocation102_spill] sm:$0xff] %v6030_v55  ;;  %v1470_v55 = vand.u32 2147483648, %v5980_v11  ;;  %v6058_v14 = vpop.eup %4666  ;;  %v1460_v22 = vmul.f32 %v6036_v25, %v5980_v11  ;;  %v2839_v11 = vmul.f32 1.442695, %v2752_v8  ;;  %v6100_v38 = vadd.f32 %v6000_v44, %v1447_v20 }
 0x186   : > { %9072 = vst [vmem:[#allocation103_spill] sm:$0xff] %v6033_v60  ;;  %v6050_v60 = vadd.f32 1.0, %v1033_v42  ;;  %v6065_v42 = vadd.f32 %v784_v27, %v5222_v0  ;;  %v2689_v27 = vmul.f32 %v961_v46, %v961_v46  ;;  %v6093_v46 = vmul.f32 0.70710677, %v6073_v29 }
 0x187   : > { %9073 = vst [vmem:[#allocation104_spill] sm:$0xff] %v6036_v25  ;;  %v1461_v33 = vsub.f32 1.0, %v1460_v22  ;;  %v1500_v20 = vand.u32 2147483648, %v6046_v28 }
 0x188   : > { %9074 = vst [vmem:[#allocation105_spill] sm:$0xff] %v6040_v50  ;;  %v6068_v50 = vadd.f32 %v5967_v53, %v1432_v56  ;;  %4672 = vrcp.f32 %v6050_v60  ;;  %v6082_v56 = vor.u32 1.1754944e-38, %v1470_v55  ;;  %v3385_v55 = vpack.c.bf16 %v5642_v43, %v5590_v26 }
 0x189   : > { %9075 = vst [vmem:[#allocation106_spill] sm:$0xff] %v6043_v12  ;;  %v6062_v12 = vmul.f32 0.5, %v687_v10  ;;  %v1485_v10 = vand.u32 2147483648, %v6013_v15  ;;  %4674 = vrcp.f32 %v6046_v28  ;;  %v2753_v8 = vsub.f32 0.0, %v2689_v27 }
 0x18a   : > { %9076 = vst [vmem:[#allocation107_spill] sm:$0xff] %v6046_v28  ;;  %4676 = vpow2.f32 %v2837_v2  ;;  %v3386_v2 = vpack.c.bf16 %v5680_v36, %v5598_v5  ;;  %3681 = vmatmul.bf16.vlgmr.msrb.gmra.mxu0 %v3385_v55  ;;  %v6112_v26 = vadd.f32 %v740_v48, %v5220_v62  ;;  %v1462_v43 = vmul.f32 %v6036_v25, %v1461_v33 }
 0x18b   : > { %9077 = vst [vmem:[#allocation108_spill] sm:$0xff] %v6053_v34  ;;  %v6075_v34 = vpop.eup %4668  ;;  %v6103_v22 = vor.u32 1.1754944e-38, %v1485_v10  ;;  %4678 = vrcp.f32 %v6084_v24  ;;  %v789_v10 = vpop.f32.mrf.mxu3  ;;  %v6122_v55 = vmul.f32 0.5, %v6027_v32  ;;  %vm1614_vm8 = vweird.f32 %v6050_v60 }
 0x18c   : > { %9078 = vst [vmem:[#allocation109_spill] sm:$0xff] %v6056_v37  ;;  %v6080_v31 = vpop.eup %4670  ;;  %v1475_v53 = vmul.f32 %v6075_v34, %v6013_v15  ;;  %3730 = vmatmul.bf16.vlgmr.msrb.gmra.mxu1 %v3386_v2  ;;  %4680 = vpow2.f32 %v2839_v11  ;;  %v2841_v15 = vmul.f32 1.442695, %v2753_v8  ;;  %v640_v11 = vadd.f32 %v5886_v9, %v5213_v57 }
 0x18d   : > { %9079 = vst [vmem:[#allocation110_spill] sm:$0xff] %v6058_v14  ;;  %v2690_v14 = vmul.f32 %v962_v19, %v962_v19  ;;  %v6138_v32 = vadd.f32 %v789_v10, %v5222_v0  ;;  %v6143_v8 = vor.u32 1.1754944e-38, %v1500_v20  ;;  %v1515_v9 = vand.u32 2147483648, %v6084_v24 }
 0x18e   : > { %9080 = vst [vmem:[#allocation111_spill] sm:$0xff] %v6062_v12  ;;  %v963_v12 = vand.u32 2147483647, %v6056_v37  ;;  %v6105_v37 = vpop.eup %4672  ;;  %v1476_v19 = vsub.f32 1.0, %v1475_v53  ;;  %v6135_v53 = vmul.f32 0.70710677, %v6112_v26  ;;  %4682 = vpow2.f32 %v2841_v15 }
 0x18f   : > { %9081 = vst [vmem:[#allocation112_spill] sm:$0xff] %v6068_v50  ;;  %v6088_v50 = vmul.f32 0.70710677, %v6065_v42  ;;  %v6114_v5 = vpop.eup %4674  ;;  %v1610_v48 = vmul.f32 %v6105_v37, %v6050_v60  ;;  %v6152_v1 = vmul.f32 0.70710677, %v640_v11  ;;  %v6168_v15 = vmul.f32 0.5, %v6065_v42 }
 0x190   : > { %9082 = vst [vmem:[#allocation113_spill] sm:$0xff] %v6075_v34  ;;  %v6119_v27 = vpop.eup %4676  ;;  %vm1615_vm9 = vweird.f32 %v6105_v37 }
 0x191   : > { %9083 = vst [vmem:[#allocation114_spill] sm:$0xff] %v6080_v31  ;;  %v6109_v31 = vand.u32 2147483647, %v6093_v46  ;;  %v964_v36 = vand.u32 2147483647, %v6088_v50  ;;  %v1611_v44 = vsub.f32 1.0, %v1610_v48  ;;  %vm6221_vm10 = vmor %vm1614_vm8, %vm1615_vm9  ;;  %vm1254_vm8 = vweird.f32 %v5558_v13 }
 0x192   : > { %9084 = vst [vmem:[#allocation115_spill] sm:$0xff] %v6082_v56  ;;  %v1027_v56 = vmul.f32 0.3275911, %v963_v12  ;;  %vm1255_vm9 = vweird.f32 %v5606_v63 }
 0x193   : > { %9085 = vst [vmem:[#allocation116_spill] sm:$0xff] %v6084_v24  ;;  %v1034_v33 = vmul.f32 0.3275911, %v6109_v31  ;;  %v1028_v2 = vmul.f32 0.3275911, %v964_v36  ;;  %v1612_v10 = vmul.f32 %v6105_v37, %v1611_v44 }
 0x194   : > { %9086 = vst [vmem:[#allocation117_spill] sm:$0xff] %v6088_v50  ;;  %v1490_v50 = vmul.f32 %v6114_v5, %v6046_v28  ;;  %v1477_v28 = vmul.f32 %v6075_v34, %v1476_v19  ;;  %v6161_v19 = vmul.f32 0.70710677, %v6138_v32 }
 0x195   : > { %9087 = vst [vmem:[#allocation118_spill] sm:$0xff] %v6093_v46  ;;  %v6170_v48 = vadd.f32 1.0, %v1028_v2 }
 0x196   : > { %9088 = vst [vmem:[#allocation119_spill] sm:$0xff] %v6100_v38  ;;  %v2691_v38 = vmul.f32 %v963_v12, %v963_v12  ;;  %v1491_v20 = vsub.f32 1.0, %v1490_v50  ;;  %v6173_v50 = vadd.f32 %v6075_v34, %v1477_v28  ;;  %v6185_v28 = vand.u32 2147483647, %v6161_v19 }
 0x197   : > { %9089 = vst [vmem:[#allocation120_spill] sm:$0xff] %v6103_v22  ;;  %v2754_v22 = vsub.f32 0.0, %v2690_v14  ;;  %v6141_v14 = vadd.f32 %v6036_v25, %v1462_v43  ;;  %v6154_v43 = vadd.f32 1.0, %v1034_v33 }
 0x198   : > { %9090 = vst [vmem:[#allocation121_spill] sm:$0xff] %v6114_v5  ;;  %v2755_v33 = vsub.f32 0.0, %v2691_v38  ;;  %v1492_v42 = vmul.f32 %v6114_v5, %v1491_v20 }
 0x199   : > { %9091 = vst [vmem:[#allocation122_spill] sm:$0xff] %v6119_v27  ;;  %v6132_v27 = vadd.f32 1.0, %v1027_v56  ;;  %v2843_v56 = vmul.f32 1.442695, %v2754_v22  ;;  %v6165_v22 = vor.u32 1.1754944e-38, %v1515_v9  ;;  %v6181_v9 = vmul.f32 0.5, %v640_v11 }
 0x19a   : > { %9092 = vst [vmem:[#allocation123_spill] sm:$0xff] %v6122_v55  ;;  %v6146_v55 = vpop.eup %4678  ;;  %v1613_v11 = vadd.f32 %v6105_v37, %v1612_v10  ;;  %vm1629_vm12 = vweird.f32 %v6154_v43 }
 0x19b   : > { %9093 = vst [vmem:[#allocation124_spill] sm:$0xff] %v6132_v27  ;;  %v6149_v35 = vpop.eup %4680  ;;  %4684 = vrcp.f32 %v6132_v27  ;;  %v1505_v12 = vmul.f32 %v6146_v55, %v6084_v24  ;;  %v689_v24 = vadd.f32 %v5989_v4, %v5215_v59 }
 0x19c   : > { %9094 = vst [vmem:[#allocation125_spill] sm:$0xff] %v6135_v53  ;;  %4686 = vpow2.f32 %v2843_v56  ;;  %v6187_v38 = vpop.eup %4682  ;;  %v1530_v56 = vand.u32 2147483648, %v6132_v27 }
 0x19d   : > { %9095 = vst [vmem:[#allocation126_spill] sm:$0xff] %v6141_v14  ;;  %v965_v14 = vand.u32 2147483647, %v6152_v1  ;;  %4688 = vrcp.f32 %v6154_v43  ;;  %v1506_v44 = vsub.f32 1.0, %v1505_v12  ;;  %v738_v12 = vadd.f32 %v6023_v30, %v5220_v62 }
 0x19e   : > { %9096 = vst [vmem:[#allocation127_spill] sm:$0xff] %v6143_v8  ;;  %v6158_v8 = vand.u32 2147483647, %v6135_v53  ;;  %4690 = vrcp.f32 %v6170_v48  ;;  %v6215_v25 = vor.u32 1.1754944e-38, %v1530_v56  ;;  %v1617_v56 = vsel %vm6221_vm10, %v6105_v37, %v1613_v11 }
 0x19f   : > { %9097 = vst [vmem:[#allocation128_spill] sm:$0xff] %v6146_v55  ;;  %v1029_v20 = vmul.f32 0.3275911, %v965_v14  ;;  %vm1315_vm10 = vweird.f32 %v5754_v7 }
 0x1a0   : > { %9098 = vst [vmem:[#allocation129_spill] sm:$0xff] %v6149_v35  ;;  %v2692_v35 = vmul.f32 %v964_v36, %v964_v36  ;;  %v1035_v2 = vmul.f32 0.3275911, %v6158_v8  ;;  %v1620_v36 = vand.u32 2147483648, %v6050_v60 }
 0x1a1   : > { %9099 = vst [vmem:[#allocation130_spill] sm:$0xff] %v6152_v1  ;;  %v6192_v4 = vpop.eup %4684  ;;  %v6205_v1 = vadd.f32 %v6114_v5, %v1492_v42  ;;  %v6253_v5 = vmul.f32 0.5, %v689_v24 }
 0x1a2   : > { %9100 = vst [vmem:[#allocation131_spill] sm:$0xff] %v6161_v19  ;;  %v6208_v10 = vadd.f32 1.0, %v1035_v2  ;;  %v1520_v34 = vmul.f32 %v6192_v4, %v6132_v27  ;;  %v2756_v30 = vsub.f32 0.0, %v2692_v35  ;;  %v2693_v19 = vmul.f32 %v965_v14, %v965_v14 }
 0x1a3   : > { %9101 = vst [vmem:[#allocation132_spill] sm:$0xff] %v6165_v22  ;;  %v1036_v22 = vmul.f32 0.3275911, %v6185_v28  ;;  %v1507_v2 = vmul.f32 %v6146_v55, %v1506_v44  ;;  %v6232_v14 = vadd.f32 1.0, %v1029_v20  ;;  %v6235_v27 = vmul.f32 0.70710677, %v738_v12 }
 0x1a4   : > { %9102 = vst [vmem:[#allocation133_spill] sm:$0xff] %v6168_v15  ;;  %v2845_v15 = vmul.f32 1.442695, %v2755_v33  ;;  %v1618_v33 = vand.u32 2147483647, %v6050_v60  ;;  %v1521_v42 = vsub.f32 1.0, %v1520_v34  ;;  %vm1644_vm1 = vweird.f32 %v6208_v10 }
 0x1a5   : > { %9103 = vst [vmem:[#allocation134_spill] sm:$0xff] %v6170_v48  ;;  %v6240_v44 = vadd.f32 1.0, %v1036_v22  ;;  %v2757_v37 = vsub.f32 0.0, %v2693_v19  ;;  %v967_v34 = vand.u32 2147483647, %v6235_v27 }
 0x1a6   : > { %9104 = vst [vmem:[#allocation135_spill] sm:$0xff] %v6173_v50  ;;  %4692 = vpow2.f32 %v2845_v15  ;;  %vm1619_vm11 = vcmp.eq.f32.partialorder %v1618_v33, 8.507059e+37  ;;  %v1545_v33 = vand.u32 2147483648, %v6170_v48 }
 0x1a7   : > { %9105 = vst [vmem:[#allocation136_spill] sm:$0xff] %v6181_v9  ;;  %v6197_v9 = vmul.f32 0.70710677, %v689_v24  ;;  %4694 = vrcp.f32 %v6208_v10  ;;  %v2849_v24 = vmul.f32 1.442695, %v2757_v37  ;;  %vm1659_vm5 = vweird.f32 %v6240_v44 }
 0x1a8   : > { %9106 = vst [vmem:[#allocation137_spill] sm:$0xff] %v6187_v38  ;;  %v6202_v38 = vpop.eup %4686  ;;  %4696 = vrcp.f32 %v6240_v44 }
 0x1a9   : > { %9107 = vst [vmem:[#allocation138_spill] sm:$0xff] %v6192_v4  ;;  %v6211_v50 = vpop.eup %4688  ;;  %v966_v60 = vand.u32 2147483647, %v6197_v9  ;;  %4698 = vrcp.f32 %v6232_v14 }
 0x1aa   : > { %9108 = vst [vmem:[#allocation139_spill] sm:$0xff] %v6197_v9  ;;  %v6230_v35 = vpop.eup %4690  ;;  %v1625_v15 = vmul.f32 %v6211_v50, %v6154_v43  ;;  %v2847_v9 = vmul.f32 1.442695, %v2756_v30  ;;  %vm1630_vm13 = vweird.f32 %v6211_v50 }
 0x1ab   : > { %9109 = vst [vmem:[#allocation140_spill] sm:$0xff] %v6202_v38  ;;  %v6248_v38 = vadd.f32 %v6146_v55, %v1507_v2  ;;  %v1030_v22 = vmul.f32 0.3275911, %v966_v60  ;;  %v1031_v55 = vmul.f32 0.3275911, %v967_v34  ;;  %vm6331_vm14 = vmor %vm1629_vm12, %vm1630_vm13 }
 0x1ac   : > { %9110 = vst [vmem:[#allocation141_spill] sm:$0xff] %v6205_v1  ;;  %v1621_v1 = vor.u32 1.1754944e-38, %v1620_v36  ;;  %v1535_v36 = vmul.f32 %v6230_v35, %v6170_v48  ;;  %v6258_v19 = vpop.eup %4692  ;;  %v1522_v48 = vmul.f32 %v6192_v4, %v1521_v42  ;;  %4700 = vpow2.f32 %v2847_v9 }
 0x1ad   : > { %9111 = vst [vmem:[#allocation142_spill] sm:$0xff] %v6215_v25  ;;  %v644_v25 = vpop.f32.mrf.mxu0  ;;  %4702 = vpow2.f32 %v2849_v24  ;;  %v6301_v24 = vadd.f32 1.0, %v1031_v55 }
 0x1ae   : > { %9114 = vst [vmem:[#allocation143_spill] sm:$0xff] %v6230_v35  ;;  %v6242_v11 = vsel %vm1619_vm11, %v1621_v1, %v1617_v56  ;;  %v6245_v20 = vadd.f32 %v644_v25, %v5213_v57  ;;  %v787_v1 = vadd.f32 %v6048_v39, %v5222_v0  ;;  %v1560_v25 = vand.u32 2147483648, %v6232_v14 }
 0x1af   : > { %9115 = vst [vmem:[#allocation144_spill] sm:$0xff] %v6232_v14  ;;  %v2121_v2 = vmul.f32 1.0614054, %v6242_v11  ;;  %v1626_v56 = vsub.f32 1.0, %v1625_v15  ;;  %v1536_v39 = vsub.f32 1.0, %v1535_v36  ;;  %v6274_v15 = vmul.f32 0.5, %v738_v12 }
 0x1b0   : > { %9116 = vst [vmem:[#allocation145_spill] sm:$0xff] %v6235_v27  ;;  %v6266_v30 = vmul.f32 0.70710677, %v6245_v20  ;;  %v6268_v27 = vpop.eup %4694  ;;  %v6276_v53 = vmul.f32 0.70710677, %v787_v1  ;;  %v6279_v37 = vor.u32 1.1754944e-38, %v1560_v25  ;;  %v6283_v36 = vadd.f32 %v6192_v4, %v1522_v48 }
 0x1b1   : > { %9117 = vst [vmem:[#allocation146_spill] sm:$0xff] %v6248_v38  ;;  %v6272_v38 = vadd.f32 1.0, %v1030_v22  ;;  %v2185_v58 = vadd.f32 -1.4531521, %v2121_v2  ;;  %v1627_v46 = vmul.f32 %v6211_v50, %v1626_v56  ;;  %v1640_v9 = vmul.f32 %v6268_v27, %v6208_v10  ;;  %v693_v56 = vpop.f32.mrf.mxu1 }
 0x1b2   : > { %9118 = vst [vmem:[#allocation147_spill] sm:$0xff] %v6253_v5  ;;  %v6270_v5 = vor.u32 1.1754944e-38, %v1545_v33  ;;  %v6288_v12 = vand.u32 2147483647, %v6266_v30  ;;  %v1537_v33 = vmul.f32 %v6230_v35, %v1536_v39  ;;  %v6293_v25 = vmul.f32 0.5, %v787_v1 }
 0x1b3   : > { %9119 = vst [vmem:[#allocation148_spill] sm:$0xff] %v6258_v19  ;;  %v2694_v19 = vmul.f32 %v966_v60, %v966_v60  ;;  %v6290_v60 = vpop.eup %4696  ;;  %v6296_v2 = vmul.f32 0.5, %v5965_v3  ;;  %4704 = vrcp.f32 %v6272_v38  ;;  %v968_v42 = vand.u32 2147483647, %v6276_v53 }
 0x1b4   : > { %9120 = vst [vmem:[#allocation149_spill] sm:$0xff] %v6266_v30  ;;  %v6298_v48 = vpop.eup %4698  ;;  %v1628_v1 = vadd.f32 %v6211_v50, %v1627_v46  ;;  %v1635_v3 = vand.u32 2147483648, %v6154_v43  ;;  %v1641_v39 = vsub.f32 1.0, %v1640_v9  ;;  %v1037_v55 = vmul.f32 0.3275911, %v6288_v12 }
 0x1b5   : > { %9121 = vst [vmem:[#allocation150_spill] sm:$0xff] %v6270_v5  ;;  %v2758_v22 = vsub.f32 0.0, %v2694_v19  ;;  %v2249_v19 = vmul.f32 %v2185_v58, %v6242_v11  ;;  %v1633_v58 = vand.u32 2147483647, %v6154_v43  ;;  %v3387_v46 = vpack.c.bf16 %v5726_v23, %v5609_v17 }
 0x1b6   : > { %9122 = vst [vmem:[#allocation151_spill] sm:$0xff] %v6272_v38  ;;  %v3388_v5 = vpack.c.bf16 %v5794_v52, %v5616_v54  ;;  %v1032_v30 = vmul.f32 0.3275911, %v968_v42  ;;  %4706 = vrcp.f32 %v6301_v24  ;;  %v1632_v54 = vsel %vm6331_vm14, %v6211_v50, %v1628_v1 }
 0x1b7   : > { %9123 = vst [vmem:[#allocation152_spill] sm:$0xff] %v6274_v15  ;;  %v6305_v15 = vpop.eup %4700  ;;  %v2851_v4 = vmul.f32 1.442695, %v2758_v22  ;;  %v2313_v17 = vadd.f32 1.4214138, %v2249_v19  ;;  %v1636_v23 = vor.u32 1.1754944e-38, %v1635_v3  ;;  %3779 = vmatmul.bf16.vlgmr.msrb.gmra.mxu2 %v3387_v46  ;;  %vm1645_vm0 = vweird.f32 %v6268_v27 }
 0x1b8   : > { %9124 = vst [vmem:[#allocation153_spill] sm:$0xff] %v6276_v53  ;;  %v6315_v53 = vadd.f32 %v693_v56, %v5215_v59  ;;  %v6324_v9 = vpop.eup %4702  ;;  %3828 = vmatmul.bf16.vlgmr.msrb.gmra.mxu3 %v3388_v5  ;;  %v6342_v43 = vadd.f32 1.0, %v1037_v55  ;;  %vm1634_vm15 = vcmp.eq.f32.partialorder %v1633_v58, 8.507059e+37  ;;  %v6353_v5 = vadd.f32 1.0, %v1032_v30  ;;  %vm6381_vm2 = vmor %vm1644_vm1, %vm1645_vm0 }
 0x1b9   : > { %9125 = vst [vmem:[#allocation154_spill] sm:$0xff] %v6279_v37  ;;  %v2695_v37 = vmul.f32 %v967_v34, %v967_v34  ;;  %v6339_v52 = vpop.eup %4704  ;;  %v1642_v34 = vmul.f32 %v6268_v27, %v1641_v39  ;;  %4708 = vpow2.f32 %v2851_v4  ;;  %v6355_v1 = vsel %vm1634_vm15, %v1636_v23, %v1632_v54 }
 0x1ba   : > { %9126 = vst [vmem:[#allocation155_spill] sm:$0xff] %v6283_v36  ;;  %v1575_v36 = vand.u32 2147483648, %v6272_v38  ;;  %v2377_v3 = vmul.f32 %v2313_v17, %v6242_v11  ;;  %v2697_v39 = vmul.f32 %v6018_v6, %v6018_v6  ;;  %4710 = vrcp.f32 %v6342_v43 }
 0x1bb   : > { %9127 = vst [vmem:[#allocation156_spill] sm:$0xff] %v6293_v25  ;;  %v1655_v25 = vmul.f32 %v6290_v60, %v6240_v44  ;;  %v2122_v55 = vmul.f32 1.0614054, %v6355_v1  ;;  %v1650_v6 = vand.u32 2147483648, %v6208_v10  ;;  %4712 = vrcp.f32 %v6353_v5 }
 0x1bc   : > { %9128 = vst [vmem:[#allocation157_spill] sm:$0xff] %v6298_v48  ;;  %v6351_v50 = vor.u32 1.1754944e-38, %v1575_v36  ;;  %v6367_v30 = vpop.eup %4706  ;;  %v2696_v36 = vmul.f32 %v968_v42, %v968_v42  ;;  %v1648_v46 = vand.u32 2147483647, %v6208_v10  ;;  %v1565_v17 = vmul.f32 %v6339_v52, %v6272_v38 }
 0x1bd   : > { %9129 = vst [vmem:[#allocation158_spill] sm:$0xff] %v6301_v24  ;;  %v1656_v22 = vsub.f32 1.0, %v1655_v25  ;;  %v2759_v25 = vsub.f32 0.0, %v2695_v37  ;;  %v1590_v54 = vand.u32 2147483648, %v6301_v24  ;;  %v2761_v23 = vsub.f32 0.0, %v2697_v39 }
 0x1be   : > { %9130 = vst [vmem:[#allocation159_spill] sm:$0xff] %v6305_v15  ;;  %v1550_v15 = vmul.f32 %v6298_v48, %v6232_v14  ;;  %v6348_v14 = vadd.f32 %v6230_v35, %v1537_v33  ;;  %vm1660_vm3 = vweird.f32 %v6290_v60  ;;  %v1580_v39 = vmul.f32 %v6367_v30, %v6301_v24 }
 0x1bf   : > { %9131 = vst [vmem:[#allocation160_spill] sm:$0xff] %v6324_v9  ;;  %v6345_v9 = vmul.f32 0.70710677, %v6315_v53  ;;  %v1657_v33 = vmul.f32 %v6290_v60, %v1656_v22  ;;  %v2441_v22 = vadd.f32 -0.28449672, %v2377_v3  ;;  %v1665_v35 = vand.u32 2147483648, %v6240_v44  ;;  %vm6407_vm6 = vmor %vm1659_vm5, %vm1660_vm3 }
 0x1c0   : > { %9134 = vst [vmem:[#allocation161_spill] sm:$0xff] %v6339_v52  ;;  %v1551_v19 = vsub.f32 1.0, %v1550_v15  ;;  %v1643_v15 = vadd.f32 %v6268_v27, %v1642_v34  ;;  %v6386_v34 = vpop.eup %4708  ;;  %v2186_v56 = vadd.f32 -1.4531521, %v2122_v55  ;;  %vm1649_vm4 = vcmp.eq.f32.partialorder %v1648_v46, 8.507059e+37 }
 0x1c1   : > { %9135 = vst [vmem:[#allocation162_spill] sm:$0xff] %v6348_v14  ;;  %v6365_v4 = vand.u32 2147483647, %v6345_v9  ;;  %v1651_v14 = vor.u32 1.1754944e-38, %v1650_v6  ;;  %v1566_v3 = vsub.f32 1.0, %v1565_v17  ;;  %v6422_v24 = vor.u32 1.1754944e-38, %v1590_v54 }
 0x1c2   : > { %9136 = vst [vmem:[#allocation163_spill] sm:$0xff] %v6351_v50  ;;  %v1552_v37 = vmul.f32 %v6298_v48, %v1551_v19  ;;  %v1647_v10 = vsel %vm6381_vm2, %v6268_v27, %v1643_v15  ;;  %v1658_v19 = vadd.f32 %v6290_v60, %v1657_v33  ;;  %v6396_v50 = vpop.eup %4710  ;;  %v1663_v27 = vand.u32 2147483647, %v6240_v44  ;;  %vm6532_vm2 = vmor %vm1254_vm8, %vm1255_vm9 }
 0x1c3   : > { %9137 = vst [vmem:[#allocation164_spill] sm:$0xff] %v6353_v5  ;;  %v1038_v58 = vmul.f32 0.3275911, %v6365_v4  ;;  %v2853_v15 = vmul.f32 1.442695, %v2759_v25  ;;  %v2760_v33 = vsub.f32 0.0, %v2696_v36  ;;  %v6403_v42 = vsel %vm1649_vm4, %v1651_v14, %v1647_v10  ;;  %v6411_v6 = vpop.eup %4712 }
 0x1c4   : > { %9138 = vst [vmem:[#allocation165_spill] sm:$0xff] %v6367_v30  ;;  %v2857_v46 = vmul.f32 1.442695, %v2761_v23  ;;  %v1662_v44 = vsel %vm6407_vm6, %v6290_v60, %v1658_v19  ;;  %v1581_v25 = vsub.f32 1.0, %v1580_v39  ;;  %v2250_v14 = vmul.f32 %v2186_v56, %v6355_v1 }
 0x1c5   : > { %9141 = vst [vmem:[#allocation166_spill] sm:$0xff] %v6386_v34  ;;  %v6399_v34 = vadd.f32 %v6298_v48, %v1552_v37  ;;  %v2505_v37 = vmul.f32 %v2441_v22, %v6242_v11  ;;  %v6417_v17 = vadd.f32 1.0, %v1038_v58  ;;  %v1666_v36 = vor.u32 1.1754944e-38, %v1665_v35 }
 0x1c6   : > { %9145 = vst [vmem:[#allocation168_spill] sm:$0xff] %v6411_v6  ;;  %v1670_v10 = vmul.f32 %v6396_v50, %v6342_v43  ;;  %v2123_v22 = vmul.f32 1.0614054, %v6403_v42  ;;  %vm1664_vm7 = vcmp.eq.f32.partialorder %v1663_v27, 8.507059e+37  ;;  %v1567_v23 = vmul.f32 %v6339_v52, %v1566_v3 }
 0x1c7   : > { %9142 = vst [vmem:[#allocation167_spill] sm:$0xff] %v6399_v34  ;;  %v1605_v34 = vand.u32 2147483648, %v6353_v5  ;;  %v1595_v60 = vmul.f32 %v6411_v6, %v6353_v5  ;;  %v2855_v58 = vmul.f32 1.442695, %v2760_v33  ;;  %v6429_v19 = vsel %vm1664_vm7, %v1666_v36, %v1662_v44  ;;  %v742_v36 = vpop.f32.mrf.mxu2 }
 0x1c8   : > { %9146 = vst [vmem:[#allocation169_spill] sm:$0xff] %v6422_v24  ;;  %v2569_v56 = vadd.f32 0.2548296, %v2505_v37  ;;  %v2698_v54 = vmul.f32 %v6109_v31, %v6109_v31  ;;  %4714 = vrcp.f32 %v6417_v17  ;;  %v1582_v39 = vmul.f32 %v6367_v30, %v1581_v25 }
 0x1c9   : > { %4716 = vpow2.f32 %v2857_v46  ;;  %v2314_v27 = vadd.f32 1.4214138, %v2250_v14  ;;  %v1671_v55 = vsub.f32 1.0, %v1670_v10  ;;  %v6436_v3 = vor.u32 1.1754944e-38, %v1605_v34  ;;  %v791_v14 = vpop.f32.mrf.mxu3 }
 0x1ca   : > { %4718 = vpow2.f32 %v2853_v15  ;;  %v2187_v24 = vadd.f32 -1.4531521, %v2123_v22  ;;  %v2124_v33 = vmul.f32 1.0614054, %v6429_v19  ;;  %v6440_v44 = vadd.f32 %v6339_v52, %v1567_v23 }
 0x1cb   : > { %9147 = vst [vmem:[#allocation170_spill] sm:$0xff] %v6436_v3  ;;  %v1596_v37 = vsub.f32 1.0, %v1595_v60  ;;  %4720 = vpow2.f32 %v2855_v58  ;;  %v2699_v31 = vmul.f32 %v6158_v8, %v6158_v8  ;;  %v2633_v25 = vmul.f32 %v2569_v56, %v6242_v11 }
 0x1cc   : > { %9148 = vst [vmem:[#allocation171_spill] sm:$0xff] %v6440_v44  ;;  %v6446_v46 = vmul.f32 0.5, %v6073_v29  ;;  %v2762_v15 = vsub.f32 0.0, %v2698_v54  ;;  %v2700_v34 = vmul.f32 %v6185_v28, %v6185_v28  ;;  %v6453_v10 = vadd.f32 %v6367_v30, %v1582_v39  ;;  %v9182_v44 = vld [vmem:[#allocation57_spill] sm:$0xff] }
 0x1cd   : > { %v2378_v8 = vmul.f32 %v2314_v27, %v6355_v1  ;;  %v6457_v22 = vmul.f32 0.5, %v6112_v26  ;;  %v1672_v29 = vmul.f32 %v6396_v50, %v1671_v55  ;;  %v2251_v23 = vmul.f32 %v2187_v24, %v6403_v42 }
 0x1ce   : > { %9149 = vst [vmem:[#allocation172_spill] sm:$0xff] %v6453_v10  ;;  %v6460_v11 = vpop.eup %4714  ;;  %v6464_v28 = vmul.f32 0.5, %v6138_v32  ;;  %v2188_v60 = vadd.f32 -1.4531521, %v2124_v33  ;;  %v6467_v58 = vadd.f32 %v742_v36, %v5220_v62  ;;  %v1597_v54 = vmul.f32 %v6411_v6, %v1596_v37 }
 0x1cf   : > { %v4717_v56 = vpop.eup %4716  ;;  %v2763_v26 = vsub.f32 0.0, %v2699_v31  ;;  %v6472_v39 = vmul.f32 0.5, %v6245_v20  ;;  %v6475_v27 = vadd.f32 %v791_v14, %v5222_v0  ;;  %v2859_v55 = vmul.f32 1.442695, %v2762_v15  ;;  %v647_v14 = vpop.f32.mrf.mxu0 }
 0x1d0   : > { %v6477_v24 = vpop.eup %4718  ;;  %v2953_v32 = vmul.f32 %v4717_v56, %v2633_v25  ;;  %v2764_v33 = vsub.f32 0.0, %v2700_v34  ;;  %v2701_v36 = vmul.f32 %v6288_v12, %v6288_v12  ;;  %vm1314_vm11 = vweird.f32 %v5699_v47 }
 0x1d1   : > { %9150 = vst [vmem:[#allocation173_spill] sm:$0xff] %v6477_v24  ;;  %v6481_v35 = vpop.eup %4720  ;;  %v2442_v37 = vadd.f32 -0.28449672, %v2378_v8  ;;  %v1673_v31 = vadd.f32 %v6396_v50, %v1672_v29  ;;  %vm1675_vm12 = vweird.f32 %v6396_v50  ;;  %v1685_v20 = vmul.f32 %v6460_v11, %v6417_v17  ;;  %vm6555_vm5 = vmor %vm1314_vm11, %vm1315_vm10 }
 0x1d2   : > { %9151 = vst [vmem:[#allocation174_spill] sm:$0xff] %v6481_v35  ;;  %v9152_v25 = vand.u32 2147483647, %v5558_v13  ;;  %v2315_v12 = vadd.f32 1.4214138, %v2251_v23  ;;  %v2252_v34 = vmul.f32 %v2188_v60, %v6429_v19  ;;  %v1680_v56 = vand.u32 2147483648, %v6342_v43 }
 0x1d3   : > { %v6497_v8 = vmul.f32 0.70710677, %v6467_v58  ;;  %vm3081_vm14 = vcmp.lt.f32.partialorder %v5997_v21, 0.0  ;;  %v2861_v29 = vmul.f32 1.442695, %v2763_v26  ;;  %vm1674_vm15 = vweird.f32 %v6342_v43 }
 0x1d4   : > { %vm6490_vm13 = vcmp.eq.f32.partialorder %v9152_v25, 8.507059e+37  ;;  %v1678_v35 = vand.u32 2147483647, %v6342_v43  ;;  %v6503_v25 = vmul.f32 0.70710677, %v6475_v27  ;;  %v6506_v24 = vadd.f32 %v6411_v6, %v1597_v54  ;;  %vm6510_vm0 = vmor %vm1674_vm15, %vm1675_vm12 }
 0x1d5   : > { %v3017_v23 = vsub.f32 1.0, %v2953_v32  ;;  %4722 = vpow2.f32 %v2859_v55  ;;  %v6515_v26 = vadd.f32 %v647_v14, %v5213_v57  ;;  %v2506_v3 = vmul.f32 %v2442_v37, %v6355_v1 }
 0x1d6   : > { %9155 = vst [vmem:[#allocation175_spill] sm:$0xff] %v6506_v24  ;;  %v1677_v43 = vsel %vm6510_vm0, %v6396_v50, %v1673_v31  ;;  %v2765_v5 = vsub.f32 0.0, %v2701_v36  ;;  %v1686_v54 = vsub.f32 1.0, %v1685_v20  ;;  %v2379_v32 = vmul.f32 %v2315_v12, %v6403_v42 }
 0x1d7   : > { %v2316_v55 = vadd.f32 1.4214138, %v2252_v34  ;;  %v1681_v24 = vor.u32 1.1754944e-38, %v1680_v56  ;;  %v6523_v6 = vand.u32 2147483647, %v6497_v8  ;;  %4724 = vpow2.f32 %v2861_v29 }
 0x1d8   : > { %v2863_v10 = vmul.f32 1.442695, %v2764_v33  ;;  %vm1679_vm1 = vcmp.eq.f32.partialorder %v1678_v35, 8.507059e+37  ;;  %v6526_v14 = vand.u32 2147483647, %v6503_v25  ;;  %v3145_v36 = vsub.f32 0.0, %v3017_v23 }
 0x1d9   : > { %v6536_v37 = vsel %vm1679_vm1, %v1681_v24, %v1677_v43  ;;  %v6539_v31 = vmul.f32 0.5, %v6315_v53  ;;  %v6542_v33 = vmul.f32 0.70710677, %v6515_v26  ;;  %v2570_v35 = vadd.f32 0.2548296, %v2506_v3 }
 0x1da   : > { %v2865_v20 = vmul.f32 1.442695, %v2765_v5  ;;  %v1687_v12 = vmul.f32 %v6460_v11, %v1686_v54  ;;  %v1257_v13 = vsel %vm6532_vm2, %v5606_v63, %v5697_v41  ;;  %vm1269_vm3 = vweird.f32 %v5573_v18 }
 0x1db   : > { %v4723_v34 = vpop.eup %4722  ;;  %vm1270_vm4 = vweird.f32 %v5618_v45  ;;  %v2443_v5 = vadd.f32 -0.28449672, %v2379_v32  ;;  %v2380_v3 = vmul.f32 %v2316_v55, %v6429_v19  ;;  %vm1689_vm6 = vweird.f32 %v6417_v17 }
 0x1dc   : > { %v1039_v63 = vmul.f32 0.3275911, %v6523_v6  ;;  %vm1330_vm7 = vweird.f32 %v5780_v16  ;;  %v2125_v41 = vmul.f32 1.0614054, %v6536_v37  ;;  %v1040_v24 = vmul.f32 0.3275911, %v6526_v14 }
 0x1dd   : > { %v6568_v56 = vsel %vm6490_vm13, %v5657_v61, %v1257_v13  ;;  %v1317_v29 = vsel %vm6555_vm5, %v5754_v7, %v5851_v51  ;;  %v3209_v60 = vsel %vm3081_vm14, %v3145_v36, %v3017_v23  ;;  %v1695_v43 = vand.u32 2147483648, %v6417_v17  ;;  %v6582_v55 = vpop.eup %4724  ;;  %vm6630_vm14 = vmor %vm1269_vm3, %vm1270_vm4 }
 0x1de   : > { %v2702_v54 = vmul.f32 %v6365_v4, %v6365_v4  ;;  %v6580_v32 = vand.u32 2147483647, %v6542_v33  ;;  %vm1329_vm8 = vweird.f32 %v5720_v49  ;;  %v2634_v61 = vmul.f32 %v2570_v35, %v6355_v1 }
 0x1df   : > { %v1688_v15 = vadd.f32 %v6460_v11, %v1687_v12  ;;  %vm1690_vm9 = vweird.f32 %v6460_v11  ;;  %v9162_v7 = vand.u32 2147483647, %v5699_v47  ;;  %v2444_v51 = vadd.f32 -0.28449672, %v2380_v3  ;;  %vm6646_vm0 = vmor %vm1329_vm8, %vm1330_vm7 }
 0x1e0   : > { %v6590_v21 = vadd.f32 1.0, %v1039_v63  ;;  %v2097_v23 = vmul.f32 1.0614054, %v6568_v56  ;;  %v2507_v50 = vmul.f32 %v2443_v5, %v6403_v42  ;;  %v2189_v36 = vadd.f32 -1.4531521, %v2125_v41  ;;  %vm6608_vm12 = vmor %vm1689_vm6, %vm1690_vm9 }
 0x1e1   : > { %vm1319_vm10 = vcmp.eq.f32.partialorder %v9162_v7, 8.507059e+37  ;;  %v1693_v1 = vand.u32 2147483647, %v6417_v17  ;;  %v6598_v35 = vadd.f32 1.0, %v1040_v24  ;;  %v9163_v12 = vand.u32 2147483647, %v5573_v18 }
 0x1e2   : > { %v6593_v4 = vsel %vm1319_vm10, %v5783_v40, %v1317_v29  ;;  %4726 = vpow2.f32 %v2863_v10  ;;  %v1041_v13 = vmul.f32 0.3275911, %v6580_v32  ;;  %v2161_v5 = vadd.f32 -1.4531521, %v2097_v23  ;;  %v696_v29 = vpop.f32.mrf.mxu1 }
 0x1e3   : > { %vm6602_vm11 = vcmp.eq.f32.partialorder %v9163_v12, 8.507059e+37  ;;  %v2101_v53 = vmul.f32 1.0614054, %v6593_v4  ;;  %v3273_v3 = vadd.f32 1.0, %v3209_v60  ;;  %4728 = vpow2.f32 %v2865_v20 }
 0x1e4   : > { %v1692_v63 = vsel %vm6608_vm12, %v6460_v11, %v1688_v15  ;;  %v2766_v41 = vsub.f32 0.0, %v2702_v54  ;;  %v2954_v24 = vmul.f32 %v4723_v34, %v2634_v61  ;;  %v2508_v10 = vmul.f32 %v2444_v51, %v6429_v19  ;;  %v9171_v54 = vld [vmem:[#allocation118_spill] sm:$0xff] }
 0x1e5   : > { %v1696_v17 = vor.u32 1.1754944e-38, %v1695_v43  ;;  %4730 = vrcp.f32 %v6590_v21  ;;  %v2571_v7 = vadd.f32 0.2548296, %v2507_v50  ;;  %vm1694_vm13 = vcmp.eq.f32.partialorder %v1693_v1, 8.507059e+37  ;;  %v9174_v1 = vld [vmem:[#allocation34_spill] sm:$0xff] }
 0x1e6   : > { %v2165_v12 = vadd.f32 -1.4531521, %v2101_v53  ;;  %v2225_v30 = vmul.f32 %v2161_v5, %v6568_v56  ;;  %v2253_v60 = vmul.f32 %v2189_v36, %v6536_v37  ;;  %4732 = vrcp.f32 %v6598_v35 }
 0x1e7   : > { %v6621_v20 = vsel %vm1694_vm13, %v1696_v17, %v1692_v63  ;;  %v6624_v11 = vadd.f32 1.0, %v1041_v13  ;;  %v6635_v43 = vmul.f32 %v3273_v3, %v6296_v2  ;;  %vm3082_vm15 = vcmp.lt.f32.partialorder %v9171_v54, 0.0  ;;  %v9175_v63 = vld [vmem:[#allocation70_spill] sm:$0xff] }
 0x1e8   : > { %v2867_v61 = vmul.f32 1.442695, %v2766_v41  ;;  %v6639_v15 = vadd.f32 %v696_v29, %v5215_v59  ;;  %v2229_v51 = vmul.f32 %v2165_v12, %v6593_v4  ;;  %v4727_v23 = vpop.eup %4726  ;;  %v3018_v50 = vsub.f32 1.0, %v2954_v24  ;;  %v9176_v29 = vld [vmem:[#allocation32_spill] sm:$0xff] }
 0x1e9   : > { %9170 = vst [vmem:[#allocation176_spill] sm:$0xff] %v6635_v43  ;;  %v2572_v2 = vadd.f32 0.2548296, %v2508_v10  ;;  %v2289_v36 = vadd.f32 1.4214138, %v2225_v30  ;;  %v1272_v40 = vsel %vm6630_vm14, %v5618_v45, %v9174_v1  ;;  %v6654_v13 = vpop.eup %4728  ;;  %v2635_v53 = vmul.f32 %v2571_v7, %v6403_v42 }
 0x1ea   : > { %v2126_v5 = vmul.f32 1.0614054, %v6621_v20  ;;  %v2293_v3 = vadd.f32 1.4214138, %v2229_v51  ;;  %v1332_v41 = vsel %vm6646_vm0, %v5780_v16, %v9175_v63  ;;  %v2317_v30 = vadd.f32 1.4214138, %v2253_v60 }
 0x1eb   : > { %v6662_v24 = vpop.eup %4730  ;;  %v6665_v10 = vmul.f32 0.5, %v6467_v58  ;;  %4734 = vrcp.f32 %v6624_v11  ;;  %v2353_v45 = vmul.f32 %v2289_v36, %v6568_v56  ;;  %v6670_v42 = vmul.f32 0.70710677, %v6639_v15  ;;  %v9178_v51 = vld [vmem:[#allocation53_spill] sm:$0xff] }
 0x1ec   : > { %v2357_v17 = vmul.f32 %v2293_v3, %v6593_v4  ;;  %v6676_v7 = vsel %vm6602_vm11, %v9176_v29, %v1272_v40  ;;  %v9177_v16 = vand.u32 2147483647, %v5720_v49  ;;  %v6680_v12 = vpop.eup %4732  ;;  %v3146_v58 = vsub.f32 0.0, %v3018_v50 }
 0x1ed   : > { %v2636_v60 = vmul.f32 %v2572_v2, %v6429_v19  ;;  %v2417_v34 = vadd.f32 -0.28449672, %v2353_v45  ;;  %v6687_v36 = vmul.f32 %v6582_v55, %v2635_v53  ;;  %v2190_v1 = vadd.f32 -1.4531521, %v2126_v5 }
 0x1ee   : > { %vm1334_vm1 = vcmp.eq.f32.partialorder %v9177_v16, 8.507059e+37  ;;  %v1700_v47 = vmul.f32 %v6662_v24, %v6590_v21  ;;  %v2421_v40 = vadd.f32 -0.28449672, %v2357_v17  ;;  %v2381_v49 = vmul.f32 %v2317_v30, %v6536_v37  ;;  %v9179_v17 = vld [vmem:[#allocation16_spill] sm:$0xff] }
 0x1ef   : > { %v6684_v18 = vsel %vm1334_vm1, %v9178_v51, %v1332_v41  ;;  %4736 = vpow2.f32 %v2867_v61  ;;  %v2481_v3 = vmul.f32 %v2417_v34, %v6568_v56  ;;  %v2098_v63 = vmul.f32 1.0614054, %v6676_v7 }
 0x1f0   : > { %v1715_v19 = vmul.f32 %v6680_v12, %v6598_v35  ;;  %v6697_v2 = vand.u32 2147483647, %v6670_v42  ;;  %v2485_v55 = vmul.f32 %v2421_v40, %v6593_v4  ;;  %v2102_v53 = vmul.f32 1.0614054, %v6684_v18 }
 0x1f1   : > { %v6701_v5 = vpop.eup %4734  ;;  %v6705_v41 = vsel %vm3082_vm15, %v3146_v58, %v3018_v50  ;;  %v6709_v61 = vmul.f32 %v6523_v6, %v6523_v6  ;;  %v2545_v30 = vadd.f32 0.2548296, %v2481_v3  ;;  %v2162_v45 = vadd.f32 -1.4531521, %v2098_v63  ;;  %v9180_v58 = vld [vmem:[#allocation23_spill] sm:$0xff] }
 0x1f2   : > { %vm3057_vm2 = vcmp.lt.f32.partialorder %v9179_v17, 0.0  ;;  %v6713_v16 = vmul.f32 %v4727_v23, %v2636_v60  ;;  %v2254_v34 = vmul.f32 %v2190_v1, %v6621_v20  ;;  %v1701_v51 = vsub.f32 1.0, %v1700_v47  ;;  %v9181_v1 = vld [vmem:[#allocation31_spill] sm:$0xff] }
 0x1f3   : > { %v2445_v40 = vadd.f32 -0.28449672, %v2381_v49  ;;  %v2549_v43 = vadd.f32 0.2548296, %v2485_v55  ;;  %v2609_v54 = vmul.f32 %v2545_v30, %v6568_v56  ;;  %v2166_v50 = vadd.f32 -1.4531521, %v2102_v53 }
 0x1f4   : > { %vm3061_vm3 = vcmp.lt.f32.partialorder %v9180_v58, 0.0  ;;  %vm1704_vm4 = vweird.f32 %v6590_v21  ;;  %v1708_v6 = vand.u32 2147483647, %v6590_v21  ;;  %v1716_v3 = vsub.f32 1.0, %v1715_v19  ;;  %v9200_v58 = vld [vmem:[#allocation62_spill] sm:$0xff] }
 0x1f5   : > { %v1042_v63 = vmul.f32 0.3275911, %v6697_v2  ;;  %v6721_v29 = vpop.eup %4736  ;;  %v1730_v23 = vmul.f32 %v6701_v5, %v6624_v11  ;;  %v2613_v60 = vmul.f32 %v2549_v43, %v6593_v4  ;;  %v2929_v47 = vmul.f32 %v9181_v1, %v2609_v54 }
 0x1f6   : > { %v2226_v56 = vmul.f32 %v2162_v45, %v6676_v7  ;;  %v2318_v49 = vadd.f32 1.4214138, %v2254_v34  ;;  %v1702_v55 = vmul.f32 %v6662_v24, %v1701_v51  ;;  %v1710_v53 = vand.u32 2147483648, %v6590_v21 }
 0x1f7   : > { %v2230_v19 = vmul.f32 %v2166_v50, %v6684_v18  ;;  %v2509_v30 = vmul.f32 %v2445_v40, %v6536_v37  ;;  %v2933_v38 = vmul.f32 %v9182_v44, %v2613_v60  ;;  %v2993_v52 = vsub.f32 1.0, %v2929_v47 }
 0x1f8   : > { %v2290_v48 = vadd.f32 1.4214138, %v2226_v56  ;;  %vm1705_vm5 = vweird.f32 %v6662_v24  ;;  %vm6734_vm6 = vcmp.eq.f32.partialorder %v1708_v6, 8.507059e+37  ;;  %v1717_v43 = vmul.f32 %v6680_v12, %v1716_v3 }
 0x1f9   : > { %v6739_v45 = vadd.f32 1.0, %v1042_v63  ;;  %v2294_v34 = vadd.f32 1.4214138, %v2230_v19  ;;  %v1731_v51 = vsub.f32 1.0, %v1730_v23  ;;  %v2997_v54 = vsub.f32 1.0, %v2933_v38  ;;  %vm6755_vm8 = vmor %vm1704_vm4, %vm1705_vm5 }
 0x1fa   : > { %v3121_v50 = vsub.f32 0.0, %v2993_v52  ;;  %v2354_v40 = vmul.f32 %v2290_v48, %v6676_v7  ;;  %v1703_v44 = vadd.f32 %v6662_v24, %v1702_v55  ;;  %v1723_v60 = vand.u32 2147483647, %v6598_v35 }
 0x1fb   : > { %v1725_v1 = vand.u32 2147483648, %v6598_v35  ;;  %v2358_v6 = vmul.f32 %v2294_v34, %v6684_v18  ;;  %vm1720_vm7 = vweird.f32 %v6680_v12  ;;  %v3125_v47 = vsub.f32 0.0, %v2997_v54 }
 0x1fc   : > { %v3185_v3 = vsel %vm3057_vm2, %v3121_v50, %v2993_v52  ;;  %v2418_v63 = vadd.f32 -0.28449672, %v2354_v40  ;;  %v1718_v38 = vadd.f32 %v6680_v12, %v1717_v43  ;;  %4738 = vrcp.f32 %v6739_v45  ;;  %v9191_v50 = vld [vmem:[#allocation17_spill] sm:$0xff]  ;;  %v9192_v40 = vld [vmem:[#allocation20_spill] sm:$0xff] }
 0x1fd   : > { %v3249_v48 = vadd.f32 1.0, %v3185_v3  ;;  %v2422_v23 = vadd.f32 -0.28449672, %v2358_v6  ;;  %v1711_v55 = vor.u32 1.1754944e-38, %v1710_v53  ;;  %v1732_v19 = vmul.f32 %v6701_v5, %v1731_v51  ;;  %v9193_v6 = vld [vmem:[#allocation38_spill] sm:$0xff] }
 0x1fe   : > { %v3189_v52 = vsel %vm3061_vm3, %v3125_v47, %v2997_v54  ;;  %v2482_v17 = vmul.f32 %v2418_v63, %v6676_v7  ;;  %v1707_v43 = vsel %vm6755_vm8, %v6662_v24, %v1703_v44  ;;  %vm1719_vm9 = vweird.f32 %v6598_v35  ;;  %v745_v24 = vpop.f32.mrf.mxu2 }
 0x1ff   : > { %v3253_v34 = vadd.f32 1.0, %v3189_v52  ;;  %v2486_v21 = vmul.f32 %v2422_v23, %v6684_v18  ;;  %vm6770_vm10 = vmor %vm1719_vm9, %vm1720_vm7  ;;  %vm6774_vm11 = vcmp.eq.f32.partialorder %v1723_v60, 8.507059e+37  ;;  %v1726_v51 = vor.u32 1.1754944e-38, %v1725_v1  ;;  %v9194_v60 = vld [vmem:[#allocation25_spill] sm:$0xff] }
 0x200   : > { %vm1734_vm12 = vweird.f32 %v6624_v11  ;;  %v2546_v54 = vadd.f32 0.2548296, %v2482_v17  ;;  %vm3058_vm13 = vcmp.lt.f32.partialorder %v9191_v50, 0.0  ;;  %v1722_v35 = vsel %vm6770_vm10, %v6680_v12, %v1718_v38  ;;  %v9195_v12 = vld [vmem:[#allocation125_spill] sm:$0xff] }
 0x201   : > { %v3313_v44 = vmul.f32 %v3249_v48, %v9192_v40  ;;  %v3317_v47 = vmul.f32 %v3253_v34, %v9193_v6  ;;  %v2550_v3 = vadd.f32 0.2548296, %v2486_v21  ;;  %vm3062_vm14 = vcmp.lt.f32.partialorder %v9194_v60, 0.0  ;;  %v9197_v34 = vld [vmem:[#allocation29_spill] sm:$0xff] }
 0x202   : > { %v6788_v1 = vsel %vm6734_vm6, %v1711_v55, %v1707_v43  ;;  %v1733_v63 = vadd.f32 %v6701_v5, %v1732_v19  ;;  %vm1735_vm15 = vweird.f32 %v6701_v5  ;;  %v2610_v23 = vmul.f32 %v2546_v54, %v6676_v7  ;;  %v6793_v56 = vpop.eup %4738  ;;  %v9196_v19 = vld [vmem:[#allocation37_spill] sm:$0xff] }
 0x203   : > { %vm3083_vm0 = vcmp.lt.f32.partialorder %v9195_v12, 0.0  ;;  %v1740_v38 = vand.u32 2147483648, %v6624_v11  ;;  %v3389_v48 = vpack.c.bf16 %v3317_v47, %v3313_v44  ;;  %v2614_v52 = vmul.f32 %v2550_v3, %v6684_v18  ;;  %vm6815_vm2 = vmor %vm1734_vm12, %vm1735_vm15  ;;  %v9211_v12 = vld [vmem:[#allocation21_spill] sm:$0xff] }
 0x204   : > { %v6799_v17 = vadd.f32 %v745_v24, %v5220_v62  ;;  %v2382_v4 = vmul.f32 %v2318_v49, %v6621_v20  ;;  %v6804_v55 = vsel %vm6774_vm11, %v1726_v51, %v1722_v35  ;;  %v1738_v7 = vand.u32 2147483647, %v6624_v11  ;;  %v9201_v35 = vld [vmem:[#allocation22_spill] sm:$0xff]  ;;  %v9202_v11 = vld [vmem:[#allocation131_spill] sm:$0xff] }
 0x205   : > { %v2930_v43 = vmul.f32 %v9196_v19, %v2610_v23  ;;  %vm1285_vm1 = vweird.f32 %v9197_v34  ;;  %v3274_v21 = vadd.f32 1.0, %v6705_v41  ;;  %v2573_v53 = vadd.f32 0.2548296, %v2509_v30  ;;  %3686 = vmatmul.bf16.gmra.mxu0 %v3389_v48 }
 0x206   : > { %v2127_v18 = vmul.f32 1.0614054, %v6788_v1  ;;  %v2934_v51 = vmul.f32 %v9200_v58, %v2614_v52  ;;  %v3020_v54 = vsub.f32 1.0, %v6713_v16  ;;  %v1737_v41 = vsel %vm6815_vm2, %v6701_v5, %v1733_v63  ;;  %v9204_v63 = vld [vmem:[#allocation48_spill] sm:$0xff] }
 0x207   : > { %v1745_v30 = vmul.f32 %v6793_v56, %v6739_v45  ;;  %v2994_v24 = vsub.f32 1.0, %v2930_v43  ;;  %vm1284_vm3 = vweird.f32 %v9201_v35  ;;  %vm3084_vm4 = vcmp.lt.f32.partialorder %v9202_v11, 0.0  ;;  %v649_v11 = vpop.f32.mrf.mxu0 }
 0x208   : > { %v2128_v40 = vmul.f32 1.0614054, %v6804_v55  ;;  %v1741_v44 = vor.u32 1.1754944e-38, %v1740_v38  ;;  %v2998_v6 = vsub.f32 1.0, %v2934_v51  ;;  %v6830_v47 = vmul.f32 0.70710677, %v6799_v17  ;;  %vm6883_vm9 = vmor %vm1284_vm3, %vm1285_vm1 }
 0x209   : > { %v9203_v16 = vsub.f32 1.0, %v6687_v36  ;;  %v2446_v23 = vadd.f32 -0.28449672, %v2382_v4  ;;  %vm1739_vm5 = vcmp.eq.f32.partialorder %v1738_v7, 8.507059e+37  ;;  %v3122_v5 = vsub.f32 0.0, %v2994_v24 }
 0x20a   : > { %vm1345_vm6 = vweird.f32 %v9204_v63  ;;  %v2637_v48 = vmul.f32 %v2573_v53, %v6536_v37  ;;  %v2191_v52 = vadd.f32 -1.4531521, %v2127_v18  ;;  %v6836_v19 = vsel %vm1739_vm5, %v1741_v44, %v1737_v41  ;;  %v9208_v37 = vld [vmem:[#allocation36_spill] sm:$0xff] }
 0x20b   : > { %v3147_v3 = vsub.f32 0.0, %v9203_v16  ;;  %v3126_v43 = vsub.f32 0.0, %v2998_v6  ;;  %v2767_v38 = vsub.f32 0.0, %v6709_v61  ;;  %v6840_v49 = vmul.f32 0.5, %v6475_v27 }
 0x20c   : > { %v1746_v58 = vsub.f32 1.0, %v1745_v30  ;;  %v3186_v51 = vsel %vm3058_vm13, %v3122_v5, %v2994_v24  ;;  %v9205_v4 = vand.u32 2147483647, %v9201_v35  ;;  %vm1344_vm8 = vweird.f32 %v9208_v37 }
 0x20d   : > { %v2192_v53 = vadd.f32 -1.4531521, %v2128_v40  ;;  %v3190_v18 = vsel %vm3062_vm14, %v3126_v43, %v2998_v6  ;;  %v3250_v61 = vadd.f32 1.0, %v3186_v51  ;;  %v6854_v27 = vand.u32 2147483647, %v6830_v47  ;;  %v9212_v51 = vld [vmem:[#allocation44_spill] sm:$0xff]  ;;  %vm6912_vm15 = vmor %vm1344_vm8, %vm1345_vm6 }
 0x20e   : > { %vm6846_vm7 = vcmp.eq.f32.partialorder %v9205_v4, 8.507059e+37  ;;  %v9209_v41 = vmov %v9203_v16  ;;  %v3148_v30 = vsub.f32 0.0, %v3020_v54  ;;  %v2129_v24 = vmul.f32 1.0614054, %v6836_v19  ;;  %v794_v16 = vpop.f32.mrf.mxu3 }
 0x20f   : > { %v3211_v50 = vsel %vm3083_vm0, %v3147_v3, %v9209_v41  ;;  %v3254_v44 = vadd.f32 1.0, %v3190_v18  ;;  %v6862_v5 = vmul.f32 %v3274_v21, %v6446_v46  ;;  %v6865_v60 = vmul.f32 %v6654_v13, %v2637_v48 }
 0x210   : > { %v2510_v40 = vmul.f32 %v2446_v23, %v6621_v20  ;;  %v2255_v6 = vmul.f32 %v2191_v52, %v6788_v1  ;;  %v2869_v43 = vmul.f32 1.442695, %v2767_v38  ;;  %v1747_v36 = vmul.f32 %v6793_v56, %v1746_v58 }
 0x211   : > { %9210 = vst [vmem:[#allocation118_spill] sm:$0xff] %v6862_v5  ;;  %v3314_v3 = vmul.f32 %v3250_v61, %v9211_v12  ;;  %v3318_v4 = vmul.f32 %v3254_v44, %v9212_v51  ;;  %v6872_v41 = vadd.f32 1.0, %v3211_v50  ;;  %v2256_v18 = vmul.f32 %v2192_v53, %v6804_v55  ;;  %v9215_v53 = vld [vmem:[#allocation149_spill] sm:$0xff]  ;;  %v9216_v44 = vld [vmem:[#allocation46_spill] sm:$0xff]  ;;  %v9221_v51 = vld [vmem:[#allocation35_spill] sm:$0xff] }
 0x212   : > { %v1043_v46 = vmul.f32 0.3275911, %v6854_v27  ;;  %v6877_v13 = vadd.f32 %v794_v16, %v5222_v0  ;;  %v3212_v23 = vsel %vm3084_vm4, %v3148_v30, %v3020_v54  ;;  %v2704_v48 = vmul.f32 %v6526_v14, %v6526_v14  ;;  %v9217_v16 = vld [vmem:[#allocation33_spill] sm:$0xff] }
 0x213   : > { %v2193_v52 = vadd.f32 -1.4531521, %v2129_v24  ;;  %v3390_v38 = vpack.c.bf16 %v3318_v4, %v3314_v3  ;;  %v3021_v58 = vsub.f32 1.0, %v6865_v60  ;;  %vm3085_vm10 = vcmp.lt.f32.partialorder %v9215_v53, 0.0 }
 0x214   : > { %v2574_v61 = vadd.f32 0.2548296, %v2510_v40  ;;  %v2319_v50 = vadd.f32 1.4214138, %v2255_v6  ;;  %v1287_v35 = vsel %vm6883_vm9, %v9197_v34, %v9216_v44  ;;  %vm1300_vm11 = vweird.f32 %v9217_v16  ;;  %v9218_v34 = vld [vmem:[#allocation24_spill] sm:$0xff] }
 0x215   : > { %v1748_v54 = vadd.f32 %v6793_v56, %v1747_v36  ;;  %vm1749_vm12 = vweird.f32 %v6739_v45  ;;  %vm1750_vm13 = vweird.f32 %v6793_v56  ;;  %v1755_v14 = vand.u32 2147483648, %v6739_v45  ;;  %3735 = vmatmul.bf16.gmra.mxu1 %v3390_v38 }
 0x216   : > { %v3276_v30 = vadd.f32 1.0, %v3212_v23  ;;  %v2320_v24 = vadd.f32 1.4214138, %v2256_v18  ;;  %v6902_v60 = vadd.f32 1.0, %v1043_v46  ;;  %v6905_v40 = vmul.f32 0.70710677, %v6877_v13  ;;  %vm6931_vm1 = vmor %vm1749_vm12, %vm1750_vm13 }
 0x217   : > { %vm1299_vm14 = vweird.f32 %v9218_v34  ;;  %v2768_v36 = vsub.f32 0.0, %v2704_v48  ;;  %v2257_v12 = vmul.f32 %v2193_v52, %v6836_v19  ;;  %v1753_v3 = vand.u32 2147483647, %v6739_v45  ;;  %v9222_v18 = vld [vmem:[#allocation55_spill] sm:$0xff]  ;;  %v9232_v48 = vld [vmem:[#allocation60_spill] sm:$0xff] }
 0x218   : > { %v6921_v4 = vsel %vm6846_vm7, %v9221_v51, %v1287_v35  ;;  %vm1360_vm0 = vweird.f32 %v9222_v18  ;;  %v3149_v46 = vsub.f32 0.0, %v3021_v58  ;;  %v2638_v21 = vmul.f32 %v2574_v61, %v6621_v20  ;;  %v9225_v61 = vld [vmem:[#allocation72_spill] sm:$0xff]  ;;  %v9226_v45 = vld [vmem:[#allocation43_spill] sm:$0xff]  ;;  %vm6991_vm6 = vmor %vm1299_vm14, %vm1300_vm11 }
 0x219   : > { %v2705_v23 = vmul.f32 %v6580_v32, %v6580_v32  ;;  %v6936_v7 = vadd.f32 %v649_v11, %v5213_v57  ;;  %v2383_v52 = vmul.f32 %v2319_v50, %v6788_v1  ;;  %v1752_v20 = vsel %vm6931_vm1, %v6793_v56, %v1748_v54 }
 0x21a   : > { %v1756_v38 = vor.u32 1.1754944e-38, %v1755_v14  ;;  %v1347_v32 = vsel %vm6912_vm15, %v9204_v63, %v9225_v61  ;;  %vm1359_vm2 = vweird.f32 %v9226_v45  ;;  %v2384_v44 = vmul.f32 %v2320_v24, %v6804_v55 }
 0x21b   : > { %4740 = vrcp.f32 %v6902_v60  ;;  %v6950_v35 = vand.u32 2147483647, %v6905_v40  ;;  %v2099_v50 = vmul.f32 1.0614054, %v6921_v4  ;;  %v9227_v11 = vand.u32 2147483647, %v9218_v34  ;;  %vm7016_vm7 = vmor %vm1359_vm2, %vm1360_vm0 }
 0x21c   : > { %v2871_v54 = vmul.f32 1.442695, %v2768_v36  ;;  %v2321_v14 = vadd.f32 1.4214138, %v2257_v12  ;;  %vm1754_vm4 = vcmp.eq.f32.partialorder %v1753_v3, 8.507059e+37  ;;  %v6962_v24 = vmul.f32 %v6721_v29, %v2638_v21 }
 0x21d   : > { %vm6955_vm3 = vcmp.eq.f32.partialorder %v9227_v11, 8.507059e+37  ;;  %v9230_v63 = vand.u32 2147483647, %v9208_v37  ;;  %v6964_v6 = vsel %vm1754_vm4, %v1756_v38, %v1752_v20  ;;  %v6967_v51 = vmul.f32 0.70710677, %v6936_v7 }
 0x21e   : > { %v3213_v11 = vsel %vm3085_vm10, %v3149_v46, %v3021_v58  ;;  %v2447_v36 = vadd.f32 -0.28449672, %v2383_v52  ;;  %v2769_v12 = vsub.f32 0.0, %v2705_v23  ;;  %4742 = vpow2.f32 %v2869_v43  ;;  %v9237_v52 = vld [vmem:[#allocation49_spill] sm:$0xff]  ;;  %v9241_v43 = vld [vmem:[#allocation78_spill] sm:$0xff] }
 0x21f   : > { %vm1349_vm5 = vcmp.eq.f32.partialorder %v9230_v63, 8.507059e+37  ;;  %9231 = vst [vmem:[#allocation34_spill] sm:$0xff] %v6967_v51  ;;  %v2448_v37 = vadd.f32 -0.28449672, %v2384_v44  ;;  %v1044_v29 = vmul.f32 0.3275911, %v6950_v35  ;;  %v6978_v20 = vmul.f32 %v6872_v41, %v6457_v22 }
 0x220   : > { %v6970_v61 = vsel %vm1349_vm5, %v9232_v48, %v1347_v32  ;;  %v2163_v21 = vadd.f32 -1.4531521, %v2099_v50  ;;  %v6981_v38 = vmul.f32 %v3276_v30, %v6464_v28  ;;  %v2385_v32 = vmul.f32 %v2321_v14, %v6836_v19 }
 0x221   : > { %v2103_v3 = vmul.f32 1.0614054, %v6970_v61  ;;  %9233 = vst [vmem:[#allocation70_spill] sm:$0xff] %v6978_v20  ;;  %v2130_v58 = vmul.f32 1.0614054, %v6964_v6  ;;  %v6985_v53 = vpop.eup %4740  ;;  %v6995_v46 = vadd.f32 1.0, %v3213_v11  ;;  %4744 = vpow2.f32 %v2871_v54  ;;  %v698_v11 = vpop.f32.mrf.mxu1 }
 0x222   : > { %9234 = vst [vmem:[#allocation32_spill] sm:$0xff] %v6981_v38  ;;  %v8943_v22 = vsub.f32 1.0, %v6962_v24  ;;  %v6999_v28 = vand.u32 2147483647, %v6967_v51  ;;  %v2511_v41 = vmul.f32 %v2447_v36, %v6788_v1  ;;  %v2706_v30 = vmul.f32 %v6697_v2, %v6697_v2 }
 0x223   : > { %v2167_v23 = vadd.f32 -1.4531521, %v2103_v3  ;;  %v1302_v34 = vsel %vm6991_vm6, %v9217_v16, %v9237_v52  ;;  %v2512_v44 = vmul.f32 %v2448_v37, %v6804_v55  ;;  %v2873_v50 = vmul.f32 1.442695, %v2769_v12 }
 0x224   : > { %v7009_v14 = vadd.f32 1.0, %v1044_v29  ;;  %v2227_v54 = vmul.f32 %v2163_v21, %v6921_v4  ;;  %v2449_v2 = vadd.f32 -0.28449672, %v2385_v32  ;;  %v2194_v48 = vadd.f32 -1.4531521, %v2130_v58  ;;  %v4743_v12 = vpop.eup %4742  ;;  %v9240_v29 = vld [vmem:[#allocation42_spill] sm:$0xff] }
 0x225   : > { %v1760_v16 = vmul.f32 %v6985_v53, %v6902_v60  ;;  %v2231_v36 = vmul.f32 %v2167_v23, %v6970_v61  ;;  %v1045_v3 = vmul.f32 0.3275911, %v6999_v28  ;;  %v7027_v21 = vsel %vm6955_vm3, %v9240_v29, %v1302_v34  ;;  %v9243_v29 = vld [vmem:[#allocation65_spill] sm:$0xff] }
 0x226   : > { %v2291_v37 = vadd.f32 1.4214138, %v2227_v54  ;;  %v1362_v32 = vsel %vm7016_vm7, %v9222_v18, %v9241_v43  ;;  %vm3086_vm8 = vcmp.lt.f32.partialorder %v6345_v9, 0.0  ;;  %v3150_v58 = vsub.f32 0.0, %v8943_v22 }
 0x227   : > { %v2575_v23 = vadd.f32 0.2548296, %v2511_v41  ;;  %v2770_v52 = vsub.f32 0.0, %v2706_v30  ;;  %v2295_v38 = vadd.f32 1.4214138, %v2231_v36  ;;  %v4745_v20 = vpop.eup %4744  ;;  %4746 = vrcp.f32 %v7009_v14 }
 0x228   : > { %v2576_v54 = vadd.f32 0.2548296, %v2512_v44  ;;  %v7038_v56 = vadd.f32 %v698_v11, %v5215_v59  ;;  %v9242_v34 = vand.u32 2147483647, %v9226_v45  ;;  %v2355_v18 = vmul.f32 %v2291_v37, %v6921_v4 }
 0x229   : > { %v2359_v63 = vmul.f32 %v2295_v38, %v6970_v61  ;;  %v2100_v41 = vmul.f32 1.0614054, %v7027_v21  ;;  %v2513_v30 = vmul.f32 %v2449_v2, %v6836_v19  ;;  %v2258_v44 = vmul.f32 %v2194_v48, %v6964_v6 }
 0x22a   : > { %vm1364_vm9 = vcmp.eq.f32.partialorder %v9242_v34, 8.507059e+37  ;;  %v1761_v36 = vsub.f32 1.0, %v1760_v16  ;;  %v7050_v22 = vadd.f32 1.0, %v1045_v3  ;;  %4748 = vpow2.f32 %v2873_v50 }
 0x22b   : > { %v7045_v43 = vsel %vm1364_vm9, %v9243_v29, %v1362_v32  ;;  %v2419_v11 = vadd.f32 -0.28449672, %v2355_v18  ;;  %v2423_v45 = vadd.f32 -0.28449672, %v2359_v63  ;;  %v2639_v37 = vmul.f32 %v2575_v23, %v6788_v1 }
 0x22c   : > { %v2104_v34 = vmul.f32 1.0614054, %v7045_v43  ;;  %v2640_v38 = vmul.f32 %v2576_v54, %v6804_v55  ;;  %v2875_v32 = vmul.f32 1.442695, %v2770_v52  ;;  %v7056_v29 = vmul.f32 0.70710677, %v7038_v56 }
 0x22d   : > { %v2483_v2 = vmul.f32 %v2419_v11, %v6921_v4  ;;  %v2487_v48 = vmul.f32 %v2423_v45, %v6970_v61  ;;  %v2164_v16 = vadd.f32 -1.4531521, %v2100_v41  ;;  %v7060_v5 = vpop.eup %4746  ;;  %v2577_v50 = vadd.f32 0.2548296, %v2513_v30  ;;  %v9245_v54 = vld [vmem:[#allocation18_spill] sm:$0xff] }
 0x22e   : > { %9244 = vst [vmem:[#allocation53_spill] sm:$0xff] %v7056_v29  ;;  %v2168_v3 = vadd.f32 -1.4531521, %v2104_v34  ;;  %v2322_v18 = vadd.f32 1.4214138, %v2258_v44  ;;  %v1762_v63 = vmul.f32 %v6985_v53, %v1761_v36  ;;  %4750 = vrcp.f32 %v7050_v22  ;;  %v9246_v11 = vld [vmem:[#allocation26_spill] sm:$0xff] }
 0x22f   : > { %v2547_v1 = vadd.f32 0.2548296, %v2483_v2  ;;  %v2551_v55 = vadd.f32 0.2548296, %v2487_v48  ;;  %v2228_v23 = vmul.f32 %v2164_v16, %v7027_v21  ;;  %vm3059_vm10 = vcmp.lt.f32.partialorder %v9245_v54, 0.0  ;;  %v9252_v54 = vld [vmem:[#allocation19_spill] sm:$0xff] }
 0x230   : > { %v2232_v52 = vmul.f32 %v2168_v3, %v7045_v43  ;;  %vm3063_vm11 = vcmp.lt.f32.partialorder %v9246_v11, 0.0  ;;  %v9247_v41 = vsub.f32 1.0, %v6962_v24  ;;  %v7074_v44 = vmul.f32 %v4743_v12, %v2639_v37  ;;  %v4749_v45 = vpop.eup %4748  ;;  %v9248_v37 = vld [vmem:[#allocation41_spill] sm:$0xff] }
 0x231   : > { %4752 = vpow2.f32 %v2875_v32  ;;  %v7077_v36 = vand.u32 2147483647, %v7056_v29  ;;  %v7079_v34 = vmul.f32 %v4745_v20, %v2640_v38  ;;  %v2611_v2 = vmul.f32 %v2547_v1, %v6921_v4  ;;  %v9249_v20 = vld [vmem:[#allocation64_spill] sm:$0xff] }
 0x232   : > { %v7072_v30 = vsel %vm3086_vm8, %v3150_v58, %v9247_v41  ;;  %v2615_v48 = vmul.f32 %v2551_v55, %v6970_v61  ;;  %v2292_v16 = vadd.f32 1.4214138, %v2228_v23  ;;  %v2641_v24 = vmul.f32 %v2577_v50, %v6836_v19 }
 0x233   : > { %v1763_v9 = vadd.f32 %v6985_v53, %v1762_v63  ;;  %vm1765_vm12 = vweird.f32 %v6985_v53  ;;  %v1775_v12 = vmul.f32 %v7060_v5, %v7009_v14  ;;  %v2386_v58 = vmul.f32 %v2322_v18, %v6964_v6 }
 0x234   : > { %v2931_v32 = vmul.f32 %v9248_v37, %v2611_v2  ;;  %v2935_v38 = vmul.f32 %v9249_v20, %v2615_v48  ;;  %v2296_v3 = vadd.f32 1.4214138, %v2232_v52  ;;  %v7091_v4 = vpop.eup %4750  ;;  %vm1764_vm13 = vweird.f32 %v6902_v60 }
 0x235   : > { %v1770_v19 = vand.u32 2147483648, %v6902_v60  ;;  %v1046_v61 = vmul.f32 0.3275911, %v7077_v36  ;;  %v2356_v50 = vmul.f32 %v2292_v16, %v7027_v21  ;;  %vm7097_vm14 = vmor %vm1764_vm13, %vm1765_vm12  ;;  %v1768_v18 = vand.u32 2147483647, %v6902_v60 }
 0x236   : > { %v2995_v1 = vsub.f32 1.0, %v2931_v32  ;;  %v2999_v55 = vsub.f32 1.0, %v2935_v38  ;;  %v2360_v23 = vmul.f32 %v2296_v3, %v7045_v43  ;;  %v7105_v41 = vmul.f32 %v4749_v45, %v2641_v24 }
 0x237   : > { %v7103_v52 = vpop.eup %4752  ;;  %v1767_v2 = vsel %vm7097_vm14, %v6985_v53, %v1763_v9  ;;  %v1776_v48 = vsub.f32 1.0, %v1775_v12  ;;  %v2420_v16 = vadd.f32 -0.28449672, %v2356_v50  ;;  %v1790_v37 = vmul.f32 %v7091_v4, %v7050_v22 }
 0x238   : > { %v3123_v20 = vsub.f32 0.0, %v2995_v1  ;;  %v3127_v29 = vsub.f32 0.0, %v2999_v55  ;;  %v2424_v60 = vadd.f32 -0.28449672, %v2360_v23  ;;  %v2450_v32 = vadd.f32 -0.28449672, %v2386_v58 }
 0x239   : > { %v1771_v38 = vor.u32 1.1754944e-38, %v1770_v19  ;;  %v7112_v51 = vadd.f32 1.0, %v1046_v61  ;;  %v2484_v3 = vmul.f32 %v2420_v16, %v7027_v21  ;;  %vm1769_vm15 = vcmp.eq.f32.partialorder %v1768_v18, 8.507059e+37 }
 0x23a   : > { %v3187_v45 = vsel %vm3059_vm10, %v3123_v20, %v2995_v1  ;;  %v3191_v53 = vsel %vm3063_vm11, %v3127_v29, %v2999_v55  ;;  %v2488_v24 = vmul.f32 %v2424_v60, %v7045_v43  ;;  %v3023_v9 = vsub.f32 1.0, %v7074_v44  ;;  %v9253_v1 = vld [vmem:[#allocation30_spill] sm:$0xff]  ;;  %v9254_v55 = vld [vmem:[#allocation27_spill] sm:$0xff] }
 0x23b   : > { %v7121_v12 = vsel %vm1769_vm15, %v1771_v38, %v1767_v2  ;;  %v1777_v58 = vmul.f32 %v7060_v5, %v1776_v48  ;;  %v3251_v19 = vadd.f32 1.0, %v3187_v45  ;;  %vm3087_vm0 = vcmp.lt.f32.partialorder %v6497_v8, 0.0  ;;  %v9255_v2 = vld [vmem:[#allocation47_spill] sm:$0xff]  ;;  %v9256_v38 = vld [vmem:[#allocation50_spill] sm:$0xff]  ;;  %v9257_v45 = vld [vmem:[#allocation77_spill] sm:$0xff] }
 0x23c   : > { %v1791_v61 = vsub.f32 1.0, %v1790_v37  ;;  %v3255_v50 = vadd.f32 1.0, %v3191_v53  ;;  %v2548_v63 = vadd.f32 0.2548296, %v2484_v3  ;;  %v2552_v18 = vadd.f32 0.2548296, %v2488_v24 }
 0x23d   : > { %vm3060_vm1 = vcmp.lt.f32.partialorder %v9252_v54, 0.0  ;;  %vm3064_vm2 = vcmp.lt.f32.partialorder %v9253_v1, 0.0  ;;  %v3024_v29 = vsub.f32 1.0, %v7079_v34  ;;  %v3025_v11 = vsub.f32 1.0, %v7105_v41 }
 0x23e   : > { %v2514_v44 = vmul.f32 %v2450_v32, %v6964_v6  ;;  %4754 = vrcp.f32 %v7112_v51  ;;  %vm3088_vm3 = vcmp.lt.f32.partialorder %v6503_v25, 0.0  ;;  %v3315_v23 = vmul.f32 %v3251_v19, %v9254_v55 }
 0x23f   : > { %v3319_v48 = vmul.f32 %v3255_v50, %v9255_v2  ;;  %v2612_v16 = vmul.f32 %v2548_v63, %v7027_v21  ;;  %v2616_v37 = vmul.f32 %v2552_v18, %v7045_v43  ;;  %vm3089_vm4 = vcmp.lt.f32.partialorder %v6542_v33, 0.0 }
 0x240   : > { %v2131_v34 = vmul.f32 1.0614054, %v7121_v12  ;;  %v1778_v41 = vadd.f32 %v7060_v5, %v1777_v58  ;;  %vm1780_vm5 = vweird.f32 %v7060_v5  ;;  %v1785_v20 = vand.u32 2147483648, %v7009_v14  ;;  %v9267_v58 = vld [vmem:[#allocation51_spill] sm:$0xff] }
 0x241   : > { %v1792_v60 = vmul.f32 %v7091_v4, %v1791_v61  ;;  %v3391_v32 = vpack.c.bf16 %v3319_v48, %v3315_v23  ;;  %v2932_v3 = vmul.f32 %v9256_v38, %v2612_v16  ;;  %v2936_v53 = vmul.f32 %v9257_v45, %v2616_v37  ;;  %v9261_v48 = vld [vmem:[#allocation66_spill] sm:$0xff]  ;;  %v9262_v45 = vld [vmem:[#allocation88_spill] sm:$0xff] }
 0x242   : > { %v3151_v21 = vsub.f32 0.0, %v3023_v9  ;;  %v2578_v24 = vadd.f32 0.2548296, %v2514_v44  ;;  %vm1779_vm6 = vweird.f32 %v7009_v14  ;;  %v1783_v43 = vand.u32 2147483647, %v7009_v14  ;;  %v9260_v14 = vld [vmem:[#allocation54_spill] sm:$0xff] }
 0x243   : > { %v3152_v19 = vsub.f32 0.0, %v3024_v29  ;;  %v3153_v50 = vsub.f32 0.0, %v3025_v11  ;;  %vm7146_vm7 = vmor %vm1779_vm6, %vm1780_vm5  ;;  %3784 = vmatmul.bf16.gmra.mxu2 %v3391_v32  ;;  %v2996_v63 = vsub.f32 1.0, %v2932_v3  ;;  %v3000_v61 = vsub.f32 1.0, %v2936_v53  ;;  %v747_v3 = vpop.f32.mrf.mxu2 }
 0x244   : > { %v7150_v18 = vpop.eup %4754  ;;  %v2195_v55 = vadd.f32 -1.4531521, %v2131_v34  ;;  %v1782_v44 = vsel %vm7146_vm7, %v7060_v5, %v1778_v41  ;;  %v1786_v23 = vor.u32 1.1754944e-38, %v1785_v20  ;;  %v1800_v2 = vand.u32 2147483648, %v7050_v22 }
 0x245   : > { %vm1374_vm8 = vweird.f32 %v9260_v14  ;;  %vm1375_vm9 = vweird.f32 %v9261_v48  ;;  %v1793_v16 = vadd.f32 %v7091_v4, %v1792_v60  ;;  %vm1795_vm10 = vweird.f32 %v7091_v4 }
 0x246   : > { %v3124_v37 = vsub.f32 0.0, %v2996_v63  ;;  %v3128_v32 = vsub.f32 0.0, %v3000_v61  ;;  %v3215_v34 = vsel %vm3087_vm0, %v3151_v21, %v3023_v9  ;;  %v2642_v38 = vmul.f32 %v2578_v24, %v6964_v6 }
 0x247   : > { %vm1784_vm11 = vcmp.eq.f32.partialorder %v1783_v43, 8.507059e+37  ;;  %vm1794_vm12 = vweird.f32 %v7050_v22  ;;  %v1798_v41 = vand.u32 2147483647, %v7050_v22  ;;  %vm1435_vm13 = vweird.f32 %v9262_v45  ;;  %v9266_v43 = vld [vmem:[#allocation28_spill] sm:$0xff] }
 0x248   : > { %v7164_v5 = vsel %vm1784_vm11, %v1786_v23, %v1782_v44  ;;  %v3188_v20 = vsel %vm3060_vm1, %v3124_v37, %v2996_v63  ;;  %v3192_v60 = vsel %vm3064_vm2, %v3128_v32, %v3000_v61  ;;  %v3216_v8 = vsel %vm3088_vm3, %v3152_v19, %v3024_v29  ;;  %vm7174_vm14 = vmor %vm1794_vm12, %vm1795_vm10  ;;  %v9265_v29 = vld [vmem:[#allocation76_spill] sm:$0xff] }
 0x249   : > { %v1805_v9 = vmul.f32 %v7150_v18, %v7112_v51  ;;  %v3252_v22 = vadd.f32 1.0, %v3188_v20  ;;  %v3256_v53 = vadd.f32 1.0, %v3192_v60  ;;  %v3217_v54 = vsel %vm3089_vm4, %v3153_v50, %v3025_v11  ;;  %vm7225_vm3 = vmor %vm1374_vm8, %vm1375_vm9 }
 0x24a   : > { %v2259_v1 = vmul.f32 %v2195_v55, %v7121_v12  ;;  %v1797_v21 = vsel %vm7174_vm14, %v7091_v4, %v1793_v16  ;;  %v1801_v25 = vor.u32 1.1754944e-38, %v1800_v2  ;;  %vm1434_vm15 = vweird.f32 %v9265_v29 }
 0x24b   : > { %v2132_v24 = vmul.f32 1.0614054, %v7164_v5  ;;  %v3316_v19 = vmul.f32 %v3252_v22, %v9266_v43  ;;  %v3320_v63 = vmul.f32 %v3256_v53, %v9267_v58  ;;  %v7191_v61 = vadd.f32 %v747_v3, %v5220_v62  ;;  %v796_v3 = vpop.f32.mrf.mxu3  ;;  %v9278_v22 = vld [vmem:[#allocation91_spill] sm:$0xff]  ;;  %vm7260_vm4 = vmor %vm1434_vm15, %vm1435_vm13  ;;  %v9282_v43 = vld [vmem:[#allocation69_spill] sm:$0xff] }
 0x24c   : > { %v9268_v33 = vand.u32 2147483647, %v9260_v14  ;;  %v3278_v4 = vadd.f32 1.0, %v7072_v30  ;;  %v849_v50 = vmul.f32 0.5, %v6515_v26  ;;  %v2962_v55 = vmul.f32 %v7103_v52, %v2642_v38 }
 0x24d   : > { %vm1799_vm1 = vcmp.eq.f32.partialorder %v1798_v41, 8.507059e+37  ;;  %v3279_v44 = vadd.f32 1.0, %v3215_v34  ;;  %v1806_v2 = vsub.f32 1.0, %v1805_v9  ;;  %v3392_v16 = vpack.c.bf16 %v3320_v63, %v3316_v19  ;;  %v9283_v63 = vld [vmem:[#allocation73_spill] sm:$0xff] }
 0x24e   : > { %vm7195_vm0 = vcmp.eq.f32.partialorder %v9268_v33, 8.507059e+37  ;;  %v7202_v23 = vsel %vm1799_vm1, %v1801_v25, %v1797_v21  ;;  %v3280_v37 = vadd.f32 1.0, %v3216_v8  ;;  %v3281_v32 = vadd.f32 1.0, %v3217_v54 }
 0x24f   : > { %v7205_v20 = vmul.f32 0.5, %v6639_v15  ;;  %v2323_v60 = vadd.f32 1.4214138, %v2259_v1  ;;  %v7209_v30 = vmul.f32 %v6995_v46, %v6472_v39  ;;  %v2707_v26 = vmul.f32 %v6854_v27, %v6854_v27  ;;  %3833 = vmatmul.bf16.gmra.mxu3 %v3392_v16 }
 0x250   : > { %v2196_v52 = vadd.f32 -1.4531521, %v2132_v24  ;;  %v7214_v34 = vmul.f32 0.70710677, %v7191_v61  ;;  %v7217_v38 = vmul.f32 %v3278_v4, %v6539_v31  ;;  %v3026_v41 = vsub.f32 1.0, %v2962_v55  ;;  %v9281_v24 = vld [vmem:[#allocation56_spill] sm:$0xff] }
 0x251   : > { %9271 = vst [vmem:[#allocation16_spill] sm:$0xff] %v7209_v30  ;;  %vm3090_vm2 = vcmp.lt.f32.partialorder %v6670_v42, 0.0  ;;  %v2133_v15 = vmul.f32 1.0614054, %v7202_v23  ;;  %v7230_v27 = vmul.f32 %v3279_v44, %v6665_v10  ;;  %v7233_v46 = vmul.f32 0.5, %v6799_v17  ;;  %v9284_v4 = vld [vmem:[#allocation112_spill] sm:$0xff] }
 0x252   : > { %9272 = vst [vmem:[#allocation23_spill] sm:$0xff] %v7217_v38  ;;  %v1807_v31 = vmul.f32 %v7150_v18, %v1806_v2  ;;  %v7237_v8 = vadd.f32 %v796_v3, %v5222_v0  ;;  %v7240_v6 = vmul.f32 %v3280_v37, %v6840_v49  ;;  %v7242_v9 = vmul.f32 %v3281_v32, %v849_v50  ;;  %v652_v49 = vpop.f32.mrf.mxu0  ;;  %v9285_v50 = vld [vmem:[#allocation96_spill] sm:$0xff] }
 0x253   : > { %9275 = vst [vmem:[#allocation31_spill] sm:$0xff] %v7230_v27  ;;  %v2387_v14 = vmul.f32 %v2323_v60, %v7121_v12  ;;  %v1377_v10 = vsel %vm7225_vm3, %v9261_v48, %v9278_v22  ;;  %v2771_v53 = vsub.f32 0.0, %v2707_v26  ;;  %v7250_v17 = vmul.f32 0.5, %v6877_v13  ;;  %v9287_v60 = vld [vmem:[#allocation82_spill] sm:$0xff] }
 0x254   : > { %9276 = vst [vmem:[#allocation57_spill] sm:$0xff] %v7240_v6  ;;  %v2260_v54 = vmul.f32 %v2196_v52, %v7164_v5  ;;  %v7254_v1 = vand.u32 2147483647, %v7214_v34  ;;  %v3154_v25 = vsub.f32 0.0, %v3026_v41  ;;  %v2708_v48 = vmul.f32 %v6950_v35, %v6950_v35  ;;  %v9290_v52 = vld [vmem:[#allocation101_spill] sm:$0xff] }
 0x255   : > { %9277 = vst [vmem:[#allocation17_spill] sm:$0xff] %v7242_v9  ;;  %v2197_v13 = vadd.f32 -1.4531521, %v2133_v15  ;;  %vm1810_vm5 = vweird.f32 %v7150_v18  ;;  %vm1389_vm6 = vweird.f32 %v9281_v24  ;;  %vm1390_vm7 = vweird.f32 %v9282_v43 }
 0x256   : > { %v1808_v19 = vadd.f32 %v7150_v18, %v1807_v31  ;;  %v7271_v58 = vmul.f32 0.70710677, %v7237_v8  ;;  %v7276_v33 = vsel %vm7195_vm0, %v9283_v63, %v1377_v10  ;;  %v1437_v35 = vsel %vm7260_vm4, %v9262_v45, %v9284_v4  ;;  %vm7351_vm15 = vmor %vm1389_vm6, %vm1390_vm7 }
 0x257   : > { %vm1450_vm8 = vweird.f32 %v9285_v50  ;;  %v2451_v55 = vadd.f32 -0.28449672, %v2387_v14  ;;  %v1813_v44 = vand.u32 2147483647, %v7112_v51  ;;  %v1815_v2 = vand.u32 2147483648, %v7112_v51  ;;  %v701_v14 = vpop.f32.mrf.mxu1 }
 0x258   : > { %v7286_v16 = vadd.f32 %v652_v49, %v5213_v57  ;;  %v2324_v37 = vadd.f32 1.4214138, %v2260_v54  ;;  %vm1809_vm9 = vweird.f32 %v7112_v51  ;;  %v1047_v11 = vmul.f32 0.3275911, %v7254_v1 }
 0x259   : > { %v9286_v32 = vand.u32 2147483647, %v9265_v29  ;;  %vm1449_vm11 = vweird.f32 %v9287_v60  ;;  %v2877_v45 = vmul.f32 1.442695, %v2771_v53  ;;  %v7294_v3 = vmul.f32 0.5, %v6936_v7  ;;  %vm7298_vm12 = vmor %vm1809_vm9, %vm1810_vm5 }
 0x25a   : > { %v2105_v51 = vmul.f32 1.0614054, %v7276_v33  ;;  %v3218_v29 = vsel %vm3090_vm2, %v3154_v25, %v3026_v41  ;;  %v2261_v39 = vmul.f32 %v2197_v13, %v7202_v23  ;;  %v1812_v7 = vsel %vm7298_vm12, %v7150_v18, %v1808_v19  ;;  %vm7364_vm0 = vmor %vm1449_vm11, %vm1450_vm8 }
 0x25b   : > { %vm1439_vm10 = vcmp.eq.f32.partialorder %v9286_v32, 8.507059e+37  ;;  %v7313_v31 = vand.u32 2147483647, %v7271_v58  ;;  %v9291_v22 = vand.u32 2147483647, %v9281_v24  ;;  %v2772_v53 = vsub.f32 0.0, %v2708_v48 }
 0x25c   : > { %v7303_v15 = vsel %vm1439_vm10, %v9290_v52, %v1437_v35  ;;  %vm1814_vm14 = vcmp.eq.f32.partialorder %v1813_v44, 8.507059e+37  ;;  %v1816_v42 = vor.u32 1.1754944e-38, %v1815_v2  ;;  %v7322_v41 = vmul.f32 0.70710677, %v7286_v16 }
 0x25d   : > { %vm7317_vm13 = vcmp.eq.f32.partialorder %v9291_v22, 8.507059e+37  ;;  %v2515_v54 = vmul.f32 %v2451_v55, %v7121_v12  ;;  %v2388_v18 = vmul.f32 %v2324_v37, %v7164_v5  ;;  %v7326_v49 = vadd.f32 1.0, %v1047_v11 }
 0x25e   : > { %v2109_v21 = vmul.f32 1.0614054, %v7303_v15  ;;  %v2709_v25 = vmul.f32 %v6999_v28, %v6999_v28  ;;  %v7331_v13 = vsel %vm1814_vm14, %v1816_v42, %v1812_v7  ;;  %v7334_v48 = vadd.f32 %v701_v14, %v5215_v59  ;;  %v9298_v14 = vld [vmem:[#allocation93_spill] sm:$0xff] }
 0x25f   : > { %v2169_v19 = vadd.f32 -1.4531521, %v2105_v51  ;;  %4756 = vpow2.f32 %v2877_v45  ;;  %v2325_v63 = vadd.f32 1.4214138, %v2261_v39  ;;  %v1048_v4 = vmul.f32 0.3275911, %v7313_v31 }
 0x260   : > { %v2173_v35 = vadd.f32 -1.4531521, %v2109_v21  ;;  %v7337_v55 = vadd.f32 1.0, %v3218_v29  ;;  %v2879_v44 = vmul.f32 1.442695, %v2772_v53  ;;  %v7340_v2 = vmul.f32 0.5, %v7038_v56 }
 0x261   : > { %v7343_v37 = vand.u32 2147483647, %v7322_v41  ;;  %v2579_v28 = vadd.f32 0.2548296, %v2515_v54  ;;  %v2452_v11 = vadd.f32 -0.28449672, %v2388_v18  ;;  %4758 = vrcp.f32 %v7326_v49 }
 0x262   : > { %v2134_v32 = vmul.f32 1.0614054, %v7331_v13  ;;  %v2773_v26 = vsub.f32 0.0, %v2709_v25  ;;  %v7356_v56 = vmul.f32 0.70710677, %v7334_v48  ;;  %v2233_v52 = vmul.f32 %v2169_v19, %v7276_v33  ;;  %v9299_v18 = vld [vmem:[#allocation119_spill] sm:$0xff] }
 0x263   : > { %v2237_v51 = vmul.f32 %v2173_v35, %v7303_v15  ;;  %v2389_v24 = vmul.f32 %v2325_v63, %v7202_v23  ;;  %v2710_v39 = vmul.f32 %v7077_v36, %v7077_v36  ;;  %v7371_v7 = vadd.f32 1.0, %v1048_v4  ;;  %v9300_v4 = vld [vmem:[#allocation79_spill] sm:$0xff] }
 0x264   : > { %v1392_v22 = vsel %vm7351_vm15, %v9282_v43, %v9298_v14  ;;  %v1049_v53 = vmul.f32 0.3275911, %v7343_v37  ;;  %v2297_v42 = vadd.f32 1.4214138, %v2233_v52  ;;  %v1452_v21 = vsel %vm7364_vm0, %v9285_v50, %v9299_v18 }
 0x265   : > { %v2301_v54 = vadd.f32 1.4214138, %v2237_v51  ;;  %v4757_v25 = vpop.eup %4756  ;;  %v2643_v19 = vmul.f32 %v2579_v28, %v7121_v12  ;;  %v2516_v36 = vmul.f32 %v2452_v11, %v7164_v5  ;;  %v2198_v63 = vadd.f32 -1.4531521, %v2134_v32  ;;  %v9302_v28 = vld [vmem:[#allocation103_spill] sm:$0xff] }
 0x266   : > { %v7387_v35 = vsel %vm7317_vm13, %v9300_v4, %v1392_v22  ;;  %v7390_v43 = vand.u32 2147483647, %v7356_v56  ;;  %v2361_v45 = vmul.f32 %v2297_v42, %v7276_v33  ;;  %v9301_v50 = vand.u32 2147483647, %v9287_v60 }
 0x267   : > { %v2365_v52 = vmul.f32 %v2301_v54, %v7303_v15  ;;  %v7396_v51 = vpop.eup %4758  ;;  %v2453_v12 = vadd.f32 -0.28449672, %v2389_v24  ;;  %4760 = vrcp.f32 %v7371_v7  ;;  %v2106_v10 = vmul.f32 1.0614054, %v7387_v35 }
 0x268   : > { %vm1454_vm1 = vcmp.eq.f32.partialorder %v9301_v50, 8.507059e+37  ;;  %4762 = vpow2.f32 %v2879_v44  ;;  %v7403_v32 = vadd.f32 1.0, %v1049_v53  ;;  %v2425_v29 = vadd.f32 -0.28449672, %v2361_v45 }
 0x269   : > { %v7400_v11 = vsel %vm1454_vm1, %v9302_v28, %v1452_v21  ;;  %v2429_v14 = vadd.f32 -0.28449672, %v2365_v52  ;;  %v2881_v22 = vmul.f32 1.442695, %v2773_v26  ;;  %v2262_v42 = vmul.f32 %v2198_v63, %v7331_v13  ;;  %v9303_v28 = vld [vmem:[#allocation39_spill] sm:$0xff] }
 0x26a   : > { %v2774_v60 = vsub.f32 0.0, %v2710_v39  ;;  %v2110_v54 = vmul.f32 1.0614054, %v7400_v11  ;;  %v1820_v24 = vmul.f32 %v7396_v51, %v7326_v49  ;;  %v1050_v18 = vmul.f32 0.3275911, %v7390_v43 }
 0x26b   : > { %v2489_v21 = vmul.f32 %v2425_v29, %v7276_v33  ;;  %v2493_v4 = vmul.f32 %v2429_v14, %v7303_v15  ;;  %v7412_v44 = vmul.f32 %v4757_v25, %v2643_v19  ;;  %v2580_v53 = vadd.f32 0.2548296, %v2516_v36  ;;  %v9304_v36 = vld [vmem:[#allocation58_spill] sm:$0xff] }
 0x26c   : > { %v2170_v45 = vadd.f32 -1.4531521, %v2106_v10  ;;  %v2174_v52 = vadd.f32 -1.4531521, %v2110_v54  ;;  %v2517_v26 = vmul.f32 %v2453_v12, %v7202_v23  ;;  %4764 = vrcp.f32 %v7403_v32 }
 0x26d   : > { %v2553_v39 = vadd.f32 0.2548296, %v2489_v21  ;;  %v2557_v63 = vadd.f32 0.2548296, %v2493_v4  ;;  %v7416_v50 = vpop.eup %4760  ;;  %vm3065_vm2 = vcmp.lt.f32.partialorder %v9303_v28, 0.0  ;;  %vm3069_vm3 = vcmp.lt.f32.partialorder %v9304_v36, 0.0 }
 0x26e   : > { %v2326_v6 = vadd.f32 1.4214138, %v2262_v42  ;;  %v2883_v9 = vmul.f32 1.442695, %v2774_v60  ;;  %v2234_v29 = vmul.f32 %v2170_v45, %v7387_v35  ;;  %v2238_v25 = vmul.f32 %v2174_v52, %v7400_v11  ;;  %v4763_v19 = vpop.eup %4762  ;;  %v9305_v52 = vld [vmem:[#allocation85_spill] sm:$0xff] }
 0x26f   : > { %4766 = vpow2.f32 %v2881_v22  ;;  %v1821_v10 = vsub.f32 1.0, %v1820_v24  ;;  %v7422_v12 = vadd.f32 1.0, %v1050_v18  ;;  %v2617_v14 = vmul.f32 %v2553_v39, %v7276_v33  ;;  %v9306_v24 = vld [vmem:[#allocation110_spill] sm:$0xff] }
 0x270   : > { %v8948_v54 = vsub.f32 1.0, %v7412_v44  ;;  %v2644_v21 = vmul.f32 %v2580_v53, %v7164_v5  ;;  %v2621_v42 = vmul.f32 %v2557_v63, %v7303_v15  ;;  %v2298_v60 = vadd.f32 1.4214138, %v2234_v29 }
 0x271   : > { %v2581_v4 = vadd.f32 0.2548296, %v2517_v26  ;;  %v1835_v45 = vmul.f32 %v7416_v50, %v7371_v7  ;;  %v2937_v27 = vmul.f32 %v9305_v52, %v2617_v14  ;;  %v2302_v38 = vadd.f32 1.4214138, %v2238_v25 }
 0x272   : > { %v2390_v22 = vmul.f32 %v2326_v6, %v7331_v13  ;;  %4768 = vpow2.f32 %v2883_v9  ;;  %v2941_v18 = vmul.f32 %v9306_v24, %v2621_v42  ;;  %v2362_v33 = vmul.f32 %v2298_v60, %v7387_v35  ;;  %v7434_v39 = vpop.eup %4764 }
 0x273   : > { %v1822_v5 = vmul.f32 %v7396_v51, %v1821_v10  ;;  %4770 = vrcp.f32 %v7422_v12  ;;  %v3001_v15 = vsub.f32 1.0, %v2937_v27  ;;  %v2366_v53 = vmul.f32 %v2302_v38, %v7400_v11 }
 0x274   : > { %v7441_v26 = vsub.f32 0.0, %v8948_v54  ;;  %v7443_v63 = vmul.f32 %v4763_v19, %v2644_v21  ;;  %v3005_v6 = vsub.f32 1.0, %v2941_v18  ;;  %v2426_v9 = vadd.f32 -0.28449672, %v2362_v33 }
 0x275   : > { %v4767_v29 = vpop.eup %4766  ;;  %v2645_v25 = vmul.f32 %v2581_v4, %v7202_v23  ;;  %v1836_v14 = vsub.f32 1.0, %v1835_v45  ;;  %v3129_v42 = vsub.f32 0.0, %v3001_v15  ;;  %v2430_v60 = vadd.f32 -0.28449672, %v2366_v53 }
 0x276   : > { %v2454_v10 = vadd.f32 -0.28449672, %v2390_v22  ;;  %vm1825_vm4 = vweird.f32 %v7396_v51  ;;  %v1850_v38 = vmul.f32 %v7434_v39, %v7403_v32  ;;  %v3133_v27 = vsub.f32 0.0, %v3005_v6 }
 0x277   : > { %v1823_v52 = vadd.f32 %v7396_v51, %v1822_v5  ;;  %v3193_v19 = vsel %vm3065_vm2, %v3129_v42, %v3001_v15  ;;  %v2490_v21 = vmul.f32 %v2426_v9, %v7387_v35  ;;  %v2494_v24 = vmul.f32 %v2430_v60, %v7400_v11  ;;  %v9309_v42 = vld [vmem:[#allocation40_spill] sm:$0xff] }
 0x278   : > { %v7454_v23 = vpop.eup %4768  ;;  %vm1824_vm5 = vweird.f32 %v7326_v49  ;;  %v1828_v4 = vand.u32 2147483647, %v7326_v49  ;;  %v1830_v45 = vand.u32 2147483648, %v7326_v49  ;;  %v3197_v22 = vsel %vm3069_vm3, %v3133_v27, %v3005_v6  ;;  %v9312_v27 = vld [vmem:[#allocation86_spill] sm:$0xff] }
 0x279   : > { %v7461_v18 = vpop.eup %4770  ;;  %v1837_v28 = vmul.f32 %v7416_v50, %v1836_v14  ;;  %v3257_v33 = vadd.f32 1.0, %v3193_v19  ;;  %v3261_v5 = vadd.f32 1.0, %v3197_v22  ;;  %v2554_v15 = vadd.f32 0.2548296, %v2490_v21  ;;  %vm7470_vm7 = vmor %vm1824_vm5, %vm1825_vm4  ;;  %v9310_v14 = vld [vmem:[#allocation63_spill] sm:$0xff]  ;;  %v9313_v49 = vld [vmem:[#allocation90_spill] sm:$0xff] }
 0x27a   : > { %vm3091_vm6 = vcmp.lt.f32.partialorder %v6830_v47, 0.0  ;;  %v7465_v53 = vmul.f32 %v4767_v29, %v2645_v25  ;;  %v2518_v9 = vmul.f32 %v2454_v10, %v7331_v13  ;;  %v1851_v36 = vsub.f32 1.0, %v1850_v38  ;;  %v9311_v25 = vld [vmem:[#allocation61_spill] sm:$0xff] }
 0x27b   : > { %v2558_v6 = vadd.f32 0.2548296, %v2494_v24  ;;  %vm3066_vm8 = vcmp.lt.f32.partialorder %v9309_v42, 0.0  ;;  %vm3070_vm9 = vcmp.lt.f32.partialorder %v9310_v14, 0.0  ;;  %v1827_v60 = vsel %vm7470_vm7, %v7396_v51, %v1823_v52 }
 0x27c   : > { %v1845_v29 = vand.u32 2147483648, %v7371_v7  ;;  %v3321_v10 = vmul.f32 %v3257_v33, %v9311_v25  ;;  %v3325_v19 = vmul.f32 %v3261_v5, %v9312_v27  ;;  %v1831_v21 = vor.u32 1.1754944e-38, %v1830_v45  ;;  %v9314_v45 = vld [vmem:[#allocation114_spill] sm:$0xff]  ;;  %v750_v27 = vpop.f32.mrf.mxu2 }
 0x27d   : > { %v1865_v22 = vmul.f32 %v7461_v18, %v7422_v12  ;;  %v2618_v38 = vmul.f32 %v2554_v15, %v7387_v35  ;;  %v2622_v24 = vmul.f32 %v2558_v6, %v7400_v11  ;;  %vm1829_vm10 = vcmp.eq.f32.partialorder %v1828_v4, 8.507059e+37  ;;  %v9323_v4 = vld [vmem:[#allocation87_spill] sm:$0xff] }
 0x27e   : > { %v1838_v54 = vadd.f32 %v7416_v50, %v1837_v28  ;;  %vm1840_vm11 = vweird.f32 %v7416_v50  ;;  %v3393_v51 = vpack.c.bf16 %v3325_v19, %v3321_v10  ;;  %v7488_v52 = vsel %vm1829_vm10, %v1831_v21, %v1827_v60  ;;  %v9317_v21 = vld [vmem:[#allocation75_spill] sm:$0xff] }
 0x27f   : > { %v1852_v33 = vmul.f32 %v7434_v39, %v1851_v36  ;;  %v2938_v5 = vmul.f32 %v9313_v49, %v2618_v38  ;;  %v2942_v25 = vmul.f32 %v9314_v45, %v2622_v24  ;;  %v2582_v30 = vadd.f32 0.2548296, %v2518_v9 }
 0x280   : > { %vm1839_vm12 = vweird.f32 %v7371_v7  ;;  %v1843_v35 = vand.u32 2147483647, %v7371_v7  ;;  %v1846_v11 = vor.u32 1.1754944e-38, %v1845_v29  ;;  %3691 = vmatmul.bf16.gmra.mxu0 %v3393_v51  ;;  %vm1854_vm14 = vweird.f32 %v7403_v32 }
 0x281   : > { %vm7495_vm13 = vmor %vm1839_vm12, %vm1840_vm11  ;;  %v1866_v28 = vsub.f32 1.0, %v1865_v22  ;;  %v3002_v15 = vsub.f32 1.0, %v2938_v5  ;;  %v3006_v36 = vsub.f32 1.0, %v2942_v25  ;;  %v2135_v6 = vmul.f32 1.0614054, %v7488_v52  ;;  %v9319_v5 = vld [vmem:[#allocation59_spill] sm:$0xff] }
 0x282   : > { %v1842_v9 = vsel %vm7495_vm13, %v7416_v50, %v1838_v54  ;;  %v1860_v60 = vand.u32 2147483648, %v7403_v32  ;;  %v7506_v7 = vadd.f32 %v750_v27, %v5220_v62  ;;  %v1853_v29 = vadd.f32 %v7434_v39, %v1852_v33 }
 0x283   : > { %vm1855_vm15 = vweird.f32 %v7434_v39  ;;  %v3130_v10 = vsub.f32 0.0, %v3002_v15  ;;  %v3134_v19 = vsub.f32 0.0, %v3006_v36  ;;  %vm1405_vm0 = vweird.f32 %v9317_v21 }
 0x284   : > { %v9318_v22 = vsub.f32 1.0, %v7412_v44  ;;  %v3028_v50 = vsub.f32 1.0, %v7443_v63  ;;  %vm1844_vm1 = vcmp.eq.f32.partialorder %v1843_v35, 8.507059e+37  ;;  %v1858_v54 = vand.u32 2147483647, %v7403_v32  ;;  %v654_v44 = vpop.f32.mrf.mxu0  ;;  %vm7532_vm4 = vmor %vm1854_vm14, %vm1855_vm15  ;;  %v9322_v32 = vld [vmem:[#allocation67_spill] sm:$0xff] }
 0x285   : > { %v7518_v24 = vsel %vm1844_vm1, %v1846_v11, %v1842_v9  ;;  %v1867_v51 = vmul.f32 %v7461_v18, %v1866_v28  ;;  %v3194_v33 = vsel %vm3066_vm8, %v3130_v10, %v3002_v15  ;;  %v3198_v49 = vsel %vm3070_vm9, %v3134_v19, %v3006_v36  ;;  %v799_v10 = vpop.f32.mrf.mxu3 }
 0x286   : > { %v3219_v38 = vsel %vm3091_vm6, %v7441_v26, %v9318_v22  ;;  %vm1404_vm2 = vweird.f32 %v9319_v5  ;;  %vm3092_vm3 = vcmp.lt.f32.partialorder %v6905_v40, 0.0  ;;  %v3029_v47 = vsub.f32 1.0, %v7465_v53  ;;  %v9328_v22 = vld [vmem:[#allocation34_spill] sm:$0xff] }
 0x287   : > { %v3258_v63 = vadd.f32 1.0, %v3194_v33  ;;  %v3262_v42 = vadd.f32 1.0, %v3198_v49  ;;  %v7537_v14 = vmul.f32 0.70710677, %v7506_v7  ;;  %v2646_v45 = vmul.f32 %v2582_v30, %v7331_v13  ;;  %v9327_v13 = vld [vmem:[#allocation104_spill] sm:$0xff]  ;;  %vm7601_vm13 = vmor %vm1404_vm2, %vm1405_vm0 }
 0x288   : > { %v2199_v25 = vadd.f32 -1.4531521, %v2135_v6  ;;  %v1857_v53 = vsel %vm7532_vm4, %v7434_v39, %v1853_v29  ;;  %v1861_v27 = vor.u32 1.1754944e-38, %v1860_v60  ;;  %v2136_v35 = vmul.f32 1.0614054, %v7518_v24  ;;  %v9329_v33 = vld [vmem:[#allocation92_spill] sm:$0xff] }
 0x289   : > { %v3322_v11 = vmul.f32 %v3258_v63, %v9322_v32  ;;  %v3326_v28 = vmul.f32 %v3262_v42, %v9323_v4  ;;  %v7547_v15 = vadd.f32 %v654_v44, %v5213_v57  ;;  %v9324_v36 = vand.u32 2147483647, %v9319_v5  ;;  %v9336_v5 = vld [vmem:[#allocation97_spill] sm:$0xff] }
 0x28a   : > { %vm1859_vm6 = vcmp.eq.f32.partialorder %v1858_v54, 8.507059e+37  ;;  %v1868_v30 = vadd.f32 %v7461_v18, %v1867_v51  ;;  %vm1869_vm7 = vweird.f32 %v7422_v12  ;;  %vm1870_vm8 = vweird.f32 %v7461_v18 }
 0x28b   : > { %vm7551_vm5 = vcmp.eq.f32.partialorder %v9324_v36, 8.507059e+37  ;;  %vm1465_vm9 = vweird.f32 %v9327_v13  ;;  %v7559_v39 = vsel %vm1859_vm6, %v1861_v27, %v1857_v53  ;;  %v1875_v6 = vand.u32 2147483648, %v7422_v12  ;;  %vm7577_vm12 = vmor %vm1869_vm7, %vm1870_vm8  ;;  %v9337_v36 = vld [vmem:[#allocation84_spill] sm:$0xff] }
 0x28c   : > { %v3394_v60 = vpack.c.bf16 %v3326_v28, %v3322_v11  ;;  %v7563_v29 = vand.u32 2147483647, %v7537_v14  ;;  %v3156_v19 = vsub.f32 0.0, %v3028_v50  ;;  %vm3093_vm10 = vcmp.lt.f32.partialorder %v9328_v22, 0.0  ;;  %v9343_v22 = vld [vmem:[#allocation113_spill] sm:$0xff] }
 0x28d   : > { %v2263_v54 = vmul.f32 %v2199_v25, %v7488_v52  ;;  %v1873_v51 = vand.u32 2147483647, %v7422_v12  ;;  %vm1464_vm11 = vweird.f32 %v9329_v33  ;;  %v7571_v49 = vmul.f32 %v7337_v55, %v7205_v20 }
 0x28e   : > { %v3283_v44 = vadd.f32 1.0, %v3219_v38  ;;  %v2200_v26 = vadd.f32 -1.4531521, %v2136_v35  ;;  %3740 = vmatmul.bf16.gmra.mxu1 %v3394_v60  ;;  %v7582_v42 = vmul.f32 0.70710677, %v7547_v15  ;;  %v3157_v25 = vsub.f32 0.0, %v3029_v47 }
 0x28f   : > { %9330 = vst [vmem:[#allocation20_spill] sm:$0xff] %v7571_v49  ;;  %v2137_v53 = vmul.f32 1.0614054, %v7559_v39  ;;  %v1872_v20 = vsel %vm7577_vm12, %v7461_v18, %v1868_v30  ;;  %v7589_v55 = vadd.f32 %v799_v10, %v5222_v0  ;;  %v7592_v12 = vmul.f32 %v7454_v23, %v2646_v45  ;;  %v9340_v60 = vld [vmem:[#allocation53_spill] sm:$0xff] }
 0x290   : > { %v2711_v38 = vmul.f32 %v7254_v1, %v7254_v1  ;;  %v1876_v27 = vor.u32 1.1754944e-38, %v1875_v6  ;;  %v1051_v35 = vmul.f32 0.3275911, %v7563_v29  ;;  %v3220_v18 = vsel %vm3092_vm3, %v3156_v19, %v3028_v50  ;;  %vm7652_vm3 = vmor %vm1464_vm11, %vm1465_vm9 }
 0x291   : > { %9333 = vst [vmem:[#allocation38_spill] sm:$0xff] %v7589_v55  ;;  %v2327_v11 = vadd.f32 1.4214138, %v2263_v54  ;;  %v2712_v23 = vmul.f32 %v7313_v31, %v7313_v31  ;;  %vm1874_vm14 = vcmp.eq.f32.partialorder %v1873_v51, 8.507059e+37  ;;  %v2264_v1 = vmul.f32 %v2200_v26, %v7518_v24 }
 0x292   : > { %v7610_v45 = vsel %vm1874_vm14, %v1876_v27, %v1872_v20  ;;  %v7613_v4 = vand.u32 2147483647, %v7582_v42  ;;  %v1407_v28 = vsel %vm7601_vm13, %v9317_v21, %v9336_v5  ;;  %vm1420_vm15 = vweird.f32 %v9337_v36  ;;  %v9341_v21 = vld [vmem:[#allocation83_spill] sm:$0xff] }
 0x293   : > { %v7621_v40 = vmul.f32 %v3283_v44, %v7233_v46  ;;  %v3221_v31 = vsel %vm3093_vm10, %v3157_v25, %v3029_v47  ;;  %v2201_v50 = vadd.f32 -1.4531521, %v2137_v53  ;;  %v7626_v30 = vmul.f32 0.70710677, %v7589_v55  ;;  %v9342_v46 = vld [vmem:[#allocation71_spill] sm:$0xff] }
 0x294   : > { %v3030_v6 = vsub.f32 1.0, %v7592_v12  ;;  %vm3094_vm0 = vcmp.lt.f32.partialorder %v9340_v60, 0.0  ;;  %v2775_v10 = vsub.f32 0.0, %v2711_v38  ;;  %v7630_v19 = vadd.f32 1.0, %v1051_v35  ;;  %v9346_v12 = vld [vmem:[#allocation100_spill] sm:$0xff] }
 0x295   : > { %9338 = vst [vmem:[#allocation25_spill] sm:$0xff] %v7621_v40  ;;  %v7635_v54 = vsel %vm7551_vm5, %v9341_v21, %v1407_v28  ;;  %vm1419_vm1 = vweird.f32 %v9342_v46  ;;  %vm1480_vm2 = vweird.f32 %v9343_v22  ;;  %v3284_v47 = vadd.f32 1.0, %v3220_v18 }
 0x296   : > { %9339 = vst [vmem:[#allocation125_spill] sm:$0xff] %v7626_v30  ;;  %v2391_v51 = vmul.f32 %v2327_v11, %v7488_v52  ;;  %v2776_v44 = vsub.f32 0.0, %v2712_v23  ;;  %v2138_v26 = vmul.f32 1.0614054, %v7610_v45  ;;  %v7642_v63 = vmul.f32 0.5, %v7191_v61  ;;  %vm7706_vm7 = vmor %vm1419_vm1, %vm1420_vm15 }
 0x297   : > { %v7645_v25 = vmul.f32 0.5, %v7237_v8  ;;  %v2328_v53 = vadd.f32 1.4214138, %v2264_v1  ;;  %v1053_v9 = vmul.f32 0.3275911, %v7613_v4  ;;  %vm1479_vm4 = vweird.f32 %v9346_v12  ;;  %v703_v8 = vpop.f32.mrf.mxu1  ;;  %v9350_v1 = vld [vmem:[#allocation126_spill] sm:$0xff] }
 0x298   : > { %v3285_v38 = vadd.f32 1.0, %v3221_v31  ;;  %v2265_v61 = vmul.f32 %v2201_v50, %v7559_v39  ;;  %v7659_v27 = vand.u32 2147483647, %v7626_v30  ;;  %v2107_v35 = vmul.f32 1.0614054, %v7635_v54  ;;  %vm7726_vm8 = vmor %vm1479_vm4, %vm1480_vm2 }
 0x299   : > { %v9347_v32 = vand.u32 2147483647, %v9342_v46  ;;  %v3158_v11 = vsub.f32 0.0, %v3030_v6  ;;  %v2885_v23 = vmul.f32 1.442695, %v2775_v10  ;;  %4772 = vrcp.f32 %v7630_v19 }
 0x29a   : > { %v1467_v5 = vsel %vm7652_vm3, %v9327_v13, %v9350_v1  ;;  %v7674_v28 = vmul.f32 %v3284_v47, %v7250_v17  ;;  %v2455_v31 = vadd.f32 -0.28449672, %v2391_v51  ;;  %v2887_v50 = vmul.f32 1.442695, %v2776_v44  ;;  %v9353_v13 = vld [vmem:[#allocation115_spill] sm:$0xff] }
 0x29b   : > { %vm7664_vm5 = vcmp.eq.f32.partialorder %v9347_v32, 8.507059e+37  ;;  %v2202_v21 = vadd.f32 -1.4531521, %v2138_v26  ;;  %v2392_v32 = vmul.f32 %v2328_v53, %v7518_v24  ;;  %v7677_v55 = vadd.f32 1.0, %v1053_v9 }
 0x29c   : > { %9351 = vst [vmem:[#allocation37_spill] sm:$0xff] %v7674_v28  ;;  %v7680_v30 = vadd.f32 %v703_v8, %v5215_v59  ;;  %v9352_v10 = vand.u32 2147483647, %v9329_v33  ;;  %v2329_v40 = vadd.f32 1.4214138, %v2265_v61  ;;  %v7689_v47 = vmul.f32 %v3285_v38, %v7294_v3 }
 0x29d   : > { %v1052_v20 = vmul.f32 0.3275911, %v7659_v27  ;;  %v2171_v17 = vadd.f32 -1.4531521, %v2107_v35  ;;  %4774 = vpow2.f32 %v2885_v23  ;;  %v2713_v51 = vmul.f32 %v7343_v37, %v7343_v37  ;;  %v9358_v35 = vld [vmem:[#allocation108_spill] sm:$0xff] }
 0x29e   : > { %vm1469_vm6 = vcmp.eq.f32.partialorder %v9352_v10, 8.507059e+37  ;;  %9354 = vst [vmem:[#allocation29_spill] sm:$0xff] %v7689_v47  ;;  %v7696_v33 = vsel %vm3094_vm0, %v3158_v11, %v3030_v6  ;;  %v2519_v26 = vmul.f32 %v2455_v31, %v7488_v52  ;;  %4776 = vpow2.f32 %v2887_v50  ;;  %v9362_v10 = vld [vmem:[#allocation135_spill] sm:$0xff] }
 0x29f   : > { %v7686_v1 = vsel %vm1469_vm6, %v9353_v13, %v1467_v5  ;;  %v2266_v53 = vmul.f32 %v2202_v21, %v7610_v45  ;;  %v7700_v9 = vpop.eup %4772  ;;  %4778 = vrcp.f32 %v7677_v55  ;;  %v7712_v37 = vmul.f32 0.70710677, %v7680_v30 }
 0x2a0   : > { %v2111_v44 = vmul.f32 1.0614054, %v7686_v1  ;;  %v2235_v60 = vmul.f32 %v2171_v17, %v7635_v54  ;;  %v2456_v38 = vadd.f32 -0.28449672, %v2392_v32  ;;  %v2393_v61 = vmul.f32 %v2329_v40, %v7559_v39 }
 0x2a1   : > { %9357 = vst [vmem:[#allocation62_spill] sm:$0xff] %v7712_v37  ;;  %v7716_v8 = vadd.f32 1.0, %v1052_v20  ;;  %v1422_v46 = vsel %vm7706_vm7, %v9337_v36, %v9358_v35  ;;  %v2777_v23 = vsub.f32 0.0, %v2713_v51  ;;  %v2714_v5 = vmul.f32 %v7390_v43, %v7390_v43  ;;  %v9361_v36 = vld [vmem:[#allocation94_spill] sm:$0xff]  ;;  %v9364_v35 = vld [vmem:[#allocation120_spill] sm:$0xff] }
 0x2a2   : > { %v2175_v6 = vadd.f32 -1.4531521, %v2111_v44  ;;  %v2299_v31 = vadd.f32 1.4214138, %v2235_v60  ;;  %v2330_v50 = vadd.f32 1.4214138, %v2266_v53  ;;  %v1880_v21 = vmul.f32 %v7700_v9, %v7630_v19 }
 0x2a3   : > { %v7738_v32 = vsel %vm7664_vm5, %v9361_v36, %v1422_v46  ;;  %v1482_v20 = vsel %vm7726_vm8, %v9343_v22, %v9362_v10  ;;  %v4775_v13 = vpop.eup %4774  ;;  %v2583_v17 = vadd.f32 0.2548296, %v2519_v26  ;;  %v7745_v43 = vand.u32 2147483647, %v7712_v37 }
 0x2a4   : > { %v2239_v40 = vmul.f32 %v2175_v6, %v7686_v1  ;;  %v2363_v44 = vmul.f32 %v2299_v31, %v7635_v54  ;;  %v4777_v53 = vpop.eup %4776  ;;  %v2520_v3 = vmul.f32 %v2456_v38, %v7518_v24  ;;  %v2457_v6 = vadd.f32 -0.28449672, %v2393_v61 }
 0x2a5   : > { %4780 = vrcp.f32 %v7716_v8  ;;  %v9363_v18 = vand.u32 2147483647, %v9346_v12  ;;  %v7752_v60 = vpop.eup %4778  ;;  %v2108_v11 = vmul.f32 1.0614054, %v7738_v32  ;;  %v2394_v31 = vmul.f32 %v2330_v50, %v7610_v45 }
 0x2a6   : > { %v2303_v51 = vadd.f32 1.4214138, %v2239_v40  ;;  %v2427_v26 = vadd.f32 -0.28449672, %v2363_v44  ;;  %v2889_v40 = vmul.f32 1.442695, %v2777_v23  ;;  %vm1885_vm12 = vweird.f32 %v7700_v9 }
 0x2a7   : > { %vm1484_vm9 = vcmp.eq.f32.partialorder %v9363_v18, 8.507059e+37  ;;  %v2778_v38 = vsub.f32 0.0, %v2714_v5  ;;  %v1881_v61 = vsub.f32 1.0, %v1880_v21  ;;  %v1054_v36 = vmul.f32 0.3275911, %v7745_v43 }
 0x2a8   : > { %v2367_v22 = vmul.f32 %v2303_v51, %v7686_v1  ;;  %v7756_v46 = vsel %vm1484_vm9, %v9364_v35, %v1482_v20  ;;  %v2491_v12 = vmul.f32 %v2427_v26, %v7635_v54  ;;  %v2647_v51 = vmul.f32 %v2583_v17, %v7488_v52 }
 0x2a9   : > { %v2112_v18 = vmul.f32 1.0614054, %v7756_v46  ;;  %v2584_v44 = vadd.f32 0.2548296, %v2520_v3  ;;  %v2521_v20 = vmul.f32 %v2457_v6, %v7559_v39  ;;  %v1910_v35 = vmul.f32 %v7752_v60, %v7677_v55 }
 0x2aa   : > { %v2431_v10 = vadd.f32 -0.28449672, %v2367_v22  ;;  %v2555_v50 = vadd.f32 0.2548296, %v2491_v12  ;;  %v2172_v5 = vadd.f32 -1.4531521, %v2108_v11  ;;  %4782 = vpow2.f32 %v2889_v40 }
 0x2ab   : > { %v2176_v21 = vadd.f32 -1.4531521, %v2112_v18  ;;  %v7768_v28 = vpop.eup %4780  ;;  %v9365_v22 = vld [vmem:[#allocation45_spill] sm:$0xff]  ;;  %v2458_v26 = vadd.f32 -0.28449672, %v2394_v31  ;;  %v1882_v52 = vmul.f32 %v7700_v9, %v1881_v61  ;;  %v7774_v17 = vadd.f32 1.0, %v1054_v36 }
 0x2ac   : > { %v2495_v23 = vmul.f32 %v2431_v10, %v7686_v1  ;;  %vm3067_vm10 = vcmp.lt.f32.partialorder %v9365_v22, 0.0  ;;  %v7771_v49 = vmul.f32 1.442695, %v2778_v38  ;;  %v2619_v6 = vmul.f32 %v2555_v50, %v7635_v54  ;;  %v9366_v12 = vld [vmem:[#allocation74_spill] sm:$0xff]  ;;  %v9367_v38 = vld [vmem:[#allocation95_spill] sm:$0xff] }
 0x2ad   : > { %v2236_v10 = vmul.f32 %v2172_v5, %v7738_v32  ;;  %vm3071_vm11 = vcmp.lt.f32.partialorder %v9366_v12, 0.0  ;;  %v7779_v11 = vmul.f32 %v4775_v13, %v2647_v51  ;;  %v2648_v18 = vmul.f32 %v2584_v44, %v7518_v24  ;;  %v9368_v24 = vld [vmem:[#allocation122_spill] sm:$0xff] }
 0x2ae   : > { %v2559_v3 = vadd.f32 0.2548296, %v2495_v23  ;;  %v2585_v47 = vadd.f32 0.2548296, %v2521_v20  ;;  %v1911_v40 = vsub.f32 1.0, %v1910_v35  ;;  %v2939_v37 = vmul.f32 %v9367_v38, %v2619_v6 }
 0x2af   : > { %v2240_v61 = vmul.f32 %v2176_v21, %v7756_v46  ;;  %v2300_v36 = vadd.f32 1.4214138, %v2236_v10  ;;  %v2522_v23 = vmul.f32 %v2458_v26, %v7610_v45  ;;  %v1883_v54 = vadd.f32 %v7700_v9, %v1882_v52 }
 0x2b0   : > { %v2623_v31 = vmul.f32 %v2559_v3, %v7686_v1  ;;  %v1895_v13 = vmul.f32 %v7768_v28, %v7716_v8  ;;  %4784 = vrcp.f32 %v7774_v17  ;;  %v3003_v44 = vsub.f32 1.0, %v2939_v37  ;;  %v7792_v20 = vpop.eup %4782 }
 0x2b1   : > { %v2304_v1 = vadd.f32 1.4214138, %v2240_v61  ;;  %vm1884_vm13 = vweird.f32 %v7630_v19  ;;  %v1888_v35 = vand.u32 2147483647, %v7630_v19  ;;  %v1890_v50 = vand.u32 2147483648, %v7630_v19 }
 0x2b2   : > { %v2943_v51 = vmul.f32 %v9368_v24, %v2623_v31  ;;  %v2364_v5 = vmul.f32 %v2300_v36, %v7738_v32  ;;  %v1912_v21 = vmul.f32 %v7752_v60, %v1911_v40  ;;  %v3131_v52 = vsub.f32 0.0, %v3003_v44  ;;  %vm7807_vm14 = vmor %vm1884_vm13, %vm1885_vm12 }
 0x2b3   : > { %v2368_v3 = vmul.f32 %v2304_v1, %v7756_v46  ;;  %v7800_v6 = vmul.f32 %v4777_v53, %v2648_v18  ;;  %v2649_v37 = vmul.f32 %v2585_v47, %v7559_v39  ;;  %v7803_v10 = vadd.f32 0.2548296, %v2522_v23 }
 0x2b4   : > { %v3007_v26 = vsub.f32 1.0, %v2943_v51  ;;  %v2428_v19 = vadd.f32 -0.28449672, %v2364_v5  ;;  %v1887_v40 = vsel %vm7807_vm14, %v7700_v9, %v1883_v54  ;;  %v1896_v38 = vsub.f32 1.0, %v1895_v13  ;;  %v752_v54 = vpop.f32.mrf.mxu2  ;;  %v9371_v5 = vld [vmem:[#allocation52_spill] sm:$0xff] }
 0x2b5   : > { %v3195_v53 = vsel %vm3067_vm10, %v3131_v52, %v3003_v44  ;;  %vm1889_vm15 = vcmp.eq.f32.partialorder %v1888_v35, 8.507059e+37  ;;  %v1891_v39 = vor.u32 1.1754944e-38, %v1890_v50  ;;  %v2432_v18 = vadd.f32 -0.28449672, %v2368_v3  ;;  %v9375_v3 = vld [vmem:[#allocation99_spill] sm:$0xff] }
 0x2b6   : > { %v3135_v61 = vsub.f32 0.0, %v3007_v26  ;;  %v3259_v47 = vadd.f32 1.0, %v3195_v53  ;;  %v7816_v36 = vpop.eup %4784  ;;  %v1913_v23 = vadd.f32 %v7752_v60, %v1912_v21  ;;  %vm1915_vm0 = vweird.f32 %v7752_v60  ;;  %v9376_v53 = vld [vmem:[#allocation80_spill] sm:$0xff] }
 0x2b7   : > { %v2492_v9 = vmul.f32 %v2428_v19, %v7738_v32  ;;  %v7823_v13 = vsel %vm1889_vm15, %v1891_v39, %v1887_v40  ;;  %vm1914_vm1 = vweird.f32 %v7677_v55  ;;  %v1920_v22 = vand.u32 2147483648, %v7677_v55 }
 0x2b8   : > { %v3199_v24 = vsel %vm3071_vm11, %v3135_v61, %v3007_v26  ;;  %v1897_v44 = vmul.f32 %v7768_v28, %v1896_v38  ;;  %v1918_v1 = vand.u32 2147483647, %v7677_v55  ;;  %v2496_v35 = vmul.f32 %v2432_v18, %v7756_v46  ;;  %vm7831_vm3 = vmor %vm1914_vm1, %vm1915_vm0  ;;  %v9374_v26 = vld [vmem:[#allocation68_spill] sm:$0xff] }
 0x2b9   : > { %v3263_v51 = vadd.f32 1.0, %v3199_v24  ;;  %v2556_v50 = vadd.f32 0.2548296, %v2492_v9  ;;  %vm3068_vm2 = vcmp.lt.f32.partialorder %v9371_v5, 0.0  ;;  %v1925_v21 = vmul.f32 %v7816_v36, %v7774_v17  ;;  %v9377_v9 = vld [vmem:[#allocation102_spill] sm:$0xff] }
 0x2ba   : > { %v3323_v52 = vmul.f32 %v3259_v47, %v9374_v26  ;;  %v7840_v19 = vadd.f32 %v752_v54, %v5220_v62  ;;  %v2139_v55 = vmul.f32 1.0614054, %v7823_v13  ;;  %v1917_v40 = vsel %vm7831_vm3, %v7752_v60, %v1913_v23  ;;  %v9385_v26 = vld [vmem:[#allocation105_spill] sm:$0xff] }
 0x2bb   : > { %v3327_v31 = vmul.f32 %v3263_v51, %v9375_v3  ;;  %v2560_v38 = vadd.f32 0.2548296, %v2496_v35  ;;  %v2620_v61 = vmul.f32 %v2556_v50, %v7738_v32  ;;  %vm3072_vm4 = vcmp.lt.f32.partialorder %v9376_v53, 0.0  ;;  %v9378_v50 = vld [vmem:[#allocation129_spill] sm:$0xff] }
 0x2bc   : > { %vm1899_vm5 = vweird.f32 %v7716_v8  ;;  %vm1900_vm6 = vweird.f32 %v7768_v28  ;;  %v1921_v39 = vor.u32 1.1754944e-38, %v1920_v22  ;;  %v1898_v18 = vadd.f32 %v7768_v28, %v1897_v44 }
 0x2bd   : > { %v3395_v47 = vpack.c.bf16 %v3327_v31, %v3323_v52  ;;  %vm1919_vm7 = vcmp.eq.f32.partialorder %v1918_v1, 8.507059e+37  ;;  %v2624_v24 = vmul.f32 %v2560_v38, %v7756_v46  ;;  %v2940_v54 = vmul.f32 %v9377_v9, %v2620_v61  ;;  %vm7873_vm10 = vmor %vm1899_vm5, %vm1900_vm6  ;;  %v9382_v38 = vld [vmem:[#allocation121_spill] sm:$0xff] }
 0x2be   : > { %v1905_v60 = vand.u32 2147483648, %v7716_v8  ;;  %v7854_v23 = vsel %vm1919_vm7, %v1921_v39, %v1917_v40  ;;  %v1926_v32 = vsub.f32 1.0, %v1925_v21  ;;  %v7857_v51 = vmul.f32 0.70710677, %v7840_v19  ;;  %v9381_v40 = vld [vmem:[#allocation107_spill] sm:$0xff] }
 0x2bf   : > { %3789 = vmatmul.bf16.gmra.mxu2 %v3395_v47  ;;  %v2203_v35 = vadd.f32 -1.4531521, %v2139_v55  ;;  %v1903_v22 = vand.u32 2147483647, %v7716_v8  ;;  %v2944_v12 = vmul.f32 %v9378_v50, %v2624_v24  ;;  %v3004_v44 = vsub.f32 1.0, %v2940_v54 }
 0x2c0   : > { %v3031_v1 = vsub.f32 1.0, %v7779_v11  ;;  %vm3095_vm8 = vcmp.lt.f32.partialorder %v7214_v34, 0.0  ;;  %v3032_v46 = vsub.f32 1.0, %v7800_v6  ;;  %vm3096_vm9 = vcmp.lt.f32.partialorder %v7271_v58, 0.0  ;;  %v9391_v34 = vld [vmem:[#allocation144_spill] sm:$0xff] }
 0x2c1   : > { %v7866_v21 = vmul.f32 %v7792_v20, %v2649_v37  ;;  %4786 = vpow2.f32 %v7771_v49  ;;  %v1902_v11 = vsel %vm7873_vm10, %v7768_v28, %v1898_v18  ;;  %v2141_v6 = vmul.f32 1.0614054, %v7854_v23 }
 0x2c2   : > { %v3008_v52 = vsub.f32 1.0, %v2944_v12  ;;  %v3132_v3 = vsub.f32 0.0, %v3004_v44  ;;  %v2650_v20 = vmul.f32 %v7803_v10, %v7610_v45  ;;  %v1906_v49 = vor.u32 1.1754944e-38, %v1905_v60  ;;  %v9383_v12 = vld [vmem:[#allocation157_spill] sm:$0xff] }
 0x2c3   : > { %v1927_v37 = vmul.f32 %v7816_v36, %v1926_v32  ;;  %v7885_v8 = vand.u32 2147483647, %v7857_v51  ;;  %v2267_v31 = vmul.f32 %v2203_v35, %v7823_v13  ;;  %vm1904_vm11 = vcmp.eq.f32.partialorder %v1903_v22, 8.507059e+37 }
 0x2c4   : > { %v3136_v55 = vsub.f32 0.0, %v3008_v52  ;;  %v3196_v28 = vsel %vm3068_vm2, %v3132_v3, %v3004_v44  ;;  %vm1494_vm12 = vweird.f32 %v9381_v40  ;;  %vm1495_vm13 = vweird.f32 %v9382_v38  ;;  %v9384_v44 = vld [vmem:[#allocation81_spill] sm:$0xff] }
 0x2c5   : > { %v3286_v61 = vadd.f32 1.0, %v7696_v33  ;;  %v3159_v45 = vsub.f32 0.0, %v3031_v1  ;;  %v7893_v10 = vsel %vm1904_vm11, %v1906_v49, %v1902_v11  ;;  %v3260_v39 = vadd.f32 1.0, %v3196_v28  ;;  %v657_v49 = vpop.f32.mrf.mxu0 }
 0x2c6   : > { %v3160_v47 = vsub.f32 0.0, %v3032_v46  ;;  %v3033_v18 = vsub.f32 1.0, %v7866_v21  ;;  %v2205_v24 = vadd.f32 -1.4531521, %v2141_v6  ;;  %v3200_v9 = vsel %vm3072_vm4, %v3136_v55, %v3008_v52 }
 0x2c7   : > { %v4787_v54 = vpop.eup %4786  ;;  %v1928_v5 = vadd.f32 %v7816_v36, %v1927_v37  ;;  %vm1930_vm14 = vweird.f32 %v7816_v36  ;;  %v3264_v60 = vadd.f32 1.0, %v3200_v9  ;;  %v1055_v32 = vmul.f32 0.3275911, %v7885_v8  ;;  %v9393_v9 = vld [vmem:[#allocation128_spill] sm:$0xff]  ;;  %v9406_v37 = vld [vmem:[#allocation154_spill] sm:$0xff] }
 0x2c8   : > { %v7901_v33 = vmul.f32 %v4787_v54, %v2650_v20  ;;  %v2331_v35 = vadd.f32 1.4214138, %v2267_v31  ;;  %v2140_v22 = vmul.f32 1.0614054, %v7893_v10  ;;  %v1935_v50 = vand.u32 2147483648, %v7774_v17 }
 0x2c9   : > { %vm1555_vm15 = vweird.f32 %v9383_v12  ;;  %vm1929_vm0 = vweird.f32 %v7774_v17  ;;  %v1933_v53 = vand.u32 2147483647, %v7774_v17  ;;  %v3324_v21 = vmul.f32 %v3260_v39, %v9384_v44 }
 0x2ca   : > { %v3328_v11 = vmul.f32 %v3264_v60, %v9385_v26  ;;  %v3223_v6 = vsel %vm3095_vm8, %v3159_v45, %v3031_v1  ;;  %v3224_v52 = vsel %vm3096_vm9, %v3160_v47, %v3032_v46  ;;  %v3161_v3 = vsub.f32 0.0, %v3033_v18  ;;  %vm7917_vm1 = vmor %vm1929_vm0, %vm1930_vm14  ;;  %v801_v47 = vpop.f32.mrf.mxu3 }
 0x2cb   : > { %v2269_v20 = vmul.f32 %v2205_v24, %v7854_v23  ;;  %v9388_v17 = vand.u32 2147483647, %v9381_v40  ;;  %vm1554_vm3 = vweird.f32 %v9391_v34  ;;  %v2715_v58 = vmul.f32 %v7563_v29, %v7563_v29  ;;  %v9392_v24 = vld [vmem:[#allocation116_spill] sm:$0xff]  ;;  %vm7955_vm8 = vmor %vm1494_vm12, %vm1495_vm13 }
 0x2cc   : > { %v1932_v1 = vsel %vm7917_vm1, %v7816_v36, %v1928_v5  ;;  %v3396_v46 = vpack.c.bf16 %v3328_v11, %v3324_v21  ;;  %v7933_v31 = vadd.f32 1.0, %v1055_v32  ;;  %v3034_v55 = vsub.f32 1.0, %v7901_v33  ;;  %v9398_v21 = vld [vmem:[#allocation141_spill] sm:$0xff]  ;;  %vm1556_vm13 = vmor %vm1554_vm3, %vm1555_vm15 }
 0x2cd   : > { %vm7923_vm2 = vcmp.eq.f32.partialorder %v9388_v17, 8.507059e+37  ;;  %v2395_v28 = vmul.f32 %v2331_v35, %v7823_v13  ;;  %v2204_v45 = vadd.f32 -1.4531521, %v2140_v22  ;;  %v1936_v39 = vor.u32 1.1754944e-38, %v1935_v50 }
 0x2ce   : > { %vm1509_vm4 = vweird.f32 %v9392_v24  ;;  %vm1510_vm5 = vweird.f32 %v9393_v9  ;;  %v7940_v29 = vmul.f32 %v3286_v61, %v7340_v2  ;;  %v3287_v54 = vadd.f32 1.0, %v3223_v6  ;;  %3838 = vmatmul.bf16.gmra.mxu3 %v3396_v46 }
 0x2cf   : > { %v857_v36 = vmul.f32 0.5, %v7286_v16  ;;  %vm1934_vm6 = vcmp.eq.f32.partialorder %v1933_v53, 8.507059e+37  ;;  %v3288_v5 = vadd.f32 1.0, %v3224_v52  ;;  %vm3097_vm7 = vcmp.lt.f32.partialorder %v7322_v41, 0.0  ;;  %vm8028_vm15 = vmor %vm1509_vm4, %vm1510_vm5 }
 0x2d0   : > { %v2333_v60 = vadd.f32 1.4214138, %v2269_v20  ;;  %v7944_v32 = vsel %vm1934_vm6, %v1936_v39, %v1932_v1  ;;  %v858_v33 = vmul.f32 0.5, %v7334_v48  ;;  %v2779_v35 = vsub.f32 0.0, %v2715_v58  ;;  %v9397_v48 = vld [vmem:[#allocation161_spill] sm:$0xff]  ;;  %v9403_v1 = vld [vmem:[#allocation127_spill] sm:$0xff] }
 0x2d1   : > { %4788 = vrcp.f32 %v7933_v31  ;;  %v7949_v22 = vadd.f32 %v801_v47, %v5222_v0  ;;  %v3225_v41 = vsel %vm3097_vm7, %v3161_v3, %v3033_v18  ;;  %v3162_v2 = vsub.f32 0.0, %v3034_v55  ;;  %v9402_v3 = vld [vmem:[#allocation151_spill] sm:$0xff] }
 0x2d2   : > { %v2459_v61 = vadd.f32 -0.28449672, %v2395_v28  ;;  %v2268_v50 = vmul.f32 %v2204_v45, %v7893_v10  ;;  %vm1570_vm9 = vweird.f32 %v9397_v48  ;;  %v7962_v53 = vmul.f32 %v3287_v54, %v7642_v63  ;;  %v9404_v39 = vld [vmem:[#allocation167_spill] sm:$0xff] }
 0x2d3   : > { %9394 = vst [vmem:[#allocation22_spill] sm:$0xff] %v7949_v22  ;;  %vm3098_vm10 = vcmp.lt.f32.partialorder %v7356_v56, 0.0  ;;  %v2142_v44 = vmul.f32 1.0614054, %v7944_v32  ;;  %v1497_v40 = vsel %vm7955_vm8, %v9382_v38, %v9398_v21  ;;  %v7971_v18 = vmul.f32 %v3288_v5, %v7645_v25  ;;  %v9409_v21 = vld [vmem:[#allocation146_spill] sm:$0xff] }
 0x2d4   : > { %v7974_v26 = vmul.f32 0.5, %v7506_v7  ;;  %v2397_v11 = vmul.f32 %v2333_v60, %v7854_v23  ;;  %v2717_v63 = vmul.f32 %v7613_v4, %v7613_v4  ;;  %v9399_v6 = vand.u32 2147483647, %v9392_v24 }
 0x2d5   : > { %vm1569_vm12 = vweird.f32 %v9402_v3  ;;  %v3289_v38 = vadd.f32 1.0, %v3225_v41  ;;  %v2893_v20 = vmul.f32 1.442695, %v2779_v35  ;;  %v7987_v25 = vmul.f32 0.5, %v7547_v15 }
 0x2d6   : > { %vm7981_vm11 = vcmp.eq.f32.partialorder %v9399_v6, 8.507059e+37  ;;  %v7990_v7 = vmul.f32 0.70710677, %v7949_v22  ;;  %v3226_v4 = vsel %vm3098_vm10, %v3162_v2, %v3034_v55  ;;  %v2523_v17 = vmul.f32 %v2459_v61, %v7823_v13  ;;  %vm8054_vm0 = vmor %vm1569_vm12, %vm1570_vm9 }
 0x2d7   : > { %v2332_v58 = vadd.f32 1.4214138, %v2268_v50  ;;  %v8002_v15 = vsel %vm7923_vm2, %v9403_v1, %v1497_v40  ;;  %v8004_v46 = vpop.eup %4788  ;;  %v2716_v28 = vmul.f32 %v7659_v27, %v7659_v27  ;;  %v2206_v45 = vadd.f32 -1.4531521, %v2142_v44  ;;  %v9412_v1 = vld [vmem:[#allocation132_spill] sm:$0xff] }
 0x2d8   : > { %v1557_v47 = vsel %vm1556_vm13, %v9383_v12, %v9404_v39  ;;  %v9405_v56 = vand.u32 2147483647, %v9391_v34  ;;  %v2461_v55 = vadd.f32 -0.28449672, %v2397_v11  ;;  %v2781_v54 = vsub.f32 0.0, %v2717_v63 }
 0x2d9   : > { %v8013_v5 = vadd.f32 %v657_v49, %v5213_v57  ;;  %v3290_v35 = vadd.f32 1.0, %v3226_v4  ;;  %v2718_v16 = vmul.f32 %v7745_v43, %v7745_v43  ;;  %v8021_v27 = vand.u32 2147483647, %v7990_v7 }
 0x2da   : > { %vm1559_vm14 = vcmp.eq.f32.partialorder %v9405_v56, 8.507059e+37  ;;  %v2113_v12 = vmul.f32 1.0614054, %v8002_v15  ;;  %v8032_v41 = vmul.f32 %v3289_v38, %v857_v36  ;;  %v2587_v2 = vadd.f32 0.2548296, %v2523_v17 }
 0x2db   : > { %v8016_v60 = vsel %vm1559_vm14, %v9406_v37, %v1557_v47  ;;  %v2396_v61 = vmul.f32 %v2332_v58, %v7893_v10  ;;  %v1940_v43 = vmul.f32 %v8004_v46, %v7933_v31  ;;  %4790 = vpow2.f32 %v2893_v20  ;;  %v9413_v47 = vld [vmem:[#allocation171_spill] sm:$0xff] }
 0x2dc   : > { %v2270_v50 = vmul.f32 %v2206_v45, %v7944_v32  ;;  %v2117_v44 = vmul.f32 1.0614054, %v8016_v60  ;;  %v1512_v24 = vsel %vm8028_vm15, %v9393_v9, %v9409_v21  ;;  %v2780_v40 = vsub.f32 0.0, %v2716_v28 }
 0x2dd   : > { %v2525_v36 = vmul.f32 %v2461_v55, %v7854_v23  ;;  %v2897_v11 = vmul.f32 1.442695, %v2781_v54  ;;  %v8045_v63 = vmul.f32 0.70710677, %v8013_v5  ;;  %v8047_v6 = vmul.f32 %v3290_v35, %v858_v33 }
 0x2de   : > { %v2782_v38 = vsub.f32 0.0, %v2718_v16  ;;  %v1056_v20 = vmul.f32 0.3275911, %v8021_v27  ;;  %v2177_v49 = vadd.f32 -1.4531521, %v2113_v12  ;;  %v2651_v9 = vmul.f32 %v2587_v2, %v7823_v13  ;;  %v706_v2 = vpop.f32.mrf.mxu1 }
 0x2df   : > { %v2460_v17 = vadd.f32 -0.28449672, %v2396_v61  ;;  %v1941_v58 = vsub.f32 1.0, %v1940_v43  ;;  %v8062_v33 = vsel %vm7981_vm11, %v9412_v1, %v1512_v24  ;;  %v2334_v28 = vadd.f32 1.4214138, %v2270_v50  ;;  %v9415_v43 = vld [vmem:[#allocation163_spill] sm:$0xff] }
 0x2e0   : > { %v2181_v45 = vadd.f32 -1.4531521, %v2117_v44  ;;  %v2241_v39 = vmul.f32 %v2177_v49, %v8002_v15  ;;  %v1572_v56 = vsel %vm8054_vm0, %v9397_v48, %v9413_v47  ;;  %v8069_v55 = vmul.f32 1.442695, %v2780_v40 }
 0x2e1   : > { %v2589_v54 = vadd.f32 0.2548296, %v2525_v36  ;;  %4792 = vpow2.f32 %v2897_v11  ;;  %v8072_v13 = vand.u32 2147483647, %v8045_v63  ;;  %v4791_v37 = vpop.eup %4790  ;;  %v8074_v52 = vadd.f32 1.0, %v1056_v20 }
 0x2e2   : > { %v2245_v35 = vmul.f32 %v2181_v45, %v8016_v60  ;;  %v9414_v16 = vand.u32 2147483647, %v9402_v3  ;;  %v2114_v12 = vmul.f32 1.0614054, %v8062_v33  ;;  %v8080_v34 = vmul.f32 1.442695, %v2782_v38 }
 0x2e3   : > { %v1942_v48 = vmul.f32 %v8004_v46, %v1941_v58  ;;  %v2305_v61 = vadd.f32 1.4214138, %v2241_v39  ;;  %v8086_v44 = vmul.f32 %v4791_v37, %v2651_v9  ;;  %v2524_v21 = vmul.f32 %v2460_v17, %v7893_v10 }
 0x2e4   : > { %vm1574_vm1 = vcmp.eq.f32.partialorder %v9414_v16, 8.507059e+37  ;;  %v2398_v24 = vmul.f32 %v2334_v28, %v7944_v32  ;;  %v2309_v40 = vadd.f32 1.4214138, %v2245_v35  ;;  %v2653_v3 = vmul.f32 %v2589_v54, %v7854_v23 }
 0x2e5   : > { %v8084_v50 = vsel %vm1574_vm1, %v9415_v43, %v1572_v56  ;;  %v1057_v36 = vmul.f32 0.3275911, %v8072_v13  ;;  %v2369_v11 = vmul.f32 %v2305_v61, %v8002_v15  ;;  %4794 = vrcp.f32 %v8074_v52 }
 0x2e6   : > { %v2118_v38 = vmul.f32 1.0614054, %v8084_v50  ;;  %v8096_v20 = vadd.f32 %v706_v2, %v5215_v59  ;;  %v2373_v49 = vmul.f32 %v2309_v40, %v8016_v60  ;;  %v2178_v4 = vadd.f32 -1.4531521, %v2114_v12  ;;  %v9420_v40 = vld [vmem:[#allocation89_spill] sm:$0xff] }
 0x2e7   : > { %v4793_v9 = vpop.eup %4792  ;;  %v1943_v17 = vadd.f32 %v8004_v46, %v1942_v48  ;;  %vm1945_vm2 = vweird.f32 %v8004_v46  ;;  %v2433_v23 = vadd.f32 -0.28449672, %v2369_v11  ;;  %vm1944_vm3 = vweird.f32 %v7933_v31 }
 0x2e8   : > { %9416 = vst [vmem:[#allocation131_spill] sm:$0xff] %v8096_v20  ;;  %v2182_v58 = vadd.f32 -1.4531521, %v2118_v38  ;;  %v1950_v1 = vand.u32 2147483648, %v7933_v31  ;;  %v2437_v28 = vadd.f32 -0.28449672, %v2373_v49  ;;  %v2242_v45 = vmul.f32 %v2178_v4, %v8062_v33  ;;  %vm8110_vm4 = vmor %vm1944_vm3, %vm1945_vm2 }
 0x2e9   : > { %v1948_v39 = vand.u32 2147483647, %v7933_v31  ;;  %v8105_v47 = vadd.f32 1.0, %v1057_v36  ;;  %v2497_v56 = vmul.f32 %v2433_v23, %v8002_v15  ;;  %v3035_v37 = vsub.f32 1.0, %v8086_v44  ;;  %v9421_v4 = vld [vmem:[#allocation130_spill] sm:$0xff] }
 0x2ea   : > { %v2246_v54 = vmul.f32 %v2182_v58, %v8084_v50  ;;  %v8115_v16 = vmul.f32 0.70710677, %v8096_v20  ;;  %v2501_v12 = vmul.f32 %v2437_v28, %v8016_v60  ;;  %v2306_v48 = vadd.f32 1.4214138, %v2242_v45  ;;  %v9422_v58 = vld [vmem:[#allocation137_spill] sm:$0xff] }
 0x2eb   : > { %vm3099_vm5 = vcmp.lt.f32.partialorder %v7537_v14, 0.0  ;;  %v2588_v31 = vadd.f32 0.2548296, %v2524_v21  ;;  %v2462_v2 = vadd.f32 -0.28449672, %v2398_v24  ;;  %v1947_v61 = vsel %vm8110_vm4, %v8004_v46, %v1943_v17  ;;  %v8122_v44 = vpop.eup %4794 }
 0x2ec   : > { %9419 = vst [vmem:[#allocation48_spill] sm:$0xff] %v8115_v16  ;;  %v2561_v43 = vadd.f32 0.2548296, %v2497_v56  ;;  %vm3073_vm6 = vcmp.lt.f32.partialorder %v9420_v40, 0.0  ;;  %v8125_v36 = vmul.f32 %v4793_v9, %v2653_v3  ;;  %v1951_v11 = vor.u32 1.1754944e-38, %v1950_v1  ;;  %v9423_v56 = vld [vmem:[#allocation160_spill] sm:$0xff] }
 0x2ed   : > { %v2565_v38 = vadd.f32 0.2548296, %v2501_v12  ;;  %v2310_v49 = vadd.f32 1.4214138, %v2246_v54  ;;  %vm3077_vm7 = vcmp.lt.f32.partialorder %v9421_v4, 0.0  ;;  %vm1949_vm8 = vcmp.eq.f32.partialorder %v1948_v39, 8.507059e+37 }
 0x2ee   : > { %4796 = vrcp.f32 %v8105_v47  ;;  %v2625_v21 = vmul.f32 %v2561_v43, %v8002_v15  ;;  %v2370_v24 = vmul.f32 %v2306_v48, %v8062_v33  ;;  %v8131_v46 = vsel %vm1949_vm8, %v1951_v11, %v1947_v61 }
 0x2ef   : > { %v8134_v17 = vand.u32 2147483647, %v8115_v16  ;;  %v2629_v3 = vmul.f32 %v2565_v38, %v8016_v60  ;;  %v2374_v9 = vmul.f32 %v2310_v49, %v8084_v50  ;;  %4798 = vpow2.f32 %v8069_v55 }
 0x2f0   : > { %v1955_v23 = vmul.f32 %v8122_v44, %v8074_v52  ;;  %v2945_v1 = vmul.f32 %v9422_v58, %v2625_v21  ;;  %v2434_v28 = vadd.f32 -0.28449672, %v2370_v24  ;;  %v3163_v15 = vsub.f32 0.0, %v3035_v37 }
 0x2f1   : > { %v3037_v45 = vsub.f32 1.0, %v8125_v36  ;;  %v2526_v39 = vmul.f32 %v2462_v2, %v7944_v32  ;;  %v2949_v54 = vmul.f32 %v9423_v56, %v2629_v3  ;;  %vm3101_vm9 = vcmp.lt.f32.partialorder %v7582_v42, 0.0 }
 0x2f2   : > { %v2143_v60 = vmul.f32 1.0614054, %v8131_v46  ;;  %v3009_v35 = vsub.f32 1.0, %v2945_v1  ;;  %v2438_v12 = vadd.f32 -0.28449672, %v2374_v9  ;;  %v2498_v55 = vmul.f32 %v2434_v28, %v8062_v33  ;;  %v9425_v28 = vld [vmem:[#allocation139_spill] sm:$0xff] }
 0x2f3   : > { %v2652_v48 = vmul.f32 %v2588_v31, %v7893_v10  ;;  %4800 = vpow2.f32 %v8080_v34  ;;  %v1058_v61 = vmul.f32 0.3275911, %v8134_v17  ;;  %v3013_v43 = vsub.f32 1.0, %v2949_v54  ;;  %v9424_v10 = vld [vmem:[#allocation98_spill] sm:$0xff] }
 0x2f4   : > { %v8151_v36 = vpop.eup %4796  ;;  %v1956_v2 = vsub.f32 1.0, %v1955_v23  ;;  %v3137_v11 = vsub.f32 0.0, %v3009_v35  ;;  %v2502_v38 = vmul.f32 %v2438_v12, %v8084_v50  ;;  %v2562_v49 = vadd.f32 0.2548296, %v2498_v55 }
 0x2f5   : > { %v3227_v21 = vsel %vm3099_vm5, %v3163_v15, %v3035_v37  ;;  %v3165_v24 = vsub.f32 0.0, %v3037_v45  ;;  %v2590_v3 = vadd.f32 0.2548296, %v2526_v39  ;;  %v3141_v9 = vsub.f32 0.0, %v3013_v43  ;;  %v4799_v58 = vpop.eup %4798 }
 0x2f6   : > { %vm3074_vm10 = vcmp.lt.f32.partialorder %v9424_v10, 0.0  ;;  %v2207_v34 = vadd.f32 -1.4531521, %v2143_v60  ;;  %v3201_v31 = vsel %vm3073_vm6, %v3137_v11, %v3009_v35  ;;  %v2566_v1 = vadd.f32 0.2548296, %v2502_v38  ;;  %v9426_v60 = vld [vmem:[#allocation140_spill] sm:$0xff] }
 0x2f7   : > { %v2626_v23 = vmul.f32 %v2562_v49, %v8062_v33  ;;  %vm3078_vm11 = vcmp.lt.f32.partialorder %v9425_v28, 0.0  ;;  %v1970_v56 = vmul.f32 %v8151_v36, %v8105_v47  ;;  %v8163_v14 = vadd.f32 1.0, %v1058_v61 }
 0x2f8   : > { %v3205_v37 = vsel %vm3077_vm7, %v3141_v9, %v3013_v43  ;;  %v3265_v15 = vadd.f32 1.0, %v3201_v31  ;;  %v1957_v39 = vmul.f32 %v8122_v44, %v1956_v2  ;;  %v2630_v40 = vmul.f32 %v2566_v1, %v8084_v50  ;;  %v9427_v43 = vld [vmem:[#allocation106_spill] sm:$0xff]  ;;  %v9428_v2 = vld [vmem:[#allocation136_spill] sm:$0xff] }
 0x2f9   : > { %v3269_v54 = vadd.f32 1.0, %v3205_v37  ;;  %v2946_v35 = vmul.f32 %v9426_v60, %v2626_v23  ;;  %v4801_v12 = vpop.eup %4800  ;;  %v3291_v33 = vadd.f32 1.0, %v3227_v21  ;;  %v8170_v55 = vmul.f32 %v4799_v58, %v2652_v48  ;;  %v9429_v9 = vld [vmem:[#allocation166_spill] sm:$0xff] }
 0x2fa   : > { %v2654_v11 = vmul.f32 %v2590_v3, %v7944_v32  ;;  %v8175_v61 = vmul.f32 %v7885_v8, %v7885_v8  ;;  %v2271_v4 = vmul.f32 %v2207_v34, %v8131_v46  ;;  %v3329_v38 = vmul.f32 %v3265_v15, %v9427_v43  ;;  %v9430_v58 = vld [vmem:[#allocation138_spill] sm:$0xff]  ;;  %v9431_v15 = vld [vmem:[#allocation124_spill] sm:$0xff] }
 0x2fb   : > { %v3333_v49 = vmul.f32 %v3269_v54, %v9428_v2  ;;  %v2950_v50 = vmul.f32 %v9429_v9, %v2630_v40  ;;  %v3229_v31 = vsel %vm3101_vm9, %v3165_v24, %v3037_v45  ;;  %vm1960_vm12 = vweird.f32 %v8122_v44  ;;  %v755_v45 = vpop.f32.mrf.mxu2  ;;  %v9436_v43 = vld [vmem:[#allocation158_spill] sm:$0xff] }
 0x2fc   : > { %v1971_v48 = vsub.f32 1.0, %v1970_v56  ;;  %v3010_v21 = vsub.f32 1.0, %v2946_v35  ;;  %v1958_v32 = vadd.f32 %v8122_v44, %v1957_v39  ;;  %4802 = vrcp.f32 %v8163_v14  ;;  %v9432_v39 = vld [vmem:[#allocation165_spill] sm:$0xff] }
 0x2fd   : > { %v3397_v8 = vpack.c.bf16 %v3333_v49, %v3329_v38  ;;  %v3014_v3 = vsub.f32 1.0, %v2950_v50  ;;  %vm1525_vm13 = vweird.f32 %v9430_v58  ;;  %v8187_v34 = vmul.f32 %v4801_v12, %v2654_v11 }
 0x2fe   : > { %v1963_v1 = vand.u32 2147483647, %v8074_v52  ;;  %v1965_v23 = vand.u32 2147483648, %v8074_v52  ;;  %v3138_v42 = vsub.f32 0.0, %v3010_v21  ;;  %v8954_v24 = vsub.f32 1.0, %v8170_v55 }
 0x2ff   : > { %v2335_v56 = vadd.f32 1.4214138, %v2271_v4  ;;  %vm1959_vm14 = vweird.f32 %v8074_v52  ;;  %3696 = vmatmul.bf16.gmra.mxu0 %v3397_v8  ;;  %v3142_v37 = vsub.f32 0.0, %v3014_v3  ;;  %vm1524_vm15 = vweird.f32 %v9431_v15  ;;  %v9441_v8 = vld [vmem:[#allocation147_spill] sm:$0xff] }
 0x300   : > { %vm1585_vm0 = vweird.f32 %v9432_v39  ;;  %v3293_v54 = vadd.f32 1.0, %v3229_v31  ;;  %v2783_v40 = vsub.f32 0.0, %v8175_v61  ;;  %vm8198_vm1 = vmor %vm1959_vm14, %vm1960_vm12  ;;  %v1972_v35 = vmul.f32 %v8151_v36, %v1971_v48 }
 0x301   : > { %v3202_v52 = vsel %vm3074_vm10, %v3138_v42, %v3010_v21  ;;  %v1962_v12 = vsel %vm8198_vm1, %v8122_v44, %v1958_v32  ;;  %v3206_v11 = vsel %vm3078_vm11, %v3142_v37, %v3014_v3  ;;  %v8211_v61 = vadd.f32 %v755_v45, %v5220_v62  ;;  %v9440_v21 = vld [vmem:[#allocation111_spill] sm:$0xff]  ;;  %v804_v45 = vpop.f32.mrf.mxu3  ;;  %vm8271_vm9 = vmor %vm1524_vm15, %vm1525_vm13 }
 0x302   : > { %v3266_v4 = vadd.f32 1.0, %v3202_v52  ;;  %vm1584_vm2 = vweird.f32 %v9436_v43  ;;  %v3038_v38 = vsub.f32 1.0, %v8187_v34  ;;  %vm1964_vm3 = vcmp.eq.f32.partialorder %v1963_v1, 8.507059e+37  ;;  %v8215_v10 = vpop.eup %4802  ;;  %v659_v52 = vpop.f32.mrf.mxu0 }
 0x303   : > { %9435 = vst [vmem:[#allocation36_spill] sm:$0xff] %v8211_v61  ;;  %v1966_v2 = vor.u32 1.1754944e-38, %v1965_v23  ;;  %v3270_v49 = vadd.f32 1.0, %v3206_v11  ;;  %v9437_v9 = vand.u32 2147483647, %v9431_v15  ;;  %v2399_v28 = vmul.f32 %v2335_v56, %v8131_v46  ;;  %v9443_v23 = vld [vmem:[#allocation62_spill] sm:$0xff]  ;;  %vm8298_vm12 = vmor %vm1584_vm2, %vm1585_vm0 }
 0x304   : > { %vm1974_vm5 = vweird.f32 %v8105_v47  ;;  %vm1975_vm6 = vweird.f32 %v8151_v36  ;;  %v1980_v50 = vand.u32 2147483648, %v8105_v47  ;;  %v1973_v48 = vadd.f32 %v8151_v36, %v1972_v35 }
 0x305   : > { %vm8219_vm4 = vcmp.eq.f32.partialorder %v9437_v9, 8.507059e+37  ;;  %v8227_v31 = vsel %vm1964_vm3, %v1966_v2, %v1962_v12  ;;  %v3330_v32 = vmul.f32 %v3266_v4, %v9440_v21  ;;  %v3334_v3 = vmul.f32 %v3270_v49, %v9441_v8  ;;  %v708_v12 = vpop.f32.mrf.mxu1  ;;  %vm8257_vm8 = vmor %vm1974_vm5, %vm1975_vm6  ;;  %v9452_v21 = vld [vmem:[#allocation143_spill] sm:$0xff]  ;;  %v9461_v4 = vld [vmem:[#allocation168_spill] sm:$0xff] }
 0x306   : > { %v8233_v34 = vmul.f32 %v3291_v33, %v7974_v26  ;;  %v8236_v1 = vmul.f32 0.5, %v7680_v30  ;;  %vm3102_vm7 = vcmp.lt.f32.partialorder %v9443_v23, 0.0  ;;  %v8240_v42 = vmul.f32 0.70710677, %v8211_v61  ;;  %v9456_v23 = vld [vmem:[#allocation142_spill] sm:$0xff] }
 0x307   : > { %v3166_v56 = vsub.f32 0.0, %v3038_v38  ;;  %v1978_v37 = vand.u32 2147483647, %v8105_v47  ;;  %v1985_v60 = vmul.f32 %v8215_v10, %v8163_v14  ;;  %v3398_v35 = vpack.c.bf16 %v3334_v3, %v3330_v32  ;;  %v9462_v47 = vld [vmem:[#allocation169_spill] sm:$0xff] }
 0x308   : > { %9442 = vst [vmem:[#allocation21_spill] sm:$0xff] %v8233_v34  ;;  %v8247_v26 = vsub.f32 0.0, %v8954_v24  ;;  %v8250_v30 = vmul.f32 0.5, %v7840_v19  ;;  %v2463_v33 = vadd.f32 -0.28449672, %v2399_v28  ;;  %v8262_v2 = vmul.f32 %v3293_v54, %v7987_v25 }
 0x309   : > { %9444 = vst [vmem:[#allocation44_spill] sm:$0xff] %v8240_v42  ;;  %v2144_v11 = vmul.f32 1.0614054, %v8227_v31  ;;  %v2901_v49 = vmul.f32 1.442695, %v2783_v40  ;;  %v1977_v19 = vsel %vm8257_vm8, %v8151_v36, %v1973_v48  ;;  %v1981_v9 = vor.u32 1.1754944e-38, %v1980_v50  ;;  %3745 = vmatmul.bf16.gmra.mxu1 %v3398_v35  ;;  %v806_v34 = vpop.f32.mrf.mxu3 }
 0x30a   : > { %v8276_v28 = vand.u32 2147483647, %v8240_v42  ;;  %v8279_v25 = vadd.f32 %v804_v45, %v5222_v0  ;;  %v8282_v54 = vadd.f32 %v659_v52, %v5213_v57  ;;  %v8285_v36 = vadd.f32 %v708_v12, %v5215_v59  ;;  %v9451_v50 = vld [vmem:[#allocation155_spill] sm:$0xff] }
 0x30b   : > { %v3230_v40 = vsel %vm3102_vm7, %v3166_v56, %v3038_v38  ;;  %vm1979_vm10 = vcmp.eq.f32.partialorder %v1978_v37, 8.507059e+37  ;;  %v1986_v15 = vsub.f32 1.0, %v1985_v60  ;;  %v1527_v48 = vsel %vm8271_vm9, %v9430_v58, %v9451_v50  ;;  %v9457_v56 = vld [vmem:[#allocation172_spill] sm:$0xff]  ;;  %v9458_v60 = vld [vmem:[#allocation134_spill] sm:$0xff] }
 0x30c   : > { %9449 = vst [vmem:[#allocation149_spill] sm:$0xff] %v8279_v25  ;;  %vm1540_vm11 = vweird.f32 %v9452_v21  ;;  %v2527_v59 = vmul.f32 %v2463_v33, %v8131_v46  ;;  %v2208_v38 = vadd.f32 -1.4531521, %v2144_v11  ;;  %v8303_v32 = vsel %vm1979_vm10, %v1981_v9, %v1977_v19 }
 0x30d   : > { %9450 = vst [vmem:[#allocation46_spill] sm:$0xff] %v8285_v36  ;;  %v2721_v8 = vmul.f32 %v8072_v13, %v8072_v13  ;;  %v8308_v58 = vmul.f32 0.70710677, %v8282_v54  ;;  %v8311_v3 = vmul.f32 0.70710677, %v8285_v36  ;;  %v8316_v45 = vsel %vm8219_vm4, %v9456_v23, %v1527_v48 }
 0x30e   : > { %v1587_v37 = vsel %vm8298_vm12, %v9432_v39, %v9457_v56  ;;  %vm1539_vm13 = vweird.f32 %v9458_v60  ;;  %v2720_v13 = vmul.f32 %v8021_v27, %v8021_v27  ;;  %v1059_v35 = vmul.f32 0.3275911, %v8276_v28 }
 0x30f   : > { %9455 = vst [vmem:[#allocation33_spill] sm:$0xff] %v8311_v3  ;;  %v8327_v52 = vmul.f32 0.70710677, %v8279_v25  ;;  %v2115_v12 = vmul.f32 1.0614054, %v8316_v45  ;;  %v1987_v44 = vmul.f32 %v8215_v10, %v1986_v15  ;;  %vm1600_vm15 = vweird.f32 %v9461_v4  ;;  %vm8384_vm5 = vmor %vm1539_vm13, %vm1540_vm11 }
 0x310   : > { %v8332_v33 = vand.u32 2147483647, %v8308_v58  ;;  %v8335_v11 = vand.u32 2147483647, %v8311_v3  ;;  %v9460_v39 = vand.u32 2147483647, %v9436_v43  ;;  %v2272_v27 = vmul.f32 %v2208_v38, %v8227_v31 }
 0x311   : > { %9459 = vst [vmem:[#allocation24_spill] sm:$0xff] %v8327_v52  ;;  %v2145_v19 = vmul.f32 1.0614054, %v8303_v32  ;;  %v2785_v9 = vsub.f32 0.0, %v2721_v8  ;;  %v2591_v15 = vadd.f32 0.2548296, %v2527_v59  ;;  %vm1989_vm0 = vweird.f32 %v8163_v14 }
 0x312   : > { %vm1589_vm14 = vcmp.eq.f32.partialorder %v9460_v39, 8.507059e+37  ;;  %v1061_v48 = vmul.f32 0.3275911, %v8332_v33  ;;  %v1062_v57 = vmul.f32 0.3275911, %v8335_v11  ;;  %v9466_v38 = vld [vmem:[#allocation164_spill] sm:$0xff]  ;;  %vm1990_vm3 = vweird.f32 %v8215_v10 }
 0x313   : > { %v8343_v50 = vsel %vm1589_vm14, %v9462_v47, %v1587_v37  ;;  %v9463_v43 = vand.u32 2147483647, %v9458_v60  ;;  %vm1599_vm2 = vweird.f32 %v9466_v38  ;;  %v8356_v8 = vadd.f32 1.0, %v1059_v35  ;;  %vm8374_vm4 = vmor %vm1989_vm0, %vm1990_vm3  ;;  %v9471_v60 = vld [vmem:[#allocation162_spill] sm:$0xff]  ;;  %v9479_v3 = vld [vmem:[#allocation109_spill] sm:$0xff] }
 0x314   : > { %v2119_v59 = vmul.f32 1.0614054, %v8343_v50  ;;  %v2179_v56 = vadd.f32 -1.4531521, %v2115_v12  ;;  %v1988_v37 = vadd.f32 %v8215_v10, %v1987_v44  ;;  %v8361_v39 = vand.u32 2147483647, %v8327_v52  ;;  %vm8415_vm7 = vmor %vm1599_vm2, %vm1600_vm15 }
 0x315   : > { %vm8350_vm1 = vcmp.eq.f32.partialorder %v9463_v43, 8.507059e+37  ;;  %v8363_v47 = vadd.f32 1.0, %v1061_v48  ;;  %v8365_v43 = vadd.f32 1.0, %v1062_v57  ;;  %4804 = vpow2.f32 %v2901_v49 }
 0x316   : > { %v2336_v24 = vadd.f32 1.4214138, %v2272_v27  ;;  %v2209_v25 = vadd.f32 -1.4531521, %v2145_v19  ;;  %v1995_v61 = vand.u32 2147483648, %v8163_v14  ;;  %v3294_v20 = vadd.f32 1.0, %v3230_v40 }
 0x317   : > { %v2784_v35 = vsub.f32 0.0, %v2720_v13  ;;  %v1993_v36 = vand.u32 2147483647, %v8163_v14  ;;  %4806 = vrcp.f32 %v8363_v47  ;;  %v2905_v12 = vmul.f32 1.442695, %v2785_v9  ;;  %v9476_v40 = vld [vmem:[#allocation175_spill] sm:$0xff] }
 0x318   : > { %4808 = vrcp.f32 %v8356_v8  ;;  %v2183_v49 = vadd.f32 -1.4531521, %v2119_v59  ;;  %v2243_v27 = vmul.f32 %v2179_v56, %v8316_v45  ;;  %v2655_v13 = vmul.f32 %v2591_v15, %v8131_v46 }
 0x319   : > { %v1992_v14 = vsel %vm8374_vm4, %v8215_v10, %v1988_v37  ;;  %v1060_v19 = vmul.f32 0.3275911, %v8361_v39  ;;  %4810 = vrcp.f32 %v8365_v43  ;;  %v2400_v9 = vmul.f32 %v2336_v24, %v8227_v31 }
 0x31a   : > { %v2273_v48 = vmul.f32 %v2209_v25, %v8303_v32  ;;  %v1996_v57 = vor.u32 1.1754944e-38, %v1995_v61  ;;  %v1542_v59 = vsel %vm8384_vm5, %v9452_v21, %v9471_v60  ;;  %v8401_v46 = vmul.f32 %v3294_v20, %v8236_v1  ;;  %v9475_v21 = vld [vmem:[#allocation150_spill] sm:$0xff] }
 0x31b   : > { %v8403_v15 = vmul.f32 1.442695, %v2784_v35  ;;  %v8406_v10 = vmul.f32 0.5, %v8013_v5  ;;  %vm1994_vm6 = vcmp.eq.f32.partialorder %v1993_v36, 8.507059e+37  ;;  %v4805_v56 = vpop.eup %4804  ;;  %4812 = vpow2.f32 %v2905_v12  ;;  %v9478_v20 = vld [vmem:[#allocation170_spill] sm:$0xff] }
 0x31c   : > { %v8408_v24 = vsel %vm1994_vm6, %v1996_v57, %v1992_v14  ;;  %v2247_v61 = vmul.f32 %v2183_v49, %v8343_v50  ;;  %v2307_v25 = vadd.f32 1.4214138, %v2243_v27  ;;  %v8419_v1 = vmul.f32 %v4805_v56, %v2655_v13 }
 0x31d   : > { %9472 = vst [vmem:[#allocation35_spill] sm:$0xff] %v8406_v10  ;;  %v4807_v37 = vpop.eup %4806  ;;  %v8423_v5 = vmul.f32 %v8134_v17, %v8134_v17  ;;  %v8425_v36 = vadd.f32 1.0, %v1060_v19  ;;  %v8430_v35 = vsel %vm8350_vm1, %v9475_v21, %v1542_v59  ;;  %v2464_v44 = vadd.f32 -0.28449672, %v2400_v9 }
 0x31e   : > { %v8432_v12 = vpop.eup %4808  ;;  %v2337_v49 = vadd.f32 1.4214138, %v2273_v48  ;;  %v2030_v27 = vmul.f32 %v4807_v37, %v8363_v47  ;;  %v1602_v13 = vsel %vm8415_vm7, %v9461_v4, %v9476_v40  ;;  %v2146_v14 = vmul.f32 1.0614054, %v8408_v24 }
 0x31f   : > { %v8439_v17 = vpop.eup %4810  ;;  %v2311_v19 = vadd.f32 1.4214138, %v2247_v61  ;;  %v2371_v23 = vmul.f32 %v2307_v25, %v8316_v45  ;;  %v2116_v57 = vmul.f32 1.0614054, %v8430_v35  ;;  %v2040_v9 = vand.u32 2147483648, %v8363_v47 }
 0x320   : > { %v2031_v60 = vsub.f32 1.0, %v2030_v27  ;;  %v2045_v48 = vmul.f32 %v8439_v17, %v8365_v43  ;;  %v9477_v59 = vand.u32 2147483647, %v9466_v38  ;;  %4814 = vrcp.f32 %v8425_v36 }
 0x321   : > { %v2375_v4 = vmul.f32 %v2311_v19, %v8343_v50  ;;  %v2435_v56 = vadd.f32 -0.28449672, %v2371_v23  ;;  %v8454_v25 = vpop.eup %4812  ;;  %v2000_v21 = vmul.f32 %v8432_v12, %v8356_v8  ;;  %vm2035_vm9 = vweird.f32 %v4807_v37 }
 0x322   : > { %vm1604_vm8 = vcmp.eq.f32.partialorder %v9477_v59, 8.507059e+37  ;;  %v2032_v27 = vmul.f32 %v4807_v37, %v2031_v60  ;;  %v2038_v40 = vand.u32 2147483647, %v8363_v47  ;;  %v2180_v42 = vadd.f32 -1.4531521, %v2116_v57 }
 0x323   : > { %v8452_v61 = vsel %vm1604_vm8, %v9478_v20, %v1602_v13  ;;  %v2439_v52 = vadd.f32 -0.28449672, %v2375_v4  ;;  %v2499_v38 = vmul.f32 %v2435_v56, %v8316_v45  ;;  %vm2034_vm10 = vweird.f32 %v8363_v47 }
 0x324   : > { %v2120_v59 = vmul.f32 1.0614054, %v8452_v61  ;;  %v2033_v19 = vadd.f32 %v4807_v37, %v2032_v27  ;;  %v2041_v13 = vor.u32 1.1754944e-38, %v2040_v9  ;;  %v2046_v23 = vsub.f32 1.0, %v2045_v48  ;;  %vm2036_vm11 = vmor %vm2034_vm10, %vm2035_vm9  ;;  %v9480_v48 = vld [vmem:[#allocation145_spill] sm:$0xff] }
 0x325   : > { %v2503_v20 = vmul.f32 %v2439_v52, %v8343_v50  ;;  %v2563_v16 = vadd.f32 0.2548296, %v2499_v38  ;;  %v2244_v60 = vmul.f32 %v2180_v42, %v8430_v35  ;;  %vm3075_vm12 = vcmp.lt.f32.partialorder %v9479_v3, 0.0 }
 0x326   : > { %v2184_v22 = vadd.f32 -1.4531521, %v2120_v59  ;;  %v2001_v56 = vsub.f32 1.0, %v2000_v21  ;;  %v2037_v10 = vsel %vm2036_vm11, %v4807_v37, %v2033_v19  ;;  %vm2039_vm13 = vcmp.eq.f32.partialorder %v2038_v40, 8.507059e+37  ;;  %v8466_v57 = vpop.eup %4814  ;;  %v9481_v59 = vld [vmem:[#allocation148_spill] sm:$0xff] }
 0x327   : > { %v8468_v27 = vsel %vm2039_vm13, %v2041_v13, %v2037_v10  ;;  %v2567_v47 = vadd.f32 0.2548296, %v2503_v20  ;;  %v2627_v9 = vmul.f32 %v2563_v16, %v8316_v45  ;;  %vm3079_vm14 = vcmp.lt.f32.partialorder %v9480_v48, 0.0  ;;  %v9487_v48 = vld [vmem:[#allocation117_spill] sm:$0xff] }
 0x328   : > { %v2248_v52 = vmul.f32 %v2184_v22, %v8452_v61  ;;  %v8475_v38 = vmul.f32 %v2464_v44, %v8227_v31  ;;  %v2401_v21 = vmul.f32 %v2337_v49, %v8303_v32  ;;  %v2047_v37 = vmul.f32 %v8439_v17, %v2046_v23  ;;  %v9482_v44 = vld [vmem:[#allocation173_spill] sm:$0xff] }
 0x329   : > { %v2210_v40 = vadd.f32 -1.4531521, %v2146_v14  ;;  %v2631_v10 = vmul.f32 %v2567_v47, %v8343_v50  ;;  %v2947_v19 = vmul.f32 %v9481_v59, %v2627_v9  ;;  %v2308_v13 = vadd.f32 1.4214138, %v2244_v60 }
 0x32a   : > { %v2002_v16 = vmul.f32 %v8432_v12, %v2001_v56  ;;  %vm2005_vm15 = vweird.f32 %v8432_v12  ;;  %v2010_v22 = vand.u32 2147483648, %v8356_v8  ;;  %v2149_v45 = vmul.f32 1.0614054, %v8468_v27 }
 0x32b   : > { %v2951_v20 = vmul.f32 %v9482_v44, %v2631_v10  ;;  %v3011_v42 = vsub.f32 1.0, %v2947_v19  ;;  %v2312_v49 = vadd.f32 1.4214138, %v2248_v52  ;;  %v2372_v23 = vmul.f32 %v2308_v13, %v8430_v35 }
 0x32c   : > { %v2015_v50 = vmul.f32 %v8466_v57, %v8425_v36  ;;  %v2048_v14 = vadd.f32 %v8439_v17, %v2047_v37  ;;  %vm2050_vm0 = vweird.f32 %v8439_v17  ;;  %v2055_v60 = vand.u32 2147483648, %v8365_v43 }
 0x32d   : > { %v3015_v56 = vsub.f32 1.0, %v2951_v20  ;;  %v3139_v47 = vsub.f32 0.0, %v3011_v42  ;;  %v2376_v9 = vmul.f32 %v2312_v49, %v8452_v61  ;;  %v2436_v59 = vadd.f32 -0.28449672, %v2372_v23 }
 0x32e   : > { %v2003_v10 = vadd.f32 %v8432_v12, %v2002_v16  ;;  %v2213_v19 = vadd.f32 -1.4531521, %v2149_v45  ;;  %vm2049_vm1 = vweird.f32 %v8365_v43  ;;  %v2053_v52 = vand.u32 2147483647, %v8365_v43 }
 0x32f   : > { %vm8496_vm2 = vmor %vm2049_vm1, %vm2050_vm0  ;;  %v3143_v37 = vsub.f32 0.0, %v3015_v56  ;;  %v3203_v44 = vsel %vm3075_vm12, %v3139_v47, %v3011_v42  ;;  %v2440_v20 = vadd.f32 -0.28449672, %v2376_v9  ;;  %v2500_v4 = vmul.f32 %v2436_v59, %v8430_v35 }
 0x330   : > { %vm2004_vm3 = vweird.f32 %v8356_v8  ;;  %v2008_v16 = vand.u32 2147483647, %v8356_v8  ;;  %v2011_v45 = vor.u32 1.1754944e-38, %v2010_v22  ;;  %v2052_v43 = vsel %vm8496_vm2, %v8439_v17, %v2048_v14  ;;  %v757_v14 = vpop.f32.mrf.mxu2 }
 0x331   : > { %vm8510_vm4 = vmor %vm2004_vm3, %vm2005_vm15  ;;  %v2056_v3 = vor.u32 1.1754944e-38, %v2055_v60  ;;  %v3207_v42 = vsel %vm3079_vm14, %v3143_v37, %v3015_v56  ;;  %v3267_v23 = vadd.f32 1.0, %v3203_v44  ;;  %v2504_v47 = vmul.f32 %v2440_v20, %v8452_v61  ;;  %v9488_v56 = vld [vmem:[#allocation153_spill] sm:$0xff]  ;;  %v9489_v44 = vld [vmem:[#allocation123_spill] sm:$0xff] }
 0x332   : > { %v2007_v8 = vsel %vm8510_vm4, %v8432_v12, %v2003_v10  ;;  %v2016_v22 = vsub.f32 1.0, %v2015_v50  ;;  %vm2054_vm5 = vcmp.eq.f32.partialorder %v2053_v52, 8.507059e+37  ;;  %v3271_v17 = vadd.f32 1.0, %v3207_v42  ;;  %v9490_v12 = vld [vmem:[#allocation152_spill] sm:$0xff] }
 0x333   : > { %v2277_v9 = vmul.f32 %v2213_v19, %v8468_v27  ;;  %v8521_v59 = vsel %vm2054_vm5, %v2056_v3, %v2052_v43  ;;  %v2564_v13 = vadd.f32 0.2548296, %v2500_v4  ;;  %v2568_v60 = vadd.f32 0.2548296, %v2504_v47  ;;  %v9492_v47 = vld [vmem:[#allocation174_spill] sm:$0xff] }
 0x334   : > { %vm3076_vm6 = vcmp.lt.f32.partialorder %v9487_v48, 0.0  ;;  %vm3080_vm7 = vcmp.lt.f32.partialorder %v9488_v56, 0.0  ;;  %v2465_v37 = vadd.f32 -0.28449672, %v2401_v21  ;;  %vm2009_vm8 = vcmp.eq.f32.partialorder %v2008_v16, 8.507059e+37 }
 0x335   : > { %v3331_v20 = vmul.f32 %v3267_v23, %v9489_v44  ;;  %v3335_v50 = vmul.f32 %v3271_v17, %v9490_v12  ;;  %v8527_v10 = vsel %vm2009_vm8, %v2011_v45, %v2007_v8  ;;  %v2628_v52 = vmul.f32 %v2564_v13, %v8430_v35  ;;  %v9491_v45 = vld [vmem:[#allocation159_spill] sm:$0xff]  ;;  %v9494_v17 = vld [vmem:[#allocation16_spill] sm:$0xff] }
 0x336   : > { %v2632_v19 = vmul.f32 %v2568_v60, %v8452_v61  ;;  %v8532_v4 = vadd.f32 %v757_v14, %v5220_v62  ;;  %v2017_v43 = vmul.f32 %v8466_v57, %v2016_v22  ;;  %v2150_v49 = vmul.f32 1.0614054, %v8521_v59 }
 0x337   : > { %v3399_v3 = vpack.c.bf16 %v3335_v50, %v3331_v20  ;;  %v8537_v21 = vadd.f32 %v806_v34, %v5222_v0  ;;  %v2274_v16 = vmul.f32 %v2210_v40, %v8408_v24  ;;  %v2341_v42 = vadd.f32 1.4214138, %v2277_v9  ;;  %v9493_v40 = vld [vmem:[#allocation176_spill] sm:$0xff] }
 0x338   : > { %v2948_v23 = vmul.f32 %v9491_v45, %v2628_v52  ;;  %v2952_v35 = vmul.f32 %v9492_v47, %v2632_v19  ;;  %v2529_v61 = vmul.f32 %v2465_v37, %v8303_v32  ;;  %v2147_v62 = vmul.f32 1.0614054, %v8527_v10 }
 0x339   : > { %vm2019_vm9 = vweird.f32 %v8425_v36  ;;  %3794 = vmatmul.bf16.gmra.mxu2 %v3399_v3  ;;  %v8546_v8 = vmul.f32 0.70710677, %v8532_v4  ;;  %v8549_v34 = vmul.f32 0.70710677, %v8537_v21  ;;  %v3401_v14 = vpack.c.bf16 %v9494_v17, %v9493_v40 }
 0x33a   : > { %v3012_v22 = vsub.f32 1.0, %v2948_v23  ;;  %v3016_v0 = vsub.f32 1.0, %v2952_v35  ;;  %v2018_v9 = vadd.f32 %v8466_v57, %v2017_v43  ;;  %vm2020_vm10 = vweird.f32 %v8466_v57 }
 0x33b   : > { %v2214_v13 = vadd.f32 -1.4531521, %v2150_v49  ;;  %v8556_v60 = vand.u32 2147483647, %v8546_v8  ;;  %v2405_v37 = vmul.f32 %v2341_v42, %v8468_v27  ;;  %v8560_v12 = vand.u32 2147483647, %v8549_v34  ;;  %3701 = vmatmul.bf16.gmra.mxu0 %v3401_v14  ;;  %vm8569_vm11 = vmor %vm2019_vm9, %vm2020_vm10 }
 0x33c   : > { %v3140_v44 = vsub.f32 0.0, %v3012_v22  ;;  %v3144_v20 = vsub.f32 0.0, %v3016_v0  ;;  %v2023_v50 = vand.u32 2147483647, %v8425_v36  ;;  %v2025_v52 = vand.u32 2147483648, %v8425_v36 }
 0x33d   : > { %v2725_v19 = vmul.f32 %v8332_v33, %v8332_v33  ;;  %v1063_v43 = vmul.f32 0.3275911, %v8556_v60  ;;  %v2211_v49 = vadd.f32 -1.4531521, %v2147_v62  ;;  %v1064_v23 = vmul.f32 0.3275911, %v8560_v12 }
 0x33e   : > { %v3204_v42 = vsel %vm3076_vm6, %v3140_v44, %v3012_v22  ;;  %v3208_v45 = vsel %vm3080_vm7, %v3144_v20, %v3016_v0  ;;  %v2338_v47 = vadd.f32 1.4214138, %v2274_v16  ;;  %v2022_v33 = vsel %vm8569_vm11, %v8466_v57, %v2018_v9  ;;  %v9497_v0 = vld [vmem:[#allocation133_spill] sm:$0xff]  ;;  %v9498_v16 = vld [vmem:[#allocation156_spill] sm:$0xff] }
 0x33f   : > { %v3268_v35 = vadd.f32 1.0, %v3204_v42  ;;  %v3272_v62 = vadd.f32 1.0, %v3208_v45  ;;  %vm3103_vm12 = vcmp.lt.f32.partialorder %v7857_v51, 0.0  ;;  %v2469_v36 = vadd.f32 -0.28449672, %v2405_v37 }
 0x340   : > { %v2278_v40 = vmul.f32 %v2214_v13, %v8521_v59  ;;  %v8583_v17 = vadd.f32 1.0, %v1063_v43  ;;  %v8585_v48 = vadd.f32 1.0, %v1064_v23  ;;  %v2026_v56 = vor.u32 1.1754944e-38, %v2025_v52 }
 0x341   : > { %v2789_v22 = vsub.f32 0.0, %v2725_v19  ;;  %v3332_v14 = vmul.f32 %v3268_v35, %v9497_v0  ;;  %v3336_v44 = vmul.f32 %v3272_v62, %v9498_v16  ;;  %v2593_v20 = vadd.f32 0.2548296, %v2529_v61  ;;  %v9502_v35 = vld [vmem:[#allocation23_spill] sm:$0xff]  ;;  %v9506_v16 = vld [vmem:[#allocation29_spill] sm:$0xff] }
 0x342   : > { %v2275_v57 = vmul.f32 %v2211_v49, %v8527_v10  ;;  %vm2024_vm13 = vcmp.eq.f32.partialorder %v2023_v50, 8.507059e+37  ;;  %4816 = vrcp.f32 %v8583_v17  ;;  %v2402_v9 = vmul.f32 %v2338_v47, %v8408_v24  ;;  %v9504_v0 = vld [vmem:[#allocation31_spill] sm:$0xff] }
 0x343   : > { %v2723_v13 = vmul.f32 %v8276_v28, %v8276_v28  ;;  %v8594_v37 = vsel %vm2024_vm13, %v2026_v56, %v2022_v33  ;;  %v3400_v43 = vpack.c.bf16 %v3336_v44, %v3332_v14  ;;  %v9499_v52 = vsub.f32 0.0, %v8423_v5  ;;  %v9501_v33 = vld [vmem:[#allocation118_spill] sm:$0xff] }
 0x344   : > { %v2533_v3 = vmul.f32 %v2469_v36, %v8468_v27  ;;  %v2342_v42 = vadd.f32 1.4214138, %v2278_v40  ;;  %4818 = vrcp.f32 %v8585_v48  ;;  %v9500_v61 = vsub.f32 1.0, %v8419_v1  ;;  %v9503_v56 = vld [vmem:[#allocation70_spill] sm:$0xff] }
 0x345   : > { %v2907_v19 = vmul.f32 1.442695, %v9499_v52  ;;  %v2592_v49 = vadd.f32 0.2548296, %v8475_v38  ;;  %v2913_v45 = vmul.f32 1.442695, %v2789_v22  ;;  %v2726_v28 = vmul.f32 %v8335_v11, %v8335_v11  ;;  %3843 = vmatmul.bf16.gmra.mxu3 %v3400_v43 }
 0x346   : > { %v3167_v50 = vsub.f32 0.0, %v9500_v61  ;;  %v2657_v23 = vmul.f32 %v2593_v20, %v8303_v32  ;;  %v2339_v47 = vadd.f32 1.4214138, %v2275_v57  ;;  %v2148_v5 = vmul.f32 1.0614054, %v8594_v37  ;;  %v9505_v32 = vld [vmem:[#allocation17_spill] sm:$0xff] }
 0x347   : > { %v3402_v62 = vpack.c.bf16 %v9502_v35, %v9501_v33  ;;  %4820 = vpow2.f32 %v8403_v15  ;;  %v2466_v36 = vadd.f32 -0.28449672, %v2402_v9  ;;  %v2787_v40 = vsub.f32 0.0, %v2723_v13 }
 0x348   : > { %v3403_v38 = vpack.c.bf16 %v9504_v0, %v9503_v56  ;;  %v4817_v22 = vpop.eup %4816  ;;  %4822 = vpow2.f32 %v2907_v19  ;;  %v2597_v14 = vadd.f32 0.2548296, %v2533_v3  ;;  %v2406_v11 = vmul.f32 %v2342_v42, %v8521_v59 }
 0x349   : > { %3750 = vmatmul.bf16.gmra.mxu1 %v3402_v62  ;;  %v3405_v44 = vpack.c.bf16 %v9506_v16, %v9505_v32  ;;  %v9507_v20 = vmov %v9500_v61  ;;  %4824 = vpow2.f32 %v2913_v45  ;;  %v2790_v15 = vsub.f32 0.0, %v2726_v28  ;;  %v9509_v16 = vld [vmem:[#allocation57_spill] sm:$0xff] }
 0x34a   : > { %v8619_v57 = vsel %vm3103_vm12, %v3167_v50, %v9507_v20  ;;  %v2060_v9 = vmul.f32 %v4817_v22, %v8583_v17  ;;  %3799 = vmatmul.bf16.gmra.mxu2 %v3403_v38  ;;  %v4819_v13 = vpop.eup %4818  ;;  %v8623_v43 = vmul.f32 %v2592_v49, %v8227_v31  ;;  %v8626_v52 = vmul.f32 %v8454_v25, %v2657_v23 }
 0x34b   : > { %v2403_v19 = vmul.f32 %v2339_v47, %v8527_v10  ;;  %v2212_v3 = vadd.f32 -1.4531521, %v2148_v5  ;;  %v2530_v1 = vmul.f32 %v2466_v36, %v8408_v24  ;;  %v8630_v51 = vmul.f32 1.442695, %v2787_v40  ;;  %3706 = vmatmul.bf16.gmra.mxu0 %v3405_v44 }
 0x34c   : > { %v2061_v42 = vsub.f32 1.0, %v2060_v9  ;;  %v2075_v61 = vmul.f32 %v4819_v13, %v8585_v48  ;;  %v2661_v50 = vmul.f32 %v2597_v14, %v8468_v27  ;;  %v2470_v45 = vadd.f32 -0.28449672, %v2406_v11 }
 0x34d   : > { %v2068_v28 = vand.u32 2147483647, %v8583_v17  ;;  %v2070_v31 = vand.u32 2147483648, %v8583_v17  ;;  %v4821_v25 = vpop.eup %4820  ;;  %v2915_v49 = vmul.f32 1.442695, %v2790_v15  ;;  %vm2065_vm14 = vweird.f32 %v4817_v22 }
 0x34e   : > { %v2062_v23 = vmul.f32 %v4817_v22, %v2061_v42  ;;  %v2076_v47 = vsub.f32 1.0, %v2075_v61  ;;  %v8636_v5 = vpop.eup %4822  ;;  %v2467_v33 = vadd.f32 -0.28449672, %v2403_v19  ;;  %v2276_v35 = vmul.f32 %v2212_v3, %v8594_v37 }
 0x34f   : > { %vm2064_vm15 = vweird.f32 %v8583_v17  ;;  %v2085_v27 = vand.u32 2147483648, %v8585_v48  ;;  %v4825_v62 = vpop.eup %4824  ;;  %vm2080_vm0 = vweird.f32 %v4819_v13  ;;  %v2083_v56 = vand.u32 2147483647, %v8585_v48  ;;  %v9508_v17 = vld [vmem:[#allocation32_spill] sm:$0xff] }
 0x350   : > { %v2063_v36 = vadd.f32 %v4817_v22, %v2062_v23  ;;  %v2077_v40 = vmul.f32 %v4819_v13, %v2076_v47  ;;  %v8642_v0 = vmul.f32 %v4825_v62, %v2661_v50  ;;  %v2534_v38 = vmul.f32 %v2470_v45, %v8521_v59  ;;  %vm2066_vm1 = vmor %vm2064_vm15, %vm2065_vm14  ;;  %v9510_v50 = vld [vmem:[#allocation20_spill] sm:$0xff] }
 0x351   : > { %vm2069_vm2 = vcmp.eq.f32.partialorder %v2068_v28, 8.507059e+37  ;;  %v2071_v14 = vor.u32 1.1754944e-38, %v2070_v31  ;;  %vm2079_vm3 = vweird.f32 %v8585_v48  ;;  %v3404_v44 = vpack.c.bf16 %v9509_v16, %v9508_v17  ;;  %v9512_v16 = vld [vmem:[#allocation125_spill] sm:$0xff] }
 0x352   : > { %v2067_v11 = vsel %vm2066_vm1, %v4817_v22, %v2063_v36  ;;  %v2078_v32 = vadd.f32 %v4819_v13, %v2077_v40  ;;  %4826 = vpow2.f32 %v2915_v49  ;;  %v2727_v15 = vmul.f32 %v8556_v60, %v8556_v60  ;;  %vm2081_vm4 = vmor %vm2079_vm3, %vm2080_vm0  ;;  %v9511_v49 = vld [vmem:[#allocation25_spill] sm:$0xff] }
 0x353   : > { %v8648_v20 = vsel %vm2069_vm2, %v2071_v14, %v2067_v11  ;;  %v2086_v9 = vor.u32 1.1754944e-38, %v2085_v27  ;;  %v2340_v19 = vadd.f32 1.4214138, %v2276_v35  ;;  %vm2084_vm5 = vcmp.eq.f32.partialorder %v2083_v56, 8.507059e+37 }
 0x354   : > { %v2151_v3 = vmul.f32 1.0614054, %v8648_v20  ;;  %v2082_v42 = vsel %vm2081_vm4, %v4819_v13, %v2078_v32  ;;  %v2531_v22 = vmul.f32 %v2467_v33, %v8527_v10  ;;  %v2598_v61 = vadd.f32 0.2548296, %v2534_v38 }
 0x355   : > { %v8654_v48 = vsel %vm2084_vm5, %v2086_v9, %v2082_v42  ;;  %v3406_v45 = vpack.c.bf16 %v7940_v29, %v9510_v50  ;;  %vm3105_vm6 = vcmp.lt.f32.partialorder %v8045_v63, 0.0  ;;  %v3045_v28 = vsub.f32 1.0, %v8642_v0  ;;  %3848 = vmatmul.bf16.gmra.mxu3 %v3404_v44 }
 0x356   : > { %v2215_v60 = vadd.f32 -1.4531521, %v2151_v3  ;;  %v2152_v31 = vmul.f32 1.0614054, %v8654_v48  ;;  %v3407_v13 = vpack.c.bf16 %v7962_v53, %v9511_v49  ;;  %v3041_v23 = vsub.f32 1.0, %v8626_v52 }
 0x357   : > { %v2594_v47 = vadd.f32 0.2548296, %v2530_v1  ;;  %v2724_v33 = vmul.f32 %v8361_v39, %v8361_v39  ;;  %v2791_v35 = vsub.f32 0.0, %v2727_v15  ;;  %v2404_v29 = vmul.f32 %v2340_v19, %v8594_v37 }
 0x358   : > { %v2279_v27 = vmul.f32 %v2215_v60, %v8648_v20  ;;  %v2216_v62 = vadd.f32 -1.4531521, %v2152_v31  ;;  %v2728_v36 = vmul.f32 %v8560_v12, %v8560_v12  ;;  %v4827_v40 = vpop.eup %4826  ;;  %v8671_v56 = vmul.f32 %v4821_v25, %v8623_v43 }
 0x359   : > { %v2595_v53 = vadd.f32 0.2548296, %v2531_v22  ;;  %v2662_v52 = vmul.f32 %v2598_v61, %v8521_v59  ;;  %3755 = vmatmul.bf16.gmra.mxu1 %v3406_v45  ;;  %v3409_v39 = vpack.c.bf16 %v8262_v2, %v8032_v41  ;;  %4828 = vpow2.f32 %v8630_v51 }
 0x35a   : > { %v3173_v1 = vsub.f32 0.0, %v3045_v28  ;;  %v2343_v0 = vadd.f32 1.4214138, %v2279_v27  ;;  %v2280_v38 = vmul.f32 %v2216_v62, %v8654_v48  ;;  %3804 = vmatmul.bf16.gmra.mxu2 %v3407_v13  ;;  %v3169_v14 = vsub.f32 0.0, %v3041_v23 }
 0x35b   : > { %v2658_v12 = vmul.f32 %v2594_v47, %v8408_v24  ;;  %v2788_v11 = vsub.f32 0.0, %v2724_v33  ;;  %v2917_v43 = vmul.f32 1.442695, %v2791_v35  ;;  %v2468_v25 = vadd.f32 -0.28449672, %v2404_v29  ;;  %3711 = vmatmul.bf16.gmra.mxu0 %v3409_v39  ;;  %v3682_v39 = vpop.f32.mrf.mxu0 }
 0x35c   : > { %v2407_v32 = vmul.f32 %v2343_v0, %v8648_v20  ;;  %v2344_v59 = vadd.f32 1.4214138, %v2280_v38  ;;  %v2792_v17 = vsub.f32 0.0, %v2728_v36  ;;  %vm3100_vm7 = vcmp.lt.f32.partialorder %v9512_v16, 0.0  ;;  %v9516_v0 = vld [vmem:[#allocation38_spill] sm:$0xff] }
 0x35d   : > { %v3295_v41 = vadd.f32 1.0, %v8619_v57  ;;  %v2659_v2 = vmul.f32 %v2595_v53, %v8527_v10  ;;  %vm3109_vm8 = vcmp.lt.f32.partialorder %v8308_v58, 0.0  ;;  %v2982_v51 = vmul.f32 %v4827_v40, %v2662_v52 }
 0x35e   : > { %v3040_v44 = vsub.f32 1.0, %v8671_v56  ;;  %v3237_v24 = vsel %vm3109_vm8, %v3173_v1, %v3045_v28  ;;  %v2471_v15 = vadd.f32 -0.28449672, %v2407_v32  ;;  %v2408_v9 = vmul.f32 %v2344_v59, %v8654_v48  ;;  %v3731_v1 = vpop.f32.mrf.mxu1 }
 0x35f   : > { %v3233_v19 = vsel %vm3105_vm6, %v3169_v14, %v3041_v23  ;;  %v8689_v3 = vmul.f32 %v8636_v5, %v2658_v12  ;;  %v2911_v42 = vmul.f32 1.442695, %v2788_v11  ;;  %4830 = vpow2.f32 %v2917_v43  ;;  %v4829_v57 = vpop.eup %4828  ;;  %v9513_v5 = vld [vmem:[#allocation37_spill] sm:$0xff]  ;;  %v9517_v12 = vld [vmem:[#allocation35_spill] sm:$0xff] }
 0x360   : > { %v2532_v10 = vmul.f32 %v2468_v25, %v8594_v37  ;;  %v2535_v58 = vmul.f32 %v2471_v15, %v8648_v20  ;;  %v2472_v22 = vadd.f32 -0.28449672, %v2408_v9  ;;  %v2919_v61 = vmul.f32 1.442695, %v2792_v17  ;;  %v295_v9 = vld [vmem:[%s5191_s11] sm:$0xff]  }
 0x361   : > { %v3359_v50 = vmul.f32 %v3295_v41, %v8250_v30  ;;  %v2979_v45 = vmul.f32 %v4829_v57, %v2659_v2  ;;  %v3301_v28 = vadd.f32 1.0, %v3237_v24  ;;  %v3046_v60 = vsub.f32 1.0, %v2982_v51  ;;  %v9519_v51 = vld [vmem:[#allocation22_spill] sm:$0xff] }
 0x362   : > { %v3168_v31 = vsub.f32 0.0, %v3040_v44  ;;  %v2599_v63 = vadd.f32 0.2548296, %v2535_v58  ;;  %v2536_v49 = vmul.f32 %v2472_v22, %v8654_v48  ;;  %v3408_v13 = vpack.c.bf16 %v7971_v18, %v9513_v5 }
 0x363   : > { %v3297_v23 = vadd.f32 1.0, %v3233_v19  ;;  %v3042_v47 = vsub.f32 1.0, %v8689_v3  ;;  %4832 = vpow2.f32 %v2911_v42  ;;  %v869_v33 = vmul.f32 0.5, %v8282_v54  ;;  %v9521_v19 = vld [vmem:[#allocation44_spill] sm:$0xff]  ;;  %v3684_v5 = vpop.f32.mrf.mxu0 }
 0x364   : > { %v2596_v35 = vadd.f32 0.2548296, %v2532_v10  ;;  %v2663_v29 = vmul.f32 %v2599_v63, %v8648_v20  ;;  %v2600_v30 = vadd.f32 0.2548296, %v2536_v49  ;;  %4834 = vpow2.f32 %v2919_v61  ;;  %v9515_v20 = vld [vmem:[#allocation21_spill] sm:$0xff]  ;;  %v9522_v63 = vld [vmem:[#allocation46_spill] sm:$0xff] }
 0x365   : > { %v4831_v27 = vpop.eup %4830  ;;  %v3043_v62 = vsub.f32 1.0, %v2979_v45  ;;  %v3365_v36 = vmul.f32 %v3301_v28, %v869_v33  ;;  %v3174_v40 = vsub.f32 0.0, %v3046_v60  ;;  %v3410_v56 = vpack.c.bf16 %v8401_v46, %v8047_v6  ;;  %3853 = vmatmul.bf16.gmra.mxu3 %v3408_v13  ;;  %v3829_v46 = vpop.f32.mrf.mxu3  ;;  %v8722_v45 = vld [vmem:[%s8804_s4] ss:$0 sm:$0xff] }
 0x366   : > { %v9514_v18 = vsub.f32 1.0, %v8170_v55  ;;  %vm3104_vm9 = vcmp.lt.f32.partialorder %v7990_v7, 0.0  ;;  %v2983_v54 = vmul.f32 %v4831_v27, %v2663_v29  ;;  %v3411_v52 = vpack.c.bf16 %v3359_v50, %v9515_v20  ;;  %v3780_v55 = vpop.f32.mrf.mxu2  ;;  %v9518_v7 = vld [vmem:[#allocation33_spill] sm:$0xff]  ;;  %v3733_v13 = vpop.f32.mrf.mxu1 }
 0x367   : > { %v860_v38 = vmul.f32 0.5, %v9516_v0  ;;  %v3232_v14 = vsel %vm3104_vm9, %v3168_v31, %v3040_v44  ;;  %v3361_v11 = vmul.f32 %v3297_v23, %v9517_v12  ;;  %v2664_v6 = vmul.f32 %v2600_v30, %v8654_v48  ;;  %v9520_v48 = vld [vmem:[#allocation48_spill] sm:$0xff]  ;;  %v9523_v23 = vld [vmem:[#allocation131_spill] sm:$0xff] }
 0x368   : > { %v3228_v53 = vsel %vm3100_vm7, %v8247_v26, %v9514_v18  ;;  %v3170_v43 = vsub.f32 0.0, %v3042_v47  ;;  %v2660_v26 = vmul.f32 %v2596_v35, %v8594_v37  ;;  %vm3110_vm10 = vcmp.lt.f32.partialorder %v9518_v7, 0.0 }
 0x369   : > { %v3047_v25 = vsub.f32 1.0, %v2983_v54  ;;  %v4833_v32 = vpop.eup %4832  ;;  %v3292_v59 = vadd.f32 1.0, %v3228_v53  ;;  %v3171_v17 = vsub.f32 0.0, %v3043_v62  ;;  %v3238_v16 = vsel %vm3110_vm10, %v3174_v40, %v3046_v60  ;;  %3760 = vmatmul.bf16.gmra.mxu1 %v3410_v56 }
 0x36a   : > { %v3413_v41 = vpack.c.bf16 %v3365_v36, %v3361_v11  ;;  %v4835_v2 = vpop.eup %4834  ;;  %v864_v44 = vmul.f32 0.5, %v9519_v51  ;;  %v3296_v24 = vadd.f32 1.0, %v3232_v14  ;;  %vm3106_vm11 = vcmp.lt.f32.partialorder %v9520_v48, 0.0  ;;  %3809 = vmatmul.bf16.gmra.mxu2 %v3411_v52  ;;  %v9524_v52 = vld [vmem:[#allocation36_spill] sm:$0xff] }
 0x36b   : > { %v3175_v15 = vsub.f32 0.0, %v3047_v25  ;;  %vm3107_vm12 = vcmp.lt.f32.partialorder %v9521_v19, 0.0  ;;  %vm3111_vm13 = vcmp.lt.f32.partialorder %v8546_v8, 0.0  ;;  %v2984_v37 = vmul.f32 %v4835_v2, %v2664_v6  ;;  %v9526_v19 = vld [vmem:[#allocation149_spill] sm:$0xff] }
 0x36c   : > { %v3732_v3 = vadd.f32 %v3731_v1, %v3682_v39  ;;  %v3234_v42 = vsel %vm3106_vm11, %v3170_v43, %v3042_v47  ;;  %v2980_v57 = vmul.f32 %v4833_v32, %v2660_v26  ;;  %v3302_v10 = vadd.f32 1.0, %v3238_v16  ;;  %3716 = vmatmul.bf16.gmra.mxu0 %v3413_v41  ;;  %v9525_v16 = vld [vmem:[#allocation24_spill] sm:$0xff] }
 0x36d   : > { %v3239_v58 = vsel %vm3111_vm13, %v3175_v15, %v3047_v25  ;;  %v3235_v22 = vsel %vm3107_vm12, %v3171_v17, %v3043_v62  ;;  %v311_v50 = vunpack.c.l.bf16 %v295_v9  ;;  %v312_v28 = vunpack.c.h.bf16 %v295_v9  ;;  %v3831_v27 = vpop.f32.mrf.mxu3 }
 0x36e   : > { %v3781_v61 = vadd.f32 %v3780_v55, %v3732_v3  ;;  %v3356_v60 = vmul.f32 %v3292_v59, %v860_v38  ;;  %v3360_v31 = vmul.f32 %v3296_v24, %v864_v44  ;;  %v870_v8 = vmul.f32 0.5, %v9522_v63  ;;  %v3782_v30 = vpop.f32.mrf.mxu2  ;;  %v3736_v7 = vpop.f32.mrf.mxu1 }
 0x36f   : > { %v3303_v49 = vadd.f32 1.0, %v3239_v58  ;;  %v866_v47 = vmul.f32 0.5, %v9523_v23  ;;  %v3298_v33 = vadd.f32 1.0, %v3234_v42  ;;  %v3048_v35 = vsub.f32 1.0, %v2984_v37 }
 0x370   : > { %v3734_v29 = vadd.f32 %v3733_v13, %v3684_v5  ;;  %v3299_v62 = vadd.f32 1.0, %v3235_v22  ;;  %v3044_v36 = vsub.f32 1.0, %v2980_v57  ;;  %v3366_v40 = vmul.f32 %v3302_v10, %v870_v8 }
 0x371   : > { %v871_v56 = vmul.f32 0.5, %v8532_v4  ;;  %v331_v18 = vadd.f32 %v8722_v45, %v311_v50  ;;  %v3830_v53 = vadd.f32 %v3829_v46, %v3781_v61  ;;  %v332_v20 = vadd.f32 %v8722_v45, %v312_v28  ;;  %v3687_v46 = vpop.f32.mrf.mxu0 }
 0x372   : > { %v3783_v54 = vadd.f32 %v3782_v30, %v3734_v29  ;;  %v867_v39 = vmul.f32 0.5, %v9524_v52  ;;  %v3412_v0 = vpack.c.bf16 %v3360_v31, %v3356_v60  ;;  %v3362_v38 = vmul.f32 %v3298_v33, %v866_v47 }
 0x373   : > { %v3367_v1 = vmul.f32 %v3303_v49, %v871_v56  ;;  %v3176_v14 = vsub.f32 0.0, %v3048_v35  ;;  %v3172_v6 = vsub.f32 0.0, %v3044_v36  ;;  %v3869_v43 = vadd.f32 %v3830_v53, %v331_v18 }
 0x374   : > { %v3832_v12 = vadd.f32 %v3831_v27, %v3783_v54  ;;  %v3363_v11 = vmul.f32 %v3299_v62, %v867_v39  ;;  %v3414_v55 = vpack.c.bf16 %v3366_v40, %v3362_v38  ;;  %vm3112_vm14 = vcmp.lt.f32.partialorder %v8549_v34, 0.0  ;;  %v297_v34 = vld [vmem:[%s5191_s11 + $0x8] sm:$0xff]  }
 0x375   : > { %3858 = vmatmul.bf16.gmra.mxu3 %v3412_v0  ;;  %v3240_v25 = vsel %vm3112_vm14, %v3176_v14, %v3048_v35  ;;  %v3834_v17 = vpop.f32.mrf.mxu3  ;;  %vm3108_vm15 = vcmp.lt.f32.partialorder %v9525_v16, 0.0  ;;  %v3737_v51 = vadd.f32 %v3736_v7, %v3687_v46  ;;  %v872_v24 = vmul.f32 0.5, %v8537_v21  ;;  %v299_v35 = vld [vmem:[%s5191_s11 + $0x10] sm:$0xff]   ;;  %v301_v7 = vld [vmem:[%s5191_s11 + $0x18] sm:$0xff]  }
 0x376   : > { %v3870_v26 = vadd.f32 %v3832_v12, %v332_v20  ;;  %v3415_v4 = vpack.c.bf16 %v3367_v1, %v3363_v11  ;;  %v3785_v59 = vpop.f32.mrf.mxu2  ;;  %v3236_v41 = vsel %vm3108_vm15, %v3172_v6, %v3044_v36  ;;  %v3304_v2 = vadd.f32 1.0, %v3240_v25  ;;  %v3738_v57 = vpop.f32.mrf.mxu1 }
 0x377   : > { %v3300_v44 = vadd.f32 1.0, %v3236_v41  ;;  %v3786_v48 = vadd.f32 %v3785_v59, %v3737_v51  ;;  %v313_v15 = vunpack.c.l.bf16 %v297_v34  ;;  %v314_v9 = vunpack.c.h.bf16 %v297_v34 }
 0x378   : > { %v4452_v32 = vpack.c.bf16 %v3870_v26, %v3869_v43  ;;  %v868_v37 = vmul.f32 0.5, %v9526_v19  ;;  %v3368_v3 = vmul.f32 %v3304_v2, %v872_v24  ;;  %v315_v27 = vunpack.c.l.bf16 %v299_v35 }
 0x379   : > { %3765 = vmatmul.bf16.gmra.mxu1 %v3414_v55  ;;  %v3689_v42 = vpop.f32.mrf.mxu0  ;;  %v333_v50 = vadd.f32 %v8722_v45, %v313_v15  ;;  %v3835_v28 = vadd.f32 %v3834_v17, %v3786_v48  ;;  %v334_v21 = vadd.f32 %v8722_v45, %v314_v9  ;;  %v316_v62 = vunpack.c.h.bf16 %v299_v35 }
 0x37a   : > { %4453 = vst [vmem:[%s8734_s28] sm:$0xff] %v4452_v32   ;;  %3814 = vmatmul.bf16.gmra.mxu2 %v3415_v4  ;;  %v3739_v10 = vadd.f32 %v3738_v57, %v3689_v42  ;;  %v3364_v61 = vmul.f32 %v3300_v44, %v868_v37  ;;  %v335_v53 = vadd.f32 %v8722_v45, %v315_v27  ;;  %v317_v16 = vunpack.c.l.bf16 %v301_v7 }
 0x37b   : > { %v3871_v8 = vadd.f32 %v3835_v28, %v333_v50  ;;  %v336_v52 = vadd.f32 %v8722_v45, %v316_v62  ;;  %v318_v41 = vunpack.c.h.bf16 %v301_v7 }
 0x37c   : > { %v3416_v31 = vpack.c.bf16 %v3368_v3, %v3364_v61  ;;  %v337_v24 = vadd.f32 %v8722_v45, %v317_v16 }
 0x37d   : > { %v3836_v22 = vpop.f32.mrf.mxu3  ;;  %v338_v15 = vadd.f32 %v8722_v45, %v318_v41 }
 0x37e   : > { %v3787_v58 = vpop.f32.mrf.mxu2  ;;  %v3741_v13 = vpop.f32.mrf.mxu1 }
 0x37f   : > { %v3788_v60 = vadd.f32 %v3787_v58, %v3739_v10 }
 0x381   : > { %v3837_v63 = vadd.f32 %v3836_v22, %v3788_v60  ;;  %v3692_v5 = vpop.f32.mrf.mxu0  ;;  %v303_v22 = vld [vmem:[%s5191_s11 + $0x20] sm:$0xff]  }
 0x382   : > { %v3742_v29 = vadd.f32 %v3741_v13, %v3692_v5 }
 0x383   : > { %v3872_v49 = vadd.f32 %v3837_v63, %v334_v21  ;;  %v319_v21 = vunpack.c.l.bf16 %v303_v22 }
 0x385   : > { %3863 = vmatmul.bf16.gmra.mxu3 %v3416_v31  ;;  %v4457_v23 = vpack.c.bf16 %v3872_v49, %v3871_v8  ;;  %v3839_v33 = vpop.f32.mrf.mxu3  ;;  %v320_v31 = vunpack.c.h.bf16 %v303_v22  ;;  %v339_v49 = vadd.f32 %v8722_v45, %v319_v21  ;;  %v309_v22 = vld [vmem:[%s5191_s11 + $0x38] sm:$0xff]  }
 0x386   : > { %v3790_v47 = vpop.f32.mrf.mxu2  ;;  %v3743_v40 = vpop.f32.mrf.mxu1 }
 0x387   : > { %4489 = vst [vmem:[%s8734_s28 + $0x8] sm:$0xff] %v4457_v23   ;;  %v3791_v30 = vadd.f32 %v3790_v47, %v3742_v29  ;;  %v340_v13 = vadd.f32 %v8722_v45, %v320_v31  ;;  %v325_v31 = vunpack.c.l.bf16 %v309_v22 }
 0x389   : > { %v3694_v36 = vpop.f32.mrf.mxu0  ;;  %v3840_v54 = vadd.f32 %v3839_v33, %v3791_v30 }
 0x38a   : > { %v3744_v56 = vadd.f32 %v3743_v40, %v3694_v36  ;;  %v305_v36 = vld [vmem:[%s5191_s11 + $0x28] sm:$0xff]  }
 0x38b   : > { %v3873_v0 = vadd.f32 %v3840_v54, %v335_v53 }
 0x38d   : > { %v3841_v39 = vpop.f32.mrf.mxu3 }
 0x38e   : > { %v3792_v18 = vpop.f32.mrf.mxu2  ;;  %v3746_v11 = vpop.f32.mrf.mxu1 }
 0x38f   : > { %v3793_v20 = vadd.f32 %v3792_v18, %v3744_v56 }
 0x391   : > { %v3842_v1 = vadd.f32 %v3841_v39, %v3793_v20  ;;  %v3697_v12 = vpop.f32.mrf.mxu0  ;;  %v322_v39 = vunpack.c.h.bf16 %v305_v36 }
 0x392   : > { %v3747_v32 = vadd.f32 %v3746_v11, %v3697_v12 }
 0x393   : > { %v3874_v38 = vadd.f32 %v3842_v1, %v336_v52  ;;  %v321_v52 = vunpack.c.l.bf16 %v305_v36  ;;  %v342_v12 = vadd.f32 %v8722_v45, %v322_v39 }
 0x395   : > { %v4462_v14 = vpack.c.bf16 %v3874_v38, %v3873_v0  ;;  %v341_v38 = vadd.f32 %v8722_v45, %v321_v52 }
 0x396   : > { %v3748_v55 = vpop.f32.mrf.mxu1 }
 0x397   : > { %4490 = vst [vmem:[%s8734_s28 + $0x10] sm:$0xff] %v4462_v14  }
 0x399   : > { %v3699_v6 = vpop.f32.mrf.mxu0 }
 0x39a   : > { %v3749_v59 = vadd.f32 %v3748_v55, %v3699_v6 }
 0x3b8   : > { %v3702_v26 = vpop.f32.mrf.mxu0 }
 0x3bc   : > { %v3795_v43 = vpop.f32.mrf.mxu2 }
 0x3bd   : > { %v3796_v17 = vadd.f32 %v3795_v43, %v3747_v32 }
 0x3c0   : > { %v3704_v2 = vpop.f32.mrf.mxu0 }
 0x3c4   : > { %v3797_v4 = vpop.f32.mrf.mxu2 }
 0x3c5   : > { %v3798_v51 = vadd.f32 %v3797_v4, %v3749_v59 }
 0x3c6   : > { %v3751_v46 = vpop.f32.mrf.mxu1 }
 0x3c7   : > { %v3752_v50 = vadd.f32 %v3751_v46, %v3702_v26 }
 0x3c8   : > { %v3844_v25 = vpop.f32.mrf.mxu3  ;;  %v3707_v10 = vpop.f32.mrf.mxu0 }
 0x3c9   : > { %v3845_v48 = vadd.f32 %v3844_v25, %v3796_v17  ;;  %v307_v25 = vld [vmem:[%s5191_s11 + $0x30] sm:$0xff]  }
 0x3ca   : > { %v323_v41 = vunpack.c.l.bf16 %v307_v25 }
 0x3cb   : > { %v3875_v37 = vadd.f32 %v3845_v48, %v337_v24 }
 0x3cc   : > { %v343_v24 = vadd.f32 %v8722_v45, %v323_v41 }
 0x3cd   : > { %v3800_v34 = vpop.f32.mrf.mxu2 }
 0x3ce   : > { %v3753_v44 = vpop.f32.mrf.mxu1  ;;  %v3801_v60 = vadd.f32 %v3800_v34, %v3752_v50 }
 0x3cf   : > { %v3754_v28 = vadd.f32 %v3753_v44, %v3704_v2  ;;  %v324_v2 = vunpack.c.h.bf16 %v307_v25 }
 0x3d0   : > { %v3846_v9 = vpop.f32.mrf.mxu3  ;;  %v3709_v23 = vpop.f32.mrf.mxu0 }
 0x3d1   : > { %v3847_v19 = vadd.f32 %v3846_v9, %v3798_v51 }
 0x3d3   : > { %v3876_v3 = vadd.f32 %v3847_v19, %v338_v15  ;;  %v344_v15 = vadd.f32 %v8722_v45, %v324_v2 }
 0x3d5   : > { %v3802_v42 = vpop.f32.mrf.mxu2  ;;  %v4467_v57 = vpack.c.bf16 %v3876_v3, %v3875_v37 }
 0x3d6   : > { %v3756_v58 = vpop.f32.mrf.mxu1  ;;  %v3803_v8 = vadd.f32 %v3802_v42, %v3754_v28 }
 0x3d7   : > { %4491 = vst [vmem:[%s8734_s28 + $0x18] sm:$0xff] %v4467_v57   ;;  %v3757_v56 = vadd.f32 %v3756_v58, %v3707_v10 }
 0x3d8   : > { %v3849_v61 = vpop.f32.mrf.mxu3  ;;  %v3712_v18 = vpop.f32.mrf.mxu0 }
 0x3d9   : > { %v3850_v5 = vadd.f32 %v3849_v61, %v3801_v60 }
 0x3db   : > { %v3877_v29 = vadd.f32 %v3850_v5, %v339_v49  ;;  %v345_v49 = vadd.f32 %v8722_v45, %v325_v31 }
 0x3dd   : > { %v3805_v63 = vpop.f32.mrf.mxu2 }
 0x3de   : > { %v3758_v33 = vpop.f32.mrf.mxu1  ;;  %v3806_v20 = vadd.f32 %v3805_v63, %v3757_v56  ;;  %v326_v63 = vunpack.c.h.bf16 %v309_v22 }
 0x3df   : > { %v3759_v54 = vadd.f32 %v3758_v33, %v3709_v23 }
 0x3e0   : > { %v3851_v47 = vpop.f32.mrf.mxu3  ;;  %v3714_v26 = vpop.f32.mrf.mxu0 }
 0x3e1   : > { %v3852_v35 = vadd.f32 %v3851_v47, %v3803_v8 }
 0x3e3   : > { %v3878_v30 = vadd.f32 %v3852_v35, %v340_v13  ;;  %v346_v13 = vadd.f32 %v8722_v45, %v326_v63 }
 0x3e5   : > { %v3807_v27 = vpop.f32.mrf.mxu2  ;;  %v4472_v62 = vpack.c.bf16 %v3878_v30, %v3877_v29 }
 0x3e6   : > { %v3761_v53 = vpop.f32.mrf.mxu1  ;;  %v3808_v0 = vadd.f32 %v3807_v27, %v3759_v54 }
 0x3e7   : > { %4492 = vst [vmem:[%s8734_s28 + $0x20] sm:$0xff] %v4472_v62   ;;  %v3762_v59 = vadd.f32 %v3761_v53, %v3712_v18 }
 0x3e8   : > { %v3854_v40 = vpop.f32.mrf.mxu3 }
 0x3e9   : > { %v3855_v14 = vadd.f32 %v3854_v40, %v3806_v20  ;;  %v3717_v34 = vpop.f32.mrf.mxu0 }
 0x3eb   : > { %v3879_v55 = vadd.f32 %v3855_v14, %v341_v38 }
 0x3ed   : > { %v3810_v1 = vpop.f32.mrf.mxu2 }
 0x3ee   : > { %v3763_v4 = vpop.f32.mrf.mxu1  ;;  %v3811_v16 = vadd.f32 %v3810_v1, %v3762_v59 }
 0x3ef   : > { %v3764_v17 = vadd.f32 %v3763_v4, %v3714_v26 }
 0x3f0   : > { %v3856_v11 = vpop.f32.mrf.mxu3 }
 0x3f1   : > { %v3857_v6 = vadd.f32 %v3856_v11, %v3808_v0  ;;  %v3719_v10 = vpop.f32.mrf.mxu0 }
 0x3f3   : > { %v3880_v43 = vadd.f32 %v3857_v6, %v342_v12 }
 0x3f5   : > { %v4477_v46 = vpack.c.bf16 %v3880_v43, %v3879_v55  ;;  %v3812_v7 = vpop.f32.mrf.mxu2 }
 0x3f6   : > { %v3813_v51 = vadd.f32 %v3812_v7, %v3764_v17  ;;  %v3766_v44 = vpop.f32.mrf.mxu1 }
 0x3f7   : > { %4493 = vst [vmem:[%s8734_s28 + $0x28] sm:$0xff] %v4477_v46   ;;  %v3767_v50 = vadd.f32 %v3766_v44, %v3717_v34 }
 0x3f8   : > { %v3859_v32 = vpop.f32.mrf.mxu3 }
 0x3f9   : > { %v3860_v48 = vadd.f32 %v3859_v32, %v3811_v16 }
 0x3fb   : > { %v3881_v3 = vadd.f32 %v3860_v48, %v343_v24 }
 0x3fd   : > { %v3815_v19 = vpop.f32.mrf.mxu2 }
 0x3fe   : > { %v3768_v58 = vpop.f32.mrf.mxu1  ;;  %v3816_v21 = vadd.f32 %v3815_v19, %v3767_v50 }
 0x3ff   : > { %v3769_v60 = vadd.f32 %v3768_v58, %v3719_v10 }
 0x400   : > { %v3861_v9 = vpop.f32.mrf.mxu3 }
 0x401   : > { %v3862_v37 = vadd.f32 %v3861_v9, %v3813_v51 }
 0x403   : > { %v3882_v42 = vadd.f32 %v3862_v37, %v344_v15 }
 0x405   : > { %v4482_v57 = vpack.c.bf16 %v3882_v42, %v3881_v3  ;;  %v3817_v28 = vpop.f32.mrf.mxu2 }
 0x406   : > { %v3818_v8 = vadd.f32 %v3817_v28, %v3769_v60 }
 0x407   : > { %4494 = vst [vmem:[%s8734_s28 + $0x30] sm:$0xff] %v4482_v57  }
 0x408   : > { %v3864_v61 = vpop.f32.mrf.mxu3 }
 0x409   : > { %v3865_v5 = vadd.f32 %v3864_v61, %v3816_v21 }
 0x40b   : > { %v3883_v33 = vadd.f32 %v3865_v5, %v345_v49 }
 0x410   : > { %v3866_v23 = vpop.f32.mrf.mxu3 }
 0x411   : > { %v3867_v47 = vadd.f32 %v3866_v23, %v3818_v8 }
 0x413   : > { %v3884_v35 = vadd.f32 %v3867_v47, %v346_v13 }
 0x415   : > { %v4487_v29 = vpack.c.bf16 %v3884_v35, %v3883_v33 }
 0x417   : > { %4495 = vst [vmem:[%s8734_s28 + $0x38] sm:$0xff] %v4487_v29  }
 0x418   : > { %4983 = shalt.err (!%p4980_p10)
}
 0x419   : > { %s5039_s17 = smov 64   ;;  %s5040_s29 = smov 4  }
 0x41a   : > { %4510 = dma.vmem_to_hbm [thread:$0]  (%p5155_p0), %s3963_s13, 1024, %s3965_s12, %s3950_s22, %s5039_s17, %s5039_s17, %s5040_s29  }
 0x41b PF: > { %p4537_p11 = scmp.ge.s32.totalorder %s5030_s21, 2  ;;  %s3979_s28 = sand.u32 1, %s5018_s18  }
 0x41c   : > { %s3980_s16 = scalar_lea.sflag [#allocation5], %s3979_s28 }
 0x41d   : > { %p4527_p12 = pnand %p4537_p11, %p5106_p6 }
 0x41f   : > { %p4528_p13 = pneg %p4527_p12 }
 0x421   : > { %5013 = dma.done.wait (%p4528_p13), %s3980_s16, 1024  }
 0x422   : > { %5015 = vsyncadd (%p4528_p13), %s3980_s16, 4294966272  ;;  %p20_p3 = scmp.ge.s32.totalorder %s5142_s30, 6   ;;  %s9527_s18 = smov %s5022_s19 }
 0x423   : > { %s9528_s19 = smov %s5026_s20  ;;  %s9529_s20 = smov %s5151_s9 }
 0x424   : > { %s9530_s21 = smov %s5142_s30  ;;  %22 = sbr.rel (!%p20_p3) target bundleno = 7 (0x7), region = 97 }
 0x429   :  { %3986 = vsyncpa [#allocation4], 1 }
 0x42a   :  { %3988 = vsyncpa [#allocation4 + $0x1], 1 }
 0x42b   :  { %3989 = vsyncpa [#allocation7], 1 }
 0x42c   :  { %3990 = vsyncpa [#allocation10], 1 }
 0x42d   :  { %3991 = vsyncpa [#allocation5], 1 }
 0x42e   :  { %3993 = vsyncpa [#allocation5 + $0x1], 1 }

// kernel: tpu_custom_call.1
= control target key start
LH: loop header
LB: loop body
LE: loop exit
PB: predicated region body
PF: predicated region fallthrough
CT: control target
= control target key end

     0   :  { %10 = vsyncpa [#allocation4], 0  ;;  %s8800_s0 = inlined_call_operand.hbm [shape: bf16[512,128], index: 0, kind: input, shape index: {}]   ;;  %s8801_s1 = inlined_call_operand.hbm [shape: bf16[128,512], index: 1, kind: input, shape index: {}]   ;;  %s8802_s2 = inlined_call_operand.hbm [shape: f32[1,512], index: 2, kind: input, shape index: {}]   ;;  %s8803_s3 = inlined_call_operand.hbm [shape: bf16[512,128], index: 3, kind: input, shape index: {}]   ;;  %s8804_s4 = inlined_call_operand.vmem [shape: f32[1,128], index: 4, kind: input, shape index: {}]   ;;  %s8805_s5 = inlined_call_operand.hbm [shape: bf16[512,128], index: 5, kind: output, shape index: {}]  }
   0x1   :  { %12 = vsyncpa [#allocation4 + $0x1], 0 }
   0x2   :  { %13 = vsyncpa [#allocation7], 0 }
   0x3   :  { %14 = vsyncpa [#allocation10], 0 }
   0x4   :  { %15 = vsyncpa [#allocation5], 0 }
   0x5   :  { %17 = vsyncpa [#allocation5 + $0x1], 0  ;;  %s5071_s18 = smov 0   ;;  %s5073_s19 = smov 0  }
   0x6   :  { %s5075_s20 = smov 0   ;;  %s5077_s21 = smov 0  }
   0x7 LB: > { %s5092_s22 = sadd.s32 4294967295, %s5030_s21   ;;  %s4067_s23 = sadd.s32 4294967294, %s5030_s21   ;;  %s5030_s21 = sphi %s5077_s21, %s9530_s21   ;;  %s5026_s20 = sphi %s5075_s20, %s9529_s20   ;;  %s5022_s19 = sphi %s5073_s19, %s9528_s19   ;;  %s5018_s18 = sphi %s5071_s18, %s9527_s18  }
   0x8   : > { %p43_p0 = scmp.ne.s32.totalorder %s5022_s19, %s5018_s18  ;;  %p44_p1 = scmp.eq.s32.totalorder %s5092_s22, 0 }
   0x9   : > { %p151_p2 = scmp.eq.s32.totalorder %s5092_s22, 3  ;;  %p157_p3 = scmp.eq.s32.totalorder %s4067_s23, 3 }
   0xa   : > { %p5101_p4 = por %p44_p1, %p43_p0  ;;  %p4068_p5 = scmp.ge.s32.totalorder %s5030_s21, 1 }
   0xb   : > { %p5106_p6 = por %p157_p3, %p43_p0  ;;  %p164_p7 = scmp.lt.s32.totalorder %s5030_s21, 5 }
   0xc   : > { %s175_s28 = sshll.u32 %s8801_s1, 4  ;;  %s5032_s30 = smov [#allocation6]   ;;  %s176_s28 = int_to_ptr.hbm [resolvable:$true] %s175_s28 }
   0xd   : > { %p5114_p8 = pnand %p4068_p5, %p164_p7  ;;  %s177_s6 = sshll.u32 %s5032_s30, 4  ;;  %s178_s6 = int_to_ptr.vmem [resolvable:$true] %s177_s6 }
   0xe   : > { %s190_s10 = sshll.u32 %s8802_s2, 4  ;;  %s5033_s11 = smov 256   ;;  %s191_s10 = int_to_ptr.hbm [resolvable:$true] %s190_s10 }
   0xf   : > { %p4512_p9 = pneg %p5114_p8  ;;  %s5034_s12 = smov 16  }
  0x10   : > { %s5035_s13 = smov [#allocation8]   ;;  %s201_s17 = sshll.u32 %s8803_s3, 4  ;;  %s202_s17 = int_to_ptr.hbm [resolvable:$true] %s201_s17 }
  0x11   : > { %p5122_p10 = pnand %p4512_p9, %p44_p1  ;;  %s192_s14 = sshll.u32 %s5035_s13, 4  ;;  %s193_s14 = int_to_ptr.vmem [resolvable:$true] %s192_s14 }
  0x12   : > { %s5036_s23 = smov [#allocation9]   ;;  %s8806_s27 = smov 64  }
  0x13   : > { %4515 = dma.hbm_to_vmem [thread:$0]  (!%p5122_p10), %s176_s28, 4096, %s178_s6, [#allocation7], %s5033_s11, %s5033_s11, %s5034_s12  }
  0x14   : > { %4518 = dma.hbm_to_vmem [thread:$0]  (!%p5122_p10), %s191_s10, 64, %s193_s14, [#allocation7]  }
  0x15   : > { %s203_s26 = sshll.u32 %s5036_s23, 4  ;;  %s5038_s28 = smov 4   ;;  %s204_s26 = int_to_ptr.vmem [resolvable:$true] %s203_s26 }
  0x16   : > { %4521 = dma.hbm_to_vmem [thread:$0]  (!%p5122_p10), %s202_s17, 4096, %s204_s26, [#allocation10], %s8806_s27, %s8806_s27, %s5038_s28  }
  0x17   : > { %s5142_s30 = sadd.s32 1, %s5030_s21   ;;  %s30_s8 = sadd.s32 1, %s5026_s20 }
  0x18   : > { %s27_s6 = ssub.s32 %s5030_s21, %s5142_s30  ;;  %p37_p12 = scmp.ne.s32.totalorder %s5026_s20, %s5022_s19 }
  0x19   : > { %p28_p11 = scmp.eq.s32.totalorder %s27_s6, 0  ;;  %p38_p13 = scmp.eq.s32.totalorder %s5030_s21, 0 }
  0x1a   : > { %p5155_p0 = por %p151_p2, %p37_p12  ;;  %p4533_p3 = scmp.lt.s32.totalorder %s5030_s21, 4 }
  0x1b   : > { %s5151_s9 = scalar_select %p28_p11, %s5026_s20, %s30_s8  }
  0x1c   : > { %s220_s7 = sand.u32 1, %s5026_s20   ;;  %s4375_s11 = sshll.u32 %s5030_s21, 6 }
  0x1d   : > { %p39_p5 = por %p38_p13, %p37_p12  ;;  %s4073_s12 = sshll.u32 %s220_s7, 6 }
  0x1e   : > { %s229_s15 = scalar_lea.hbm %s8800_s0, %s4375_s11  ;;  %s224_s17 = scalar_lea.vmem [#allocation3], %s4073_s12 }
  0x1f   : > { %s230_s16 = sshll.u32 %s229_s15, 4  ;;  %s232_s23 = sshll.u32 %s224_s17, 4  ;;  %s231_s16 = int_to_ptr.hbm [resolvable:$true] %s230_s16  ;;  %s233_s23 = int_to_ptr.vmem [resolvable:$true] %s232_s23 }
  0x20   : > { %p5165_p7 = pnand %p4533_p3, %p39_p5  ;;  %s221_s6 = scalar_lea.sflag [#allocation4], %s220_s7 }
  0x21   : > { %s4926_s8 = sshra.s32 %s231_s16, 4  ;;  %s4933_s12 = scalar_lea.hbm %s8800_s0, 256  ;;  %s4927_s8 = int_to_ptr.hbm [resolvable:$true] %s4926_s8 }
  0x22   : > { %s4928_s27 = scalar_lea.hbm %s4927_s8, 64  ;;  %p4930_p9 = pneg %p5165_p7 }
  0x23   : > { %p4929_p2 = scmp.ne.s32.totalorder %s4927_s8, %s4928_s27  ;;  %p4934_p12 = scmp.lt.s32.totalorder %s4927_s8, %s8800_s0 }
  0x24   : > { %p4935_p13 = scmp.lt.s32.totalorder %s4933_s12, %s4928_s27 }
  0x25   : > { %p4931_p10 = pnand %p4930_p9, %p4929_p2 }
  0x26   : > { %p4936_p3 = por %p4935_p13, %p4934_p12 }
  0x27   : > { %p4932_p11 = pneg %p4931_p10 }
  0x29   : > { %p4937_p5 = pnand %p4936_p3, %p4932_p11 }
  0x2b   : > { %4940 = shalt.err (!%p4937_p5)
}
  0x2c   : > { %s8970_s7 = smov 64   ;;  %244 = sbr.rel (%p5114_p8) target bundleno = 1051 (0x41b), region = 40 }
  0x2d   : > { %4525 = dma.hbm_to_vmem [thread:$0]  (!%p5165_p7), %s231_s16, 1024, %s233_s23, %s221_s6, %s8970_s7, %s8970_s7, %s5038_s28  }
  0x31   : > { %s5185_s17 = sand.u32 1, %s5022_s19  }
  0x32   : > { %s4077_s27 = sshll.u32 %s5185_s17, 6  ;;  %s247_s8 = scalar_lea.sflag [#allocation4], %s5185_s17 }
  0x33   : > { %s5191_s11 = scalar_lea.vmem [#allocation3], %s4077_s27 }
  0x34   : > { %5001 = dma.done.wait (%p5101_p4), %s247_s8, 1024  }
  0x35   : > { %5003 = vsyncadd (%p5101_p4), %s247_s8, 4294966272 }
  0x36   : > { %5005 = dma.done.wait (%p44_p1), [#allocation7], 4160  }
  0x37   : > { %5007 = vsyncadd (%p44_p1), [#allocation7], 4294963136 }
  0x38   : > { %5009 = dma.done.wait (%p44_p1), [#allocation10], 4096  }
  0x39   : > { %5011 = vsyncadd (%p44_p1), [#allocation10], 4294963200  ;;  %v4228_v0 = vld [vmem:[#allocation6 + $0xe0] sm:$0xf]  ;;  %v4414_v1 = vld [vmem:[#allocation6 + $0xec] sm:$0xf0] }
  0x3a   : > { %v4412_v2 = vld [vmem:[#allocation6 + $0xe4] sm:$0xf]  ;;  %v4229_v3 = vor.u32 %v4414_v1, %v4228_v0  ;;  %v4230_v4 = vld [vmem:[#allocation6 + $0xf0] sm:$0xf0]  ;;  %v4236_v5 = vld [vmem:[#allocation6 + $0xe8] sm:$0xf] }
  0x3b   : > { %v4415_v6 = vld [vmem:[#allocation6 + $0xf4] sm:$0xf0]  ;;  %v4233_v7 = vor.u32 %v4412_v2, %v4230_v4  ;;  %v4413_v9 = vld [vmem:[#allocation6 + $0xec] sm:$0xf]  ;;  %v4238_v10 = vld [vmem:[#allocation6 + $0xf8] sm:$0xf0] }
  0x3c   : > { %v4237_v8 = vor.u32 %v4415_v6, %v4236_v5  ;;  %v4212_v11 = vld [vmem:[#allocation6 + $0xc0] sm:$0xf]  ;;  %613 = vmatpush.bf16.msra.mxu0 %v4229_v3  ;;  %v4241_v12 = vor.u32 %v4413_v9, %v4238_v10  ;;  %v4410_v13 = vld [vmem:[#allocation6 + $0xcc] sm:$0xf0]  ;;  %v4408_v14 = vld [vmem:[#allocation6 + $0xc4] sm:$0xf] }
  0x3d   : > { %v4214_v15 = vld [vmem:[#allocation6 + $0xd0] sm:$0xf0]  ;;  %662 = vmatpush.bf16.msra.mxu1 %v4233_v7  ;;  %v4213_v16 = vor.u32 %v4410_v13, %v4212_v11  ;;  %v4220_v18 = vld [vmem:[#allocation6 + $0xc8] sm:$0xf]  ;;  %v4411_v19 = vld [vmem:[#allocation6 + $0xd4] sm:$0xf0] }
  0x3e   : > { %711 = vmatpush.bf16.msra.mxu2 %v4237_v8  ;;  %v4217_v17 = vor.u32 %v4408_v14, %v4214_v15  ;;  %v4409_v20 = vld [vmem:[#allocation6 + $0xcc] sm:$0xf]  ;;  %760 = vmatpush.bf16.msra.mxu3 %v4241_v12  ;;  %v4221_v21 = vor.u32 %v4411_v19, %v4220_v18  ;;  %v4222_v22 = vld [vmem:[#allocation6 + $0xd8] sm:$0xf0]  ;;  %v4196_v23 = vld [vmem:[#allocation6 + $0xa0] sm:$0xf] }
  0x3f   : > { %v4406_v24 = vld [vmem:[#allocation6 + $0xac] sm:$0xf0]  ;;  %v4225_v25 = vor.u32 %v4409_v20, %v4222_v22  ;;  %v4404_v26 = vld [vmem:[#allocation6 + $0xa4] sm:$0xf]  ;;  %v4198_v27 = vld [vmem:[#allocation6 + $0xb0] sm:$0xf0] }
  0x40   : > { %v4204_v28 = vld [vmem:[#allocation6 + $0xa8] sm:$0xf]  ;;  %614 = vmatpush.bf16.msra.mxu0 %v4213_v16  ;;  %v4197_v29 = vor.u32 %v4406_v24, %v4196_v23  ;;  %v4407_v30 = vld [vmem:[#allocation6 + $0xb4] sm:$0xf0]  ;;  %v4405_v31 = vld [vmem:[#allocation6 + $0xac] sm:$0xf]  ;;  %v4201_v33 = vor.u32 %v4404_v26, %v4198_v27 }
  0x41   : > { %v4206_v32 = vld [vmem:[#allocation6 + $0xb8] sm:$0xf0]  ;;  %663 = vmatpush.bf16.msra.mxu1 %v4217_v17  ;;  %v4205_v34 = vor.u32 %v4407_v30, %v4204_v28  ;;  %v4180_v35 = vld [vmem:[#allocation6 + $0x80] sm:$0xf]  ;;  %v4402_v36 = vld [vmem:[#allocation6 + $0x8c] sm:$0xf0] }
  0x42   : > { %712 = vmatpush.bf16.msra.mxu2 %v4221_v21  ;;  %v4400_v37 = vld [vmem:[#allocation6 + $0x84] sm:$0xf]  ;;  %761 = vmatpush.bf16.msra.mxu3 %v4225_v25  ;;  %v4209_v38 = vor.u32 %v4405_v31, %v4206_v32  ;;  %v4182_v39 = vld [vmem:[#allocation6 + $0x90] sm:$0xf0]  ;;  %v4188_v40 = vld [vmem:[#allocation6 + $0x88] sm:$0xf]  ;;  %v4181_v44 = vor.u32 %v4402_v36, %v4180_v35 }
  0x43   : > { %v4403_v41 = vld [vmem:[#allocation6 + $0x94] sm:$0xf0]  ;;  %v4401_v42 = vld [vmem:[#allocation6 + $0x8c] sm:$0xf]  ;;  %v4190_v43 = vld [vmem:[#allocation6 + $0x98] sm:$0xf0]  ;;  %v4185_v45 = vor.u32 %v4400_v37, %v4182_v39 }
  0x44   : > { %615 = vmatpush.bf16.msra.mxu0 %v4197_v29  ;;  %v4189_v46 = vor.u32 %v4403_v41, %v4188_v40  ;;  %v4164_v47 = vld [vmem:[#allocation6 + $0x60] sm:$0xf]  ;;  %v4398_v48 = vld [vmem:[#allocation6 + $0x6c] sm:$0xf0]  ;;  %v4396_v49 = vld [vmem:[#allocation6 + $0x64] sm:$0xf]  ;;  %v4193_v50 = vor.u32 %v4401_v42, %v4190_v43 }
  0x45   : > { %664 = vmatpush.bf16.msra.mxu1 %v4201_v33  ;;  %v4166_v51 = vld [vmem:[#allocation6 + $0x70] sm:$0xf0]  ;;  %v4172_v52 = vld [vmem:[#allocation6 + $0x68] sm:$0xf]  ;;  %v4399_v53 = vld [vmem:[#allocation6 + $0x74] sm:$0xf0]  ;;  %v4165_v56 = vor.u32 %v4398_v48, %v4164_v47 }
  0x46   : > { %713 = vmatpush.bf16.msra.mxu2 %v4205_v34  ;;  %762 = vmatpush.bf16.msra.mxu3 %v4209_v38  ;;  %v4397_v54 = vld [vmem:[#allocation6 + $0x6c] sm:$0xf]  ;;  %v4174_v55 = vld [vmem:[#allocation6 + $0x78] sm:$0xf0]  ;;  %v4169_v57 = vor.u32 %v4396_v49, %v4166_v51  ;;  %v4173_v58 = vor.u32 %v4399_v53, %v4172_v52  ;;  %v4148_v59 = vld [vmem:[#allocation6 + $0x40] sm:$0xf] }
  0x47   : > { %v4394_v60 = vld [vmem:[#allocation6 + $0x4c] sm:$0xf0]  ;;  %v4392_v61 = vld [vmem:[#allocation6 + $0x44] sm:$0xf]  ;;  %v4177_v62 = vor.u32 %v4397_v54, %v4174_v55  ;;  %v4150_v63 = vld [vmem:[#allocation6 + $0x50] sm:$0xf0] }
  0x48   : > { %616 = vmatpush.bf16.msra.mxu0 %v4181_v44  ;;  %v4156_v0 = vld [vmem:[#allocation6 + $0x48] sm:$0xf]  ;;  %v4395_v1 = vld [vmem:[#allocation6 + $0x54] sm:$0xf0]  ;;  %v4393_v2 = vld [vmem:[#allocation6 + $0x4c] sm:$0xf]  ;;  %v4149_v4 = vor.u32 %v4394_v60, %v4148_v59  ;;  %v4153_v5 = vor.u32 %v4392_v61, %v4150_v63 }
  0x49   : > { %665 = vmatpush.bf16.msra.mxu1 %v4185_v45  ;;  %v4158_v3 = vld [vmem:[#allocation6 + $0x58] sm:$0xf0]  ;;  %v4157_v6 = vor.u32 %v4395_v1, %v4156_v0  ;;  %v4132_v7 = vld [vmem:[#allocation6 + $0x20] sm:$0xf]  ;;  %v4390_v8 = vld [vmem:[#allocation6 + $0x2c] sm:$0xf0] }
  0x4a   : > { %714 = vmatpush.bf16.msra.mxu2 %v4189_v46  ;;  %763 = vmatpush.bf16.msra.mxu3 %v4193_v50  ;;  %v4388_v9 = vld [vmem:[#allocation6 + $0x24] sm:$0xf]  ;;  %v4161_v10 = vor.u32 %v4393_v2, %v4158_v3  ;;  %v4134_v11 = vld [vmem:[#allocation6 + $0x30] sm:$0xf0]  ;;  %v4140_v12 = vld [vmem:[#allocation6 + $0x28] sm:$0xf]  ;;  %v4133_v16 = vor.u32 %v4390_v8, %v4132_v7 }
  0x4b   : > { %v4391_v13 = vld [vmem:[#allocation6 + $0x34] sm:$0xf0]  ;;  %v4389_v14 = vld [vmem:[#allocation6 + $0x2c] sm:$0xf]  ;;  %v4142_v15 = vld [vmem:[#allocation6 + $0x38] sm:$0xf0]  ;;  %v4137_v17 = vor.u32 %v4388_v9, %v4134_v11 }
  0x4c   : > { %617 = vmatpush.bf16.msra.mxu0 %v4165_v56  ;;  %v4141_v18 = vor.u32 %v4391_v13, %v4140_v12  ;;  %v4116_v19 = vld [vmem:[#allocation6] sm:$0xf]  ;;  %v4386_v20 = vld [vmem:[#allocation6 + $0xc] sm:$0xf0]  ;;  %v4384_v21 = vld [vmem:[#allocation6 + $0x4] sm:$0xf]  ;;  %v4145_v22 = vor.u32 %v4389_v14, %v4142_v15 }
  0x4d   : > { %666 = vmatpush.bf16.msra.mxu1 %v4169_v57  ;;  %v4118_v23 = vld [vmem:[#allocation6 + $0x10] sm:$0xf0]  ;;  %v4124_v24 = vld [vmem:[#allocation6 + $0x8] sm:$0xf]  ;;  %v4387_v25 = vld [vmem:[#allocation6 + $0x14] sm:$0xf0]  ;;  %v4117_v28 = vor.u32 %v4386_v20, %v4116_v19 }
  0x4e   : > { %715 = vmatpush.bf16.msra.mxu2 %v4173_v58  ;;  %764 = vmatpush.bf16.msra.mxu3 %v4177_v62  ;;  %v4385_v26 = vld [vmem:[#allocation6 + $0xc] sm:$0xf]  ;;  %v4126_v27 = vld [vmem:[#allocation6 + $0x18] sm:$0xf0]  ;;  %v4121_v29 = vor.u32 %v4384_v21, %v4118_v23  ;;  %v4125_v30 = vor.u32 %v4387_v25, %v4124_v24  ;;  %v4376_v32 = vld [vmem:[%s5191_s11] sm:$0xff]  ;;  %s8734_s28 = scalar_lea.vmem [#allocation11], %s4077_s27 }
  0x4f   : > { %v4129_v31 = vor.u32 %v4385_v26, %v4126_v27  ;;  %v4377_v33 = vld [vmem:[%s5191_s11 + $0x8] sm:$0xff]  ;;  %v4378_v34 = vld [vmem:[%s5191_s11 + $0x10] sm:$0xff]  ;;  %v4439_v35 = vld [vmem:[#allocation9 + $0xb8] sm:$0xff]  ;;  %s4448_s16 = sshll.u32 %s5092_s22, 6  ;;  %s3962_s13 = sshll.u32 %s8734_s28, 4  ;;  %s3963_s13 = int_to_ptr.vmem [resolvable:$true] %s3962_s13 }
  0x50   : > { %618 = vmatpush.bf16.msra.mxu0 %v4149_v4  ;;  %v4447_v36 = vld [vmem:[#allocation9 + $0xf8] sm:$0xff]  ;;  %v4438_v40 = vld [vmem:[#allocation9 + $0xb0] sm:$0xff]  ;;  %v4437_v45 = vld [vmem:[#allocation9 + $0xa8] sm:$0xff]  ;;  %s3961_s6 = scalar_lea.hbm %s8805_s5, %s4448_s16  ;;  %s3950_s22 = scalar_lea.sflag [#allocation5], %s5185_s17 }
  0x51   : > { %667 = vmatpush.bf16.msra.mxu1 %v4153_v5  ;;  %v4423_v37 = vld [vmem:[#allocation9 + $0x38] sm:$0xff]  ;;  %v4446_v41 = vld [vmem:[#allocation9 + $0xf0] sm:$0xff]  ;;  %v4445_v46 = vld [vmem:[#allocation9 + $0xe8] sm:$0xff]  ;;  %s3964_s12 = sshll.u32 %s3961_s6, 4  ;;  %s4976_s8 = scalar_lea.hbm %s8805_s5, 256  ;;  %s3965_s12 = int_to_ptr.hbm [resolvable:$true] %s3964_s12 }
  0x52   : > { %716 = vmatpush.bf16.msra.mxu2 %v4157_v6  ;;  %765 = vmatpush.bf16.msra.mxu3 %v4161_v10  ;;  %v4431_v38 = vld [vmem:[#allocation9 + $0x78] sm:$0xff]  ;;  %v4422_v42 = vld [vmem:[#allocation9 + $0x30] sm:$0xff]  ;;  %v4421_v47 = vld [vmem:[#allocation9 + $0x28] sm:$0xff]  ;;  %s4970_s14 = sshra.s32 %s3965_s12, 4  ;;  %s4971_s14 = int_to_ptr.hbm [resolvable:$true] %s4970_s14 }
  0x53   : > { %v4379_v39 = vld [vmem:[%s5191_s11 + $0x18] sm:$0xff]  ;;  %v4380_v44 = vld [vmem:[%s5191_s11 + $0x20] sm:$0xff]  ;;  %v4429_v48 = vld [vmem:[#allocation9 + $0x68] sm:$0xff]  ;;  %s4972_s15 = scalar_lea.hbm %s4971_s14, 64  ;;  %p4977_p7 = scmp.lt.s32.totalorder %s4971_s14, %s8805_s5 }
  0x54   : > { %619 = vmatpush.bf16.msra.mxu0 %v4133_v16  ;;  %v4430_v43 = vld [vmem:[#allocation9 + $0x70] sm:$0xff]  ;;  %v4381_v49 = vld [vmem:[%s5191_s11 + $0x28] sm:$0xff]  ;;  %v395_v56 = vld [vmem:[#allocation8] sm:$0xf]  ;;  %p4973_p1 = scmp.ne.s32.totalorder %s4971_s14, %s4972_s15  ;;  %p4978_p2 = scmp.lt.s32.totalorder %s4976_s8, %s4972_s15 }
  0x55   : > { %668 = vmatpush.bf16.msra.mxu1 %v4137_v17  ;;  %v4436_v50 = vld [vmem:[#allocation9 + $0xa0] sm:$0xff]  ;;  %v4382_v54 = vld [vmem:[%s5191_s11 + $0x30] sm:$0xff]  ;;  %v4383_v55 = vld [vmem:[%s5191_s11 + $0x38] sm:$0xff]  ;;  %v5213_v57 = vperm.slane %v395_v56, 0  ;;  %v5215_v59 = vperm.slane %v395_v56, 1  ;;  %v5220_v62 = vperm.slane %v395_v56, 2 }
  0x56   : > { %717 = vmatpush.bf16.msra.mxu2 %v4141_v18  ;;  %766 = vmatpush.bf16.msra.mxu3 %v4145_v22  ;;  %v4444_v51 = vld [vmem:[#allocation9 + $0xe0] sm:$0xff]  ;;  %v5222_v0 = vperm.slane %v395_v56, 3  ;;  %v4419_v21 = vld [vmem:[#allocation9 + $0x18] sm:$0xff]  ;;  %p4974_p4 = pnand %p4973_p1, %p5155_p0  ;;  %p4979_p9 = por %p4978_p2, %p4977_p7 }
  0x57   : > { %v4420_v52 = vld [vmem:[#allocation9 + $0x20] sm:$0xff]  ;;  %v4427_v22 = vld [vmem:[#allocation9 + $0x58] sm:$0xff] }
  0x58   : > { %620 = vmatpush.bf16.msra.mxu0 %v4117_v28  ;;  %v4428_v53 = vld [vmem:[#allocation9 + $0x60] sm:$0xff]  ;;  %p4975_p8 = pneg %p4974_p4 }
  0x59   : > { %669 = vmatpush.bf16.msra.mxu1 %v4121_v29  ;;  %v4435_v29 = vld [vmem:[#allocation9 + $0x98] sm:$0xff] }
  0x5a   : > { %718 = vmatpush.bf16.msra.mxu2 %v4125_v30  ;;  %767 = vmatpush.bf16.msra.mxu3 %v4129_v31  ;;  %v4443_v30 = vld [vmem:[#allocation9 + $0xd8] sm:$0xff]  ;;  %p4980_p10 = pnand %p4979_p9, %p4975_p8 }
  0x5b   : > { %621 = vmatmul.bf16.vlgmr.msra.gmra.mxu0 %v4376_v32 }
  0x5c   : > { %670 = vmatmul.bf16.vlgmr.msra.gmra.mxu1 %v4376_v32  ;;  %3673 = vmatpush.bf16.msrb.mxu0 %v4423_v37 }
  0x5d   : > { %719 = vmatmul.bf16.vlgmr.msra.gmra.mxu2 %v4376_v32  ;;  %768 = vmatmul.bf16.vlgmr.msra.gmra.mxu3 %v4376_v32 }
  0x5e   : > { %3771 = vmatpush.bf16.msrb.mxu2 %v4439_v35  ;;  %3820 = vmatpush.bf16.msrb.mxu3 %v4447_v36 }
  0x5f   : > { %3722 = vmatpush.bf16.msrb.mxu1 %v4431_v38 }
  0x60   : > { %3674 = vmatpush.bf16.msrb.mxu0 %v4422_v42 }
  0x62   : > { %3772 = vmatpush.bf16.msrb.mxu2 %v4438_v40  ;;  %3821 = vmatpush.bf16.msrb.mxu3 %v4446_v41 }
  0x63   : > { %3723 = vmatpush.bf16.msrb.mxu1 %v4430_v43 }
  0x64   : > { %3675 = vmatpush.bf16.msrb.mxu0 %v4421_v47 }
  0x66   : > { %3773 = vmatpush.bf16.msrb.mxu2 %v4437_v45  ;;  %3822 = vmatpush.bf16.msrb.mxu3 %v4445_v46 }
  0x67   : > { %3724 = vmatpush.bf16.msrb.mxu1 %v4429_v48 }
  0x68   : > { %3676 = vmatpush.bf16.msrb.mxu0 %v4420_v52 }
  0x6a   : > { %3774 = vmatpush.bf16.msrb.mxu2 %v4436_v50  ;;  %3823 = vmatpush.bf16.msrb.mxu3 %v4444_v51 }
  0x6b   : > { %626 = vmatmul.bf16.gmra.mxu0 %v4377_v33  ;;  %3725 = vmatpush.bf16.msrb.mxu1 %v4428_v53 }
  0x6c   : > { %675 = vmatmul.bf16.gmra.mxu1 %v4377_v33  ;;  %3677 = vmatpush.bf16.msrb.mxu0 %v4419_v21 }
  0x6d   : > { %724 = vmatmul.bf16.gmra.mxu2 %v4377_v33  ;;  %773 = vmatmul.bf16.gmra.mxu3 %v4377_v33 }
  0x6e   : > { %3775 = vmatpush.bf16.msrb.mxu2 %v4435_v29  ;;  %3824 = vmatpush.bf16.msrb.mxu3 %v4443_v30 }
  0x6f   : > { %3726 = vmatpush.bf16.msrb.mxu1 %v4427_v22 }
  0x7b   : > { %631 = vmatmul.bf16.gmra.mxu0 %v4378_v34 }
  0x7c   : > { %680 = vmatmul.bf16.gmra.mxu1 %v4378_v34 }
  0x7d   : > { %729 = vmatmul.bf16.gmra.mxu2 %v4378_v34  ;;  %778 = vmatmul.bf16.gmra.mxu3 %v4378_v34 }
  0x8b   : > { %636 = vmatmul.bf16.gmra.mxu0 %v4379_v39 }
  0x8c   : > { %685 = vmatmul.bf16.gmra.mxu1 %v4379_v39 }
  0x8d   : > { %734 = vmatmul.bf16.gmra.mxu2 %v4379_v39  ;;  %783 = vmatmul.bf16.gmra.mxu3 %v4379_v39 }
  0x9b   : > { %641 = vmatmul.bf16.gmra.mxu0 %v4380_v44 }
  0x9c   : > { %690 = vmatmul.bf16.gmra.mxu1 %v4380_v44 }
  0x9d   : > { %739 = vmatmul.bf16.gmra.mxu2 %v4380_v44  ;;  %788 = vmatmul.bf16.gmra.mxu3 %v4380_v44 }
  0xab   : > { %646 = vmatmul.bf16.gmra.mxu0 %v4381_v49 }
  0xac   : > { %695 = vmatmul.bf16.gmra.mxu1 %v4381_v49 }
  0xad   : > { %744 = vmatmul.bf16.gmra.mxu2 %v4381_v49  ;;  %793 = vmatmul.bf16.gmra.mxu3 %v4381_v49 }
  0xbb   : > { %651 = vmatmul.bf16.gmra.mxu0 %v4382_v54 }
  0xbc   : > { %700 = vmatmul.bf16.gmra.mxu1 %v4382_v54 }
  0xbd   : > { %749 = vmatmul.bf16.gmra.mxu2 %v4382_v54  ;;  %798 = vmatmul.bf16.gmra.mxu3 %v4382_v54 }
  0xcb   : > { %656 = vmatmul.bf16.gmra.mxu0 %v4383_v55 }
  0xcc   : > { %705 = vmatmul.bf16.gmra.mxu1 %v4383_v55 }
  0xcd   : > { %754 = vmatmul.bf16.gmra.mxu2 %v4383_v55  ;;  %803 = vmatmul.bf16.gmra.mxu3 %v4383_v55 }
  0xd8   : > { %v622_v58 = vpop.f32.mrf.mxu0 }
  0xd9   : > { %v5218_v60 = vadd.f32 %v622_v58, %v5213_v57  ;;  %v671_v61 = vpop.f32.mrf.mxu1 }
  0xda   : > { %v5225_v2 = vadd.f32 %v671_v61, %v5215_v59 }
  0xdb   : > { %v5228_v3 = vmul.f32 0.70710677, %v5218_v60 }
  0xdc   : > { %v5237_v6 = vmul.f32 0.70710677, %v5225_v2 }
  0xdd   : > { %v5240_v7 = vand.u32 2147483647, %v5228_v3 }
  0xde   : > { %v5249_v11 = vand.u32 2147483647, %v5237_v6 }
  0xdf   : > { %v1001_v13 = vmul.f32 0.3275911, %v5240_v7 }
  0xe0   : > { %v720_v63 = vpop.f32.mrf.mxu2  ;;  %v769_v1 = vpop.f32.mrf.mxu3  ;;  %v1002_v16 = vmul.f32 0.3275911, %v5249_v11 }
  0xe1   : > { %v5231_v4 = vadd.f32 %v720_v63, %v5220_v62  ;;  %v5234_v5 = vadd.f32 %v769_v1, %v5222_v0  ;;  %v624_v9 = vpop.f32.mrf.mxu0  ;;  %v5265_v18 = vadd.f32 1.0, %v1001_v13  ;;  %v673_v20 = vpop.f32.mrf.mxu1 }
  0xe2   : > { %v5252_v12 = vadd.f32 %v624_v9, %v5213_v57  ;;  %v5269_v24 = vadd.f32 1.0, %v1002_v16  ;;  %v5275_v26 = vadd.f32 %v673_v20, %v5215_v59 }
  0xe3   : > { %v5243_v8 = vmul.f32 0.70710677, %v5231_v4  ;;  %v5246_v10 = vmul.f32 0.70710677, %v5234_v5  ;;  %4580 = vrcp.f32 %v5265_v18  ;;  %v1138_v61 = vand.u32 2147483647, %v5265_v18 }
  0xe4   : > { %v5263_v17 = vmul.f32 0.70710677, %v5252_v12  ;;  %4582 = vrcp.f32 %v5269_v24  ;;  %v5285_v32 = vmul.f32 0.70710677, %v5275_v26  ;;  %v1140_v63 = vand.u32 2147483648, %v5265_v18 }
  0xe5   : > { %v5256_v14 = vand.u32 2147483647, %v5243_v8  ;;  %v5259_v15 = vand.u32 2147483647, %v5246_v10  ;;  %vm1134_vm0 = vweird.f32 %v5265_v18  ;;  %vm5340_vm2 = vcmp.eq.f32.partialorder %v1138_v61, 8.507059e+37 }
  0xe6   : > { %v5272_v25 = vand.u32 2147483647, %v5263_v17  ;;  %v5295_v37 = vand.u32 2147483647, %v5285_v32  ;;  %vm1149_vm3 = vweird.f32 %v5269_v24  ;;  %v1155_v30 = vand.u32 2147483648, %v5269_v24 }
  0xe7   : > { %v1003_v19 = vmul.f32 0.3275911, %v5256_v14  ;;  %v1004_v23 = vmul.f32 0.3275911, %v5259_v15 }
  0xe8   : > { %v1005_v31 = vmul.f32 0.3275911, %v5272_v25  ;;  %v722_v33 = vpop.f32.mrf.mxu2  ;;  %v1006_v43 = vmul.f32 0.3275911, %v5295_v37  ;;  %v771_v49 = vpop.f32.mrf.mxu3 }
  0xe9   : > { %v5278_v27 = vadd.f32 1.0, %v1003_v19  ;;  %v5280_v28 = vadd.f32 1.0, %v1004_v23  ;;  %v4581_v34 = vpop.eup %4580  ;;  %v5290_v35 = vadd.f32 %v722_v33, %v5220_v62  ;;  %v5323_v54 = vadd.f32 %v771_v49, %v5222_v0 }
  0xea   : > { %v5292_v36 = vadd.f32 1.0, %v1005_v31  ;;  %v5297_v38 = vpop.eup %4582  ;;  %v1130_v39 = vmul.f32 %v4581_v34, %v5265_v18  ;;  %v5318_v50 = vadd.f32 1.0, %v1006_v43  ;;  %vm1135_vm1 = vweird.f32 %v4581_v34 }
  0xeb   : > { %4584 = vrcp.f32 %v5278_v27  ;;  %v5303_v41 = vmul.f32 0.70710677, %v5290_v35  ;;  %v1145_v45 = vmul.f32 %v5297_v38, %v5269_v24  ;;  %v5334_v16 = vmul.f32 0.70710677, %v5323_v54  ;;  %vm5346_vm4 = vmor %vm1134_vm0, %vm1135_vm1 }
  0xec   : > { %4586 = vrcp.f32 %v5280_v28  ;;  %v1131_v44 = vsub.f32 1.0, %v1130_v39  ;;  %v1141_v18 = vor.u32 1.1754944e-38, %v1140_v63  ;;  %v1153_v23 = vand.u32 2147483647, %v5269_v24 }
  0xed   : > { %4588 = vrcp.f32 %v5292_v36  ;;  %v5316_v48 = vand.u32 2147483647, %v5303_v41  ;;  %v1146_v53 = vsub.f32 1.0, %v1145_v45  ;;  %vm1150_vm5 = vweird.f32 %v5297_v38 }
  0xee   : > { %v1132_v52 = vmul.f32 %v4581_v34, %v1131_v44  ;;  %4590 = vrcp.f32 %v5318_v50  ;;  %v1168_v31 = vand.u32 2147483647, %v5278_v27  ;;  %v5360_v45 = vand.u32 2147483647, %v5334_v16  ;;  %vm5368_vm8 = vmor %vm1149_vm3, %vm1150_vm5 }
  0xef   : > { %v1007_v58 = vmul.f32 0.3275911, %v5316_v48  ;;  %v1147_v13 = vmul.f32 %v5297_v38, %v1146_v53  ;;  %vm1164_vm9 = vweird.f32 %v5278_v27  ;;  %v1185_v53 = vand.u32 2147483648, %v5280_v28 }
  0xf0   : > { %v1133_v9 = vadd.f32 %v4581_v34, %v1132_v52  ;;  %v1183_v52 = vand.u32 2147483647, %v5280_v28  ;;  %vm1179_vm11 = vweird.f32 %v5280_v28  ;;  %vm1154_vm12 = vcmp.eq.f32.partialorder %v1153_v23, 8.507059e+37 }
  0xf1   : > { %v5300_v40 = vpop.eup %4584  ;;  %v5338_v21 = vadd.f32 1.0, %v1007_v58  ;;  %v1148_v44 = vadd.f32 %v5297_v38, %v1147_v13  ;;  %v1008_v63 = vmul.f32 0.3275911, %v5360_v45  ;;  %vm1169_vm14 = vcmp.eq.f32.partialorder %v1168_v31, 8.507059e+37 }
  0xf2   : > { %v5305_v42 = vpop.eup %4586  ;;  %v1160_v46 = vmul.f32 %v5300_v40, %v5278_v27  ;;  %v1137_v43 = vsel %vm5346_vm4, %v4581_v34, %v1133_v9  ;;  %vm1165_vm6 = vweird.f32 %v5300_v40  ;;  %v1170_v34 = vand.u32 2147483648, %v5278_v27 }
  0xf3   : > { %v1175_v47 = vmul.f32 %v5305_v42, %v5280_v28  ;;  %v5320_v51 = vpop.eup %4588  ;;  %vm1180_vm7 = vweird.f32 %v5305_v42  ;;  %4592 = vrcp.f32 %v5338_v21  ;;  %vm5380_vm10 = vmor %vm1164_vm9, %vm1165_vm6  ;;  %v1152_v27 = vsel %vm5368_vm8, %v5297_v38, %v1148_v44 }
  0xf4   : > { %v1161_v55 = vsub.f32 1.0, %v1160_v46  ;;  %v1190_v1 = vmul.f32 %v5320_v51, %v5292_v36  ;;  %v5353_v39 = vpop.eup %4590  ;;  %vm5391_vm13 = vmor %vm1179_vm11, %vm1180_vm7  ;;  %v1171_v38 = vor.u32 1.1754944e-38, %v1170_v34  ;;  %vm1184_vm15 = vcmp.eq.f32.partialorder %v1183_v52, 8.507059e+37 }
  0xf5   : > { %v1176_v56 = vsub.f32 1.0, %v1175_v47  ;;  %v1205_v58 = vmul.f32 %v5353_v39, %v5318_v50  ;;  %vm1195_vm0 = vweird.f32 %v5320_v51  ;;  %vm1194_vm1 = vweird.f32 %v5292_v36 }
  0xf6   : > { %v1162_v19 = vmul.f32 %v5300_v40, %v1161_v55  ;;  %v1191_v33 = vsub.f32 1.0, %v1190_v1  ;;  %v5378_v55 = vsel %vm5340_vm2, %v1141_v18, %v1137_v43  ;;  %v1156_v1 = vor.u32 1.1754944e-38, %v1155_v30  ;;  %vm1196_vm2 = vmor %vm1194_vm1, %vm1195_vm0 }
  0xf7   : > { %v1177_v20 = vmul.f32 %v5305_v42, %v1176_v56  ;;  %v2089_v13 = vmul.f32 1.0614054, %v5378_v55  ;;  %v1206_v23 = vsub.f32 1.0, %v1205_v58  ;;  %v5414_v30 = vadd.f32 1.0, %v1008_v63 }
  0xf8   : > { %v1163_v46 = vadd.f32 %v5300_v40, %v1162_v19  ;;  %v1192_v24 = vmul.f32 %v5320_v51, %v1191_v33  ;;  %v1186_v19 = vor.u32 1.1754944e-38, %v1185_v53  ;;  %v5405_v22 = vsel %vm1154_vm12, %v1156_v1, %v1152_v27 }
  0xf9   : > { %v1178_v47 = vadd.f32 %v5305_v42, %v1177_v20  ;;  %v5403_v20 = vpop.eup %4592  ;;  %v1198_v31 = vand.u32 2147483647, %v5292_v36  ;;  %v2153_v33 = vadd.f32 -1.4531521, %v2089_v13  ;;  %v2090_v43 = vmul.f32 1.0614054, %v5405_v22 }
  0xfa   : > { %v1167_v28 = vsel %vm5380_vm10, %v5300_v40, %v1163_v46  ;;  %v1193_v18 = vadd.f32 %v5320_v51, %v1192_v24  ;;  %v1220_v44 = vmul.f32 %v5403_v20, %v5338_v21  ;;  %v1207_v34 = vmul.f32 %v5353_v39, %v1206_v23 }
  0xfb   : > { %v1182_v9 = vsel %vm5391_vm13, %v5305_v42, %v1178_v47  ;;  %v5409_v40 = vsel %vm1169_vm14, %v1171_v38, %v1167_v28  ;;  %v1200_v42 = vand.u32 2147483648, %v5292_v36  ;;  %4594 = vrcp.f32 %v5414_v30 }
  0xfc   : > { %v5411_v29 = vsel %vm1184_vm15, %v1186_v19, %v1182_v9  ;;  %v2091_v46 = vmul.f32 1.0614054, %v5409_v40  ;;  %v1197_v49 = vsel %vm1196_vm2, %v5320_v51, %v1193_v18  ;;  %vm1199_vm3 = vcmp.eq.f32.partialorder %v1198_v31, 8.507059e+37 }
  0xfd   : > { %v2092_v47 = vmul.f32 1.0614054, %v5411_v29  ;;  %v1201_v52 = vor.u32 1.1754944e-38, %v1200_v42  ;;  %v2217_v36 = vmul.f32 %v2153_v33, %v5378_v55  ;;  %v2154_v53 = vadd.f32 -1.4531521, %v2090_v43 }
  0xfe   : > { %v1221_v24 = vsub.f32 1.0, %v1220_v44  ;;  %v2155_v58 = vadd.f32 -1.4531521, %v2091_v46  ;;  %v1208_v61 = vadd.f32 %v5353_v39, %v1207_v34  ;;  %vm1210_vm4 = vweird.f32 %v5353_v39 }
  0xff   : > { %v5427_v56 = vsel %vm1199_vm3, %v1201_v52, %v1197_v49  ;;  %v2156_v27 = vadd.f32 -1.4531521, %v2092_v47  ;;  %v1215_v51 = vand.u32 2147483648, %v5318_v50  ;;  %vm1209_vm5 = vweird.f32 %v5318_v50  ;;  %v4434_v52 = vld [vmem:[#allocation9 + $0x90] sm:$0xff] }
 0x100   : > { %v2093_v63 = vmul.f32 1.0614054, %v5427_v56  ;;  %v1213_v1 = vand.u32 2147483647, %v5318_v50  ;;  %v2218_v9 = vmul.f32 %v2154_v53, %v5405_v22  ;;  %vm1211_vm6 = vmor %vm1209_vm5, %vm1210_vm4  ;;  %v1222_v13 = vmul.f32 %v5403_v20, %v1221_v24  ;;  %v4418_v53 = vld [vmem:[#allocation9 + $0x10] sm:$0xff]  ;;  %3776 = vmatpush.bf16.msrb.mxu2 %v4434_v52 }
 0x101   : > { %v5435_v28 = vpop.eup %4594  ;;  %v2281_v38 = vadd.f32 1.4214138, %v2217_v36  ;;  %v2219_v19 = vmul.f32 %v2155_v58, %v5409_v40  ;;  %v2220_v18 = vmul.f32 %v2156_v27, %v5411_v29  ;;  %v1212_v23 = vsel %vm1211_vm6, %v5353_v39, %v1208_v61  ;;  %v4442_v36 = vld [vmem:[#allocation9 + $0xd0] sm:$0xff]  ;;  %3678 = vmatpush.bf16.msrb.mxu0 %v4418_v53 }
 0x102   : > { %v1216_v42 = vor.u32 1.1754944e-38, %v1215_v51  ;;  %v2665_v31 = vmul.f32 %v5240_v7, %v5240_v7  ;;  %v2157_v33 = vadd.f32 -1.4531521, %v2093_v63  ;;  %vm1214_vm7 = vcmp.eq.f32.partialorder %v1213_v1, 8.507059e+37  ;;  %3825 = vmatpush.bf16.msrb.mxu3 %v4442_v36  ;;  %v4426_v1 = vld [vmem:[#allocation9 + $0x50] sm:$0xff] }
 0x103   : > { %v1235_v50 = vmul.f32 %v5435_v28, %v5414_v30  ;;  %v2282_v43 = vadd.f32 1.4214138, %v2218_v9  ;;  %v1223_v46 = vadd.f32 %v5403_v20, %v1222_v13  ;;  %vm1225_vm8 = vweird.f32 %v5403_v20  ;;  %3727 = vmatpush.bf16.msrb.mxu1 %v4426_v1 }
 0x104   : > { %v5446_v44 = vsel %vm1214_vm7, %v1216_v42, %v1212_v23  ;;  %v2345_v47 = vmul.f32 %v2281_v38, %v5378_v55  ;;  %v2283_v49 = vadd.f32 1.4214138, %v2219_v19  ;;  %v2284_v39 = vadd.f32 1.4214138, %v2220_v18 }
 0x105   : > { %v1230_v34 = vand.u32 2147483648, %v5338_v21  ;;  %vm1224_vm9 = vweird.f32 %v5338_v21  ;;  %v1228_v7 = vand.u32 2147483647, %v5338_v21  ;;  %v2221_v24 = vmul.f32 %v2157_v33, %v5427_v56 }
 0x106   : > { %v2094_v58 = vmul.f32 1.0614054, %v5446_v44  ;;  %vm5456_vm10 = vmor %vm1224_vm9, %vm1225_vm8  ;;  %v1236_v61 = vsub.f32 1.0, %v1235_v50  ;;  %v2346_v51 = vmul.f32 %v2282_v43, %v5405_v22  ;;  %v2666_v63 = vmul.f32 %v5249_v11, %v5249_v11 }
 0x107   : > { %v1227_v21 = vsel %vm5456_vm10, %v5403_v20, %v1223_v46  ;;  %v2409_v9 = vadd.f32 -0.28449672, %v2345_v47  ;;  %v2729_v13 = vsub.f32 0.0, %v2665_v31  ;;  %v2347_v38 = vmul.f32 %v2283_v49, %v5409_v40 }
 0x108   : > { %v1231_v19 = vor.u32 1.1754944e-38, %v1230_v34  ;;  %v2667_v18 = vmul.f32 %v5256_v14, %v5256_v14  ;;  %v2348_v23 = vmul.f32 %v2284_v39, %v5411_v29  ;;  %v2668_v11 = vmul.f32 %v5259_v15, %v5259_v15 }
 0x109   : > { %vm1229_vm11 = vcmp.eq.f32.partialorder %v1228_v7, 8.507059e+37  ;;  %v2285_v20 = vadd.f32 1.4214138, %v2221_v24  ;;  %v2158_v42 = vadd.f32 -1.4531521, %v2094_v58  ;;  %v1237_v31 = vmul.f32 %v5435_v28, %v1236_v61 }
 0x10a   : > { %v5472_v33 = vsel %vm1229_vm11, %v1231_v19, %v1227_v21  ;;  %v2410_v50 = vadd.f32 -0.28449672, %v2346_v51  ;;  %v2730_v43 = vsub.f32 0.0, %v2666_v63  ;;  %v2473_v46 = vmul.f32 %v2409_v9, %v5378_v55 }
 0x10b   : > { %v2793_v47 = vmul.f32 1.442695, %v2729_v13  ;;  %v2411_v49 = vadd.f32 -0.28449672, %v2347_v38  ;;  %v2731_v14 = vsub.f32 0.0, %v2667_v18  ;;  %v2732_v39 = vsub.f32 0.0, %v2668_v11 }
 0x10c   : > { %v2412_v34 = vadd.f32 -0.28449672, %v2348_v23  ;;  %v2095_v52 = vmul.f32 1.0614054, %v5472_v33  ;;  %v2349_v15 = vmul.f32 %v2285_v20, %v5427_v56  ;;  %v2222_v7 = vmul.f32 %v2158_v42, %v5446_v44 }
 0x10d   : > { %v1238_v36 = vadd.f32 %v5435_v28, %v1237_v31  ;;  %vm1240_vm12 = vweird.f32 %v5435_v28  ;;  %v2474_v53 = vmul.f32 %v2410_v50, %v5405_v22  ;;  %v2795_v24 = vmul.f32 1.442695, %v2730_v43 }
 0x10e   : > { %v2669_v58 = vmul.f32 %v5272_v25, %v5272_v25  ;;  %v1245_v27 = vand.u32 2147483648, %v5414_v30  ;;  %v2537_v61 = vadd.f32 0.2548296, %v2473_v46  ;;  %v2475_v51 = vmul.f32 %v2411_v49, %v5409_v40 }
 0x10f   : > { %vm1239_vm13 = vweird.f32 %v5414_v30  ;;  %v1243_v63 = vand.u32 2147483647, %v5414_v30  ;;  %4596 = vpow2.f32 %v2793_v47  ;;  %v2797_v21 = vmul.f32 1.442695, %v2731_v14  ;;  %v627_v30 = vpop.f32.mrf.mxu0  ;;  %v676_v47 = vpop.f32.mrf.mxu1 }
 0x110   : > { %v2476_v1 = vmul.f32 %v2412_v34, %v5411_v29  ;;  %v2159_v9 = vadd.f32 -1.4531521, %v2095_v52  ;;  %vm5489_vm14 = vmor %vm1239_vm13, %vm1240_vm12  ;;  %v2799_v38 = vmul.f32 1.442695, %v2732_v39  ;;  %v2413_v25 = vadd.f32 -0.28449672, %v2349_v15 }
 0x111   : > { %v2286_v19 = vadd.f32 1.4214138, %v2222_v7  ;;  %v1242_v18 = vsel %vm5489_vm14, %v5435_v28, %v1238_v36  ;;  %v2538_v23 = vadd.f32 0.2548296, %v2474_v53  ;;  %v2733_v11 = vsub.f32 0.0, %v2669_v58 }
 0x112   : > { %v1246_v20 = vor.u32 1.1754944e-38, %v1245_v27  ;;  %v2601_v42 = vmul.f32 %v2537_v61, %v5378_v55  ;;  %4598 = vpow2.f32 %v2795_v24  ;;  %v2539_v31 = vadd.f32 0.2548296, %v2475_v51 }
 0x113   : > { %vm1244_vm15 = vcmp.eq.f32.partialorder %v1243_v63, 8.507059e+37  ;;  %4600 = vpow2.f32 %v2797_v21  ;;  %v2540_v50 = vadd.f32 0.2548296, %v2476_v1  ;;  %v2223_v43 = vmul.f32 %v2159_v9, %v5472_v33 }
 0x114   : > { %v5498_v46 = vsel %vm1244_vm15, %v1246_v20, %v1242_v18  ;;  %4602 = vpow2.f32 %v2799_v38  ;;  %v2477_v49 = vmul.f32 %v2413_v25, %v5427_v56  ;;  %v2350_v28 = vmul.f32 %v2286_v19, %v5446_v44 }
 0x115   : > { %v5503_v14 = vadd.f32 %v627_v30, %v5213_v57  ;;  %v4597_v34 = vpop.eup %4596  ;;  %v2602_v55 = vmul.f32 %v2538_v23, %v5405_v22  ;;  %v2801_v39 = vmul.f32 1.442695, %v2733_v11  ;;  %v2670_v52 = vmul.f32 %v5295_v37, %v5295_v37 }
 0x116   : > { %v2921_v15 = vmul.f32 %v4597_v34, %v2601_v42  ;;  %v2603_v7 = vmul.f32 %v2539_v31, %v5409_v40  ;;  %v2096_v36 = vmul.f32 1.0614054, %v5498_v46  ;;  %v5511_v53 = vadd.f32 %v676_v47, %v5215_v59  ;;  %v725_v47 = vpop.f32.mrf.mxu2 }
 0x117   : > { %v2604_v24 = vmul.f32 %v2540_v50, %v5411_v29  ;;  %v2287_v58 = vadd.f32 1.4214138, %v2223_v43  ;;  %v2541_v61 = vadd.f32 0.2548296, %v2477_v49  ;;  %v2414_v51 = vadd.f32 -0.28449672, %v2350_v28 }
 0x118   : > { %v4599_v27 = vpop.eup %4598  ;;  %v5515_v22 = vmul.f32 0.70710677, %v5503_v14  ;;  %v5518_v37 = vmul.f32 0.5, %v5218_v60  ;;  %4604 = vpow2.f32 %v2801_v39  ;;  %v2734_v40 = vsub.f32 0.0, %v2670_v52 }
 0x119   : > { %v4601_v63 = vpop.eup %4600  ;;  %v2922_v21 = vmul.f32 %v4599_v27, %v2602_v55  ;;  %v2985_v9 = vsub.f32 1.0, %v2921_v15  ;;  %v2160_v38 = vadd.f32 -1.4531521, %v2096_v36  ;;  %v5521_v29 = vmul.f32 0.70710677, %v5511_v53 }
 0x11a   : > { %8985 = vst [vmem:[#allocation16_spill] sm:$0xff] %v5515_v22  ;;  %v4603_v1 = vpop.eup %4602  ;;  %v2923_v13 = vmul.f32 %v4601_v63, %v2603_v7  ;;  %v5524_v25 = vmul.f32 0.5, %v5225_v2  ;;  %v2351_v18 = vmul.f32 %v2287_v58, %v5472_v33  ;;  %v2671_v60 = vmul.f32 %v5316_v48, %v5316_v48 }
 0x11b   : > { %8986 = vst [vmem:[#allocation17_spill] sm:$0xff] %v5521_v29  ;;  %v2924_v19 = vmul.f32 %v4603_v1, %v2604_v24  ;;  %vm3049_vm0 = vcmp.lt.f32.partialorder %v5228_v3, 0.0  ;;  %v2605_v23 = vmul.f32 %v2541_v61, %v5427_v56  ;;  %v2478_v11 = vmul.f32 %v2414_v51, %v5446_v44  ;;  %v774_v24 = vpop.f32.mrf.mxu3 }
 0x11c   : > { %v945_v20 = vand.u32 2147483647, %v5515_v22  ;;  %v2986_v30 = vsub.f32 1.0, %v2922_v21  ;;  %vm3050_vm1 = vcmp.lt.f32.partialorder %v5237_v6, 0.0  ;;  %v5535_v2 = vmul.f32 0.5, %v5231_v4 }
 0x11d   : > { %v2803_v42 = vmul.f32 1.442695, %v2734_v40  ;;  %v3113_v31 = vsub.f32 0.0, %v2985_v9  ;;  %v2987_v50 = vsub.f32 1.0, %v2923_v13  ;;  %v2224_v43 = vmul.f32 %v2160_v38, %v5498_v46 }
 0x11e   : > { %v5539_v48 = vand.u32 2147483647, %v5521_v29  ;;  %v4605_v56 = vpop.eup %4604  ;;  %vm3051_vm2 = vcmp.lt.f32.partialorder %v5243_v8, 0.0  ;;  %v2988_v49 = vsub.f32 1.0, %v2924_v19  ;;  %v2415_v28 = vadd.f32 -0.28449672, %v2351_v18 }
 0x11f   : > { %v2735_v34 = vsub.f32 0.0, %v2671_v60  ;;  %v5543_v55 = vmul.f32 0.5, %v5234_v5  ;;  %v2925_v4 = vmul.f32 %v4605_v56, %v2605_v23  ;;  %v2542_v39 = vadd.f32 0.2548296, %v2478_v11  ;;  %v4417_v60 = vld [vmem:[#allocation9 + $0x8] sm:$0xff] }
 0x120   : > { %v1009_v52 = vmul.f32 0.3275911, %v945_v20  ;;  %v3114_v15 = vsub.f32 0.0, %v2986_v30  ;;  %v5546_v7 = vmul.f32 0.5, %v5252_v12  ;;  %4606 = vpow2.f32 %v2803_v42  ;;  %v4425_v23 = vld [vmem:[#allocation9 + $0x48] sm:$0xff]  ;;  %3679 = vmatpush.bf16.msrb.mxu0 %v4417_v60 }
 0x121   : > { %v5549_v36 = vadd.f32 %v725_v47, %v5220_v62  ;;  %v3177_v58 = vsel %vm3049_vm0, %v3113_v31, %v2985_v9  ;;  %v3115_v27 = vsub.f32 0.0, %v2987_v50  ;;  %v2288_v61 = vadd.f32 1.4214138, %v2224_v43  ;;  %3728 = vmatpush.bf16.msrb.mxu1 %v4425_v23 }
 0x122   : > { %v1010_v5 = vmul.f32 0.3275911, %v5539_v48  ;;  %v3116_v51 = vsub.f32 0.0, %v2988_v49  ;;  %v2479_v63 = vmul.f32 %v2415_v28, %v5472_v33  ;;  %v2805_v21 = vmul.f32 1.442695, %v2735_v34 }
 0x123   : > { %v2672_v12 = vmul.f32 %v5360_v45, %v5360_v45  ;;  %v2989_v40 = vsub.f32 1.0, %v2925_v4  ;;  %v2606_v1 = vmul.f32 %v2542_v39, %v5446_v44  ;;  %v5558_v13 = vadd.f32 1.0, %v1009_v52  ;;  %v629_v4 = vpop.f32.mrf.mxu0 }
 0x124   : > { %v5561_v38 = vadd.f32 %v774_v24, %v5222_v0  ;;  %v3241_v3 = vadd.f32 1.0, %v3177_v58  ;;  %vm3052_vm3 = vcmp.lt.f32.partialorder %v5246_v10, 0.0  ;;  %vm3053_vm4 = vcmp.lt.f32.partialorder %v5263_v17, 0.0 }
 0x125   : > { %v5566_v9 = vmul.f32 0.70710677, %v5549_v36  ;;  %v3178_v19 = vsel %vm3050_vm1, %v3114_v15, %v2986_v30  ;;  %v3179_v45 = vsel %vm3051_vm2, %v3115_v27, %v2987_v50  ;;  %v2352_v44 = vmul.f32 %v2288_v61, %v5498_v46  ;;  %v4441_v27 = vld [vmem:[#allocation9 + $0xc8] sm:$0xff] }
 0x126   : > { %v5573_v18 = vadd.f32 1.0, %v1010_v5  ;;  %v4607_v11 = vpop.eup %4606  ;;  %v3180_v42 = vsel %vm3052_vm3, %v3116_v51, %v2988_v49  ;;  %v2543_v10 = vadd.f32 0.2548296, %v2479_v63  ;;  %4608 = vpow2.f32 %v2805_v21  ;;  %3826 = vmatpush.bf16.msrb.mxu3 %v4441_v27 }
 0x127   : > { %8987 = vst [vmem:[#allocation18_spill] sm:$0xff] %v5566_v9  ;;  %v2736_v31 = vsub.f32 0.0, %v2672_v12  ;;  %v3117_v43 = vsub.f32 0.0, %v2989_v40  ;;  %v2926_v47 = vmul.f32 %v4607_v11, %v2606_v1  ;;  %4610 = vrcp.f32 %v5558_v13 }
 0x128   : > { %v5577_v6 = vmul.f32 0.70710677, %v5561_v38  ;;  %v3242_v8 = vadd.f32 1.0, %v3178_v19  ;;  %v5580_v30 = vmul.f32 0.5, %v5275_v26  ;;  %v5583_v50 = vmul.f32 0.5, %v5290_v35  ;;  %v727_v19 = vpop.f32.mrf.mxu2 }
 0x129   : > { %v947_v56 = vand.u32 2147483647, %v5566_v9  ;;  %v3243_v49 = vadd.f32 1.0, %v3179_v45  ;;  %v2416_v28 = vadd.f32 -0.28449672, %v2352_v44  ;;  %v2673_v34 = vmul.f32 %v945_v20, %v945_v20  ;;  %v4433_v20 = vld [vmem:[#allocation9 + $0x88] sm:$0xff] }
 0x12a   : > { %8988 = vst [vmem:[#allocation19_spill] sm:$0xff] %v5577_v6  ;;  %4612 = vrcp.f32 %v5573_v18  ;;  %v3244_v39 = vadd.f32 1.0, %v3180_v42  ;;  %vm3054_vm5 = vcmp.lt.f32.partialorder %v5285_v32, 0.0  ;;  %v2607_v52 = vmul.f32 %v2543_v10, %v5472_v33  ;;  %3777 = vmatpush.bf16.msrb.mxu2 %v4433_v20 }
 0x12b   : > { %v2807_v15 = vmul.f32 1.442695, %v2736_v31  ;;  %v5590_v26 = vmul.f32 %v3241_v3, %v5518_v37  ;;  %v3181_v35 = vsel %vm3053_vm4, %v3117_v43, %v2989_v40  ;;  %v2990_v24 = vsub.f32 1.0, %v2926_v47 }
 0x12c   : > { %v5595_v58 = vand.u32 2147483647, %v5577_v6  ;;  %v4609_v61 = vpop.eup %4608  ;;  %v5598_v5 = vmul.f32 %v3242_v8, %v5524_v25  ;;  %v5601_v51 = vmul.f32 0.5, %v5323_v54  ;;  %v1011_v33 = vmul.f32 0.3275911, %v947_v56  ;;  %v678_v25 = vpop.f32.mrf.mxu1 }
 0x12d   : > { %v5604_v37 = vadd.f32 %v629_v4, %v5213_v57  ;;  %v5606_v63 = vpop.eup %4610  ;;  %v5609_v17 = vmul.f32 %v3243_v49, %v5535_v2  ;;  %v2480_v21 = vmul.f32 %v2416_v28, %v5498_v46  ;;  %v5613_v12 = vmul.f32 0.5, %v5503_v14 }
 0x12e   : > { %v2737_v40 = vsub.f32 0.0, %v2673_v34  ;;  %v5616_v54 = vmul.f32 %v3244_v39, %v5543_v55  ;;  %v3245_v1 = vadd.f32 1.0, %v3181_v35  ;;  %v2927_v3 = vmul.f32 %v4609_v61, %v2607_v52  ;;  %v776_v52 = vpop.f32.mrf.mxu3 }
 0x12f   : > { %8989 = vst [vmem:[#allocation20_spill] sm:$0xff] %v5613_v12  ;;  %4614 = vpow2.f32 %v2807_v15  ;;  %v3118_v2 = vsub.f32 0.0, %v2990_v24  ;;  %v5621_v44 = vmul.f32 0.5, %v5511_v53  ;;  %v2674_v14 = vmul.f32 %v5539_v48, %v5539_v48 }
 0x130   : > { %v5618_v45 = vpop.eup %4612  ;;  %v1012_v60 = vmul.f32 0.3275911, %v5595_v58  ;;  %v1250_v23 = vmul.f32 %v5606_v63, %v5558_v13  ;;  %v5628_v55 = vadd.f32 1.0, %v1011_v33  ;;  %v5631_v11 = vmul.f32 0.70710677, %v5604_v37 }
 0x131   : > { %8990 = vst [vmem:[#allocation21_spill] sm:$0xff] %v5621_v44  ;;  %v5634_v42 = vadd.f32 %v678_v25, %v5215_v59  ;;  %vm3055_vm6 = vcmp.lt.f32.partialorder %v5303_v41, 0.0  ;;  %v2544_v53 = vadd.f32 0.2548296, %v2480_v21  ;;  %v1260_v10 = vand.u32 2147483648, %v5558_v13 }
 0x132   : > { %8991 = vst [vmem:[#allocation22_spill] sm:$0xff] %v5628_v55  ;;  %v2809_v31 = vmul.f32 1.442695, %v2737_v40  ;;  %v5639_v48 = vadd.f32 %v727_v19, %v5220_v62  ;;  %v5642_v43 = vmul.f32 %v3245_v1, %v5546_v7  ;;  %v2991_v47 = vsub.f32 1.0, %v2927_v3 }
 0x133   : > { %8992 = vst [vmem:[#allocation23_spill] sm:$0xff] %v5631_v11  ;;  %v1265_v49 = vmul.f32 %v5618_v45, %v5573_v18  ;;  %v3182_v28 = vsel %vm3054_vm5, %v3118_v2, %v2990_v24  ;;  %v2738_v34 = vsub.f32 0.0, %v2674_v14  ;;  %v2675_v4 = vmul.f32 %v947_v56, %v947_v56 }
 0x134   : > { %v5649_v39 = vadd.f32 1.0, %v1012_v60  ;;  %v1251_v35 = vsub.f32 1.0, %v1250_v23  ;;  %4616 = vrcp.f32 %v5628_v55  ;;  %v949_v7 = vand.u32 2147483647, %v5631_v11 }
 0x135   : > { %v4615_v15 = vpop.eup %4614  ;;  %v5654_v20 = vmul.f32 0.70710677, %v5634_v42  ;;  %v2608_v27 = vmul.f32 %v2544_v53, %v5498_v46  ;;  %v5657_v61 = vor.u32 1.1754944e-38, %v1260_v10  ;;  %4618 = vpow2.f32 %v2809_v31 }
 0x136   : > { %8993 = vst [vmem:[#allocation24_spill] sm:$0xff] %v5649_v39  ;;  %v5660_v32 = vmul.f32 0.70710677, %v5639_v48  ;;  %v3246_v56 = vadd.f32 1.0, %v3182_v28  ;;  %v3119_v24 = vsub.f32 0.0, %v2991_v47  ;;  %v1266_v33 = vsub.f32 1.0, %v1265_v49 }
 0x137   : > { %8994 = vst [vmem:[#allocation25_spill] sm:$0xff] %v5654_v20  ;;  %v5663_v21 = vadd.f32 %v776_v52, %v5222_v0  ;;  %v1275_v40 = vand.u32 2147483648, %v5573_v18  ;;  %v5667_v25 = vmul.f32 0.5, %v5549_v36  ;;  %v2739_v1 = vsub.f32 0.0, %v2675_v4 }
 0x138   : > { %8995 = vst [vmem:[#allocation26_spill] sm:$0xff] %v5660_v32  ;;  %4620 = vrcp.f32 %v5649_v39  ;;  %v1252_v46 = vmul.f32 %v5606_v63, %v1251_v35  ;;  %v2811_v3 = vmul.f32 1.442695, %v2738_v34  ;;  %v1013_v19 = vmul.f32 0.3275911, %v949_v7 }
 0x139   : > { %8996 = vst [vmem:[#allocation27_spill] sm:$0xff] %v5667_v25  ;;  %v950_v2 = vand.u32 2147483647, %v5654_v20  ;;  %v2928_v14 = vmul.f32 %v4615_v15, %v2608_v27  ;;  %v5674_v23 = vmul.f32 0.5, %v5561_v38  ;;  %v951_v53 = vand.u32 2147483647, %v5660_v32 }
 0x13a   : > { %v5677_v10 = vpop.eup %4616  ;;  %v5680_v36 = vmul.f32 %v3246_v56, %v5580_v30  ;;  %v3183_v31 = vsel %vm3055_vm6, %v3119_v24, %v2991_v47  ;;  %v1267_v49 = vmul.f32 %v5618_v45, %v1266_v33  ;;  %v5686_v28 = vmul.f32 0.70710677, %v5663_v21  ;;  %v632_v30 = vpop.f32.mrf.mxu0 }
 0x13b   : > { %8997 = vst [vmem:[#allocation28_spill] sm:$0xff] %v5674_v23  ;;  %v5688_v34 = vpop.eup %4618  ;;  %v5690_v4 = vor.u32 1.1754944e-38, %v1275_v40  ;;  %v1290_v38 = vand.u32 2147483648, %v5628_v55  ;;  %v2813_v52 = vmul.f32 1.442695, %v2739_v1  ;;  %v2676_v15 = vmul.f32 %v5595_v58, %v5595_v58  ;;  %v681_v1 = vpop.f32.mrf.mxu1 }
 0x13c   : > { %8998 = vst [vmem:[#allocation29_spill] sm:$0xff] %v5677_v10  ;;  %vm3056_vm7 = vcmp.lt.f32.partialorder %v5334_v16, 0.0  ;;  %v5697_v41 = vadd.f32 %v5606_v63, %v1252_v46  ;;  %4622 = vpow2.f32 %v2811_v3  ;;  %v5699_v47 = vadd.f32 1.0, %v1013_v19 }
 0x13d   : > { %8999 = vst [vmem:[#allocation30_spill] sm:$0xff] %v5686_v28  ;;  %v1014_v35 = vmul.f32 0.3275911, %v950_v2  ;;  %v3247_v56 = vadd.f32 1.0, %v3183_v31  ;;  %v2992_v24 = vsub.f32 1.0, %v2928_v14  ;;  %v1280_v33 = vmul.f32 %v5677_v10, %v5628_v55  ;;  %v4416_v55 = vld [vmem:[#allocation9] sm:$0xff] }
 0x13e   : > { %9000 = vst [vmem:[#allocation31_spill] sm:$0xff] %v5688_v34  ;;  %v5701_v27 = vpop.eup %4620  ;;  %v1015_v40 = vmul.f32 0.3275911, %v951_v53  ;;  %v5706_v58 = vadd.f32 %v5618_v45, %v1267_v49  ;;  %v2677_v46 = vmul.f32 %v949_v7, %v949_v7  ;;  %v5710_v3 = vand.u32 2147483647, %v5686_v28  ;;  %v730_v7 = vpop.f32.mrf.mxu2  ;;  %3680 = vmatpush.bf16.msrb.mxu0 %v4416_v55 }
 0x13f   : > { %9001 = vst [vmem:[#allocation32_spill] sm:$0xff] %v5690_v4  ;;  %v5712_v19 = vor.u32 1.1754944e-38, %v1290_v38  ;;  %4624 = vpow2.f32 %v2813_v52  ;;  %v2740_v8 = vsub.f32 0.0, %v2676_v15  ;;  %v5715_v14 = vadd.f32 %v632_v30, %v5213_v57 }
 0x140   : > { %9002 = vst [vmem:[#allocation33_spill] sm:$0xff] %v5701_v27  ;;  %v1295_v31 = vmul.f32 %v5701_v27, %v5649_v39  ;;  %4626 = vrcp.f32 %v5699_v47  ;;  %v5720_v49 = vadd.f32 1.0, %v1014_v35  ;;  %v5723_v60 = vadd.f32 %v681_v1, %v5215_v59 }
 0x141   : > { %9003 = vst [vmem:[#allocation34_spill] sm:$0xff] %v5706_v58  ;;  %v5726_v23 = vmul.f32 %v3247_v56, %v5583_v50  ;;  %v3120_v38 = vsub.f32 0.0, %v2992_v24  ;;  %v1281_v52 = vsub.f32 1.0, %v1280_v33  ;;  %v5728_v15 = vadd.f32 1.0, %v1015_v40 }
 0x142   : > { %9004 = vst [vmem:[#allocation35_spill] sm:$0xff] %v5712_v19  ;;  %v5730_v30 = vpop.eup %4622  ;;  %v1305_v25 = vand.u32 2147483648, %v5649_v39  ;;  %v5734_v28 = vmul.f32 0.5, %v5604_v37  ;;  %v2741_v35 = vsub.f32 0.0, %v2677_v46  ;;  %v1016_v6 = vmul.f32 0.3275911, %v5710_v3  ;;  %v634_v19 = vpop.f32.mrf.mxu0 }
 0x143   : > { %9005 = vst [vmem:[#allocation36_spill] sm:$0xff] %v5728_v15  ;;  %v2815_v32 = vmul.f32 1.442695, %v2740_v8  ;;  %v5739_v50 = vmul.f32 0.70710677, %v5715_v14  ;;  %v5742_v56 = vadd.f32 %v730_v7, %v5220_v62  ;;  %v1296_v33 = vsub.f32 1.0, %v1295_v31 }
 0x144   : > { %9006 = vst [vmem:[#allocation37_spill] sm:$0xff] %v5730_v30  ;;  %4628 = vrcp.f32 %v5720_v49  ;;  %v2678_v40 = vmul.f32 %v950_v2, %v950_v2  ;;  %v5746_v9 = vmul.f32 0.70710677, %v5723_v60  ;;  %v3184_v46 = vsel %vm3056_vm7, %v3120_v38, %v2992_v24 }
 0x145   : > { %9007 = vst [vmem:[#allocation38_spill] sm:$0xff] %v5734_v28  ;;  %v5748_v37 = vpop.eup %4624  ;;  %v1282_v8 = vmul.f32 %v5677_v10, %v1281_v52  ;;  %4630 = vrcp.f32 %v5728_v15  ;;  %v2679_v1 = vmul.f32 %v951_v53, %v951_v53  ;;  %v5756_v31 = vor.u32 1.1754944e-38, %v1305_v25  ;;  %v779_v53 = vpop.f32.mrf.mxu3  ;;  %v4424_v52 = vld [vmem:[#allocation9 + $0x40] sm:$0xff] }
 0x146   : > { %9008 = vst [vmem:[#allocation39_spill] sm:$0xff] %v5739_v50  ;;  %v5754_v7 = vpop.eup %4626  ;;  %v1320_v2 = vand.u32 2147483648, %v5699_v47  ;;  %v2817_v39 = vmul.f32 1.442695, %v2741_v35  ;;  %v5759_v44 = vadd.f32 1.0, %v1016_v6  ;;  %4632 = vpow2.f32 %v2815_v32  ;;  %3729 = vmatpush.bf16.msrb.mxu1 %v4424_v52 }
 0x147   : > { %9009 = vst [vmem:[#allocation40_spill] sm:$0xff] %v5746_v9  ;;  %v5762_v16 = vmul.f32 0.5, %v5634_v42  ;;  %v953_v24 = vand.u32 2147483647, %v5739_v50  ;;  %v5766_v38 = vmul.f32 0.70710677, %v5742_v56  ;;  %v1297_v25 = vmul.f32 %v5701_v27, %v1296_v33 }
 0x148   : > { %9010 = vst [vmem:[#allocation41_spill] sm:$0xff] %v5748_v37  ;;  %v3248_v37 = vadd.f32 1.0, %v3184_v46  ;;  %v5770_v35 = vand.u32 2147483647, %v5746_v9  ;;  %v5773_v6 = vadd.f32 %v5677_v10, %v1282_v8  ;;  %v1310_v42 = vmul.f32 %v5754_v7, %v5699_v47 }
 0x149   : > { %9011 = vst [vmem:[#allocation42_spill] sm:$0xff] %v5756_v31  ;;  %v2742_v31 = vsub.f32 0.0, %v2678_v40  ;;  %v5778_v32 = vmul.f32 0.5, %v5639_v48  ;;  %v2743_v50 = vsub.f32 0.0, %v2679_v1  ;;  %v5783_v40 = vor.u32 1.1754944e-38, %v1320_v2 }
 0x14a   : > { %9012 = vst [vmem:[#allocation43_spill] sm:$0xff] %v5759_v44  ;;  %4634 = vrcp.f32 %v5759_v44  ;;  %v5787_v55 = vadd.f32 %v779_v53, %v5222_v0  ;;  %v1335_v8 = vand.u32 2147483648, %v5720_v49  ;;  %v1017_v48 = vmul.f32 0.3275911, %v953_v24  ;;  %v4440_v53 = vld [vmem:[#allocation9 + $0xc0] sm:$0xff] }
 0x14b   : > { %9013 = vst [vmem:[#allocation44_spill] sm:$0xff] %v5762_v16  ;;  %v5780_v16 = vpop.eup %4628  ;;  %4636 = vpow2.f32 %v2817_v39  ;;  %v955_v1 = vand.u32 2147483647, %v5766_v38  ;;  %v5794_v52 = vmul.f32 %v3248_v37, %v5601_v51  ;;  %v5797_v33 = vadd.f32 %v5701_v27, %v1297_v25  ;;  %3827 = vmatpush.bf16.msrb.mxu3 %v4440_v53 }
 0x14c   : > { %9014 = vst [vmem:[#allocation45_spill] sm:$0xff] %v5766_v38  ;;  %v5789_v46 = vpop.eup %4630  ;;  %v2819_v2 = vmul.f32 1.442695, %v2742_v31  ;;  %v1018_v9 = vmul.f32 0.3275911, %v5770_v35  ;;  %v1311_v10 = vsub.f32 1.0, %v1310_v42  ;;  %v2680_v30 = vmul.f32 %v5710_v3, %v5710_v3 }
 0x14d   : > { %9015 = vst [vmem:[#allocation46_spill] sm:$0xff] %v5773_v6  ;;  %v5800_v6 = vpop.eup %4632  ;;  %v2821_v39 = vmul.f32 1.442695, %v2743_v50  ;;  %v5805_v38 = vadd.f32 %v634_v19, %v5213_v57  ;;  %v1325_v51 = vmul.f32 %v5780_v16, %v5720_v49  ;;  %v1340_v37 = vmul.f32 %v5789_v46, %v5728_v15 }
 0x14e   : > { %9016 = vst [vmem:[#allocation47_spill] sm:$0xff] %v5778_v32  ;;  %v4432_v32 = vld [vmem:[#allocation9 + $0x80] sm:$0xff]  ;;  %v5812_v31 = vmul.f32 0.5, %v5663_v21  ;;  %v5815_v25 = vmul.f32 0.70710677, %v5787_v55  ;;  %v5818_v3 = vor.u32 1.1754944e-38, %v1335_v8  ;;  %4638 = vpow2.f32 %v2819_v2 }
 0x14f   : > { %9017 = vst [vmem:[#allocation48_spill] sm:$0xff] %v5789_v46  ;;  %3778 = vmatpush.bf16.msrb.mxu2 %v4432_v32  ;;  %v5820_v19 = vadd.f32 1.0, %v1017_v48  ;;  %v1019_v42 = vmul.f32 0.3275911, %v955_v1  ;;  %v5828_v20 = vadd.f32 1.0, %v1018_v9  ;;  %v1312_v8 = vmul.f32 %v5754_v7, %v1311_v10 }
 0x150   : > { %9018 = vst [vmem:[#allocation49_spill] sm:$0xff] %v5797_v33  ;;  %v5822_v33 = vpop.f32.mrf.mxu0  ;;  %v5824_v27 = vpop.eup %4634  ;;  %4640 = vpow2.f32 %v2821_v39  ;;  %v2744_v48 = vsub.f32 0.0, %v2680_v30  ;;  %v5834_v53 = vmul.f32 0.70710677, %v5805_v38  ;;  %v1326_v50 = vsub.f32 1.0, %v1325_v51 }
 0x151   : > { %9019 = vst [vmem:[#allocation50_spill] sm:$0xff] %v5800_v6  ;;  %v683_v6 = vpop.f32.mrf.mxu1  ;;  %v5830_v32 = vpop.eup %4636  ;;  %v1341_v28 = vsub.f32 1.0, %v1340_v37  ;;  %v956_v12 = vand.u32 2147483647, %v5815_v25  ;;  %v1355_v9 = vmul.f32 %v5824_v27, %v5759_v44  ;;  %4642 = vrcp.f32 %v5820_v19 }
 0x152   : > { %9020 = vst [vmem:[#allocation51_spill] sm:$0xff] %v5812_v31  ;;  %v1350_v31 = vand.u32 2147483648, %v5728_v15  ;;  %v5838_v2 = vadd.f32 %v683_v6, %v5215_v59  ;;  %v2681_v21 = vmul.f32 %v953_v24, %v953_v24  ;;  %v5843_v15 = vadd.f32 1.0, %v1019_v42  ;;  %v732_v24 = vpop.f32.mrf.mxu2 }
 0x153   : > { %9021 = vst [vmem:[#allocation52_spill] sm:$0xff] %v5815_v25  ;;  %v1365_v39 = vand.u32 2147483648, %v5759_v44  ;;  %4644 = vrcp.f32 %v5828_v20  ;;  %v5851_v51 = vadd.f32 %v5754_v7, %v1312_v8  ;;  %v2823_v6 = vmul.f32 1.442695, %v2744_v48 }
 0x154   : > { %9022 = vst [vmem:[#allocation53_spill] sm:$0xff] %v5818_v3  ;;  %v5845_v10 = vor.u32 1.1754944e-38, %v1350_v31  ;;  %v5854_v37 = vmul.f32 0.5, %v5715_v14  ;;  %v5857_v25 = vand.u32 2147483647, %v5834_v53  ;;  %v5859_v42 = vpop.eup %4638  ;;  %v1327_v31 = vmul.f32 %v5780_v16, %v1326_v50 }
 0x155   : > { %9023 = vst [vmem:[#allocation54_spill] sm:$0xff] %v5820_v19  ;;  %v2682_v30 = vmul.f32 %v5770_v35, %v5770_v35  ;;  %v5865_v44 = vmul.f32 0.70710677, %v5838_v2  ;;  %v1342_v14 = vmul.f32 %v5789_v46, %v1341_v28  ;;  %v1356_v48 = vsub.f32 1.0, %v1355_v9 }
 0x156   : > { %9024 = vst [vmem:[#allocation55_spill] sm:$0xff] %v5824_v27  ;;  %v5867_v8 = vpop.eup %4640  ;;  %4646 = vrcp.f32 %v5843_v15  ;;  %v2683_v50 = vmul.f32 %v955_v1, %v955_v1  ;;  %v5875_v29 = vadd.f32 %v732_v24, %v5220_v62  ;;  %v5883_v28 = vmul.f32 0.5, %v5742_v56 }
 0x157   : > { %9025 = vst [vmem:[#allocation56_spill] sm:$0xff] %v5828_v20  ;;  %v5877_v35 = vpop.eup %4642  ;;  %4648 = vpow2.f32 %v2823_v6  ;;  %v5891_v1 = vadd.f32 %v5780_v16, %v1327_v31  ;;  %v2746_v24 = vsub.f32 0.0, %v2682_v30  ;;  %v958_v6 = vand.u32 2147483647, %v5865_v44 }
 0x158   : > { %9026 = vst [vmem:[#allocation57_spill] sm:$0xff] %v5830_v32  ;;  %v5880_v32 = vmul.f32 0.5, %v5723_v60  ;;  %v5886_v9 = vpop.f32.mrf.mxu0  ;;  %v5897_v60 = vadd.f32 %v5789_v46, %v1342_v14  ;;  %v1357_v56 = vmul.f32 %v5824_v27, %v1356_v48  ;;  %v1370_v34 = vmul.f32 %v5877_v35, %v5820_v19 }
 0x159   : > { %9027 = vst [vmem:[#allocation58_spill] sm:$0xff] %v5834_v53  ;;  %v5871_v53 = vor.u32 1.1754944e-38, %v1365_v39  ;;  %v5888_v39 = vpop.eup %4644  ;;  %v2747_v31 = vsub.f32 0.0, %v2683_v50  ;;  %v1022_v50 = vmul.f32 0.3275911, %v958_v6  ;;  %v2684_v46 = vmul.f32 %v956_v12, %v956_v12 }
 0x15a   : > { %9028 = vst [vmem:[#allocation59_spill] sm:$0xff] %v5843_v15  ;;  %v1385_v14 = vmul.f32 %v5888_v39, %v5828_v20  ;;  %v1371_v22 = vsub.f32 1.0, %v1370_v34 }
 0x15b   : > { %9029 = vst [vmem:[#allocation60_spill] sm:$0xff] %v5845_v10  ;;  %v1020_v10 = vmul.f32 0.3275911, %v956_v12  ;;  %v2829_v3 = vmul.f32 1.442695, %v2747_v31  ;;  %v5937_v12 = vmul.f32 0.5, %v5787_v55 }
 0x15c   : > { %9030 = vst [vmem:[#allocation61_spill] sm:$0xff] %v5854_v37  ;;  %v2745_v37 = vsub.f32 0.0, %v2681_v21  ;;  %v1021_v21 = vmul.f32 0.3275911, %v5857_v25  ;;  %v5908_v30 = vpop.eup %4646  ;;  %v5939_v34 = vadd.f32 1.0, %v1022_v50  ;;  %v2748_v31 = vsub.f32 0.0, %v2684_v46 }
 0x15d   : > { %9031 = vst [vmem:[#allocation62_spill] sm:$0xff] %v5859_v42  ;;  %v1380_v42 = vand.u32 2147483648, %v5820_v19  ;;  %v5923_v19 = vadd.f32 %v5824_v27, %v1357_v56 }
 0x15e   : > { %9032 = vst [vmem:[#allocation63_spill] sm:$0xff] %v5865_v44  ;;  %v1395_v44 = vand.u32 2147483648, %v5828_v20  ;;  %v5913_v48 = vadd.f32 1.0, %v1021_v21  ;;  %v686_v21 = vpop.f32.mrf.mxu1 }
 0x15f   : > { %9033 = vst [vmem:[#allocation64_spill] sm:$0xff] %v5867_v8  ;;  %v5893_v8 = vadd.f32 1.0, %v1020_v10  ;;  %v5903_v11 = vor.u32 1.1754944e-38, %v1380_v42  ;;  %v5906_v10 = vmul.f32 0.70710677, %v5875_v29 }
 0x160   : > { %9034 = vst [vmem:[#allocation65_spill] sm:$0xff] %v5871_v53  ;;  %v781_v53 = vpop.f32.mrf.mxu3  ;;  %v2827_v42 = vmul.f32 1.442695, %v2746_v24  ;;  %v5929_v20 = vor.u32 1.1754944e-38, %v1395_v44  ;;  %v2685_v44 = vmul.f32 %v5857_v25, %v5857_v25  ;;  %v5957_v25 = vmul.f32 0.5, %v5805_v38 }
 0x161   : > { %9035 = vst [vmem:[#allocation66_spill] sm:$0xff] %v5877_v35  ;;  %4650 = vrcp.f32 %v5893_v8  ;;  %v959_v24 = vand.u32 2147483647, %v5906_v10  ;;  %v1425_v46 = vand.u32 2147483648, %v5893_v8 }
 0x162   : > { %9036 = vst [vmem:[#allocation67_spill] sm:$0xff] %v5880_v32  ;;  %v2825_v32 = vmul.f32 1.442695, %v2745_v37  ;;  %v5916_v37 = vadd.f32 %v781_v53, %v5222_v0  ;;  %v1400_v53 = vmul.f32 %v5908_v30, %v5843_v15  ;;  %v2749_v38 = vsub.f32 0.0, %v2685_v44 }
 0x163   : > { %9037 = vst [vmem:[#allocation68_spill] sm:$0xff] %v5883_v28  ;;  %v1386_v28 = vsub.f32 1.0, %v1385_v14  ;;  %v5947_v14 = vadd.f32 %v5822_v33, %v5213_v57  ;;  %v1023_v55 = vmul.f32 0.3275911, %v959_v24  ;;  %v5987_v44 = vor.u32 1.1754944e-38, %v1425_v46 }
 0x164   : > { %9038 = vst [vmem:[#allocation69_spill] sm:$0xff] %v5888_v39  ;;  %4652 = vpow2.f32 %v2825_v32  ;;  %v5933_v56 = vmul.f32 0.70710677, %v5916_v37  ;;  %v1401_v32 = vsub.f32 1.0, %v1400_v53 }
 0x165   : > { %9039 = vst [vmem:[#allocation70_spill] sm:$0xff] %v5891_v1  ;;  %4654 = vrcp.f32 %v5913_v48 }
 0x166   : > { %9040 = vst [vmem:[#allocation71_spill] sm:$0xff] %v5893_v8  ;;  %4656 = vpow2.f32 %v2827_v42  ;;  %v1372_v42 = vmul.f32 %v5877_v35, %v1371_v22  ;;  %v960_v33 = vand.u32 2147483647, %v5933_v56  ;;  %v2686_v22 = vmul.f32 %v958_v6, %v958_v6  ;;  %v5989_v4 = vpop.f32.mrf.mxu1 }
 0x167   : > { %9041 = vst [vmem:[#allocation72_spill] sm:$0xff] %v5897_v60  ;;  %v1410_v60 = vand.u32 2147483648, %v5843_v15  ;;  %4658 = vpow2.f32 %v2829_v3  ;;  %v2831_v15 = vmul.f32 1.442695, %v2748_v31  ;;  %v1402_v6 = vmul.f32 %v5908_v30, %v1401_v32 }
 0x168   : > { %9042 = vst [vmem:[#allocation73_spill] sm:$0xff] %v5903_v11  ;;  %v5920_v11 = vpop.eup %4648  ;;  %4660 = vrcp.f32 %v5939_v34  ;;  %v784_v27 = vpop.f32.mrf.mxu3  ;;  %v2833_v31 = vmul.f32 1.442695, %v2749_v38 }
 0x169   : > { %9043 = vst [vmem:[#allocation74_spill] sm:$0xff] %v5906_v10  ;;  %v642_v10 = vpop.f32.mrf.mxu0  ;;  %4662 = vpow2.f32 %v2831_v15 }
 0x16a   : > { %9044 = vst [vmem:[#allocation75_spill] sm:$0xff] %v5908_v30  ;;  %v5965_v3 = vadd.f32 %v642_v10, %v5213_v57  ;;  %v687_v10 = vadd.f32 %v686_v21, %v5215_v59 }
 0x16b   : > { %9045 = vst [vmem:[#allocation76_spill] sm:$0xff] %v5913_v48 }
 0x16c   : > { %9046 = vst [vmem:[#allocation77_spill] sm:$0xff] %v5920_v11  ;;  %v5941_v11 = vor.u32 1.1754944e-38, %v1410_v60  ;;  %v1387_v60 = vmul.f32 %v5888_v39, %v1386_v28  ;;  %v5997_v21 = vmul.f32 0.70710677, %v5965_v3 }
 0x16d   : > { %9047 = vst [vmem:[#allocation78_spill] sm:$0xff] %v5923_v19  ;;  %v1024_v19 = vmul.f32 0.3275911, %v960_v33 }
 0x16e   : > { %9048 = vst [vmem:[#allocation79_spill] sm:$0xff] %v5929_v20  ;;  %v5949_v20 = vpop.eup %4650 }
 0x16f   : > { %9049 = vst [vmem:[#allocation80_spill] sm:$0xff] %v5933_v56  ;;  %v5952_v50 = vpop.eup %4652  ;;  %v1415_v28 = vmul.f32 %v5949_v20, %v5893_v8  ;;  %v6003_v8 = vadd.f32 %v5908_v30, %v1402_v6  ;;  %v6013_v15 = vadd.f32 1.0, %v1024_v19  ;;  %v6018_v6 = vand.u32 2147483647, %v5997_v21 }
 0x170   : > { %9050 = vst [vmem:[#allocation81_spill] sm:$0xff] %v5937_v12  ;;  %v735_v12 = vpop.f32.mrf.mxu2  ;;  %v5967_v53 = vpop.eup %4654 }
 0x171   : > { %9051 = vst [vmem:[#allocation82_spill] sm:$0xff] %v5939_v34  ;;  %v5974_v56 = vpop.eup %4656  ;;  %v1430_v32 = vmul.f32 %v5967_v53, %v5913_v48 }
 0x172   : > { %9052 = vst [vmem:[#allocation83_spill] sm:$0xff] %v5941_v11  ;;  %v5961_v11 = vmul.f32 0.5, %v5838_v2  ;;  %v5977_v2 = vadd.f32 %v5877_v35, %v1372_v42  ;;  %v1440_v42 = vand.u32 2147483648, %v5913_v48 }
 0x173   : > { %9053 = vst [vmem:[#allocation84_spill] sm:$0xff] %v5949_v20  ;;  %v1431_v38 = vsub.f32 1.0, %v1430_v32  ;;  %v6027_v32 = vadd.f32 %v735_v12, %v5220_v62  ;;  %v6043_v12 = vmul.f32 0.5, %v5947_v14 }
 0x174   : > { %9054 = vst [vmem:[#allocation85_spill] sm:$0xff] %v5952_v50  ;;  %v5984_v50 = vadd.f32 %v5888_v39, %v1387_v60  ;;  %v1416_v60 = vsub.f32 1.0, %v1415_v28  ;;  %v1455_v39 = vand.u32 2147483648, %v5939_v34  ;;  %v6011_v28 = vmul.f32 0.5, %v5875_v29 }
 0x175   : > { %9055 = vst [vmem:[#allocation86_spill] sm:$0xff] %v5957_v25  ;;  %v5972_v25 = vmul.f32 0.70710677, %v5947_v14 }
 0x176   : > { %9056 = vst [vmem:[#allocation87_spill] sm:$0xff] %v5961_v11  ;;  %v5980_v11 = vadd.f32 1.0, %v1023_v55  ;;  %v2750_v55 = vsub.f32 0.0, %v2686_v22 }
 0x177   : > { %9057 = vst [vmem:[#allocation88_spill] sm:$0xff] %v5967_v53  ;;  %v961_v46 = vand.u32 2147483647, %v5972_v25 }
 0x178   : > { %9058 = vst [vmem:[#allocation89_spill] sm:$0xff] %v5972_v25  ;;  %4664 = vrcp.f32 %v5980_v11  ;;  %v6015_v25 = vor.u32 1.1754944e-38, %v1440_v42  ;;  %v6023_v30 = vpop.f32.mrf.mxu2  ;;  %v1033_v42 = vmul.f32 0.3275911, %v6018_v6 }
 0x179   : > { %9059 = vst [vmem:[#allocation90_spill] sm:$0xff] %v5974_v56  ;;  %v5991_v56 = vpop.eup %4658  ;;  %4666 = vpow2.f32 %v2833_v31  ;;  %v2688_v31 = vmul.f32 %v960_v33, %v960_v33  ;;  %v691_v33 = vpop.f32.mrf.mxu1 }
 0x17a   : > { %9060 = vst [vmem:[#allocation91_spill] sm:$0xff] %v5977_v2  ;;  %v2835_v2 = vmul.f32 1.442695, %v2750_v55  ;;  %4668 = vrcp.f32 %v6013_v15 }
 0x17b   : > { %9061 = vst [vmem:[#allocation92_spill] sm:$0xff] %v5980_v11 }
 0x17c   : > { %9062 = vst [vmem:[#allocation93_spill] sm:$0xff] %v5984_v50  ;;  %v6006_v50 = vmul.f32 0.70710677, %v687_v10  ;;  %4670 = vpow2.f32 %v2835_v2 }
 0x17d   : > { %9063 = vst [vmem:[#allocation94_spill] sm:$0xff] %v5987_v44  ;;  %v6000_v44 = vpop.eup %4660 }
 0x17e   : > { %9064 = vst [vmem:[#allocation95_spill] sm:$0xff] %v5991_v56  ;;  %v2687_v56 = vmul.f32 %v959_v24, %v959_v24  ;;  %v1417_v24 = vmul.f32 %v5949_v20, %v1416_v60  ;;  %v1445_v22 = vmul.f32 %v6000_v44, %v5939_v34  ;;  %v962_v19 = vand.u32 2147483647, %v6006_v50  ;;  %v6030_v55 = vpop.eup %4662 }
 0x17f   : > { %9065 = vst [vmem:[#allocation96_spill] sm:$0xff] %v6000_v44  ;;  %v6033_v60 = vor.u32 1.1754944e-38, %v1455_v39  ;;  %v6048_v39 = vpop.f32.mrf.mxu3 }
 0x180   : > { %9066 = vst [vmem:[#allocation97_spill] sm:$0xff] %v6003_v8  ;;  %v1025_v8 = vmul.f32 0.3275911, %v961_v46  ;;  %v2751_v29 = vsub.f32 0.0, %v2687_v56  ;;  %v1432_v56 = vmul.f32 %v5967_v53, %v1431_v38  ;;  %v1446_v48 = vsub.f32 1.0, %v1445_v22 }
 0x181   : > { %9067 = vst [vmem:[#allocation98_spill] sm:$0xff] %v6006_v50  ;;  %v6040_v50 = vmul.f32 0.5, %v5916_v37  ;;  %v6053_v34 = vadd.f32 %v5949_v20, %v1417_v24  ;;  %v1026_v38 = vmul.f32 0.3275911, %v962_v19  ;;  %v6056_v37 = vmul.f32 0.70710677, %v6027_v32 }
 0x182   : > { %9068 = vst [vmem:[#allocation99_spill] sm:$0xff] %v6011_v28  ;;  %v6046_v28 = vadd.f32 1.0, %v1025_v8  ;;  %v2837_v2 = vmul.f32 1.442695, %v2751_v29  ;;  %v2752_v8 = vsub.f32 0.0, %v2688_v31  ;;  %v6073_v29 = vadd.f32 %v691_v33, %v5215_v59 }
 0x183   : > { %9069 = vst [vmem:[#allocation100_spill] sm:$0xff] %v6013_v15  ;;  %v1447_v20 = vmul.f32 %v6000_v44, %v1446_v48  ;;  %v6084_v24 = vadd.f32 1.0, %v1026_v38  ;;  %v740_v48 = vpop.f32.mrf.mxu2 }
 0x184   : > { %9070 = vst [vmem:[#allocation101_spill] sm:$0xff] %v6015_v25  ;;  %v6036_v25 = vpop.eup %4664 }
 0x185   : > { %9071 = vst [vmem:[#allocation102_spill] sm:$0xff] %v6030_v55  ;;  %v1470_v55 = vand.u32 2147483648, %v5980_v11  ;;  %v6058_v14 = vpop.eup %4666  ;;  %v1460_v22 = vmul.f32 %v6036_v25, %v5980_v11  ;;  %v2839_v11 = vmul.f32 1.442695, %v2752_v8  ;;  %v6100_v38 = vadd.f32 %v6000_v44, %v1447_v20 }
 0x186   : > { %9072 = vst [vmem:[#allocation103_spill] sm:$0xff] %v6033_v60  ;;  %v6050_v60 = vadd.f32 1.0, %v1033_v42  ;;  %v6065_v42 = vadd.f32 %v784_v27, %v5222_v0  ;;  %v2689_v27 = vmul.f32 %v961_v46, %v961_v46  ;;  %v6093_v46 = vmul.f32 0.70710677, %v6073_v29 }
 0x187   : > { %9073 = vst [vmem:[#allocation104_spill] sm:$0xff] %v6036_v25  ;;  %v1461_v33 = vsub.f32 1.0, %v1460_v22  ;;  %v1500_v20 = vand.u32 2147483648, %v6046_v28 }
 0x188   : > { %9074 = vst [vmem:[#allocation105_spill] sm:$0xff] %v6040_v50  ;;  %v6068_v50 = vadd.f32 %v5967_v53, %v1432_v56  ;;  %4672 = vrcp.f32 %v6050_v60  ;;  %v6082_v56 = vor.u32 1.1754944e-38, %v1470_v55  ;;  %v3385_v55 = vpack.c.bf16 %v5642_v43, %v5590_v26 }
 0x189   : > { %9075 = vst [vmem:[#allocation106_spill] sm:$0xff] %v6043_v12  ;;  %v6062_v12 = vmul.f32 0.5, %v687_v10  ;;  %v1485_v10 = vand.u32 2147483648, %v6013_v15  ;;  %4674 = vrcp.f32 %v6046_v28  ;;  %v2753_v8 = vsub.f32 0.0, %v2689_v27 }
 0x18a   : > { %9076 = vst [vmem:[#allocation107_spill] sm:$0xff] %v6046_v28  ;;  %4676 = vpow2.f32 %v2837_v2  ;;  %v3386_v2 = vpack.c.bf16 %v5680_v36, %v5598_v5  ;;  %3681 = vmatmul.bf16.vlgmr.msrb.gmra.mxu0 %v3385_v55  ;;  %v6112_v26 = vadd.f32 %v740_v48, %v5220_v62  ;;  %v1462_v43 = vmul.f32 %v6036_v25, %v1461_v33 }
 0x18b   : > { %9077 = vst [vmem:[#allocation108_spill] sm:$0xff] %v6053_v34  ;;  %v6075_v34 = vpop.eup %4668  ;;  %v6103_v22 = vor.u32 1.1754944e-38, %v1485_v10  ;;  %4678 = vrcp.f32 %v6084_v24  ;;  %v789_v10 = vpop.f32.mrf.mxu3  ;;  %v6122_v55 = vmul.f32 0.5, %v6027_v32  ;;  %vm1614_vm8 = vweird.f32 %v6050_v60 }
 0x18c   : > { %9078 = vst [vmem:[#allocation109_spill] sm:$0xff] %v6056_v37  ;;  %v6080_v31 = vpop.eup %4670  ;;  %v1475_v53 = vmul.f32 %v6075_v34, %v6013_v15  ;;  %3730 = vmatmul.bf16.vlgmr.msrb.gmra.mxu1 %v3386_v2  ;;  %4680 = vpow2.f32 %v2839_v11  ;;  %v2841_v15 = vmul.f32 1.442695, %v2753_v8  ;;  %v640_v11 = vadd.f32 %v5886_v9, %v5213_v57 }
 0x18d   : > { %9079 = vst [vmem:[#allocation110_spill] sm:$0xff] %v6058_v14  ;;  %v2690_v14 = vmul.f32 %v962_v19, %v962_v19  ;;  %v6138_v32 = vadd.f32 %v789_v10, %v5222_v0  ;;  %v6143_v8 = vor.u32 1.1754944e-38, %v1500_v20  ;;  %v1515_v9 = vand.u32 2147483648, %v6084_v24 }
 0x18e   : > { %9080 = vst [vmem:[#allocation111_spill] sm:$0xff] %v6062_v12  ;;  %v963_v12 = vand.u32 2147483647, %v6056_v37  ;;  %v6105_v37 = vpop.eup %4672  ;;  %v1476_v19 = vsub.f32 1.0, %v1475_v53  ;;  %v6135_v53 = vmul.f32 0.70710677, %v6112_v26  ;;  %4682 = vpow2.f32 %v2841_v15 }
 0x18f   : > { %9081 = vst [vmem:[#allocation112_spill] sm:$0xff] %v6068_v50  ;;  %v6088_v50 = vmul.f32 0.70710677, %v6065_v42  ;;  %v6114_v5 = vpop.eup %4674  ;;  %v1610_v48 = vmul.f32 %v6105_v37, %v6050_v60  ;;  %v6152_v1 = vmul.f32 0.70710677, %v640_v11  ;;  %v6168_v15 = vmul.f32 0.5, %v6065_v42 }
 0x190   : > { %9082 = vst [vmem:[#allocation113_spill] sm:$0xff] %v6075_v34  ;;  %v6119_v27 = vpop.eup %4676  ;;  %vm1615_vm9 = vweird.f32 %v6105_v37 }
 0x191   : > { %9083 = vst [vmem:[#allocation114_spill] sm:$0xff] %v6080_v31  ;;  %v6109_v31 = vand.u32 2147483647, %v6093_v46  ;;  %v964_v36 = vand.u32 2147483647, %v6088_v50  ;;  %v1611_v44 = vsub.f32 1.0, %v1610_v48  ;;  %vm6221_vm10 = vmor %vm1614_vm8, %vm1615_vm9  ;;  %vm1254_vm8 = vweird.f32 %v5558_v13 }
 0x192   : > { %9084 = vst [vmem:[#allocation115_spill] sm:$0xff] %v6082_v56  ;;  %v1027_v56 = vmul.f32 0.3275911, %v963_v12  ;;  %vm1255_vm9 = vweird.f32 %v5606_v63 }
 0x193   : > { %9085 = vst [vmem:[#allocation116_spill] sm:$0xff] %v6084_v24  ;;  %v1034_v33 = vmul.f32 0.3275911, %v6109_v31  ;;  %v1028_v2 = vmul.f32 0.3275911, %v964_v36  ;;  %v1612_v10 = vmul.f32 %v6105_v37, %v1611_v44 }
 0x194   : > { %9086 = vst [vmem:[#allocation117_spill] sm:$0xff] %v6088_v50  ;;  %v1490_v50 = vmul.f32 %v6114_v5, %v6046_v28  ;;  %v1477_v28 = vmul.f32 %v6075_v34, %v1476_v19  ;;  %v6161_v19 = vmul.f32 0.70710677, %v6138_v32 }
 0x195   : > { %9087 = vst [vmem:[#allocation118_spill] sm:$0xff] %v6093_v46  ;;  %v6170_v48 = vadd.f32 1.0, %v1028_v2 }
 0x196   : > { %9088 = vst [vmem:[#allocation119_spill] sm:$0xff] %v6100_v38  ;;  %v2691_v38 = vmul.f32 %v963_v12, %v963_v12  ;;  %v1491_v20 = vsub.f32 1.0, %v1490_v50  ;;  %v6173_v50 = vadd.f32 %v6075_v34, %v1477_v28  ;;  %v6185_v28 = vand.u32 2147483647, %v6161_v19 }
 0x197   : > { %9089 = vst [vmem:[#allocation120_spill] sm:$0xff] %v6103_v22  ;;  %v2754_v22 = vsub.f32 0.0, %v2690_v14  ;;  %v6141_v14 = vadd.f32 %v6036_v25, %v1462_v43  ;;  %v6154_v43 = vadd.f32 1.0, %v1034_v33 }
 0x198   : > { %9090 = vst [vmem:[#allocation121_spill] sm:$0xff] %v6114_v5  ;;  %v2755_v33 = vsub.f32 0.0, %v2691_v38  ;;  %v1492_v42 = vmul.f32 %v6114_v5, %v1491_v20 }
 0x199   : > { %9091 = vst [vmem:[#allocation122_spill] sm:$0xff] %v6119_v27  ;;  %v6132_v27 = vadd.f32 1.0, %v1027_v56  ;;  %v2843_v56 = vmul.f32 1.442695, %v2754_v22  ;;  %v6165_v22 = vor.u32 1.1754944e-38, %v1515_v9  ;;  %v6181_v9 = vmul.f32 0.5, %v640_v11 }
 0x19a   : > { %9092 = vst [vmem:[#allocation123_spill] sm:$0xff] %v6122_v55  ;;  %v6146_v55 = vpop.eup %4678  ;;  %v1613_v11 = vadd.f32 %v6105_v37, %v1612_v10  ;;  %vm1629_vm12 = vweird.f32 %v6154_v43 }
 0x19b   : > { %9093 = vst [vmem:[#allocation124_spill] sm:$0xff] %v6132_v27  ;;  %v6149_v35 = vpop.eup %4680  ;;  %4684 = vrcp.f32 %v6132_v27  ;;  %v1505_v12 = vmul.f32 %v6146_v55, %v6084_v24  ;;  %v689_v24 = vadd.f32 %v5989_v4, %v5215_v59 }
 0x19c   : > { %9094 = vst [vmem:[#allocation125_spill] sm:$0xff] %v6135_v53  ;;  %4686 = vpow2.f32 %v2843_v56  ;;  %v6187_v38 = vpop.eup %4682  ;;  %v1530_v56 = vand.u32 2147483648, %v6132_v27 }
 0x19d   : > { %9095 = vst [vmem:[#allocation126_spill] sm:$0xff] %v6141_v14  ;;  %v965_v14 = vand.u32 2147483647, %v6152_v1  ;;  %4688 = vrcp.f32 %v6154_v43  ;;  %v1506_v44 = vsub.f32 1.0, %v1505_v12  ;;  %v738_v12 = vadd.f32 %v6023_v30, %v5220_v62 }
 0x19e   : > { %9096 = vst [vmem:[#allocation127_spill] sm:$0xff] %v6143_v8  ;;  %v6158_v8 = vand.u32 2147483647, %v6135_v53  ;;  %4690 = vrcp.f32 %v6170_v48  ;;  %v6215_v25 = vor.u32 1.1754944e-38, %v1530_v56  ;;  %v1617_v56 = vsel %vm6221_vm10, %v6105_v37, %v1613_v11 }
 0x19f   : > { %9097 = vst [vmem:[#allocation128_spill] sm:$0xff] %v6146_v55  ;;  %v1029_v20 = vmul.f32 0.3275911, %v965_v14  ;;  %vm1315_vm10 = vweird.f32 %v5754_v7 }
 0x1a0   : > { %9098 = vst [vmem:[#allocation129_spill] sm:$0xff] %v6149_v35  ;;  %v2692_v35 = vmul.f32 %v964_v36, %v964_v36  ;;  %v1035_v2 = vmul.f32 0.3275911, %v6158_v8  ;;  %v1620_v36 = vand.u32 2147483648, %v6050_v60 }
 0x1a1   : > { %9099 = vst [vmem:[#allocation130_spill] sm:$0xff] %v6152_v1  ;;  %v6192_v4 = vpop.eup %4684  ;;  %v6205_v1 = vadd.f32 %v6114_v5, %v1492_v42  ;;  %v6253_v5 = vmul.f32 0.5, %v689_v24 }
 0x1a2   : > { %9100 = vst [vmem:[#allocation131_spill] sm:$0xff] %v6161_v19  ;;  %v6208_v10 = vadd.f32 1.0, %v1035_v2  ;;  %v1520_v34 = vmul.f32 %v6192_v4, %v6132_v27  ;;  %v2756_v30 = vsub.f32 0.0, %v2692_v35  ;;  %v2693_v19 = vmul.f32 %v965_v14, %v965_v14 }
 0x1a3   : > { %9101 = vst [vmem:[#allocation132_spill] sm:$0xff] %v6165_v22  ;;  %v1036_v22 = vmul.f32 0.3275911, %v6185_v28  ;;  %v1507_v2 = vmul.f32 %v6146_v55, %v1506_v44  ;;  %v6232_v14 = vadd.f32 1.0, %v1029_v20  ;;  %v6235_v27 = vmul.f32 0.70710677, %v738_v12 }
 0x1a4   : > { %9102 = vst [vmem:[#allocation133_spill] sm:$0xff] %v6168_v15  ;;  %v2845_v15 = vmul.f32 1.442695, %v2755_v33  ;;  %v1618_v33 = vand.u32 2147483647, %v6050_v60  ;;  %v1521_v42 = vsub.f32 1.0, %v1520_v34  ;;  %vm1644_vm1 = vweird.f32 %v6208_v10 }
 0x1a5   : > { %9103 = vst [vmem:[#allocation134_spill] sm:$0xff] %v6170_v48  ;;  %v6240_v44 = vadd.f32 1.0, %v1036_v22  ;;  %v2757_v37 = vsub.f32 0.0, %v2693_v19  ;;  %v967_v34 = vand.u32 2147483647, %v6235_v27 }
 0x1a6   : > { %9104 = vst [vmem:[#allocation135_spill] sm:$0xff] %v6173_v50  ;;  %4692 = vpow2.f32 %v2845_v15  ;;  %vm1619_vm11 = vcmp.eq.f32.partialorder %v1618_v33, 8.507059e+37  ;;  %v1545_v33 = vand.u32 2147483648, %v6170_v48 }
 0x1a7   : > { %9105 = vst [vmem:[#allocation136_spill] sm:$0xff] %v6181_v9  ;;  %v6197_v9 = vmul.f32 0.70710677, %v689_v24  ;;  %4694 = vrcp.f32 %v6208_v10  ;;  %v2849_v24 = vmul.f32 1.442695, %v2757_v37  ;;  %vm1659_vm5 = vweird.f32 %v6240_v44 }
 0x1a8   : > { %9106 = vst [vmem:[#allocation137_spill] sm:$0xff] %v6187_v38  ;;  %v6202_v38 = vpop.eup %4686  ;;  %4696 = vrcp.f32 %v6240_v44 }
 0x1a9   : > { %9107 = vst [vmem:[#allocation138_spill] sm:$0xff] %v6192_v4  ;;  %v6211_v50 = vpop.eup %4688  ;;  %v966_v60 = vand.u32 2147483647, %v6197_v9  ;;  %4698 = vrcp.f32 %v6232_v14 }
 0x1aa   : > { %9108 = vst [vmem:[#allocation139_spill] sm:$0xff] %v6197_v9  ;;  %v6230_v35 = vpop.eup %4690  ;;  %v1625_v15 = vmul.f32 %v6211_v50, %v6154_v43  ;;  %v2847_v9 = vmul.f32 1.442695, %v2756_v30  ;;  %vm1630_vm13 = vweird.f32 %v6211_v50 }
 0x1ab   : > { %9109 = vst [vmem:[#allocation140_spill] sm:$0xff] %v6202_v38  ;;  %v6248_v38 = vadd.f32 %v6146_v55, %v1507_v2  ;;  %v1030_v22 = vmul.f32 0.3275911, %v966_v60  ;;  %v1031_v55 = vmul.f32 0.3275911, %v967_v34  ;;  %vm6331_vm14 = vmor %vm1629_vm12, %vm1630_vm13 }
 0x1ac   : > { %9110 = vst [vmem:[#allocation141_spill] sm:$0xff] %v6205_v1  ;;  %v1621_v1 = vor.u32 1.1754944e-38, %v1620_v36  ;;  %v1535_v36 = vmul.f32 %v6230_v35, %v6170_v48  ;;  %v6258_v19 = vpop.eup %4692  ;;  %v1522_v48 = vmul.f32 %v6192_v4, %v1521_v42  ;;  %4700 = vpow2.f32 %v2847_v9 }
 0x1ad   : > { %9111 = vst [vmem:[#allocation142_spill] sm:$0xff] %v6215_v25  ;;  %v644_v25 = vpop.f32.mrf.mxu0  ;;  %4702 = vpow2.f32 %v2849_v24  ;;  %v6301_v24 = vadd.f32 1.0, %v1031_v55 }
 0x1ae   : > { %9114 = vst [vmem:[#allocation143_spill] sm:$0xff] %v6230_v35  ;;  %v6242_v11 = vsel %vm1619_vm11, %v1621_v1, %v1617_v56  ;;  %v6245_v20 = vadd.f32 %v644_v25, %v5213_v57  ;;  %v787_v1 = vadd.f32 %v6048_v39, %v5222_v0  ;;  %v1560_v25 = vand.u32 2147483648, %v6232_v14 }
 0x1af   : > { %9115 = vst [vmem:[#allocation144_spill] sm:$0xff] %v6232_v14  ;;  %v2121_v2 = vmul.f32 1.0614054, %v6242_v11  ;;  %v1626_v56 = vsub.f32 1.0, %v1625_v15  ;;  %v1536_v39 = vsub.f32 1.0, %v1535_v36  ;;  %v6274_v15 = vmul.f32 0.5, %v738_v12 }
 0x1b0   : > { %9116 = vst [vmem:[#allocation145_spill] sm:$0xff] %v6235_v27  ;;  %v6266_v30 = vmul.f32 0.70710677, %v6245_v20  ;;  %v6268_v27 = vpop.eup %4694  ;;  %v6276_v53 = vmul.f32 0.70710677, %v787_v1  ;;  %v6279_v37 = vor.u32 1.1754944e-38, %v1560_v25  ;;  %v6283_v36 = vadd.f32 %v6192_v4, %v1522_v48 }
 0x1b1   : > { %9117 = vst [vmem:[#allocation146_spill] sm:$0xff] %v6248_v38  ;;  %v6272_v38 = vadd.f32 1.0, %v1030_v22  ;;  %v2185_v58 = vadd.f32 -1.4531521, %v2121_v2  ;;  %v1627_v46 = vmul.f32 %v6211_v50, %v1626_v56  ;;  %v1640_v9 = vmul.f32 %v6268_v27, %v6208_v10  ;;  %v693_v56 = vpop.f32.mrf.mxu1 }
 0x1b2   : > { %9118 = vst [vmem:[#allocation147_spill] sm:$0xff] %v6253_v5  ;;  %v6270_v5 = vor.u32 1.1754944e-38, %v1545_v33  ;;  %v6288_v12 = vand.u32 2147483647, %v6266_v30  ;;  %v1537_v33 = vmul.f32 %v6230_v35, %v1536_v39  ;;  %v6293_v25 = vmul.f32 0.5, %v787_v1 }
 0x1b3   : > { %9119 = vst [vmem:[#allocation148_spill] sm:$0xff] %v6258_v19  ;;  %v2694_v19 = vmul.f32 %v966_v60, %v966_v60  ;;  %v6290_v60 = vpop.eup %4696  ;;  %v6296_v2 = vmul.f32 0.5, %v5965_v3  ;;  %4704 = vrcp.f32 %v6272_v38  ;;  %v968_v42 = vand.u32 2147483647, %v6276_v53 }
 0x1b4   : > { %9120 = vst [vmem:[#allocation149_spill] sm:$0xff] %v6266_v30  ;;  %v6298_v48 = vpop.eup %4698  ;;  %v1628_v1 = vadd.f32 %v6211_v50, %v1627_v46  ;;  %v1635_v3 = vand.u32 2147483648, %v6154_v43  ;;  %v1641_v39 = vsub.f32 1.0, %v1640_v9  ;;  %v1037_v55 = vmul.f32 0.3275911, %v6288_v12 }
 0x1b5   : > { %9121 = vst [vmem:[#allocation150_spill] sm:$0xff] %v6270_v5  ;;  %v2758_v22 = vsub.f32 0.0, %v2694_v19  ;;  %v2249_v19 = vmul.f32 %v2185_v58, %v6242_v11  ;;  %v1633_v58 = vand.u32 2147483647, %v6154_v43  ;;  %v3387_v46 = vpack.c.bf16 %v5726_v23, %v5609_v17 }
 0x1b6   : > { %9122 = vst [vmem:[#allocation151_spill] sm:$0xff] %v6272_v38  ;;  %v3388_v5 = vpack.c.bf16 %v5794_v52, %v5616_v54  ;;  %v1032_v30 = vmul.f32 0.3275911, %v968_v42  ;;  %4706 = vrcp.f32 %v6301_v24  ;;  %v1632_v54 = vsel %vm6331_vm14, %v6211_v50, %v1628_v1 }
 0x1b7   : > { %9123 = vst [vmem:[#allocation152_spill] sm:$0xff] %v6274_v15  ;;  %v6305_v15 = vpop.eup %4700  ;;  %v2851_v4 = vmul.f32 1.442695, %v2758_v22  ;;  %v2313_v17 = vadd.f32 1.4214138, %v2249_v19  ;;  %v1636_v23 = vor.u32 1.1754944e-38, %v1635_v3  ;;  %3779 = vmatmul.bf16.vlgmr.msrb.gmra.mxu2 %v3387_v46  ;;  %vm1645_vm0 = vweird.f32 %v6268_v27 }
 0x1b8   : > { %9124 = vst [vmem:[#allocation153_spill] sm:$0xff] %v6276_v53  ;;  %v6315_v53 = vadd.f32 %v693_v56, %v5215_v59  ;;  %v6324_v9 = vpop.eup %4702  ;;  %3828 = vmatmul.bf16.vlgmr.msrb.gmra.mxu3 %v3388_v5  ;;  %v6342_v43 = vadd.f32 1.0, %v1037_v55  ;;  %vm1634_vm15 = vcmp.eq.f32.partialorder %v1633_v58, 8.507059e+37  ;;  %v6353_v5 = vadd.f32 1.0, %v1032_v30  ;;  %vm6381_vm2 = vmor %vm1644_vm1, %vm1645_vm0 }
 0x1b9   : > { %9125 = vst [vmem:[#allocation154_spill] sm:$0xff] %v6279_v37  ;;  %v2695_v37 = vmul.f32 %v967_v34, %v967_v34  ;;  %v6339_v52 = vpop.eup %4704  ;;  %v1642_v34 = vmul.f32 %v6268_v27, %v1641_v39  ;;  %4708 = vpow2.f32 %v2851_v4  ;;  %v6355_v1 = vsel %vm1634_vm15, %v1636_v23, %v1632_v54 }
 0x1ba   : > { %9126 = vst [vmem:[#allocation155_spill] sm:$0xff] %v6283_v36  ;;  %v1575_v36 = vand.u32 2147483648, %v6272_v38  ;;  %v2377_v3 = vmul.f32 %v2313_v17, %v6242_v11  ;;  %v2697_v39 = vmul.f32 %v6018_v6, %v6018_v6  ;;  %4710 = vrcp.f32 %v6342_v43 }
 0x1bb   : > { %9127 = vst [vmem:[#allocation156_spill] sm:$0xff] %v6293_v25  ;;  %v1655_v25 = vmul.f32 %v6290_v60, %v6240_v44  ;;  %v2122_v55 = vmul.f32 1.0614054, %v6355_v1  ;;  %v1650_v6 = vand.u32 2147483648, %v6208_v10  ;;  %4712 = vrcp.f32 %v6353_v5 }
 0x1bc   : > { %9128 = vst [vmem:[#allocation157_spill] sm:$0xff] %v6298_v48  ;;  %v6351_v50 = vor.u32 1.1754944e-38, %v1575_v36  ;;  %v6367_v30 = vpop.eup %4706  ;;  %v2696_v36 = vmul.f32 %v968_v42, %v968_v42  ;;  %v1648_v46 = vand.u32 2147483647, %v6208_v10  ;;  %v1565_v17 = vmul.f32 %v6339_v52, %v6272_v38 }
 0x1bd   : > { %9129 = vst [vmem:[#allocation158_spill] sm:$0xff] %v6301_v24  ;;  %v1656_v22 = vsub.f32 1.0, %v1655_v25  ;;  %v2759_v25 = vsub.f32 0.0, %v2695_v37  ;;  %v1590_v54 = vand.u32 2147483648, %v6301_v24  ;;  %v2761_v23 = vsub.f32 0.0, %v2697_v39 }
 0x1be   : > { %9130 = vst [vmem:[#allocation159_spill] sm:$0xff] %v6305_v15  ;;  %v1550_v15 = vmul.f32 %v6298_v48, %v6232_v14  ;;  %v6348_v14 = vadd.f32 %v6230_v35, %v1537_v33  ;;  %vm1660_vm3 = vweird.f32 %v6290_v60  ;;  %v1580_v39 = vmul.f32 %v6367_v30, %v6301_v24 }
 0x1bf   : > { %9131 = vst [vmem:[#allocation160_spill] sm:$0xff] %v6324_v9  ;;  %v6345_v9 = vmul.f32 0.70710677, %v6315_v53  ;;  %v1657_v33 = vmul.f32 %v6290_v60, %v1656_v22  ;;  %v2441_v22 = vadd.f32 -0.28449672, %v2377_v3  ;;  %v1665_v35 = vand.u32 2147483648, %v6240_v44  ;;  %vm6407_vm6 = vmor %vm1659_vm5, %vm1660_vm3 }
 0x1c0   : > { %9134 = vst [vmem:[#allocation161_spill] sm:$0xff] %v6339_v52  ;;  %v1551_v19 = vsub.f32 1.0, %v1550_v15  ;;  %v1643_v15 = vadd.f32 %v6268_v27, %v1642_v34  ;;  %v6386_v34 = vpop.eup %4708  ;;  %v2186_v56 = vadd.f32 -1.4531521, %v2122_v55  ;;  %vm1649_vm4 = vcmp.eq.f32.partialorder %v1648_v46, 8.507059e+37 }
 0x1c1   : > { %9135 = vst [vmem:[#allocation162_spill] sm:$0xff] %v6348_v14  ;;  %v6365_v4 = vand.u32 2147483647, %v6345_v9  ;;  %v1651_v14 = vor.u32 1.1754944e-38, %v1650_v6  ;;  %v1566_v3 = vsub.f32 1.0, %v1565_v17  ;;  %v6422_v24 = vor.u32 1.1754944e-38, %v1590_v54 }
 0x1c2   : > { %9136 = vst [vmem:[#allocation163_spill] sm:$0xff] %v6351_v50  ;;  %v1552_v37 = vmul.f32 %v6298_v48, %v1551_v19  ;;  %v1647_v10 = vsel %vm6381_vm2, %v6268_v27, %v1643_v15  ;;  %v1658_v19 = vadd.f32 %v6290_v60, %v1657_v33  ;;  %v6396_v50 = vpop.eup %4710  ;;  %v1663_v27 = vand.u32 2147483647, %v6240_v44  ;;  %vm6532_vm2 = vmor %vm1254_vm8, %vm1255_vm9 }
 0x1c3   : > { %9137 = vst [vmem:[#allocation164_spill] sm:$0xff] %v6353_v5  ;;  %v1038_v58 = vmul.f32 0.3275911, %v6365_v4  ;;  %v2853_v15 = vmul.f32 1.442695, %v2759_v25  ;;  %v2760_v33 = vsub.f32 0.0, %v2696_v36  ;;  %v6403_v42 = vsel %vm1649_vm4, %v1651_v14, %v1647_v10  ;;  %v6411_v6 = vpop.eup %4712 }
 0x1c4   : > { %9138 = vst [vmem:[#allocation165_spill] sm:$0xff] %v6367_v30  ;;  %v2857_v46 = vmul.f32 1.442695, %v2761_v23  ;;  %v1662_v44 = vsel %vm6407_vm6, %v6290_v60, %v1658_v19  ;;  %v1581_v25 = vsub.f32 1.0, %v1580_v39  ;;  %v2250_v14 = vmul.f32 %v2186_v56, %v6355_v1 }
 0x1c5   : > { %9141 = vst [vmem:[#allocation166_spill] sm:$0xff] %v6386_v34  ;;  %v6399_v34 = vadd.f32 %v6298_v48, %v1552_v37  ;;  %v2505_v37 = vmul.f32 %v2441_v22, %v6242_v11  ;;  %v6417_v17 = vadd.f32 1.0, %v1038_v58  ;;  %v1666_v36 = vor.u32 1.1754944e-38, %v1665_v35 }
 0x1c6   : > { %9145 = vst [vmem:[#allocation168_spill] sm:$0xff] %v6411_v6  ;;  %v1670_v10 = vmul.f32 %v6396_v50, %v6342_v43  ;;  %v2123_v22 = vmul.f32 1.0614054, %v6403_v42  ;;  %vm1664_vm7 = vcmp.eq.f32.partialorder %v1663_v27, 8.507059e+37  ;;  %v1567_v23 = vmul.f32 %v6339_v52, %v1566_v3 }
 0x1c7   : > { %9142 = vst [vmem:[#allocation167_spill] sm:$0xff] %v6399_v34  ;;  %v1605_v34 = vand.u32 2147483648, %v6353_v5  ;;  %v1595_v60 = vmul.f32 %v6411_v6, %v6353_v5  ;;  %v2855_v58 = vmul.f32 1.442695, %v2760_v33  ;;  %v6429_v19 = vsel %vm1664_vm7, %v1666_v36, %v1662_v44  ;;  %v742_v36 = vpop.f32.mrf.mxu2 }
 0x1c8   : > { %9146 = vst [vmem:[#allocation169_spill] sm:$0xff] %v6422_v24  ;;  %v2569_v56 = vadd.f32 0.2548296, %v2505_v37  ;;  %v2698_v54 = vmul.f32 %v6109_v31, %v6109_v31  ;;  %4714 = vrcp.f32 %v6417_v17  ;;  %v1582_v39 = vmul.f32 %v6367_v30, %v1581_v25 }
 0x1c9   : > { %4716 = vpow2.f32 %v2857_v46  ;;  %v2314_v27 = vadd.f32 1.4214138, %v2250_v14  ;;  %v1671_v55 = vsub.f32 1.0, %v1670_v10  ;;  %v6436_v3 = vor.u32 1.1754944e-38, %v1605_v34  ;;  %v791_v14 = vpop.f32.mrf.mxu3 }
 0x1ca   : > { %4718 = vpow2.f32 %v2853_v15  ;;  %v2187_v24 = vadd.f32 -1.4531521, %v2123_v22  ;;  %v2124_v33 = vmul.f32 1.0614054, %v6429_v19  ;;  %v6440_v44 = vadd.f32 %v6339_v52, %v1567_v23 }
 0x1cb   : > { %9147 = vst [vmem:[#allocation170_spill] sm:$0xff] %v6436_v3  ;;  %v1596_v37 = vsub.f32 1.0, %v1595_v60  ;;  %4720 = vpow2.f32 %v2855_v58  ;;  %v2699_v31 = vmul.f32 %v6158_v8, %v6158_v8  ;;  %v2633_v25 = vmul.f32 %v2569_v56, %v6242_v11 }
 0x1cc   : > { %9148 = vst [vmem:[#allocation171_spill] sm:$0xff] %v6440_v44  ;;  %v6446_v46 = vmul.f32 0.5, %v6073_v29  ;;  %v2762_v15 = vsub.f32 0.0, %v2698_v54  ;;  %v2700_v34 = vmul.f32 %v6185_v28, %v6185_v28  ;;  %v6453_v10 = vadd.f32 %v6367_v30, %v1582_v39  ;;  %v9182_v44 = vld [vmem:[#allocation57_spill] sm:$0xff] }
 0x1cd   : > { %v2378_v8 = vmul.f32 %v2314_v27, %v6355_v1  ;;  %v6457_v22 = vmul.f32 0.5, %v6112_v26  ;;  %v1672_v29 = vmul.f32 %v6396_v50, %v1671_v55  ;;  %v2251_v23 = vmul.f32 %v2187_v24, %v6403_v42 }
 0x1ce   : > { %9149 = vst [vmem:[#allocation172_spill] sm:$0xff] %v6453_v10  ;;  %v6460_v11 = vpop.eup %4714  ;;  %v6464_v28 = vmul.f32 0.5, %v6138_v32  ;;  %v2188_v60 = vadd.f32 -1.4531521, %v2124_v33  ;;  %v6467_v58 = vadd.f32 %v742_v36, %v5220_v62  ;;  %v1597_v54 = vmul.f32 %v6411_v6, %v1596_v37 }
 0x1cf   : > { %v4717_v56 = vpop.eup %4716  ;;  %v2763_v26 = vsub.f32 0.0, %v2699_v31  ;;  %v6472_v39 = vmul.f32 0.5, %v6245_v20  ;;  %v6475_v27 = vadd.f32 %v791_v14, %v5222_v0  ;;  %v2859_v55 = vmul.f32 1.442695, %v2762_v15  ;;  %v647_v14 = vpop.f32.mrf.mxu0 }
 0x1d0   : > { %v6477_v24 = vpop.eup %4718  ;;  %v2953_v32 = vmul.f32 %v4717_v56, %v2633_v25  ;;  %v2764_v33 = vsub.f32 0.0, %v2700_v34  ;;  %v2701_v36 = vmul.f32 %v6288_v12, %v6288_v12  ;;  %vm1314_vm11 = vweird.f32 %v5699_v47 }
 0x1d1   : > { %9150 = vst [vmem:[#allocation173_spill] sm:$0xff] %v6477_v24  ;;  %v6481_v35 = vpop.eup %4720  ;;  %v2442_v37 = vadd.f32 -0.28449672, %v2378_v8  ;;  %v1673_v31 = vadd.f32 %v6396_v50, %v1672_v29  ;;  %vm1675_vm12 = vweird.f32 %v6396_v50  ;;  %v1685_v20 = vmul.f32 %v6460_v11, %v6417_v17  ;;  %vm6555_vm5 = vmor %vm1314_vm11, %vm1315_vm10 }
 0x1d2   : > { %9151 = vst [vmem:[#allocation174_spill] sm:$0xff] %v6481_v35  ;;  %v9152_v25 = vand.u32 2147483647, %v5558_v13  ;;  %v2315_v12 = vadd.f32 1.4214138, %v2251_v23  ;;  %v2252_v34 = vmul.f32 %v2188_v60, %v6429_v19  ;;  %v1680_v56 = vand.u32 2147483648, %v6342_v43 }
 0x1d3   : > { %v6497_v8 = vmul.f32 0.70710677, %v6467_v58  ;;  %vm3081_vm14 = vcmp.lt.f32.partialorder %v5997_v21, 0.0  ;;  %v2861_v29 = vmul.f32 1.442695, %v2763_v26  ;;  %vm1674_vm15 = vweird.f32 %v6342_v43 }
 0x1d4   : > { %vm6490_vm13 = vcmp.eq.f32.partialorder %v9152_v25, 8.507059e+37  ;;  %v1678_v35 = vand.u32 2147483647, %v6342_v43  ;;  %v6503_v25 = vmul.f32 0.70710677, %v6475_v27  ;;  %v6506_v24 = vadd.f32 %v6411_v6, %v1597_v54  ;;  %vm6510_vm0 = vmor %vm1674_vm15, %vm1675_vm12 }
 0x1d5   : > { %v3017_v23 = vsub.f32 1.0, %v2953_v32  ;;  %4722 = vpow2.f32 %v2859_v55  ;;  %v6515_v26 = vadd.f32 %v647_v14, %v5213_v57  ;;  %v2506_v3 = vmul.f32 %v2442_v37, %v6355_v1 }
 0x1d6   : > { %9155 = vst [vmem:[#allocation175_spill] sm:$0xff] %v6506_v24  ;;  %v1677_v43 = vsel %vm6510_vm0, %v6396_v50, %v1673_v31  ;;  %v2765_v5 = vsub.f32 0.0, %v2701_v36  ;;  %v1686_v54 = vsub.f32 1.0, %v1685_v20  ;;  %v2379_v32 = vmul.f32 %v2315_v12, %v6403_v42 }
 0x1d7   : > { %v2316_v55 = vadd.f32 1.4214138, %v2252_v34  ;;  %v1681_v24 = vor.u32 1.1754944e-38, %v1680_v56  ;;  %v6523_v6 = vand.u32 2147483647, %v6497_v8  ;;  %4724 = vpow2.f32 %v2861_v29 }
 0x1d8   : > { %v2863_v10 = vmul.f32 1.442695, %v2764_v33  ;;  %vm1679_vm1 = vcmp.eq.f32.partialorder %v1678_v35, 8.507059e+37  ;;  %v6526_v14 = vand.u32 2147483647, %v6503_v25  ;;  %v3145_v36 = vsub.f32 0.0, %v3017_v23 }
 0x1d9   : > { %v6536_v37 = vsel %vm1679_vm1, %v1681_v24, %v1677_v43  ;;  %v6539_v31 = vmul.f32 0.5, %v6315_v53  ;;  %v6542_v33 = vmul.f32 0.70710677, %v6515_v26  ;;  %v2570_v35 = vadd.f32 0.2548296, %v2506_v3 }
 0x1da   : > { %v2865_v20 = vmul.f32 1.442695, %v2765_v5  ;;  %v1687_v12 = vmul.f32 %v6460_v11, %v1686_v54  ;;  %v1257_v13 = vsel %vm6532_vm2, %v5606_v63, %v5697_v41  ;;  %vm1269_vm3 = vweird.f32 %v5573_v18 }
 0x1db   : > { %v4723_v34 = vpop.eup %4722  ;;  %vm1270_vm4 = vweird.f32 %v5618_v45  ;;  %v2443_v5 = vadd.f32 -0.28449672, %v2379_v32  ;;  %v2380_v3 = vmul.f32 %v2316_v55, %v6429_v19  ;;  %vm1689_vm6 = vweird.f32 %v6417_v17 }
 0x1dc   : > { %v1039_v63 = vmul.f32 0.3275911, %v6523_v6  ;;  %vm1330_vm7 = vweird.f32 %v5780_v16  ;;  %v2125_v41 = vmul.f32 1.0614054, %v6536_v37  ;;  %v1040_v24 = vmul.f32 0.3275911, %v6526_v14 }
 0x1dd   : > { %v6568_v56 = vsel %vm6490_vm13, %v5657_v61, %v1257_v13  ;;  %v1317_v29 = vsel %vm6555_vm5, %v5754_v7, %v5851_v51  ;;  %v3209_v60 = vsel %vm3081_vm14, %v3145_v36, %v3017_v23  ;;  %v1695_v43 = vand.u32 2147483648, %v6417_v17  ;;  %v6582_v55 = vpop.eup %4724  ;;  %vm6630_vm14 = vmor %vm1269_vm3, %vm1270_vm4 }
 0x1de   : > { %v2702_v54 = vmul.f32 %v6365_v4, %v6365_v4  ;;  %v6580_v32 = vand.u32 2147483647, %v6542_v33  ;;  %vm1329_vm8 = vweird.f32 %v5720_v49  ;;  %v2634_v61 = vmul.f32 %v2570_v35, %v6355_v1 }
 0x1df   : > { %v1688_v15 = vadd.f32 %v6460_v11, %v1687_v12  ;;  %vm1690_vm9 = vweird.f32 %v6460_v11  ;;  %v9162_v7 = vand.u32 2147483647, %v5699_v47  ;;  %v2444_v51 = vadd.f32 -0.28449672, %v2380_v3  ;;  %vm6646_vm0 = vmor %vm1329_vm8, %vm1330_vm7 }
 0x1e0   : > { %v6590_v21 = vadd.f32 1.0, %v1039_v63  ;;  %v2097_v23 = vmul.f32 1.0614054, %v6568_v56  ;;  %v2507_v50 = vmul.f32 %v2443_v5, %v6403_v42  ;;  %v2189_v36 = vadd.f32 -1.4531521, %v2125_v41  ;;  %vm6608_vm12 = vmor %vm1689_vm6, %vm1690_vm9 }
 0x1e1   : > { %vm1319_vm10 = vcmp.eq.f32.partialorder %v9162_v7, 8.507059e+37  ;;  %v1693_v1 = vand.u32 2147483647, %v6417_v17  ;;  %v6598_v35 = vadd.f32 1.0, %v1040_v24  ;;  %v9163_v12 = vand.u32 2147483647, %v5573_v18 }
 0x1e2   : > { %v6593_v4 = vsel %vm1319_vm10, %v5783_v40, %v1317_v29  ;;  %4726 = vpow2.f32 %v2863_v10  ;;  %v1041_v13 = vmul.f32 0.3275911, %v6580_v32  ;;  %v2161_v5 = vadd.f32 -1.4531521, %v2097_v23  ;;  %v696_v29 = vpop.f32.mrf.mxu1 }
 0x1e3   : > { %vm6602_vm11 = vcmp.eq.f32.partialorder %v9163_v12, 8.507059e+37  ;;  %v2101_v53 = vmul.f32 1.0614054, %v6593_v4  ;;  %v3273_v3 = vadd.f32 1.0, %v3209_v60  ;;  %4728 = vpow2.f32 %v2865_v20 }
 0x1e4   : > { %v1692_v63 = vsel %vm6608_vm12, %v6460_v11, %v1688_v15  ;;  %v2766_v41 = vsub.f32 0.0, %v2702_v54  ;;  %v2954_v24 = vmul.f32 %v4723_v34, %v2634_v61  ;;  %v2508_v10 = vmul.f32 %v2444_v51, %v6429_v19  ;;  %v9171_v54 = vld [vmem:[#allocation118_spill] sm:$0xff] }
 0x1e5   : > { %v1696_v17 = vor.u32 1.1754944e-38, %v1695_v43  ;;  %4730 = vrcp.f32 %v6590_v21  ;;  %v2571_v7 = vadd.f32 0.2548296, %v2507_v50  ;;  %vm1694_vm13 = vcmp.eq.f32.partialorder %v1693_v1, 8.507059e+37  ;;  %v9174_v1 = vld [vmem:[#allocation34_spill] sm:$0xff] }
 0x1e6   : > { %v2165_v12 = vadd.f32 -1.4531521, %v2101_v53  ;;  %v2225_v30 = vmul.f32 %v2161_v5, %v6568_v56  ;;  %v2253_v60 = vmul.f32 %v2189_v36, %v6536_v37  ;;  %4732 = vrcp.f32 %v6598_v35 }
 0x1e7   : > { %v6621_v20 = vsel %vm1694_vm13, %v1696_v17, %v1692_v63  ;;  %v6624_v11 = vadd.f32 1.0, %v1041_v13  ;;  %v6635_v43 = vmul.f32 %v3273_v3, %v6296_v2  ;;  %vm3082_vm15 = vcmp.lt.f32.partialorder %v9171_v54, 0.0  ;;  %v9175_v63 = vld [vmem:[#allocation70_spill] sm:$0xff] }
 0x1e8   : > { %v2867_v61 = vmul.f32 1.442695, %v2766_v41  ;;  %v6639_v15 = vadd.f32 %v696_v29, %v5215_v59  ;;  %v2229_v51 = vmul.f32 %v2165_v12, %v6593_v4  ;;  %v4727_v23 = vpop.eup %4726  ;;  %v3018_v50 = vsub.f32 1.0, %v2954_v24  ;;  %v9176_v29 = vld [vmem:[#allocation32_spill] sm:$0xff] }
 0x1e9   : > { %9170 = vst [vmem:[#allocation176_spill] sm:$0xff] %v6635_v43  ;;  %v2572_v2 = vadd.f32 0.2548296, %v2508_v10  ;;  %v2289_v36 = vadd.f32 1.4214138, %v2225_v30  ;;  %v1272_v40 = vsel %vm6630_vm14, %v5618_v45, %v9174_v1  ;;  %v6654_v13 = vpop.eup %4728  ;;  %v2635_v53 = vmul.f32 %v2571_v7, %v6403_v42 }
 0x1ea   : > { %v2126_v5 = vmul.f32 1.0614054, %v6621_v20  ;;  %v2293_v3 = vadd.f32 1.4214138, %v2229_v51  ;;  %v1332_v41 = vsel %vm6646_vm0, %v5780_v16, %v9175_v63  ;;  %v2317_v30 = vadd.f32 1.4214138, %v2253_v60 }
 0x1eb   : > { %v6662_v24 = vpop.eup %4730  ;;  %v6665_v10 = vmul.f32 0.5, %v6467_v58  ;;  %4734 = vrcp.f32 %v6624_v11  ;;  %v2353_v45 = vmul.f32 %v2289_v36, %v6568_v56  ;;  %v6670_v42 = vmul.f32 0.70710677, %v6639_v15  ;;  %v9178_v51 = vld [vmem:[#allocation53_spill] sm:$0xff] }
 0x1ec   : > { %v2357_v17 = vmul.f32 %v2293_v3, %v6593_v4  ;;  %v6676_v7 = vsel %vm6602_vm11, %v9176_v29, %v1272_v40  ;;  %v9177_v16 = vand.u32 2147483647, %v5720_v49  ;;  %v6680_v12 = vpop.eup %4732  ;;  %v3146_v58 = vsub.f32 0.0, %v3018_v50 }
 0x1ed   : > { %v2636_v60 = vmul.f32 %v2572_v2, %v6429_v19  ;;  %v2417_v34 = vadd.f32 -0.28449672, %v2353_v45  ;;  %v6687_v36 = vmul.f32 %v6582_v55, %v2635_v53  ;;  %v2190_v1 = vadd.f32 -1.4531521, %v2126_v5 }
 0x1ee   : > { %vm1334_vm1 = vcmp.eq.f32.partialorder %v9177_v16, 8.507059e+37  ;;  %v1700_v47 = vmul.f32 %v6662_v24, %v6590_v21  ;;  %v2421_v40 = vadd.f32 -0.28449672, %v2357_v17  ;;  %v2381_v49 = vmul.f32 %v2317_v30, %v6536_v37  ;;  %v9179_v17 = vld [vmem:[#allocation16_spill] sm:$0xff] }
 0x1ef   : > { %v6684_v18 = vsel %vm1334_vm1, %v9178_v51, %v1332_v41  ;;  %4736 = vpow2.f32 %v2867_v61  ;;  %v2481_v3 = vmul.f32 %v2417_v34, %v6568_v56  ;;  %v2098_v63 = vmul.f32 1.0614054, %v6676_v7 }
 0x1f0   : > { %v1715_v19 = vmul.f32 %v6680_v12, %v6598_v35  ;;  %v6697_v2 = vand.u32 2147483647, %v6670_v42  ;;  %v2485_v55 = vmul.f32 %v2421_v40, %v6593_v4  ;;  %v2102_v53 = vmul.f32 1.0614054, %v6684_v18 }
 0x1f1   : > { %v6701_v5 = vpop.eup %4734  ;;  %v6705_v41 = vsel %vm3082_vm15, %v3146_v58, %v3018_v50  ;;  %v6709_v61 = vmul.f32 %v6523_v6, %v6523_v6  ;;  %v2545_v30 = vadd.f32 0.2548296, %v2481_v3  ;;  %v2162_v45 = vadd.f32 -1.4531521, %v2098_v63  ;;  %v9180_v58 = vld [vmem:[#allocation23_spill] sm:$0xff] }
 0x1f2   : > { %vm3057_vm2 = vcmp.lt.f32.partialorder %v9179_v17, 0.0  ;;  %v6713_v16 = vmul.f32 %v4727_v23, %v2636_v60  ;;  %v2254_v34 = vmul.f32 %v2190_v1, %v6621_v20  ;;  %v1701_v51 = vsub.f32 1.0, %v1700_v47  ;;  %v9181_v1 = vld [vmem:[#allocation31_spill] sm:$0xff] }
 0x1f3   : > { %v2445_v40 = vadd.f32 -0.28449672, %v2381_v49  ;;  %v2549_v43 = vadd.f32 0.2548296, %v2485_v55  ;;  %v2609_v54 = vmul.f32 %v2545_v30, %v6568_v56  ;;  %v2166_v50 = vadd.f32 -1.4531521, %v2102_v53 }
 0x1f4   : > { %vm3061_vm3 = vcmp.lt.f32.partialorder %v9180_v58, 0.0  ;;  %vm1704_vm4 = vweird.f32 %v6590_v21  ;;  %v1708_v6 = vand.u32 2147483647, %v6590_v21  ;;  %v1716_v3 = vsub.f32 1.0, %v1715_v19  ;;  %v9200_v58 = vld [vmem:[#allocation62_spill] sm:$0xff] }
 0x1f5   : > { %v1042_v63 = vmul.f32 0.3275911, %v6697_v2  ;;  %v6721_v29 = vpop.eup %4736  ;;  %v1730_v23 = vmul.f32 %v6701_v5, %v6624_v11  ;;  %v2613_v60 = vmul.f32 %v2549_v43, %v6593_v4  ;;  %v2929_v47 = vmul.f32 %v9181_v1, %v2609_v54 }
 0x1f6   : > { %v2226_v56 = vmul.f32 %v2162_v45, %v6676_v7  ;;  %v2318_v49 = vadd.f32 1.4214138, %v2254_v34  ;;  %v1702_v55 = vmul.f32 %v6662_v24, %v1701_v51  ;;  %v1710_v53 = vand.u32 2147483648, %v6590_v21 }
 0x1f7   : > { %v2230_v19 = vmul.f32 %v2166_v50, %v6684_v18  ;;  %v2509_v30 = vmul.f32 %v2445_v40, %v6536_v37  ;;  %v2933_v38 = vmul.f32 %v9182_v44, %v2613_v60  ;;  %v2993_v52 = vsub.f32 1.0, %v2929_v47 }
 0x1f8   : > { %v2290_v48 = vadd.f32 1.4214138, %v2226_v56  ;;  %vm1705_vm5 = vweird.f32 %v6662_v24  ;;  %vm6734_vm6 = vcmp.eq.f32.partialorder %v1708_v6, 8.507059e+37  ;;  %v1717_v43 = vmul.f32 %v6680_v12, %v1716_v3 }
 0x1f9   : > { %v6739_v45 = vadd.f32 1.0, %v1042_v63  ;;  %v2294_v34 = vadd.f32 1.4214138, %v2230_v19  ;;  %v1731_v51 = vsub.f32 1.0, %v1730_v23  ;;  %v2997_v54 = vsub.f32 1.0, %v2933_v38  ;;  %vm6755_vm8 = vmor %vm1704_vm4, %vm1705_vm5 }
 0x1fa   : > { %v3121_v50 = vsub.f32 0.0, %v2993_v52  ;;  %v2354_v40 = vmul.f32 %v2290_v48, %v6676_v7  ;;  %v1703_v44 = vadd.f32 %v6662_v24, %v1702_v55  ;;  %v1723_v60 = vand.u32 2147483647, %v6598_v35 }
 0x1fb   : > { %v1725_v1 = vand.u32 2147483648, %v6598_v35  ;;  %v2358_v6 = vmul.f32 %v2294_v34, %v6684_v18  ;;  %vm1720_vm7 = vweird.f32 %v6680_v12  ;;  %v3125_v47 = vsub.f32 0.0, %v2997_v54 }
 0x1fc   : > { %v3185_v3 = vsel %vm3057_vm2, %v3121_v50, %v2993_v52  ;;  %v2418_v63 = vadd.f32 -0.28449672, %v2354_v40  ;;  %v1718_v38 = vadd.f32 %v6680_v12, %v1717_v43  ;;  %4738 = vrcp.f32 %v6739_v45  ;;  %v9191_v50 = vld [vmem:[#allocation17_spill] sm:$0xff]  ;;  %v9192_v40 = vld [vmem:[#allocation20_spill] sm:$0xff] }
 0x1fd   : > { %v3249_v48 = vadd.f32 1.0, %v3185_v3  ;;  %v2422_v23 = vadd.f32 -0.28449672, %v2358_v6  ;;  %v1711_v55 = vor.u32 1.1754944e-38, %v1710_v53  ;;  %v1732_v19 = vmul.f32 %v6701_v5, %v1731_v51  ;;  %v9193_v6 = vld [vmem:[#allocation38_spill] sm:$0xff] }
 0x1fe   : > { %v3189_v52 = vsel %vm3061_vm3, %v3125_v47, %v2997_v54  ;;  %v2482_v17 = vmul.f32 %v2418_v63, %v6676_v7  ;;  %v1707_v43 = vsel %vm6755_vm8, %v6662_v24, %v1703_v44  ;;  %vm1719_vm9 = vweird.f32 %v6598_v35  ;;  %v745_v24 = vpop.f32.mrf.mxu2 }
 0x1ff   : > { %v3253_v34 = vadd.f32 1.0, %v3189_v52  ;;  %v2486_v21 = vmul.f32 %v2422_v23, %v6684_v18  ;;  %vm6770_vm10 = vmor %vm1719_vm9, %vm1720_vm7  ;;  %vm6774_vm11 = vcmp.eq.f32.partialorder %v1723_v60, 8.507059e+37  ;;  %v1726_v51 = vor.u32 1.1754944e-38, %v1725_v1  ;;  %v9194_v60 = vld [vmem:[#allocation25_spill] sm:$0xff] }
 0x200   : > { %vm1734_vm12 = vweird.f32 %v6624_v11  ;;  %v2546_v54 = vadd.f32 0.2548296, %v2482_v17  ;;  %vm3058_vm13 = vcmp.lt.f32.partialorder %v9191_v50, 0.0  ;;  %v1722_v35 = vsel %vm6770_vm10, %v6680_v12, %v1718_v38  ;;  %v9195_v12 = vld [vmem:[#allocation125_spill] sm:$0xff] }
 0x201   : > { %v3313_v44 = vmul.f32 %v3249_v48, %v9192_v40  ;;  %v3317_v47 = vmul.f32 %v3253_v34, %v9193_v6  ;;  %v2550_v3 = vadd.f32 0.2548296, %v2486_v21  ;;  %vm3062_vm14 = vcmp.lt.f32.partialorder %v9194_v60, 0.0  ;;  %v9197_v34 = vld [vmem:[#allocation29_spill] sm:$0xff] }
 0x202   : > { %v6788_v1 = vsel %vm6734_vm6, %v1711_v55, %v1707_v43  ;;  %v1733_v63 = vadd.f32 %v6701_v5, %v1732_v19  ;;  %vm1735_vm15 = vweird.f32 %v6701_v5  ;;  %v2610_v23 = vmul.f32 %v2546_v54, %v6676_v7  ;;  %v6793_v56 = vpop.eup %4738  ;;  %v9196_v19 = vld [vmem:[#allocation37_spill] sm:$0xff] }
 0x203   : > { %vm3083_vm0 = vcmp.lt.f32.partialorder %v9195_v12, 0.0  ;;  %v1740_v38 = vand.u32 2147483648, %v6624_v11  ;;  %v3389_v48 = vpack.c.bf16 %v3317_v47, %v3313_v44  ;;  %v2614_v52 = vmul.f32 %v2550_v3, %v6684_v18  ;;  %vm6815_vm2 = vmor %vm1734_vm12, %vm1735_vm15  ;;  %v9211_v12 = vld [vmem:[#allocation21_spill] sm:$0xff] }
 0x204   : > { %v6799_v17 = vadd.f32 %v745_v24, %v5220_v62  ;;  %v2382_v4 = vmul.f32 %v2318_v49, %v6621_v20  ;;  %v6804_v55 = vsel %vm6774_vm11, %v1726_v51, %v1722_v35  ;;  %v1738_v7 = vand.u32 2147483647, %v6624_v11  ;;  %v9201_v35 = vld [vmem:[#allocation22_spill] sm:$0xff]  ;;  %v9202_v11 = vld [vmem:[#allocation131_spill] sm:$0xff] }
 0x205   : > { %v2930_v43 = vmul.f32 %v9196_v19, %v2610_v23  ;;  %vm1285_vm1 = vweird.f32 %v9197_v34  ;;  %v3274_v21 = vadd.f32 1.0, %v6705_v41  ;;  %v2573_v53 = vadd.f32 0.2548296, %v2509_v30  ;;  %3686 = vmatmul.bf16.gmra.mxu0 %v3389_v48 }
 0x206   : > { %v2127_v18 = vmul.f32 1.0614054, %v6788_v1  ;;  %v2934_v51 = vmul.f32 %v9200_v58, %v2614_v52  ;;  %v3020_v54 = vsub.f32 1.0, %v6713_v16  ;;  %v1737_v41 = vsel %vm6815_vm2, %v6701_v5, %v1733_v63  ;;  %v9204_v63 = vld [vmem:[#allocation48_spill] sm:$0xff] }
 0x207   : > { %v1745_v30 = vmul.f32 %v6793_v56, %v6739_v45  ;;  %v2994_v24 = vsub.f32 1.0, %v2930_v43  ;;  %vm1284_vm3 = vweird.f32 %v9201_v35  ;;  %vm3084_vm4 = vcmp.lt.f32.partialorder %v9202_v11, 0.0  ;;  %v649_v11 = vpop.f32.mrf.mxu0 }
 0x208   : > { %v2128_v40 = vmul.f32 1.0614054, %v6804_v55  ;;  %v1741_v44 = vor.u32 1.1754944e-38, %v1740_v38  ;;  %v2998_v6 = vsub.f32 1.0, %v2934_v51  ;;  %v6830_v47 = vmul.f32 0.70710677, %v6799_v17  ;;  %vm6883_vm9 = vmor %vm1284_vm3, %vm1285_vm1 }
 0x209   : > { %v9203_v16 = vsub.f32 1.0, %v6687_v36  ;;  %v2446_v23 = vadd.f32 -0.28449672, %v2382_v4  ;;  %vm1739_vm5 = vcmp.eq.f32.partialorder %v1738_v7, 8.507059e+37  ;;  %v3122_v5 = vsub.f32 0.0, %v2994_v24 }
 0x20a   : > { %vm1345_vm6 = vweird.f32 %v9204_v63  ;;  %v2637_v48 = vmul.f32 %v2573_v53, %v6536_v37  ;;  %v2191_v52 = vadd.f32 -1.4531521, %v2127_v18  ;;  %v6836_v19 = vsel %vm1739_vm5, %v1741_v44, %v1737_v41  ;;  %v9208_v37 = vld [vmem:[#allocation36_spill] sm:$0xff] }
 0x20b   : > { %v3147_v3 = vsub.f32 0.0, %v9203_v16  ;;  %v3126_v43 = vsub.f32 0.0, %v2998_v6  ;;  %v2767_v38 = vsub.f32 0.0, %v6709_v61  ;;  %v6840_v49 = vmul.f32 0.5, %v6475_v27 }
 0x20c   : > { %v1746_v58 = vsub.f32 1.0, %v1745_v30  ;;  %v3186_v51 = vsel %vm3058_vm13, %v3122_v5, %v2994_v24  ;;  %v9205_v4 = vand.u32 2147483647, %v9201_v35  ;;  %vm1344_vm8 = vweird.f32 %v9208_v37 }
 0x20d   : > { %v2192_v53 = vadd.f32 -1.4531521, %v2128_v40  ;;  %v3190_v18 = vsel %vm3062_vm14, %v3126_v43, %v2998_v6  ;;  %v3250_v61 = vadd.f32 1.0, %v3186_v51  ;;  %v6854_v27 = vand.u32 2147483647, %v6830_v47  ;;  %v9212_v51 = vld [vmem:[#allocation44_spill] sm:$0xff]  ;;  %vm6912_vm15 = vmor %vm1344_vm8, %vm1345_vm6 }
 0x20e   : > { %vm6846_vm7 = vcmp.eq.f32.partialorder %v9205_v4, 8.507059e+37  ;;  %v9209_v41 = vmov %v9203_v16  ;;  %v3148_v30 = vsub.f32 0.0, %v3020_v54  ;;  %v2129_v24 = vmul.f32 1.0614054, %v6836_v19  ;;  %v794_v16 = vpop.f32.mrf.mxu3 }
 0x20f   : > { %v3211_v50 = vsel %vm3083_vm0, %v3147_v3, %v9209_v41  ;;  %v3254_v44 = vadd.f32 1.0, %v3190_v18  ;;  %v6862_v5 = vmul.f32 %v3274_v21, %v6446_v46  ;;  %v6865_v60 = vmul.f32 %v6654_v13, %v2637_v48 }
 0x210   : > { %v2510_v40 = vmul.f32 %v2446_v23, %v6621_v20  ;;  %v2255_v6 = vmul.f32 %v2191_v52, %v6788_v1  ;;  %v2869_v43 = vmul.f32 1.442695, %v2767_v38  ;;  %v1747_v36 = vmul.f32 %v6793_v56, %v1746_v58 }
 0x211   : > { %9210 = vst [vmem:[#allocation118_spill] sm:$0xff] %v6862_v5  ;;  %v3314_v3 = vmul.f32 %v3250_v61, %v9211_v12  ;;  %v3318_v4 = vmul.f32 %v3254_v44, %v9212_v51  ;;  %v6872_v41 = vadd.f32 1.0, %v3211_v50  ;;  %v2256_v18 = vmul.f32 %v2192_v53, %v6804_v55  ;;  %v9215_v53 = vld [vmem:[#allocation149_spill] sm:$0xff]  ;;  %v9216_v44 = vld [vmem:[#allocation46_spill] sm:$0xff]  ;;  %v9221_v51 = vld [vmem:[#allocation35_spill] sm:$0xff] }
 0x212   : > { %v1043_v46 = vmul.f32 0.3275911, %v6854_v27  ;;  %v6877_v13 = vadd.f32 %v794_v16, %v5222_v0  ;;  %v3212_v23 = vsel %vm3084_vm4, %v3148_v30, %v3020_v54  ;;  %v2704_v48 = vmul.f32 %v6526_v14, %v6526_v14  ;;  %v9217_v16 = vld [vmem:[#allocation33_spill] sm:$0xff] }
 0x213   : > { %v2193_v52 = vadd.f32 -1.4531521, %v2129_v24  ;;  %v3390_v38 = vpack.c.bf16 %v3318_v4, %v3314_v3  ;;  %v3021_v58 = vsub.f32 1.0, %v6865_v60  ;;  %vm3085_vm10 = vcmp.lt.f32.partialorder %v9215_v53, 0.0 }
 0x214   : > { %v2574_v61 = vadd.f32 0.2548296, %v2510_v40  ;;  %v2319_v50 = vadd.f32 1.4214138, %v2255_v6  ;;  %v1287_v35 = vsel %vm6883_vm9, %v9197_v34, %v9216_v44  ;;  %vm1300_vm11 = vweird.f32 %v9217_v16  ;;  %v9218_v34 = vld [vmem:[#allocation24_spill] sm:$0xff] }
 0x215   : > { %v1748_v54 = vadd.f32 %v6793_v56, %v1747_v36  ;;  %vm1749_vm12 = vweird.f32 %v6739_v45  ;;  %vm1750_vm13 = vweird.f32 %v6793_v56  ;;  %v1755_v14 = vand.u32 2147483648, %v6739_v45  ;;  %3735 = vmatmul.bf16.gmra.mxu1 %v3390_v38 }
 0x216   : > { %v3276_v30 = vadd.f32 1.0, %v3212_v23  ;;  %v2320_v24 = vadd.f32 1.4214138, %v2256_v18  ;;  %v6902_v60 = vadd.f32 1.0, %v1043_v46  ;;  %v6905_v40 = vmul.f32 0.70710677, %v6877_v13  ;;  %vm6931_vm1 = vmor %vm1749_vm12, %vm1750_vm13 }
 0x217   : > { %vm1299_vm14 = vweird.f32 %v9218_v34  ;;  %v2768_v36 = vsub.f32 0.0, %v2704_v48  ;;  %v2257_v12 = vmul.f32 %v2193_v52, %v6836_v19  ;;  %v1753_v3 = vand.u32 2147483647, %v6739_v45  ;;  %v9222_v18 = vld [vmem:[#allocation55_spill] sm:$0xff]  ;;  %v9232_v48 = vld [vmem:[#allocation60_spill] sm:$0xff] }
 0x218   : > { %v6921_v4 = vsel %vm6846_vm7, %v9221_v51, %v1287_v35  ;;  %vm1360_vm0 = vweird.f32 %v9222_v18  ;;  %v3149_v46 = vsub.f32 0.0, %v3021_v58  ;;  %v2638_v21 = vmul.f32 %v2574_v61, %v6621_v20  ;;  %v9225_v61 = vld [vmem:[#allocation72_spill] sm:$0xff]  ;;  %v9226_v45 = vld [vmem:[#allocation43_spill] sm:$0xff]  ;;  %vm6991_vm6 = vmor %vm1299_vm14, %vm1300_vm11 }
 0x219   : > { %v2705_v23 = vmul.f32 %v6580_v32, %v6580_v32  ;;  %v6936_v7 = vadd.f32 %v649_v11, %v5213_v57  ;;  %v2383_v52 = vmul.f32 %v2319_v50, %v6788_v1  ;;  %v1752_v20 = vsel %vm6931_vm1, %v6793_v56, %v1748_v54 }
 0x21a   : > { %v1756_v38 = vor.u32 1.1754944e-38, %v1755_v14  ;;  %v1347_v32 = vsel %vm6912_vm15, %v9204_v63, %v9225_v61  ;;  %vm1359_vm2 = vweird.f32 %v9226_v45  ;;  %v2384_v44 = vmul.f32 %v2320_v24, %v6804_v55 }
 0x21b   : > { %4740 = vrcp.f32 %v6902_v60  ;;  %v6950_v35 = vand.u32 2147483647, %v6905_v40  ;;  %v2099_v50 = vmul.f32 1.0614054, %v6921_v4  ;;  %v9227_v11 = vand.u32 2147483647, %v9218_v34  ;;  %vm7016_vm7 = vmor %vm1359_vm2, %vm1360_vm0 }
 0x21c   : > { %v2871_v54 = vmul.f32 1.442695, %v2768_v36  ;;  %v2321_v14 = vadd.f32 1.4214138, %v2257_v12  ;;  %vm1754_vm4 = vcmp.eq.f32.partialorder %v1753_v3, 8.507059e+37  ;;  %v6962_v24 = vmul.f32 %v6721_v29, %v2638_v21 }
 0x21d   : > { %vm6955_vm3 = vcmp.eq.f32.partialorder %v9227_v11, 8.507059e+37  ;;  %v9230_v63 = vand.u32 2147483647, %v9208_v37  ;;  %v6964_v6 = vsel %vm1754_vm4, %v1756_v38, %v1752_v20  ;;  %v6967_v51 = vmul.f32 0.70710677, %v6936_v7 }
 0x21e   : > { %v3213_v11 = vsel %vm3085_vm10, %v3149_v46, %v3021_v58  ;;  %v2447_v36 = vadd.f32 -0.28449672, %v2383_v52  ;;  %v2769_v12 = vsub.f32 0.0, %v2705_v23  ;;  %4742 = vpow2.f32 %v2869_v43  ;;  %v9237_v52 = vld [vmem:[#allocation49_spill] sm:$0xff]  ;;  %v9241_v43 = vld [vmem:[#allocation78_spill] sm:$0xff] }
 0x21f   : > { %vm1349_vm5 = vcmp.eq.f32.partialorder %v9230_v63, 8.507059e+37  ;;  %9231 = vst [vmem:[#allocation34_spill] sm:$0xff] %v6967_v51  ;;  %v2448_v37 = vadd.f32 -0.28449672, %v2384_v44  ;;  %v1044_v29 = vmul.f32 0.3275911, %v6950_v35  ;;  %v6978_v20 = vmul.f32 %v6872_v41, %v6457_v22 }
 0x220   : > { %v6970_v61 = vsel %vm1349_vm5, %v9232_v48, %v1347_v32  ;;  %v2163_v21 = vadd.f32 -1.4531521, %v2099_v50  ;;  %v6981_v38 = vmul.f32 %v3276_v30, %v6464_v28  ;;  %v2385_v32 = vmul.f32 %v2321_v14, %v6836_v19 }
 0x221   : > { %v2103_v3 = vmul.f32 1.0614054, %v6970_v61  ;;  %9233 = vst [vmem:[#allocation70_spill] sm:$0xff] %v6978_v20  ;;  %v2130_v58 = vmul.f32 1.0614054, %v6964_v6  ;;  %v6985_v53 = vpop.eup %4740  ;;  %v6995_v46 = vadd.f32 1.0, %v3213_v11  ;;  %4744 = vpow2.f32 %v2871_v54  ;;  %v698_v11 = vpop.f32.mrf.mxu1 }
 0x222   : > { %9234 = vst [vmem:[#allocation32_spill] sm:$0xff] %v6981_v38  ;;  %v8943_v22 = vsub.f32 1.0, %v6962_v24  ;;  %v6999_v28 = vand.u32 2147483647, %v6967_v51  ;;  %v2511_v41 = vmul.f32 %v2447_v36, %v6788_v1  ;;  %v2706_v30 = vmul.f32 %v6697_v2, %v6697_v2 }
 0x223   : > { %v2167_v23 = vadd.f32 -1.4531521, %v2103_v3  ;;  %v1302_v34 = vsel %vm6991_vm6, %v9217_v16, %v9237_v52  ;;  %v2512_v44 = vmul.f32 %v2448_v37, %v6804_v55  ;;  %v2873_v50 = vmul.f32 1.442695, %v2769_v12 }
 0x224   : > { %v7009_v14 = vadd.f32 1.0, %v1044_v29  ;;  %v2227_v54 = vmul.f32 %v2163_v21, %v6921_v4  ;;  %v2449_v2 = vadd.f32 -0.28449672, %v2385_v32  ;;  %v2194_v48 = vadd.f32 -1.4531521, %v2130_v58  ;;  %v4743_v12 = vpop.eup %4742  ;;  %v9240_v29 = vld [vmem:[#allocation42_spill] sm:$0xff] }
 0x225   : > { %v1760_v16 = vmul.f32 %v6985_v53, %v6902_v60  ;;  %v2231_v36 = vmul.f32 %v2167_v23, %v6970_v61  ;;  %v1045_v3 = vmul.f32 0.3275911, %v6999_v28  ;;  %v7027_v21 = vsel %vm6955_vm3, %v9240_v29, %v1302_v34  ;;  %v9243_v29 = vld [vmem:[#allocation65_spill] sm:$0xff] }
 0x226   : > { %v2291_v37 = vadd.f32 1.4214138, %v2227_v54  ;;  %v1362_v32 = vsel %vm7016_vm7, %v9222_v18, %v9241_v43  ;;  %vm3086_vm8 = vcmp.lt.f32.partialorder %v6345_v9, 0.0  ;;  %v3150_v58 = vsub.f32 0.0, %v8943_v22 }
 0x227   : > { %v2575_v23 = vadd.f32 0.2548296, %v2511_v41  ;;  %v2770_v52 = vsub.f32 0.0, %v2706_v30  ;;  %v2295_v38 = vadd.f32 1.4214138, %v2231_v36  ;;  %v4745_v20 = vpop.eup %4744  ;;  %4746 = vrcp.f32 %v7009_v14 }
 0x228   : > { %v2576_v54 = vadd.f32 0.2548296, %v2512_v44  ;;  %v7038_v56 = vadd.f32 %v698_v11, %v5215_v59  ;;  %v9242_v34 = vand.u32 2147483647, %v9226_v45  ;;  %v2355_v18 = vmul.f32 %v2291_v37, %v6921_v4 }
 0x229   : > { %v2359_v63 = vmul.f32 %v2295_v38, %v6970_v61  ;;  %v2100_v41 = vmul.f32 1.0614054, %v7027_v21  ;;  %v2513_v30 = vmul.f32 %v2449_v2, %v6836_v19  ;;  %v2258_v44 = vmul.f32 %v2194_v48, %v6964_v6 }
 0x22a   : > { %vm1364_vm9 = vcmp.eq.f32.partialorder %v9242_v34, 8.507059e+37  ;;  %v1761_v36 = vsub.f32 1.0, %v1760_v16  ;;  %v7050_v22 = vadd.f32 1.0, %v1045_v3  ;;  %4748 = vpow2.f32 %v2873_v50 }
 0x22b   : > { %v7045_v43 = vsel %vm1364_vm9, %v9243_v29, %v1362_v32  ;;  %v2419_v11 = vadd.f32 -0.28449672, %v2355_v18  ;;  %v2423_v45 = vadd.f32 -0.28449672, %v2359_v63  ;;  %v2639_v37 = vmul.f32 %v2575_v23, %v6788_v1 }
 0x22c   : > { %v2104_v34 = vmul.f32 1.0614054, %v7045_v43  ;;  %v2640_v38 = vmul.f32 %v2576_v54, %v6804_v55  ;;  %v2875_v32 = vmul.f32 1.442695, %v2770_v52  ;;  %v7056_v29 = vmul.f32 0.70710677, %v7038_v56 }
 0x22d   : > { %v2483_v2 = vmul.f32 %v2419_v11, %v6921_v4  ;;  %v2487_v48 = vmul.f32 %v2423_v45, %v6970_v61  ;;  %v2164_v16 = vadd.f32 -1.4531521, %v2100_v41  ;;  %v7060_v5 = vpop.eup %4746  ;;  %v2577_v50 = vadd.f32 0.2548296, %v2513_v30  ;;  %v9245_v54 = vld [vmem:[#allocation18_spill] sm:$0xff] }
 0x22e   : > { %9244 = vst [vmem:[#allocation53_spill] sm:$0xff] %v7056_v29  ;;  %v2168_v3 = vadd.f32 -1.4531521, %v2104_v34  ;;  %v2322_v18 = vadd.f32 1.4214138, %v2258_v44  ;;  %v1762_v63 = vmul.f32 %v6985_v53, %v1761_v36  ;;  %4750 = vrcp.f32 %v7050_v22  ;;  %v9246_v11 = vld [vmem:[#allocation26_spill] sm:$0xff] }
 0x22f   : > { %v2547_v1 = vadd.f32 0.2548296, %v2483_v2  ;;  %v2551_v55 = vadd.f32 0.2548296, %v2487_v48  ;;  %v2228_v23 = vmul.f32 %v2164_v16, %v7027_v21  ;;  %vm3059_vm10 = vcmp.lt.f32.partialorder %v9245_v54, 0.0  ;;  %v9252_v54 = vld [vmem:[#allocation19_spill] sm:$0xff] }
 0x230   : > { %v2232_v52 = vmul.f32 %v2168_v3, %v7045_v43  ;;  %vm3063_vm11 = vcmp.lt.f32.partialorder %v9246_v11, 0.0  ;;  %v9247_v41 = vsub.f32 1.0, %v6962_v24  ;;  %v7074_v44 = vmul.f32 %v4743_v12, %v2639_v37  ;;  %v4749_v45 = vpop.eup %4748  ;;  %v9248_v37 = vld [vmem:[#allocation41_spill] sm:$0xff] }
 0x231   : > { %4752 = vpow2.f32 %v2875_v32  ;;  %v7077_v36 = vand.u32 2147483647, %v7056_v29  ;;  %v7079_v34 = vmul.f32 %v4745_v20, %v2640_v38  ;;  %v2611_v2 = vmul.f32 %v2547_v1, %v6921_v4  ;;  %v9249_v20 = vld [vmem:[#allocation64_spill] sm:$0xff] }
 0x232   : > { %v7072_v30 = vsel %vm3086_vm8, %v3150_v58, %v9247_v41  ;;  %v2615_v48 = vmul.f32 %v2551_v55, %v6970_v61  ;;  %v2292_v16 = vadd.f32 1.4214138, %v2228_v23  ;;  %v2641_v24 = vmul.f32 %v2577_v50, %v6836_v19 }
 0x233   : > { %v1763_v9 = vadd.f32 %v6985_v53, %v1762_v63  ;;  %vm1765_vm12 = vweird.f32 %v6985_v53  ;;  %v1775_v12 = vmul.f32 %v7060_v5, %v7009_v14  ;;  %v2386_v58 = vmul.f32 %v2322_v18, %v6964_v6 }
 0x234   : > { %v2931_v32 = vmul.f32 %v9248_v37, %v2611_v2  ;;  %v2935_v38 = vmul.f32 %v9249_v20, %v2615_v48  ;;  %v2296_v3 = vadd.f32 1.4214138, %v2232_v52  ;;  %v7091_v4 = vpop.eup %4750  ;;  %vm1764_vm13 = vweird.f32 %v6902_v60 }
 0x235   : > { %v1770_v19 = vand.u32 2147483648, %v6902_v60  ;;  %v1046_v61 = vmul.f32 0.3275911, %v7077_v36  ;;  %v2356_v50 = vmul.f32 %v2292_v16, %v7027_v21  ;;  %vm7097_vm14 = vmor %vm1764_vm13, %vm1765_vm12  ;;  %v1768_v18 = vand.u32 2147483647, %v6902_v60 }
 0x236   : > { %v2995_v1 = vsub.f32 1.0, %v2931_v32  ;;  %v2999_v55 = vsub.f32 1.0, %v2935_v38  ;;  %v2360_v23 = vmul.f32 %v2296_v3, %v7045_v43  ;;  %v7105_v41 = vmul.f32 %v4749_v45, %v2641_v24 }
 0x237   : > { %v7103_v52 = vpop.eup %4752  ;;  %v1767_v2 = vsel %vm7097_vm14, %v6985_v53, %v1763_v9  ;;  %v1776_v48 = vsub.f32 1.0, %v1775_v12  ;;  %v2420_v16 = vadd.f32 -0.28449672, %v2356_v50  ;;  %v1790_v37 = vmul.f32 %v7091_v4, %v7050_v22 }
 0x238   : > { %v3123_v20 = vsub.f32 0.0, %v2995_v1  ;;  %v3127_v29 = vsub.f32 0.0, %v2999_v55  ;;  %v2424_v60 = vadd.f32 -0.28449672, %v2360_v23  ;;  %v2450_v32 = vadd.f32 -0.28449672, %v2386_v58 }
 0x239   : > { %v1771_v38 = vor.u32 1.1754944e-38, %v1770_v19  ;;  %v7112_v51 = vadd.f32 1.0, %v1046_v61  ;;  %v2484_v3 = vmul.f32 %v2420_v16, %v7027_v21  ;;  %vm1769_vm15 = vcmp.eq.f32.partialorder %v1768_v18, 8.507059e+37 }
 0x23a   : > { %v3187_v45 = vsel %vm3059_vm10, %v3123_v20, %v2995_v1  ;;  %v3191_v53 = vsel %vm3063_vm11, %v3127_v29, %v2999_v55  ;;  %v2488_v24 = vmul.f32 %v2424_v60, %v7045_v43  ;;  %v3023_v9 = vsub.f32 1.0, %v7074_v44  ;;  %v9253_v1 = vld [vmem:[#allocation30_spill] sm:$0xff]  ;;  %v9254_v55 = vld [vmem:[#allocation27_spill] sm:$0xff] }
 0x23b   : > { %v7121_v12 = vsel %vm1769_vm15, %v1771_v38, %v1767_v2  ;;  %v1777_v58 = vmul.f32 %v7060_v5, %v1776_v48  ;;  %v3251_v19 = vadd.f32 1.0, %v3187_v45  ;;  %vm3087_vm0 = vcmp.lt.f32.partialorder %v6497_v8, 0.0  ;;  %v9255_v2 = vld [vmem:[#allocation47_spill] sm:$0xff]  ;;  %v9256_v38 = vld [vmem:[#allocation50_spill] sm:$0xff]  ;;  %v9257_v45 = vld [vmem:[#allocation77_spill] sm:$0xff] }
 0x23c   : > { %v1791_v61 = vsub.f32 1.0, %v1790_v37  ;;  %v3255_v50 = vadd.f32 1.0, %v3191_v53  ;;  %v2548_v63 = vadd.f32 0.2548296, %v2484_v3  ;;  %v2552_v18 = vadd.f32 0.2548296, %v2488_v24 }
 0x23d   : > { %vm3060_vm1 = vcmp.lt.f32.partialorder %v9252_v54, 0.0  ;;  %vm3064_vm2 = vcmp.lt.f32.partialorder %v9253_v1, 0.0  ;;  %v3024_v29 = vsub.f32 1.0, %v7079_v34  ;;  %v3025_v11 = vsub.f32 1.0, %v7105_v41 }
 0x23e   : > { %v2514_v44 = vmul.f32 %v2450_v32, %v6964_v6  ;;  %4754 = vrcp.f32 %v7112_v51  ;;  %vm3088_vm3 = vcmp.lt.f32.partialorder %v6503_v25, 0.0  ;;  %v3315_v23 = vmul.f32 %v3251_v19, %v9254_v55 }
 0x23f   : > { %v3319_v48 = vmul.f32 %v3255_v50, %v9255_v2  ;;  %v2612_v16 = vmul.f32 %v2548_v63, %v7027_v21  ;;  %v2616_v37 = vmul.f32 %v2552_v18, %v7045_v43  ;;  %vm3089_vm4 = vcmp.lt.f32.partialorder %v6542_v33, 0.0 }
 0x240   : > { %v2131_v34 = vmul.f32 1.0614054, %v7121_v12  ;;  %v1778_v41 = vadd.f32 %v7060_v5, %v1777_v58  ;;  %vm1780_vm5 = vweird.f32 %v7060_v5  ;;  %v1785_v20 = vand.u32 2147483648, %v7009_v14  ;;  %v9267_v58 = vld [vmem:[#allocation51_spill] sm:$0xff] }
 0x241   : > { %v1792_v60 = vmul.f32 %v7091_v4, %v1791_v61  ;;  %v3391_v32 = vpack.c.bf16 %v3319_v48, %v3315_v23  ;;  %v2932_v3 = vmul.f32 %v9256_v38, %v2612_v16  ;;  %v2936_v53 = vmul.f32 %v9257_v45, %v2616_v37  ;;  %v9261_v48 = vld [vmem:[#allocation66_spill] sm:$0xff]  ;;  %v9262_v45 = vld [vmem:[#allocation88_spill] sm:$0xff] }
 0x242   : > { %v3151_v21 = vsub.f32 0.0, %v3023_v9  ;;  %v2578_v24 = vadd.f32 0.2548296, %v2514_v44  ;;  %vm1779_vm6 = vweird.f32 %v7009_v14  ;;  %v1783_v43 = vand.u32 2147483647, %v7009_v14  ;;  %v9260_v14 = vld [vmem:[#allocation54_spill] sm:$0xff] }
 0x243   : > { %v3152_v19 = vsub.f32 0.0, %v3024_v29  ;;  %v3153_v50 = vsub.f32 0.0, %v3025_v11  ;;  %vm7146_vm7 = vmor %vm1779_vm6, %vm1780_vm5  ;;  %3784 = vmatmul.bf16.gmra.mxu2 %v3391_v32  ;;  %v2996_v63 = vsub.f32 1.0, %v2932_v3  ;;  %v3000_v61 = vsub.f32 1.0, %v2936_v53  ;;  %v747_v3 = vpop.f32.mrf.mxu2 }
 0x244   : > { %v7150_v18 = vpop.eup %4754  ;;  %v2195_v55 = vadd.f32 -1.4531521, %v2131_v34  ;;  %v1782_v44 = vsel %vm7146_vm7, %v7060_v5, %v1778_v41  ;;  %v1786_v23 = vor.u32 1.1754944e-38, %v1785_v20  ;;  %v1800_v2 = vand.u32 2147483648, %v7050_v22 }
 0x245   : > { %vm1374_vm8 = vweird.f32 %v9260_v14  ;;  %vm1375_vm9 = vweird.f32 %v9261_v48  ;;  %v1793_v16 = vadd.f32 %v7091_v4, %v1792_v60  ;;  %vm1795_vm10 = vweird.f32 %v7091_v4 }
 0x246   : > { %v3124_v37 = vsub.f32 0.0, %v2996_v63  ;;  %v3128_v32 = vsub.f32 0.0, %v3000_v61  ;;  %v3215_v34 = vsel %vm3087_vm0, %v3151_v21, %v3023_v9  ;;  %v2642_v38 = vmul.f32 %v2578_v24, %v6964_v6 }
 0x247   : > { %vm1784_vm11 = vcmp.eq.f32.partialorder %v1783_v43, 8.507059e+37  ;;  %vm1794_vm12 = vweird.f32 %v7050_v22  ;;  %v1798_v41 = vand.u32 2147483647, %v7050_v22  ;;  %vm1435_vm13 = vweird.f32 %v9262_v45  ;;  %v9266_v43 = vld [vmem:[#allocation28_spill] sm:$0xff] }
 0x248   : > { %v7164_v5 = vsel %vm1784_vm11, %v1786_v23, %v1782_v44  ;;  %v3188_v20 = vsel %vm3060_vm1, %v3124_v37, %v2996_v63  ;;  %v3192_v60 = vsel %vm3064_vm2, %v3128_v32, %v3000_v61  ;;  %v3216_v8 = vsel %vm3088_vm3, %v3152_v19, %v3024_v29  ;;  %vm7174_vm14 = vmor %vm1794_vm12, %vm1795_vm10  ;;  %v9265_v29 = vld [vmem:[#allocation76_spill] sm:$0xff] }
 0x249   : > { %v1805_v9 = vmul.f32 %v7150_v18, %v7112_v51  ;;  %v3252_v22 = vadd.f32 1.0, %v3188_v20  ;;  %v3256_v53 = vadd.f32 1.0, %v3192_v60  ;;  %v3217_v54 = vsel %vm3089_vm4, %v3153_v50, %v3025_v11  ;;  %vm7225_vm3 = vmor %vm1374_vm8, %vm1375_vm9 }
 0x24a   : > { %v2259_v1 = vmul.f32 %v2195_v55, %v7121_v12  ;;  %v1797_v21 = vsel %vm7174_vm14, %v7091_v4, %v1793_v16  ;;  %v1801_v25 = vor.u32 1.1754944e-38, %v1800_v2  ;;  %vm1434_vm15 = vweird.f32 %v9265_v29 }
 0x24b   : > { %v2132_v24 = vmul.f32 1.0614054, %v7164_v5  ;;  %v3316_v19 = vmul.f32 %v3252_v22, %v9266_v43  ;;  %v3320_v63 = vmul.f32 %v3256_v53, %v9267_v58  ;;  %v7191_v61 = vadd.f32 %v747_v3, %v5220_v62  ;;  %v796_v3 = vpop.f32.mrf.mxu3  ;;  %v9278_v22 = vld [vmem:[#allocation91_spill] sm:$0xff]  ;;  %vm7260_vm4 = vmor %vm1434_vm15, %vm1435_vm13  ;;  %v9282_v43 = vld [vmem:[#allocation69_spill] sm:$0xff] }
 0x24c   : > { %v9268_v33 = vand.u32 2147483647, %v9260_v14  ;;  %v3278_v4 = vadd.f32 1.0, %v7072_v30  ;;  %v849_v50 = vmul.f32 0.5, %v6515_v26  ;;  %v2962_v55 = vmul.f32 %v7103_v52, %v2642_v38 }
 0x24d   : > { %vm1799_vm1 = vcmp.eq.f32.partialorder %v1798_v41, 8.507059e+37  ;;  %v3279_v44 = vadd.f32 1.0, %v3215_v34  ;;  %v1806_v2 = vsub.f32 1.0, %v1805_v9  ;;  %v3392_v16 = vpack.c.bf16 %v3320_v63, %v3316_v19  ;;  %v9283_v63 = vld [vmem:[#allocation73_spill] sm:$0xff] }
 0x24e   : > { %vm7195_vm0 = vcmp.eq.f32.partialorder %v9268_v33, 8.507059e+37  ;;  %v7202_v23 = vsel %vm1799_vm1, %v1801_v25, %v1797_v21  ;;  %v3280_v37 = vadd.f32 1.0, %v3216_v8  ;;  %v3281_v32 = vadd.f32 1.0, %v3217_v54 }
 0x24f   : > { %v7205_v20 = vmul.f32 0.5, %v6639_v15  ;;  %v2323_v60 = vadd.f32 1.4214138, %v2259_v1  ;;  %v7209_v30 = vmul.f32 %v6995_v46, %v6472_v39  ;;  %v2707_v26 = vmul.f32 %v6854_v27, %v6854_v27  ;;  %3833 = vmatmul.bf16.gmra.mxu3 %v3392_v16 }
 0x250   : > { %v2196_v52 = vadd.f32 -1.4531521, %v2132_v24  ;;  %v7214_v34 = vmul.f32 0.70710677, %v7191_v61  ;;  %v7217_v38 = vmul.f32 %v3278_v4, %v6539_v31  ;;  %v3026_v41 = vsub.f32 1.0, %v2962_v55  ;;  %v9281_v24 = vld [vmem:[#allocation56_spill] sm:$0xff] }
 0x251   : > { %9271 = vst [vmem:[#allocation16_spill] sm:$0xff] %v7209_v30  ;;  %vm3090_vm2 = vcmp.lt.f32.partialorder %v6670_v42, 0.0  ;;  %v2133_v15 = vmul.f32 1.0614054, %v7202_v23  ;;  %v7230_v27 = vmul.f32 %v3279_v44, %v6665_v10  ;;  %v7233_v46 = vmul.f32 0.5, %v6799_v17  ;;  %v9284_v4 = vld [vmem:[#allocation112_spill] sm:$0xff] }
 0x252   : > { %9272 = vst [vmem:[#allocation23_spill] sm:$0xff] %v7217_v38  ;;  %v1807_v31 = vmul.f32 %v7150_v18, %v1806_v2  ;;  %v7237_v8 = vadd.f32 %v796_v3, %v5222_v0  ;;  %v7240_v6 = vmul.f32 %v3280_v37, %v6840_v49  ;;  %v7242_v9 = vmul.f32 %v3281_v32, %v849_v50  ;;  %v652_v49 = vpop.f32.mrf.mxu0  ;;  %v9285_v50 = vld [vmem:[#allocation96_spill] sm:$0xff] }
 0x253   : > { %9275 = vst [vmem:[#allocation31_spill] sm:$0xff] %v7230_v27  ;;  %v2387_v14 = vmul.f32 %v2323_v60, %v7121_v12  ;;  %v1377_v10 = vsel %vm7225_vm3, %v9261_v48, %v9278_v22  ;;  %v2771_v53 = vsub.f32 0.0, %v2707_v26  ;;  %v7250_v17 = vmul.f32 0.5, %v6877_v13  ;;  %v9287_v60 = vld [vmem:[#allocation82_spill] sm:$0xff] }
 0x254   : > { %9276 = vst [vmem:[#allocation57_spill] sm:$0xff] %v7240_v6  ;;  %v2260_v54 = vmul.f32 %v2196_v52, %v7164_v5  ;;  %v7254_v1 = vand.u32 2147483647, %v7214_v34  ;;  %v3154_v25 = vsub.f32 0.0, %v3026_v41  ;;  %v2708_v48 = vmul.f32 %v6950_v35, %v6950_v35  ;;  %v9290_v52 = vld [vmem:[#allocation101_spill] sm:$0xff] }
 0x255   : > { %9277 = vst [vmem:[#allocation17_spill] sm:$0xff] %v7242_v9  ;;  %v2197_v13 = vadd.f32 -1.4531521, %v2133_v15  ;;  %vm1810_vm5 = vweird.f32 %v7150_v18  ;;  %vm1389_vm6 = vweird.f32 %v9281_v24  ;;  %vm1390_vm7 = vweird.f32 %v9282_v43 }
 0x256   : > { %v1808_v19 = vadd.f32 %v7150_v18, %v1807_v31  ;;  %v7271_v58 = vmul.f32 0.70710677, %v7237_v8  ;;  %v7276_v33 = vsel %vm7195_vm0, %v9283_v63, %v1377_v10  ;;  %v1437_v35 = vsel %vm7260_vm4, %v9262_v45, %v9284_v4  ;;  %vm7351_vm15 = vmor %vm1389_vm6, %vm1390_vm7 }
 0x257   : > { %vm1450_vm8 = vweird.f32 %v9285_v50  ;;  %v2451_v55 = vadd.f32 -0.28449672, %v2387_v14  ;;  %v1813_v44 = vand.u32 2147483647, %v7112_v51  ;;  %v1815_v2 = vand.u32 2147483648, %v7112_v51  ;;  %v701_v14 = vpop.f32.mrf.mxu1 }
 0x258   : > { %v7286_v16 = vadd.f32 %v652_v49, %v5213_v57  ;;  %v2324_v37 = vadd.f32 1.4214138, %v2260_v54  ;;  %vm1809_vm9 = vweird.f32 %v7112_v51  ;;  %v1047_v11 = vmul.f32 0.3275911, %v7254_v1 }
 0x259   : > { %v9286_v32 = vand.u32 2147483647, %v9265_v29  ;;  %vm1449_vm11 = vweird.f32 %v9287_v60  ;;  %v2877_v45 = vmul.f32 1.442695, %v2771_v53  ;;  %v7294_v3 = vmul.f32 0.5, %v6936_v7  ;;  %vm7298_vm12 = vmor %vm1809_vm9, %vm1810_vm5 }
 0x25a   : > { %v2105_v51 = vmul.f32 1.0614054, %v7276_v33  ;;  %v3218_v29 = vsel %vm3090_vm2, %v3154_v25, %v3026_v41  ;;  %v2261_v39 = vmul.f32 %v2197_v13, %v7202_v23  ;;  %v1812_v7 = vsel %vm7298_vm12, %v7150_v18, %v1808_v19  ;;  %vm7364_vm0 = vmor %vm1449_vm11, %vm1450_vm8 }
 0x25b   : > { %vm1439_vm10 = vcmp.eq.f32.partialorder %v9286_v32, 8.507059e+37  ;;  %v7313_v31 = vand.u32 2147483647, %v7271_v58  ;;  %v9291_v22 = vand.u32 2147483647, %v9281_v24  ;;  %v2772_v53 = vsub.f32 0.0, %v2708_v48 }
 0x25c   : > { %v7303_v15 = vsel %vm1439_vm10, %v9290_v52, %v1437_v35  ;;  %vm1814_vm14 = vcmp.eq.f32.partialorder %v1813_v44, 8.507059e+37  ;;  %v1816_v42 = vor.u32 1.1754944e-38, %v1815_v2  ;;  %v7322_v41 = vmul.f32 0.70710677, %v7286_v16 }
 0x25d   : > { %vm7317_vm13 = vcmp.eq.f32.partialorder %v9291_v22, 8.507059e+37  ;;  %v2515_v54 = vmul.f32 %v2451_v55, %v7121_v12  ;;  %v2388_v18 = vmul.f32 %v2324_v37, %v7164_v5  ;;  %v7326_v49 = vadd.f32 1.0, %v1047_v11 }
 0x25e   : > { %v2109_v21 = vmul.f32 1.0614054, %v7303_v15  ;;  %v2709_v25 = vmul.f32 %v6999_v28, %v6999_v28  ;;  %v7331_v13 = vsel %vm1814_vm14, %v1816_v42, %v1812_v7  ;;  %v7334_v48 = vadd.f32 %v701_v14, %v5215_v59  ;;  %v9298_v14 = vld [vmem:[#allocation93_spill] sm:$0xff] }
 0x25f   : > { %v2169_v19 = vadd.f32 -1.4531521, %v2105_v51  ;;  %4756 = vpow2.f32 %v2877_v45  ;;  %v2325_v63 = vadd.f32 1.4214138, %v2261_v39  ;;  %v1048_v4 = vmul.f32 0.3275911, %v7313_v31 }
 0x260   : > { %v2173_v35 = vadd.f32 -1.4531521, %v2109_v21  ;;  %v7337_v55 = vadd.f32 1.0, %v3218_v29  ;;  %v2879_v44 = vmul.f32 1.442695, %v2772_v53  ;;  %v7340_v2 = vmul.f32 0.5, %v7038_v56 }
 0x261   : > { %v7343_v37 = vand.u32 2147483647, %v7322_v41  ;;  %v2579_v28 = vadd.f32 0.2548296, %v2515_v54  ;;  %v2452_v11 = vadd.f32 -0.28449672, %v2388_v18  ;;  %4758 = vrcp.f32 %v7326_v49 }
 0x262   : > { %v2134_v32 = vmul.f32 1.0614054, %v7331_v13  ;;  %v2773_v26 = vsub.f32 0.0, %v2709_v25  ;;  %v7356_v56 = vmul.f32 0.70710677, %v7334_v48  ;;  %v2233_v52 = vmul.f32 %v2169_v19, %v7276_v33  ;;  %v9299_v18 = vld [vmem:[#allocation119_spill] sm:$0xff] }
 0x263   : > { %v2237_v51 = vmul.f32 %v2173_v35, %v7303_v15  ;;  %v2389_v24 = vmul.f32 %v2325_v63, %v7202_v23  ;;  %v2710_v39 = vmul.f32 %v7077_v36, %v7077_v36  ;;  %v7371_v7 = vadd.f32 1.0, %v1048_v4  ;;  %v9300_v4 = vld [vmem:[#allocation79_spill] sm:$0xff] }
 0x264   : > { %v1392_v22 = vsel %vm7351_vm15, %v9282_v43, %v9298_v14  ;;  %v1049_v53 = vmul.f32 0.3275911, %v7343_v37  ;;  %v2297_v42 = vadd.f32 1.4214138, %v2233_v52  ;;  %v1452_v21 = vsel %vm7364_vm0, %v9285_v50, %v9299_v18 }
 0x265   : > { %v2301_v54 = vadd.f32 1.4214138, %v2237_v51  ;;  %v4757_v25 = vpop.eup %4756  ;;  %v2643_v19 = vmul.f32 %v2579_v28, %v7121_v12  ;;  %v2516_v36 = vmul.f32 %v2452_v11, %v7164_v5  ;;  %v2198_v63 = vadd.f32 -1.4531521, %v2134_v32  ;;  %v9302_v28 = vld [vmem:[#allocation103_spill] sm:$0xff] }
 0x266   : > { %v7387_v35 = vsel %vm7317_vm13, %v9300_v4, %v1392_v22  ;;  %v7390_v43 = vand.u32 2147483647, %v7356_v56  ;;  %v2361_v45 = vmul.f32 %v2297_v42, %v7276_v33  ;;  %v9301_v50 = vand.u32 2147483647, %v9287_v60 }
 0x267   : > { %v2365_v52 = vmul.f32 %v2301_v54, %v7303_v15  ;;  %v7396_v51 = vpop.eup %4758  ;;  %v2453_v12 = vadd.f32 -0.28449672, %v2389_v24  ;;  %4760 = vrcp.f32 %v7371_v7  ;;  %v2106_v10 = vmul.f32 1.0614054, %v7387_v35 }
 0x268   : > { %vm1454_vm1 = vcmp.eq.f32.partialorder %v9301_v50, 8.507059e+37  ;;  %4762 = vpow2.f32 %v2879_v44  ;;  %v7403_v32 = vadd.f32 1.0, %v1049_v53  ;;  %v2425_v29 = vadd.f32 -0.28449672, %v2361_v45 }
 0x269   : > { %v7400_v11 = vsel %vm1454_vm1, %v9302_v28, %v1452_v21  ;;  %v2429_v14 = vadd.f32 -0.28449672, %v2365_v52  ;;  %v2881_v22 = vmul.f32 1.442695, %v2773_v26  ;;  %v2262_v42 = vmul.f32 %v2198_v63, %v7331_v13  ;;  %v9303_v28 = vld [vmem:[#allocation39_spill] sm:$0xff] }
 0x26a   : > { %v2774_v60 = vsub.f32 0.0, %v2710_v39  ;;  %v2110_v54 = vmul.f32 1.0614054, %v7400_v11  ;;  %v1820_v24 = vmul.f32 %v7396_v51, %v7326_v49  ;;  %v1050_v18 = vmul.f32 0.3275911, %v7390_v43 }
 0x26b   : > { %v2489_v21 = vmul.f32 %v2425_v29, %v7276_v33  ;;  %v2493_v4 = vmul.f32 %v2429_v14, %v7303_v15  ;;  %v7412_v44 = vmul.f32 %v4757_v25, %v2643_v19  ;;  %v2580_v53 = vadd.f32 0.2548296, %v2516_v36  ;;  %v9304_v36 = vld [vmem:[#allocation58_spill] sm:$0xff] }
 0x26c   : > { %v2170_v45 = vadd.f32 -1.4531521, %v2106_v10  ;;  %v2174_v52 = vadd.f32 -1.4531521, %v2110_v54  ;;  %v2517_v26 = vmul.f32 %v2453_v12, %v7202_v23  ;;  %4764 = vrcp.f32 %v7403_v32 }
 0x26d   : > { %v2553_v39 = vadd.f32 0.2548296, %v2489_v21  ;;  %v2557_v63 = vadd.f32 0.2548296, %v2493_v4  ;;  %v7416_v50 = vpop.eup %4760  ;;  %vm3065_vm2 = vcmp.lt.f32.partialorder %v9303_v28, 0.0  ;;  %vm3069_vm3 = vcmp.lt.f32.partialorder %v9304_v36, 0.0 }
 0x26e   : > { %v2326_v6 = vadd.f32 1.4214138, %v2262_v42  ;;  %v2883_v9 = vmul.f32 1.442695, %v2774_v60  ;;  %v2234_v29 = vmul.f32 %v2170_v45, %v7387_v35  ;;  %v2238_v25 = vmul.f32 %v2174_v52, %v7400_v11  ;;  %v4763_v19 = vpop.eup %4762  ;;  %v9305_v52 = vld [vmem:[#allocation85_spill] sm:$0xff] }
 0x26f   : > { %4766 = vpow2.f32 %v2881_v22  ;;  %v1821_v10 = vsub.f32 1.0, %v1820_v24  ;;  %v7422_v12 = vadd.f32 1.0, %v1050_v18  ;;  %v2617_v14 = vmul.f32 %v2553_v39, %v7276_v33  ;;  %v9306_v24 = vld [vmem:[#allocation110_spill] sm:$0xff] }
 0x270   : > { %v8948_v54 = vsub.f32 1.0, %v7412_v44  ;;  %v2644_v21 = vmul.f32 %v2580_v53, %v7164_v5  ;;  %v2621_v42 = vmul.f32 %v2557_v63, %v7303_v15  ;;  %v2298_v60 = vadd.f32 1.4214138, %v2234_v29 }
 0x271   : > { %v2581_v4 = vadd.f32 0.2548296, %v2517_v26  ;;  %v1835_v45 = vmul.f32 %v7416_v50, %v7371_v7  ;;  %v2937_v27 = vmul.f32 %v9305_v52, %v2617_v14  ;;  %v2302_v38 = vadd.f32 1.4214138, %v2238_v25 }
 0x272   : > { %v2390_v22 = vmul.f32 %v2326_v6, %v7331_v13  ;;  %4768 = vpow2.f32 %v2883_v9  ;;  %v2941_v18 = vmul.f32 %v9306_v24, %v2621_v42  ;;  %v2362_v33 = vmul.f32 %v2298_v60, %v7387_v35  ;;  %v7434_v39 = vpop.eup %4764 }
 0x273   : > { %v1822_v5 = vmul.f32 %v7396_v51, %v1821_v10  ;;  %4770 = vrcp.f32 %v7422_v12  ;;  %v3001_v15 = vsub.f32 1.0, %v2937_v27  ;;  %v2366_v53 = vmul.f32 %v2302_v38, %v7400_v11 }
 0x274   : > { %v7441_v26 = vsub.f32 0.0, %v8948_v54  ;;  %v7443_v63 = vmul.f32 %v4763_v19, %v2644_v21  ;;  %v3005_v6 = vsub.f32 1.0, %v2941_v18  ;;  %v2426_v9 = vadd.f32 -0.28449672, %v2362_v33 }
 0x275   : > { %v4767_v29 = vpop.eup %4766  ;;  %v2645_v25 = vmul.f32 %v2581_v4, %v7202_v23  ;;  %v1836_v14 = vsub.f32 1.0, %v1835_v45  ;;  %v3129_v42 = vsub.f32 0.0, %v3001_v15  ;;  %v2430_v60 = vadd.f32 -0.28449672, %v2366_v53 }
 0x276   : > { %v2454_v10 = vadd.f32 -0.28449672, %v2390_v22  ;;  %vm1825_vm4 = vweird.f32 %v7396_v51  ;;  %v1850_v38 = vmul.f32 %v7434_v39, %v7403_v32  ;;  %v3133_v27 = vsub.f32 0.0, %v3005_v6 }
 0x277   : > { %v1823_v52 = vadd.f32 %v7396_v51, %v1822_v5  ;;  %v3193_v19 = vsel %vm3065_vm2, %v3129_v42, %v3001_v15  ;;  %v2490_v21 = vmul.f32 %v2426_v9, %v7387_v35  ;;  %v2494_v24 = vmul.f32 %v2430_v60, %v7400_v11  ;;  %v9309_v42 = vld [vmem:[#allocation40_spill] sm:$0xff] }
 0x278   : > { %v7454_v23 = vpop.eup %4768  ;;  %vm1824_vm5 = vweird.f32 %v7326_v49  ;;  %v1828_v4 = vand.u32 2147483647, %v7326_v49  ;;  %v1830_v45 = vand.u32 2147483648, %v7326_v49  ;;  %v3197_v22 = vsel %vm3069_vm3, %v3133_v27, %v3005_v6  ;;  %v9312_v27 = vld [vmem:[#allocation86_spill] sm:$0xff] }
 0x279   : > { %v7461_v18 = vpop.eup %4770  ;;  %v1837_v28 = vmul.f32 %v7416_v50, %v1836_v14  ;;  %v3257_v33 = vadd.f32 1.0, %v3193_v19  ;;  %v3261_v5 = vadd.f32 1.0, %v3197_v22  ;;  %v2554_v15 = vadd.f32 0.2548296, %v2490_v21  ;;  %vm7470_vm7 = vmor %vm1824_vm5, %vm1825_vm4  ;;  %v9310_v14 = vld [vmem:[#allocation63_spill] sm:$0xff]  ;;  %v9313_v49 = vld [vmem:[#allocation90_spill] sm:$0xff] }
 0x27a   : > { %vm3091_vm6 = vcmp.lt.f32.partialorder %v6830_v47, 0.0  ;;  %v7465_v53 = vmul.f32 %v4767_v29, %v2645_v25  ;;  %v2518_v9 = vmul.f32 %v2454_v10, %v7331_v13  ;;  %v1851_v36 = vsub.f32 1.0, %v1850_v38  ;;  %v9311_v25 = vld [vmem:[#allocation61_spill] sm:$0xff] }
 0x27b   : > { %v2558_v6 = vadd.f32 0.2548296, %v2494_v24  ;;  %vm3066_vm8 = vcmp.lt.f32.partialorder %v9309_v42, 0.0  ;;  %vm3070_vm9 = vcmp.lt.f32.partialorder %v9310_v14, 0.0  ;;  %v1827_v60 = vsel %vm7470_vm7, %v7396_v51, %v1823_v52 }
 0x27c   : > { %v1845_v29 = vand.u32 2147483648, %v7371_v7  ;;  %v3321_v10 = vmul.f32 %v3257_v33, %v9311_v25  ;;  %v3325_v19 = vmul.f32 %v3261_v5, %v9312_v27  ;;  %v1831_v21 = vor.u32 1.1754944e-38, %v1830_v45  ;;  %v9314_v45 = vld [vmem:[#allocation114_spill] sm:$0xff]  ;;  %v750_v27 = vpop.f32.mrf.mxu2 }
 0x27d   : > { %v1865_v22 = vmul.f32 %v7461_v18, %v7422_v12  ;;  %v2618_v38 = vmul.f32 %v2554_v15, %v7387_v35  ;;  %v2622_v24 = vmul.f32 %v2558_v6, %v7400_v11  ;;  %vm1829_vm10 = vcmp.eq.f32.partialorder %v1828_v4, 8.507059e+37  ;;  %v9323_v4 = vld [vmem:[#allocation87_spill] sm:$0xff] }
 0x27e   : > { %v1838_v54 = vadd.f32 %v7416_v50, %v1837_v28  ;;  %vm1840_vm11 = vweird.f32 %v7416_v50  ;;  %v3393_v51 = vpack.c.bf16 %v3325_v19, %v3321_v10  ;;  %v7488_v52 = vsel %vm1829_vm10, %v1831_v21, %v1827_v60  ;;  %v9317_v21 = vld [vmem:[#allocation75_spill] sm:$0xff] }
 0x27f   : > { %v1852_v33 = vmul.f32 %v7434_v39, %v1851_v36  ;;  %v2938_v5 = vmul.f32 %v9313_v49, %v2618_v38  ;;  %v2942_v25 = vmul.f32 %v9314_v45, %v2622_v24  ;;  %v2582_v30 = vadd.f32 0.2548296, %v2518_v9 }
 0x280   : > { %vm1839_vm12 = vweird.f32 %v7371_v7  ;;  %v1843_v35 = vand.u32 2147483647, %v7371_v7  ;;  %v1846_v11 = vor.u32 1.1754944e-38, %v1845_v29  ;;  %3691 = vmatmul.bf16.gmra.mxu0 %v3393_v51  ;;  %vm1854_vm14 = vweird.f32 %v7403_v32 }
 0x281   : > { %vm7495_vm13 = vmor %vm1839_vm12, %vm1840_vm11  ;;  %v1866_v28 = vsub.f32 1.0, %v1865_v22  ;;  %v3002_v15 = vsub.f32 1.0, %v2938_v5  ;;  %v3006_v36 = vsub.f32 1.0, %v2942_v25  ;;  %v2135_v6 = vmul.f32 1.0614054, %v7488_v52  ;;  %v9319_v5 = vld [vmem:[#allocation59_spill] sm:$0xff] }
 0x282   : > { %v1842_v9 = vsel %vm7495_vm13, %v7416_v50, %v1838_v54  ;;  %v1860_v60 = vand.u32 2147483648, %v7403_v32  ;;  %v7506_v7 = vadd.f32 %v750_v27, %v5220_v62  ;;  %v1853_v29 = vadd.f32 %v7434_v39, %v1852_v33 }
 0x283   : > { %vm1855_vm15 = vweird.f32 %v7434_v39  ;;  %v3130_v10 = vsub.f32 0.0, %v3002_v15  ;;  %v3134_v19 = vsub.f32 0.0, %v3006_v36  ;;  %vm1405_vm0 = vweird.f32 %v9317_v21 }
 0x284   : > { %v9318_v22 = vsub.f32 1.0, %v7412_v44  ;;  %v3028_v50 = vsub.f32 1.0, %v7443_v63  ;;  %vm1844_vm1 = vcmp.eq.f32.partialorder %v1843_v35, 8.507059e+37  ;;  %v1858_v54 = vand.u32 2147483647, %v7403_v32  ;;  %v654_v44 = vpop.f32.mrf.mxu0  ;;  %vm7532_vm4 = vmor %vm1854_vm14, %vm1855_vm15  ;;  %v9322_v32 = vld [vmem:[#allocation67_spill] sm:$0xff] }
 0x285   : > { %v7518_v24 = vsel %vm1844_vm1, %v1846_v11, %v1842_v9  ;;  %v1867_v51 = vmul.f32 %v7461_v18, %v1866_v28  ;;  %v3194_v33 = vsel %vm3066_vm8, %v3130_v10, %v3002_v15  ;;  %v3198_v49 = vsel %vm3070_vm9, %v3134_v19, %v3006_v36  ;;  %v799_v10 = vpop.f32.mrf.mxu3 }
 0x286   : > { %v3219_v38 = vsel %vm3091_vm6, %v7441_v26, %v9318_v22  ;;  %vm1404_vm2 = vweird.f32 %v9319_v5  ;;  %vm3092_vm3 = vcmp.lt.f32.partialorder %v6905_v40, 0.0  ;;  %v3029_v47 = vsub.f32 1.0, %v7465_v53  ;;  %v9328_v22 = vld [vmem:[#allocation34_spill] sm:$0xff] }
 0x287   : > { %v3258_v63 = vadd.f32 1.0, %v3194_v33  ;;  %v3262_v42 = vadd.f32 1.0, %v3198_v49  ;;  %v7537_v14 = vmul.f32 0.70710677, %v7506_v7  ;;  %v2646_v45 = vmul.f32 %v2582_v30, %v7331_v13  ;;  %v9327_v13 = vld [vmem:[#allocation104_spill] sm:$0xff]  ;;  %vm7601_vm13 = vmor %vm1404_vm2, %vm1405_vm0 }
 0x288   : > { %v2199_v25 = vadd.f32 -1.4531521, %v2135_v6  ;;  %v1857_v53 = vsel %vm7532_vm4, %v7434_v39, %v1853_v29  ;;  %v1861_v27 = vor.u32 1.1754944e-38, %v1860_v60  ;;  %v2136_v35 = vmul.f32 1.0614054, %v7518_v24  ;;  %v9329_v33 = vld [vmem:[#allocation92_spill] sm:$0xff] }
 0x289   : > { %v3322_v11 = vmul.f32 %v3258_v63, %v9322_v32  ;;  %v3326_v28 = vmul.f32 %v3262_v42, %v9323_v4  ;;  %v7547_v15 = vadd.f32 %v654_v44, %v5213_v57  ;;  %v9324_v36 = vand.u32 2147483647, %v9319_v5  ;;  %v9336_v5 = vld [vmem:[#allocation97_spill] sm:$0xff] }
 0x28a   : > { %vm1859_vm6 = vcmp.eq.f32.partialorder %v1858_v54, 8.507059e+37  ;;  %v1868_v30 = vadd.f32 %v7461_v18, %v1867_v51  ;;  %vm1869_vm7 = vweird.f32 %v7422_v12  ;;  %vm1870_vm8 = vweird.f32 %v7461_v18 }
 0x28b   : > { %vm7551_vm5 = vcmp.eq.f32.partialorder %v9324_v36, 8.507059e+37  ;;  %vm1465_vm9 = vweird.f32 %v9327_v13  ;;  %v7559_v39 = vsel %vm1859_vm6, %v1861_v27, %v1857_v53  ;;  %v1875_v6 = vand.u32 2147483648, %v7422_v12  ;;  %vm7577_vm12 = vmor %vm1869_vm7, %vm1870_vm8  ;;  %v9337_v36 = vld [vmem:[#allocation84_spill] sm:$0xff] }
 0x28c   : > { %v3394_v60 = vpack.c.bf16 %v3326_v28, %v3322_v11  ;;  %v7563_v29 = vand.u32 2147483647, %v7537_v14  ;;  %v3156_v19 = vsub.f32 0.0, %v3028_v50  ;;  %vm3093_vm10 = vcmp.lt.f32.partialorder %v9328_v22, 0.0  ;;  %v9343_v22 = vld [vmem:[#allocation113_spill] sm:$0xff] }
 0x28d   : > { %v2263_v54 = vmul.f32 %v2199_v25, %v7488_v52  ;;  %v1873_v51 = vand.u32 2147483647, %v7422_v12  ;;  %vm1464_vm11 = vweird.f32 %v9329_v33  ;;  %v7571_v49 = vmul.f32 %v7337_v55, %v7205_v20 }
 0x28e   : > { %v3283_v44 = vadd.f32 1.0, %v3219_v38  ;;  %v2200_v26 = vadd.f32 -1.4531521, %v2136_v35  ;;  %3740 = vmatmul.bf16.gmra.mxu1 %v3394_v60  ;;  %v7582_v42 = vmul.f32 0.70710677, %v7547_v15  ;;  %v3157_v25 = vsub.f32 0.0, %v3029_v47 }
 0x28f   : > { %9330 = vst [vmem:[#allocation20_spill] sm:$0xff] %v7571_v49  ;;  %v2137_v53 = vmul.f32 1.0614054, %v7559_v39  ;;  %v1872_v20 = vsel %vm7577_vm12, %v7461_v18, %v1868_v30  ;;  %v7589_v55 = vadd.f32 %v799_v10, %v5222_v0  ;;  %v7592_v12 = vmul.f32 %v7454_v23, %v2646_v45  ;;  %v9340_v60 = vld [vmem:[#allocation53_spill] sm:$0xff] }
 0x290   : > { %v2711_v38 = vmul.f32 %v7254_v1, %v7254_v1  ;;  %v1876_v27 = vor.u32 1.1754944e-38, %v1875_v6  ;;  %v1051_v35 = vmul.f32 0.3275911, %v7563_v29  ;;  %v3220_v18 = vsel %vm3092_vm3, %v3156_v19, %v3028_v50  ;;  %vm7652_vm3 = vmor %vm1464_vm11, %vm1465_vm9 }
 0x291   : > { %9333 = vst [vmem:[#allocation38_spill] sm:$0xff] %v7589_v55  ;;  %v2327_v11 = vadd.f32 1.4214138, %v2263_v54  ;;  %v2712_v23 = vmul.f32 %v7313_v31, %v7313_v31  ;;  %vm1874_vm14 = vcmp.eq.f32.partialorder %v1873_v51, 8.507059e+37  ;;  %v2264_v1 = vmul.f32 %v2200_v26, %v7518_v24 }
 0x292   : > { %v7610_v45 = vsel %vm1874_vm14, %v1876_v27, %v1872_v20  ;;  %v7613_v4 = vand.u32 2147483647, %v7582_v42  ;;  %v1407_v28 = vsel %vm7601_vm13, %v9317_v21, %v9336_v5  ;;  %vm1420_vm15 = vweird.f32 %v9337_v36  ;;  %v9341_v21 = vld [vmem:[#allocation83_spill] sm:$0xff] }
 0x293   : > { %v7621_v40 = vmul.f32 %v3283_v44, %v7233_v46  ;;  %v3221_v31 = vsel %vm3093_vm10, %v3157_v25, %v3029_v47  ;;  %v2201_v50 = vadd.f32 -1.4531521, %v2137_v53  ;;  %v7626_v30 = vmul.f32 0.70710677, %v7589_v55  ;;  %v9342_v46 = vld [vmem:[#allocation71_spill] sm:$0xff] }
 0x294   : > { %v3030_v6 = vsub.f32 1.0, %v7592_v12  ;;  %vm3094_vm0 = vcmp.lt.f32.partialorder %v9340_v60, 0.0  ;;  %v2775_v10 = vsub.f32 0.0, %v2711_v38  ;;  %v7630_v19 = vadd.f32 1.0, %v1051_v35  ;;  %v9346_v12 = vld [vmem:[#allocation100_spill] sm:$0xff] }
 0x295   : > { %9338 = vst [vmem:[#allocation25_spill] sm:$0xff] %v7621_v40  ;;  %v7635_v54 = vsel %vm7551_vm5, %v9341_v21, %v1407_v28  ;;  %vm1419_vm1 = vweird.f32 %v9342_v46  ;;  %vm1480_vm2 = vweird.f32 %v9343_v22  ;;  %v3284_v47 = vadd.f32 1.0, %v3220_v18 }
 0x296   : > { %9339 = vst [vmem:[#allocation125_spill] sm:$0xff] %v7626_v30  ;;  %v2391_v51 = vmul.f32 %v2327_v11, %v7488_v52  ;;  %v2776_v44 = vsub.f32 0.0, %v2712_v23  ;;  %v2138_v26 = vmul.f32 1.0614054, %v7610_v45  ;;  %v7642_v63 = vmul.f32 0.5, %v7191_v61  ;;  %vm7706_vm7 = vmor %vm1419_vm1, %vm1420_vm15 }
 0x297   : > { %v7645_v25 = vmul.f32 0.5, %v7237_v8  ;;  %v2328_v53 = vadd.f32 1.4214138, %v2264_v1  ;;  %v1053_v9 = vmul.f32 0.3275911, %v7613_v4  ;;  %vm1479_vm4 = vweird.f32 %v9346_v12  ;;  %v703_v8 = vpop.f32.mrf.mxu1  ;;  %v9350_v1 = vld [vmem:[#allocation126_spill] sm:$0xff] }
 0x298   : > { %v3285_v38 = vadd.f32 1.0, %v3221_v31  ;;  %v2265_v61 = vmul.f32 %v2201_v50, %v7559_v39  ;;  %v7659_v27 = vand.u32 2147483647, %v7626_v30  ;;  %v2107_v35 = vmul.f32 1.0614054, %v7635_v54  ;;  %vm7726_vm8 = vmor %vm1479_vm4, %vm1480_vm2 }
 0x299   : > { %v9347_v32 = vand.u32 2147483647, %v9342_v46  ;;  %v3158_v11 = vsub.f32 0.0, %v3030_v6  ;;  %v2885_v23 = vmul.f32 1.442695, %v2775_v10  ;;  %4772 = vrcp.f32 %v7630_v19 }
 0x29a   : > { %v1467_v5 = vsel %vm7652_vm3, %v9327_v13, %v9350_v1  ;;  %v7674_v28 = vmul.f32 %v3284_v47, %v7250_v17  ;;  %v2455_v31 = vadd.f32 -0.28449672, %v2391_v51  ;;  %v2887_v50 = vmul.f32 1.442695, %v2776_v44  ;;  %v9353_v13 = vld [vmem:[#allocation115_spill] sm:$0xff] }
 0x29b   : > { %vm7664_vm5 = vcmp.eq.f32.partialorder %v9347_v32, 8.507059e+37  ;;  %v2202_v21 = vadd.f32 -1.4531521, %v2138_v26  ;;  %v2392_v32 = vmul.f32 %v2328_v53, %v7518_v24  ;;  %v7677_v55 = vadd.f32 1.0, %v1053_v9 }
 0x29c   : > { %9351 = vst [vmem:[#allocation37_spill] sm:$0xff] %v7674_v28  ;;  %v7680_v30 = vadd.f32 %v703_v8, %v5215_v59  ;;  %v9352_v10 = vand.u32 2147483647, %v9329_v33  ;;  %v2329_v40 = vadd.f32 1.4214138, %v2265_v61  ;;  %v7689_v47 = vmul.f32 %v3285_v38, %v7294_v3 }
 0x29d   : > { %v1052_v20 = vmul.f32 0.3275911, %v7659_v27  ;;  %v2171_v17 = vadd.f32 -1.4531521, %v2107_v35  ;;  %4774 = vpow2.f32 %v2885_v23  ;;  %v2713_v51 = vmul.f32 %v7343_v37, %v7343_v37  ;;  %v9358_v35 = vld [vmem:[#allocation108_spill] sm:$0xff] }
 0x29e   : > { %vm1469_vm6 = vcmp.eq.f32.partialorder %v9352_v10, 8.507059e+37  ;;  %9354 = vst [vmem:[#allocation29_spill] sm:$0xff] %v7689_v47  ;;  %v7696_v33 = vsel %vm3094_vm0, %v3158_v11, %v3030_v6  ;;  %v2519_v26 = vmul.f32 %v2455_v31, %v7488_v52  ;;  %4776 = vpow2.f32 %v2887_v50  ;;  %v9362_v10 = vld [vmem:[#allocation135_spill] sm:$0xff] }
 0x29f   : > { %v7686_v1 = vsel %vm1469_vm6, %v9353_v13, %v1467_v5  ;;  %v2266_v53 = vmul.f32 %v2202_v21, %v7610_v45  ;;  %v7700_v9 = vpop.eup %4772  ;;  %4778 = vrcp.f32 %v7677_v55  ;;  %v7712_v37 = vmul.f32 0.70710677, %v7680_v30 }
 0x2a0   : > { %v2111_v44 = vmul.f32 1.0614054, %v7686_v1  ;;  %v2235_v60 = vmul.f32 %v2171_v17, %v7635_v54  ;;  %v2456_v38 = vadd.f32 -0.28449672, %v2392_v32  ;;  %v2393_v61 = vmul.f32 %v2329_v40, %v7559_v39 }
 0x2a1   : > { %9357 = vst [vmem:[#allocation62_spill] sm:$0xff] %v7712_v37  ;;  %v7716_v8 = vadd.f32 1.0, %v1052_v20  ;;  %v1422_v46 = vsel %vm7706_vm7, %v9337_v36, %v9358_v35  ;;  %v2777_v23 = vsub.f32 0.0, %v2713_v51  ;;  %v2714_v5 = vmul.f32 %v7390_v43, %v7390_v43  ;;  %v9361_v36 = vld [vmem:[#allocation94_spill] sm:$0xff]  ;;  %v9364_v35 = vld [vmem:[#allocation120_spill] sm:$0xff] }
 0x2a2   : > { %v2175_v6 = vadd.f32 -1.4531521, %v2111_v44  ;;  %v2299_v31 = vadd.f32 1.4214138, %v2235_v60  ;;  %v2330_v50 = vadd.f32 1.4214138, %v2266_v53  ;;  %v1880_v21 = vmul.f32 %v7700_v9, %v7630_v19 }
 0x2a3   : > { %v7738_v32 = vsel %vm7664_vm5, %v9361_v36, %v1422_v46  ;;  %v1482_v20 = vsel %vm7726_vm8, %v9343_v22, %v9362_v10  ;;  %v4775_v13 = vpop.eup %4774  ;;  %v2583_v17 = vadd.f32 0.2548296, %v2519_v26  ;;  %v7745_v43 = vand.u32 2147483647, %v7712_v37 }
 0x2a4   : > { %v2239_v40 = vmul.f32 %v2175_v6, %v7686_v1  ;;  %v2363_v44 = vmul.f32 %v2299_v31, %v7635_v54  ;;  %v4777_v53 = vpop.eup %4776  ;;  %v2520_v3 = vmul.f32 %v2456_v38, %v7518_v24  ;;  %v2457_v6 = vadd.f32 -0.28449672, %v2393_v61 }
 0x2a5   : > { %4780 = vrcp.f32 %v7716_v8  ;;  %v9363_v18 = vand.u32 2147483647, %v9346_v12  ;;  %v7752_v60 = vpop.eup %4778  ;;  %v2108_v11 = vmul.f32 1.0614054, %v7738_v32  ;;  %v2394_v31 = vmul.f32 %v2330_v50, %v7610_v45 }
 0x2a6   : > { %v2303_v51 = vadd.f32 1.4214138, %v2239_v40  ;;  %v2427_v26 = vadd.f32 -0.28449672, %v2363_v44  ;;  %v2889_v40 = vmul.f32 1.442695, %v2777_v23  ;;  %vm1885_vm12 = vweird.f32 %v7700_v9 }
 0x2a7   : > { %vm1484_vm9 = vcmp.eq.f32.partialorder %v9363_v18, 8.507059e+37  ;;  %v2778_v38 = vsub.f32 0.0, %v2714_v5  ;;  %v1881_v61 = vsub.f32 1.0, %v1880_v21  ;;  %v1054_v36 = vmul.f32 0.3275911, %v7745_v43 }
 0x2a8   : > { %v2367_v22 = vmul.f32 %v2303_v51, %v7686_v1  ;;  %v7756_v46 = vsel %vm1484_vm9, %v9364_v35, %v1482_v20  ;;  %v2491_v12 = vmul.f32 %v2427_v26, %v7635_v54  ;;  %v2647_v51 = vmul.f32 %v2583_v17, %v7488_v52 }
 0x2a9   : > { %v2112_v18 = vmul.f32 1.0614054, %v7756_v46  ;;  %v2584_v44 = vadd.f32 0.2548296, %v2520_v3  ;;  %v2521_v20 = vmul.f32 %v2457_v6, %v7559_v39  ;;  %v1910_v35 = vmul.f32 %v7752_v60, %v7677_v55 }
 0x2aa   : > { %v2431_v10 = vadd.f32 -0.28449672, %v2367_v22  ;;  %v2555_v50 = vadd.f32 0.2548296, %v2491_v12  ;;  %v2172_v5 = vadd.f32 -1.4531521, %v2108_v11  ;;  %4782 = vpow2.f32 %v2889_v40 }
 0x2ab   : > { %v2176_v21 = vadd.f32 -1.4531521, %v2112_v18  ;;  %v7768_v28 = vpop.eup %4780  ;;  %v9365_v22 = vld [vmem:[#allocation45_spill] sm:$0xff]  ;;  %v2458_v26 = vadd.f32 -0.28449672, %v2394_v31  ;;  %v1882_v52 = vmul.f32 %v7700_v9, %v1881_v61  ;;  %v7774_v17 = vadd.f32 1.0, %v1054_v36 }
 0x2ac   : > { %v2495_v23 = vmul.f32 %v2431_v10, %v7686_v1  ;;  %vm3067_vm10 = vcmp.lt.f32.partialorder %v9365_v22, 0.0  ;;  %v7771_v49 = vmul.f32 1.442695, %v2778_v38  ;;  %v2619_v6 = vmul.f32 %v2555_v50, %v7635_v54  ;;  %v9366_v12 = vld [vmem:[#allocation74_spill] sm:$0xff]  ;;  %v9367_v38 = vld [vmem:[#allocation95_spill] sm:$0xff] }
 0x2ad   : > { %v2236_v10 = vmul.f32 %v2172_v5, %v7738_v32  ;;  %vm3071_vm11 = vcmp.lt.f32.partialorder %v9366_v12, 0.0  ;;  %v7779_v11 = vmul.f32 %v4775_v13, %v2647_v51  ;;  %v2648_v18 = vmul.f32 %v2584_v44, %v7518_v24  ;;  %v9368_v24 = vld [vmem:[#allocation122_spill] sm:$0xff] }
 0x2ae   : > { %v2559_v3 = vadd.f32 0.2548296, %v2495_v23  ;;  %v2585_v47 = vadd.f32 0.2548296, %v2521_v20  ;;  %v1911_v40 = vsub.f32 1.0, %v1910_v35  ;;  %v2939_v37 = vmul.f32 %v9367_v38, %v2619_v6 }
 0x2af   : > { %v2240_v61 = vmul.f32 %v2176_v21, %v7756_v46  ;;  %v2300_v36 = vadd.f32 1.4214138, %v2236_v10  ;;  %v2522_v23 = vmul.f32 %v2458_v26, %v7610_v45  ;;  %v1883_v54 = vadd.f32 %v7700_v9, %v1882_v52 }
 0x2b0   : > { %v2623_v31 = vmul.f32 %v2559_v3, %v7686_v1  ;;  %v1895_v13 = vmul.f32 %v7768_v28, %v7716_v8  ;;  %4784 = vrcp.f32 %v7774_v17  ;;  %v3003_v44 = vsub.f32 1.0, %v2939_v37  ;;  %v7792_v20 = vpop.eup %4782 }
 0x2b1   : > { %v2304_v1 = vadd.f32 1.4214138, %v2240_v61  ;;  %vm1884_vm13 = vweird.f32 %v7630_v19  ;;  %v1888_v35 = vand.u32 2147483647, %v7630_v19  ;;  %v1890_v50 = vand.u32 2147483648, %v7630_v19 }
 0x2b2   : > { %v2943_v51 = vmul.f32 %v9368_v24, %v2623_v31  ;;  %v2364_v5 = vmul.f32 %v2300_v36, %v7738_v32  ;;  %v1912_v21 = vmul.f32 %v7752_v60, %v1911_v40  ;;  %v3131_v52 = vsub.f32 0.0, %v3003_v44  ;;  %vm7807_vm14 = vmor %vm1884_vm13, %vm1885_vm12 }
 0x2b3   : > { %v2368_v3 = vmul.f32 %v2304_v1, %v7756_v46  ;;  %v7800_v6 = vmul.f32 %v4777_v53, %v2648_v18  ;;  %v2649_v37 = vmul.f32 %v2585_v47, %v7559_v39  ;;  %v7803_v10 = vadd.f32 0.2548296, %v2522_v23 }
 0x2b4   : > { %v3007_v26 = vsub.f32 1.0, %v2943_v51  ;;  %v2428_v19 = vadd.f32 -0.28449672, %v2364_v5  ;;  %v1887_v40 = vsel %vm7807_vm14, %v7700_v9, %v1883_v54  ;;  %v1896_v38 = vsub.f32 1.0, %v1895_v13  ;;  %v752_v54 = vpop.f32.mrf.mxu2  ;;  %v9371_v5 = vld [vmem:[#allocation52_spill] sm:$0xff] }
 0x2b5   : > { %v3195_v53 = vsel %vm3067_vm10, %v3131_v52, %v3003_v44  ;;  %vm1889_vm15 = vcmp.eq.f32.partialorder %v1888_v35, 8.507059e+37  ;;  %v1891_v39 = vor.u32 1.1754944e-38, %v1890_v50  ;;  %v2432_v18 = vadd.f32 -0.28449672, %v2368_v3  ;;  %v9375_v3 = vld [vmem:[#allocation99_spill] sm:$0xff] }
 0x2b6   : > { %v3135_v61 = vsub.f32 0.0, %v3007_v26  ;;  %v3259_v47 = vadd.f32 1.0, %v3195_v53  ;;  %v7816_v36 = vpop.eup %4784  ;;  %v1913_v23 = vadd.f32 %v7752_v60, %v1912_v21  ;;  %vm1915_vm0 = vweird.f32 %v7752_v60  ;;  %v9376_v53 = vld [vmem:[#allocation80_spill] sm:$0xff] }
 0x2b7   : > { %v2492_v9 = vmul.f32 %v2428_v19, %v7738_v32  ;;  %v7823_v13 = vsel %vm1889_vm15, %v1891_v39, %v1887_v40  ;;  %vm1914_vm1 = vweird.f32 %v7677_v55  ;;  %v1920_v22 = vand.u32 2147483648, %v7677_v55 }
 0x2b8   : > { %v3199_v24 = vsel %vm3071_vm11, %v3135_v61, %v3007_v26  ;;  %v1897_v44 = vmul.f32 %v7768_v28, %v1896_v38  ;;  %v1918_v1 = vand.u32 2147483647, %v7677_v55  ;;  %v2496_v35 = vmul.f32 %v2432_v18, %v7756_v46  ;;  %vm7831_vm3 = vmor %vm1914_vm1, %vm1915_vm0  ;;  %v9374_v26 = vld [vmem:[#allocation68_spill] sm:$0xff] }
 0x2b9   : > { %v3263_v51 = vadd.f32 1.0, %v3199_v24  ;;  %v2556_v50 = vadd.f32 0.2548296, %v2492_v9  ;;  %vm3068_vm2 = vcmp.lt.f32.partialorder %v9371_v5, 0.0  ;;  %v1925_v21 = vmul.f32 %v7816_v36, %v7774_v17  ;;  %v9377_v9 = vld [vmem:[#allocation102_spill] sm:$0xff] }
 0x2ba   : > { %v3323_v52 = vmul.f32 %v3259_v47, %v9374_v26  ;;  %v7840_v19 = vadd.f32 %v752_v54, %v5220_v62  ;;  %v2139_v55 = vmul.f32 1.0614054, %v7823_v13  ;;  %v1917_v40 = vsel %vm7831_vm3, %v7752_v60, %v1913_v23  ;;  %v9385_v26 = vld [vmem:[#allocation105_spill] sm:$0xff] }
 0x2bb   : > { %v3327_v31 = vmul.f32 %v3263_v51, %v9375_v3  ;;  %v2560_v38 = vadd.f32 0.2548296, %v2496_v35  ;;  %v2620_v61 = vmul.f32 %v2556_v50, %v7738_v32  ;;  %vm3072_vm4 = vcmp.lt.f32.partialorder %v9376_v53, 0.0  ;;  %v9378_v50 = vld [vmem:[#allocation129_spill] sm:$0xff] }
 0x2bc   : > { %vm1899_vm5 = vweird.f32 %v7716_v8  ;;  %vm1900_vm6 = vweird.f32 %v7768_v28  ;;  %v1921_v39 = vor.u32 1.1754944e-38, %v1920_v22  ;;  %v1898_v18 = vadd.f32 %v7768_v28, %v1897_v44 }
 0x2bd   : > { %v3395_v47 = vpack.c.bf16 %v3327_v31, %v3323_v52  ;;  %vm1919_vm7 = vcmp.eq.f32.partialorder %v1918_v1, 8.507059e+37  ;;  %v2624_v24 = vmul.f32 %v2560_v38, %v7756_v46  ;;  %v2940_v54 = vmul.f32 %v9377_v9, %v2620_v61  ;;  %vm7873_vm10 = vmor %vm1899_vm5, %vm1900_vm6  ;;  %v9382_v38 = vld [vmem:[#allocation121_spill] sm:$0xff] }
 0x2be   : > { %v1905_v60 = vand.u32 2147483648, %v7716_v8  ;;  %v7854_v23 = vsel %vm1919_vm7, %v1921_v39, %v1917_v40  ;;  %v1926_v32 = vsub.f32 1.0, %v1925_v21  ;;  %v7857_v51 = vmul.f32 0.70710677, %v7840_v19  ;;  %v9381_v40 = vld [vmem:[#allocation107_spill] sm:$0xff] }
 0x2bf   : > { %3789 = vmatmul.bf16.gmra.mxu2 %v3395_v47  ;;  %v2203_v35 = vadd.f32 -1.4531521, %v2139_v55  ;;  %v1903_v22 = vand.u32 2147483647, %v7716_v8  ;;  %v2944_v12 = vmul.f32 %v9378_v50, %v2624_v24  ;;  %v3004_v44 = vsub.f32 1.0, %v2940_v54 }
 0x2c0   : > { %v3031_v1 = vsub.f32 1.0, %v7779_v11  ;;  %vm3095_vm8 = vcmp.lt.f32.partialorder %v7214_v34, 0.0  ;;  %v3032_v46 = vsub.f32 1.0, %v7800_v6  ;;  %vm3096_vm9 = vcmp.lt.f32.partialorder %v7271_v58, 0.0  ;;  %v9391_v34 = vld [vmem:[#allocation144_spill] sm:$0xff] }
 0x2c1   : > { %v7866_v21 = vmul.f32 %v7792_v20, %v2649_v37  ;;  %4786 = vpow2.f32 %v7771_v49  ;;  %v1902_v11 = vsel %vm7873_vm10, %v7768_v28, %v1898_v18  ;;  %v2141_v6 = vmul.f32 1.0614054, %v7854_v23 }
 0x2c2   : > { %v3008_v52 = vsub.f32 1.0, %v2944_v12  ;;  %v3132_v3 = vsub.f32 0.0, %v3004_v44  ;;  %v2650_v20 = vmul.f32 %v7803_v10, %v7610_v45  ;;  %v1906_v49 = vor.u32 1.1754944e-38, %v1905_v60  ;;  %v9383_v12 = vld [vmem:[#allocation157_spill] sm:$0xff] }
 0x2c3   : > { %v1927_v37 = vmul.f32 %v7816_v36, %v1926_v32  ;;  %v7885_v8 = vand.u32 2147483647, %v7857_v51  ;;  %v2267_v31 = vmul.f32 %v2203_v35, %v7823_v13  ;;  %vm1904_vm11 = vcmp.eq.f32.partialorder %v1903_v22, 8.507059e+37 }
 0x2c4   : > { %v3136_v55 = vsub.f32 0.0, %v3008_v52  ;;  %v3196_v28 = vsel %vm3068_vm2, %v3132_v3, %v3004_v44  ;;  %vm1494_vm12 = vweird.f32 %v9381_v40  ;;  %vm1495_vm13 = vweird.f32 %v9382_v38  ;;  %v9384_v44 = vld [vmem:[#allocation81_spill] sm:$0xff] }
 0x2c5   : > { %v3286_v61 = vadd.f32 1.0, %v7696_v33  ;;  %v3159_v45 = vsub.f32 0.0, %v3031_v1  ;;  %v7893_v10 = vsel %vm1904_vm11, %v1906_v49, %v1902_v11  ;;  %v3260_v39 = vadd.f32 1.0, %v3196_v28  ;;  %v657_v49 = vpop.f32.mrf.mxu0 }
 0x2c6   : > { %v3160_v47 = vsub.f32 0.0, %v3032_v46  ;;  %v3033_v18 = vsub.f32 1.0, %v7866_v21  ;;  %v2205_v24 = vadd.f32 -1.4531521, %v2141_v6  ;;  %v3200_v9 = vsel %vm3072_vm4, %v3136_v55, %v3008_v52 }
 0x2c7   : > { %v4787_v54 = vpop.eup %4786  ;;  %v1928_v5 = vadd.f32 %v7816_v36, %v1927_v37  ;;  %vm1930_vm14 = vweird.f32 %v7816_v36  ;;  %v3264_v60 = vadd.f32 1.0, %v3200_v9  ;;  %v1055_v32 = vmul.f32 0.3275911, %v7885_v8  ;;  %v9393_v9 = vld [vmem:[#allocation128_spill] sm:$0xff]  ;;  %v9406_v37 = vld [vmem:[#allocation154_spill] sm:$0xff] }
 0x2c8   : > { %v7901_v33 = vmul.f32 %v4787_v54, %v2650_v20  ;;  %v2331_v35 = vadd.f32 1.4214138, %v2267_v31  ;;  %v2140_v22 = vmul.f32 1.0614054, %v7893_v10  ;;  %v1935_v50 = vand.u32 2147483648, %v7774_v17 }
 0x2c9   : > { %vm1555_vm15 = vweird.f32 %v9383_v12  ;;  %vm1929_vm0 = vweird.f32 %v7774_v17  ;;  %v1933_v53 = vand.u32 2147483647, %v7774_v17  ;;  %v3324_v21 = vmul.f32 %v3260_v39, %v9384_v44 }
 0x2ca   : > { %v3328_v11 = vmul.f32 %v3264_v60, %v9385_v26  ;;  %v3223_v6 = vsel %vm3095_vm8, %v3159_v45, %v3031_v1  ;;  %v3224_v52 = vsel %vm3096_vm9, %v3160_v47, %v3032_v46  ;;  %v3161_v3 = vsub.f32 0.0, %v3033_v18  ;;  %vm7917_vm1 = vmor %vm1929_vm0, %vm1930_vm14  ;;  %v801_v47 = vpop.f32.mrf.mxu3 }
 0x2cb   : > { %v2269_v20 = vmul.f32 %v2205_v24, %v7854_v23  ;;  %v9388_v17 = vand.u32 2147483647, %v9381_v40  ;;  %vm1554_vm3 = vweird.f32 %v9391_v34  ;;  %v2715_v58 = vmul.f32 %v7563_v29, %v7563_v29  ;;  %v9392_v24 = vld [vmem:[#allocation116_spill] sm:$0xff]  ;;  %vm7955_vm8 = vmor %vm1494_vm12, %vm1495_vm13 }
 0x2cc   : > { %v1932_v1 = vsel %vm7917_vm1, %v7816_v36, %v1928_v5  ;;  %v3396_v46 = vpack.c.bf16 %v3328_v11, %v3324_v21  ;;  %v7933_v31 = vadd.f32 1.0, %v1055_v32  ;;  %v3034_v55 = vsub.f32 1.0, %v7901_v33  ;;  %v9398_v21 = vld [vmem:[#allocation141_spill] sm:$0xff]  ;;  %vm1556_vm13 = vmor %vm1554_vm3, %vm1555_vm15 }
 0x2cd   : > { %vm7923_vm2 = vcmp.eq.f32.partialorder %v9388_v17, 8.507059e+37  ;;  %v2395_v28 = vmul.f32 %v2331_v35, %v7823_v13  ;;  %v2204_v45 = vadd.f32 -1.4531521, %v2140_v22  ;;  %v1936_v39 = vor.u32 1.1754944e-38, %v1935_v50 }
 0x2ce   : > { %vm1509_vm4 = vweird.f32 %v9392_v24  ;;  %vm1510_vm5 = vweird.f32 %v9393_v9  ;;  %v7940_v29 = vmul.f32 %v3286_v61, %v7340_v2  ;;  %v3287_v54 = vadd.f32 1.0, %v3223_v6  ;;  %3838 = vmatmul.bf16.gmra.mxu3 %v3396_v46 }
 0x2cf   : > { %v857_v36 = vmul.f32 0.5, %v7286_v16  ;;  %vm1934_vm6 = vcmp.eq.f32.partialorder %v1933_v53, 8.507059e+37  ;;  %v3288_v5 = vadd.f32 1.0, %v3224_v52  ;;  %vm3097_vm7 = vcmp.lt.f32.partialorder %v7322_v41, 0.0  ;;  %vm8028_vm15 = vmor %vm1509_vm4, %vm1510_vm5 }
 0x2d0   : > { %v2333_v60 = vadd.f32 1.4214138, %v2269_v20  ;;  %v7944_v32 = vsel %vm1934_vm6, %v1936_v39, %v1932_v1  ;;  %v858_v33 = vmul.f32 0.5, %v7334_v48  ;;  %v2779_v35 = vsub.f32 0.0, %v2715_v58  ;;  %v9397_v48 = vld [vmem:[#allocation161_spill] sm:$0xff]  ;;  %v9403_v1 = vld [vmem:[#allocation127_spill] sm:$0xff] }
 0x2d1   : > { %4788 = vrcp.f32 %v7933_v31  ;;  %v7949_v22 = vadd.f32 %v801_v47, %v5222_v0  ;;  %v3225_v41 = vsel %vm3097_vm7, %v3161_v3, %v3033_v18  ;;  %v3162_v2 = vsub.f32 0.0, %v3034_v55  ;;  %v9402_v3 = vld [vmem:[#allocation151_spill] sm:$0xff] }
 0x2d2   : > { %v2459_v61 = vadd.f32 -0.28449672, %v2395_v28  ;;  %v2268_v50 = vmul.f32 %v2204_v45, %v7893_v10  ;;  %vm1570_vm9 = vweird.f32 %v9397_v48  ;;  %v7962_v53 = vmul.f32 %v3287_v54, %v7642_v63  ;;  %v9404_v39 = vld [vmem:[#allocation167_spill] sm:$0xff] }
 0x2d3   : > { %9394 = vst [vmem:[#allocation22_spill] sm:$0xff] %v7949_v22  ;;  %vm3098_vm10 = vcmp.lt.f32.partialorder %v7356_v56, 0.0  ;;  %v2142_v44 = vmul.f32 1.0614054, %v7944_v32  ;;  %v1497_v40 = vsel %vm7955_vm8, %v9382_v38, %v9398_v21  ;;  %v7971_v18 = vmul.f32 %v3288_v5, %v7645_v25  ;;  %v9409_v21 = vld [vmem:[#allocation146_spill] sm:$0xff] }
 0x2d4   : > { %v7974_v26 = vmul.f32 0.5, %v7506_v7  ;;  %v2397_v11 = vmul.f32 %v2333_v60, %v7854_v23  ;;  %v2717_v63 = vmul.f32 %v7613_v4, %v7613_v4  ;;  %v9399_v6 = vand.u32 2147483647, %v9392_v24 }
 0x2d5   : > { %vm1569_vm12 = vweird.f32 %v9402_v3  ;;  %v3289_v38 = vadd.f32 1.0, %v3225_v41  ;;  %v2893_v20 = vmul.f32 1.442695, %v2779_v35  ;;  %v7987_v25 = vmul.f32 0.5, %v7547_v15 }
 0x2d6   : > { %vm7981_vm11 = vcmp.eq.f32.partialorder %v9399_v6, 8.507059e+37  ;;  %v7990_v7 = vmul.f32 0.70710677, %v7949_v22  ;;  %v3226_v4 = vsel %vm3098_vm10, %v3162_v2, %v3034_v55  ;;  %v2523_v17 = vmul.f32 %v2459_v61, %v7823_v13  ;;  %vm8054_vm0 = vmor %vm1569_vm12, %vm1570_vm9 }
 0x2d7   : > { %v2332_v58 = vadd.f32 1.4214138, %v2268_v50  ;;  %v8002_v15 = vsel %vm7923_vm2, %v9403_v1, %v1497_v40  ;;  %v8004_v46 = vpop.eup %4788  ;;  %v2716_v28 = vmul.f32 %v7659_v27, %v7659_v27  ;;  %v2206_v45 = vadd.f32 -1.4531521, %v2142_v44  ;;  %v9412_v1 = vld [vmem:[#allocation132_spill] sm:$0xff] }
 0x2d8   : > { %v1557_v47 = vsel %vm1556_vm13, %v9383_v12, %v9404_v39  ;;  %v9405_v56 = vand.u32 2147483647, %v9391_v34  ;;  %v2461_v55 = vadd.f32 -0.28449672, %v2397_v11  ;;  %v2781_v54 = vsub.f32 0.0, %v2717_v63 }
 0x2d9   : > { %v8013_v5 = vadd.f32 %v657_v49, %v5213_v57  ;;  %v3290_v35 = vadd.f32 1.0, %v3226_v4  ;;  %v2718_v16 = vmul.f32 %v7745_v43, %v7745_v43  ;;  %v8021_v27 = vand.u32 2147483647, %v7990_v7 }
 0x2da   : > { %vm1559_vm14 = vcmp.eq.f32.partialorder %v9405_v56, 8.507059e+37  ;;  %v2113_v12 = vmul.f32 1.0614054, %v8002_v15  ;;  %v8032_v41 = vmul.f32 %v3289_v38, %v857_v36  ;;  %v2587_v2 = vadd.f32 0.2548296, %v2523_v17 }
 0x2db   : > { %v8016_v60 = vsel %vm1559_vm14, %v9406_v37, %v1557_v47  ;;  %v2396_v61 = vmul.f32 %v2332_v58, %v7893_v10  ;;  %v1940_v43 = vmul.f32 %v8004_v46, %v7933_v31  ;;  %4790 = vpow2.f32 %v2893_v20  ;;  %v9413_v47 = vld [vmem:[#allocation171_spill] sm:$0xff] }
 0x2dc   : > { %v2270_v50 = vmul.f32 %v2206_v45, %v7944_v32  ;;  %v2117_v44 = vmul.f32 1.0614054, %v8016_v60  ;;  %v1512_v24 = vsel %vm8028_vm15, %v9393_v9, %v9409_v21  ;;  %v2780_v40 = vsub.f32 0.0, %v2716_v28 }
 0x2dd   : > { %v2525_v36 = vmul.f32 %v2461_v55, %v7854_v23  ;;  %v2897_v11 = vmul.f32 1.442695, %v2781_v54  ;;  %v8045_v63 = vmul.f32 0.70710677, %v8013_v5  ;;  %v8047_v6 = vmul.f32 %v3290_v35, %v858_v33 }
 0x2de   : > { %v2782_v38 = vsub.f32 0.0, %v2718_v16  ;;  %v1056_v20 = vmul.f32 0.3275911, %v8021_v27  ;;  %v2177_v49 = vadd.f32 -1.4531521, %v2113_v12  ;;  %v2651_v9 = vmul.f32 %v2587_v2, %v7823_v13  ;;  %v706_v2 = vpop.f32.mrf.mxu1 }
 0x2df   : > { %v2460_v17 = vadd.f32 -0.28449672, %v2396_v61  ;;  %v1941_v58 = vsub.f32 1.0, %v1940_v43  ;;  %v8062_v33 = vsel %vm7981_vm11, %v9412_v1, %v1512_v24  ;;  %v2334_v28 = vadd.f32 1.4214138, %v2270_v50  ;;  %v9415_v43 = vld [vmem:[#allocation163_spill] sm:$0xff] }
 0x2e0   : > { %v2181_v45 = vadd.f32 -1.4531521, %v2117_v44  ;;  %v2241_v39 = vmul.f32 %v2177_v49, %v8002_v15  ;;  %v1572_v56 = vsel %vm8054_vm0, %v9397_v48, %v9413_v47  ;;  %v8069_v55 = vmul.f32 1.442695, %v2780_v40 }
 0x2e1   : > { %v2589_v54 = vadd.f32 0.2548296, %v2525_v36  ;;  %4792 = vpow2.f32 %v2897_v11  ;;  %v8072_v13 = vand.u32 2147483647, %v8045_v63  ;;  %v4791_v37 = vpop.eup %4790  ;;  %v8074_v52 = vadd.f32 1.0, %v1056_v20 }
 0x2e2   : > { %v2245_v35 = vmul.f32 %v2181_v45, %v8016_v60  ;;  %v9414_v16 = vand.u32 2147483647, %v9402_v3  ;;  %v2114_v12 = vmul.f32 1.0614054, %v8062_v33  ;;  %v8080_v34 = vmul.f32 1.442695, %v2782_v38 }
 0x2e3   : > { %v1942_v48 = vmul.f32 %v8004_v46, %v1941_v58  ;;  %v2305_v61 = vadd.f32 1.4214138, %v2241_v39  ;;  %v8086_v44 = vmul.f32 %v4791_v37, %v2651_v9  ;;  %v2524_v21 = vmul.f32 %v2460_v17, %v7893_v10 }
 0x2e4   : > { %vm1574_vm1 = vcmp.eq.f32.partialorder %v9414_v16, 8.507059e+37  ;;  %v2398_v24 = vmul.f32 %v2334_v28, %v7944_v32  ;;  %v2309_v40 = vadd.f32 1.4214138, %v2245_v35  ;;  %v2653_v3 = vmul.f32 %v2589_v54, %v7854_v23 }
 0x2e5   : > { %v8084_v50 = vsel %vm1574_vm1, %v9415_v43, %v1572_v56  ;;  %v1057_v36 = vmul.f32 0.3275911, %v8072_v13  ;;  %v2369_v11 = vmul.f32 %v2305_v61, %v8002_v15  ;;  %4794 = vrcp.f32 %v8074_v52 }
 0x2e6   : > { %v2118_v38 = vmul.f32 1.0614054, %v8084_v50  ;;  %v8096_v20 = vadd.f32 %v706_v2, %v5215_v59  ;;  %v2373_v49 = vmul.f32 %v2309_v40, %v8016_v60  ;;  %v2178_v4 = vadd.f32 -1.4531521, %v2114_v12  ;;  %v9420_v40 = vld [vmem:[#allocation89_spill] sm:$0xff] }
 0x2e7   : > { %v4793_v9 = vpop.eup %4792  ;;  %v1943_v17 = vadd.f32 %v8004_v46, %v1942_v48  ;;  %vm1945_vm2 = vweird.f32 %v8004_v46  ;;  %v2433_v23 = vadd.f32 -0.28449672, %v2369_v11  ;;  %vm1944_vm3 = vweird.f32 %v7933_v31 }
 0x2e8   : > { %9416 = vst [vmem:[#allocation131_spill] sm:$0xff] %v8096_v20  ;;  %v2182_v58 = vadd.f32 -1.4531521, %v2118_v38  ;;  %v1950_v1 = vand.u32 2147483648, %v7933_v31  ;;  %v2437_v28 = vadd.f32 -0.28449672, %v2373_v49  ;;  %v2242_v45 = vmul.f32 %v2178_v4, %v8062_v33  ;;  %vm8110_vm4 = vmor %vm1944_vm3, %vm1945_vm2 }
 0x2e9   : > { %v1948_v39 = vand.u32 2147483647, %v7933_v31  ;;  %v8105_v47 = vadd.f32 1.0, %v1057_v36  ;;  %v2497_v56 = vmul.f32 %v2433_v23, %v8002_v15  ;;  %v3035_v37 = vsub.f32 1.0, %v8086_v44  ;;  %v9421_v4 = vld [vmem:[#allocation130_spill] sm:$0xff] }
 0x2ea   : > { %v2246_v54 = vmul.f32 %v2182_v58, %v8084_v50  ;;  %v8115_v16 = vmul.f32 0.70710677, %v8096_v20  ;;  %v2501_v12 = vmul.f32 %v2437_v28, %v8016_v60  ;;  %v2306_v48 = vadd.f32 1.4214138, %v2242_v45  ;;  %v9422_v58 = vld [vmem:[#allocation137_spill] sm:$0xff] }
 0x2eb   : > { %vm3099_vm5 = vcmp.lt.f32.partialorder %v7537_v14, 0.0  ;;  %v2588_v31 = vadd.f32 0.2548296, %v2524_v21  ;;  %v2462_v2 = vadd.f32 -0.28449672, %v2398_v24  ;;  %v1947_v61 = vsel %vm8110_vm4, %v8004_v46, %v1943_v17  ;;  %v8122_v44 = vpop.eup %4794 }
 0x2ec   : > { %9419 = vst [vmem:[#allocation48_spill] sm:$0xff] %v8115_v16  ;;  %v2561_v43 = vadd.f32 0.2548296, %v2497_v56  ;;  %vm3073_vm6 = vcmp.lt.f32.partialorder %v9420_v40, 0.0  ;;  %v8125_v36 = vmul.f32 %v4793_v9, %v2653_v3  ;;  %v1951_v11 = vor.u32 1.1754944e-38, %v1950_v1  ;;  %v9423_v56 = vld [vmem:[#allocation160_spill] sm:$0xff] }
 0x2ed   : > { %v2565_v38 = vadd.f32 0.2548296, %v2501_v12  ;;  %v2310_v49 = vadd.f32 1.4214138, %v2246_v54  ;;  %vm3077_vm7 = vcmp.lt.f32.partialorder %v9421_v4, 0.0  ;;  %vm1949_vm8 = vcmp.eq.f32.partialorder %v1948_v39, 8.507059e+37 }
 0x2ee   : > { %4796 = vrcp.f32 %v8105_v47  ;;  %v2625_v21 = vmul.f32 %v2561_v43, %v8002_v15  ;;  %v2370_v24 = vmul.f32 %v2306_v48, %v8062_v33  ;;  %v8131_v46 = vsel %vm1949_vm8, %v1951_v11, %v1947_v61 }
 0x2ef   : > { %v8134_v17 = vand.u32 2147483647, %v8115_v16  ;;  %v2629_v3 = vmul.f32 %v2565_v38, %v8016_v60  ;;  %v2374_v9 = vmul.f32 %v2310_v49, %v8084_v50  ;;  %4798 = vpow2.f32 %v8069_v55 }
 0x2f0   : > { %v1955_v23 = vmul.f32 %v8122_v44, %v8074_v52  ;;  %v2945_v1 = vmul.f32 %v9422_v58, %v2625_v21  ;;  %v2434_v28 = vadd.f32 -0.28449672, %v2370_v24  ;;  %v3163_v15 = vsub.f32 0.0, %v3035_v37 }
 0x2f1   : > { %v3037_v45 = vsub.f32 1.0, %v8125_v36  ;;  %v2526_v39 = vmul.f32 %v2462_v2, %v7944_v32  ;;  %v2949_v54 = vmul.f32 %v9423_v56, %v2629_v3  ;;  %vm3101_vm9 = vcmp.lt.f32.partialorder %v7582_v42, 0.0 }
 0x2f2   : > { %v2143_v60 = vmul.f32 1.0614054, %v8131_v46  ;;  %v3009_v35 = vsub.f32 1.0, %v2945_v1  ;;  %v2438_v12 = vadd.f32 -0.28449672, %v2374_v9  ;;  %v2498_v55 = vmul.f32 %v2434_v28, %v8062_v33  ;;  %v9425_v28 = vld [vmem:[#allocation139_spill] sm:$0xff] }
 0x2f3   : > { %v2652_v48 = vmul.f32 %v2588_v31, %v7893_v10  ;;  %4800 = vpow2.f32 %v8080_v34  ;;  %v1058_v61 = vmul.f32 0.3275911, %v8134_v17  ;;  %v3013_v43 = vsub.f32 1.0, %v2949_v54  ;;  %v9424_v10 = vld [vmem:[#allocation98_spill] sm:$0xff] }
 0x2f4   : > { %v8151_v36 = vpop.eup %4796  ;;  %v1956_v2 = vsub.f32 1.0, %v1955_v23  ;;  %v3137_v11 = vsub.f32 0.0, %v3009_v35  ;;  %v2502_v38 = vmul.f32 %v2438_v12, %v8084_v50  ;;  %v2562_v49 = vadd.f32 0.2548296, %v2498_v55 }
 0x2f5   : > { %v3227_v21 = vsel %vm3099_vm5, %v3163_v15, %v3035_v37  ;;  %v3165_v24 = vsub.f32 0.0, %v3037_v45  ;;  %v2590_v3 = vadd.f32 0.2548296, %v2526_v39  ;;  %v3141_v9 = vsub.f32 0.0, %v3013_v43  ;;  %v4799_v58 = vpop.eup %4798 }
 0x2f6   : > { %vm3074_vm10 = vcmp.lt.f32.partialorder %v9424_v10, 0.0  ;;  %v2207_v34 = vadd.f32 -1.4531521, %v2143_v60  ;;  %v3201_v31 = vsel %vm3073_vm6, %v3137_v11, %v3009_v35  ;;  %v2566_v1 = vadd.f32 0.2548296, %v2502_v38  ;;  %v9426_v60 = vld [vmem:[#allocation140_spill] sm:$0xff] }
 0x2f7   : > { %v2626_v23 = vmul.f32 %v2562_v49, %v8062_v33  ;;  %vm3078_vm11 = vcmp.lt.f32.partialorder %v9425_v28, 0.0  ;;  %v1970_v56 = vmul.f32 %v8151_v36, %v8105_v47  ;;  %v8163_v14 = vadd.f32 1.0, %v1058_v61 }
 0x2f8   : > { %v3205_v37 = vsel %vm3077_vm7, %v3141_v9, %v3013_v43  ;;  %v3265_v15 = vadd.f32 1.0, %v3201_v31  ;;  %v1957_v39 = vmul.f32 %v8122_v44, %v1956_v2  ;;  %v2630_v40 = vmul.f32 %v2566_v1, %v8084_v50  ;;  %v9427_v43 = vld [vmem:[#allocation106_spill] sm:$0xff]  ;;  %v9428_v2 = vld [vmem:[#allocation136_spill] sm:$0xff] }
 0x2f9   : > { %v3269_v54 = vadd.f32 1.0, %v3205_v37  ;;  %v2946_v35 = vmul.f32 %v9426_v60, %v2626_v23  ;;  %v4801_v12 = vpop.eup %4800  ;;  %v3291_v33 = vadd.f32 1.0, %v3227_v21  ;;  %v8170_v55 = vmul.f32 %v4799_v58, %v2652_v48  ;;  %v9429_v9 = vld [vmem:[#allocation166_spill] sm:$0xff] }
 0x2fa   : > { %v2654_v11 = vmul.f32 %v2590_v3, %v7944_v32  ;;  %v8175_v61 = vmul.f32 %v7885_v8, %v7885_v8  ;;  %v2271_v4 = vmul.f32 %v2207_v34, %v8131_v46  ;;  %v3329_v38 = vmul.f32 %v3265_v15, %v9427_v43  ;;  %v9430_v58 = vld [vmem:[#allocation138_spill] sm:$0xff]  ;;  %v9431_v15 = vld [vmem:[#allocation124_spill] sm:$0xff] }
 0x2fb   : > { %v3333_v49 = vmul.f32 %v3269_v54, %v9428_v2  ;;  %v2950_v50 = vmul.f32 %v9429_v9, %v2630_v40  ;;  %v3229_v31 = vsel %vm3101_vm9, %v3165_v24, %v3037_v45  ;;  %vm1960_vm12 = vweird.f32 %v8122_v44  ;;  %v755_v45 = vpop.f32.mrf.mxu2  ;;  %v9436_v43 = vld [vmem:[#allocation158_spill] sm:$0xff] }
 0x2fc   : > { %v1971_v48 = vsub.f32 1.0, %v1970_v56  ;;  %v3010_v21 = vsub.f32 1.0, %v2946_v35  ;;  %v1958_v32 = vadd.f32 %v8122_v44, %v1957_v39  ;;  %4802 = vrcp.f32 %v8163_v14  ;;  %v9432_v39 = vld [vmem:[#allocation165_spill] sm:$0xff] }
 0x2fd   : > { %v3397_v8 = vpack.c.bf16 %v3333_v49, %v3329_v38  ;;  %v3014_v3 = vsub.f32 1.0, %v2950_v50  ;;  %vm1525_vm13 = vweird.f32 %v9430_v58  ;;  %v8187_v34 = vmul.f32 %v4801_v12, %v2654_v11 }
 0x2fe   : > { %v1963_v1 = vand.u32 2147483647, %v8074_v52  ;;  %v1965_v23 = vand.u32 2147483648, %v8074_v52  ;;  %v3138_v42 = vsub.f32 0.0, %v3010_v21  ;;  %v8954_v24 = vsub.f32 1.0, %v8170_v55 }
 0x2ff   : > { %v2335_v56 = vadd.f32 1.4214138, %v2271_v4  ;;  %vm1959_vm14 = vweird.f32 %v8074_v52  ;;  %3696 = vmatmul.bf16.gmra.mxu0 %v3397_v8  ;;  %v3142_v37 = vsub.f32 0.0, %v3014_v3  ;;  %vm1524_vm15 = vweird.f32 %v9431_v15  ;;  %v9441_v8 = vld [vmem:[#allocation147_spill] sm:$0xff] }
 0x300   : > { %vm1585_vm0 = vweird.f32 %v9432_v39  ;;  %v3293_v54 = vadd.f32 1.0, %v3229_v31  ;;  %v2783_v40 = vsub.f32 0.0, %v8175_v61  ;;  %vm8198_vm1 = vmor %vm1959_vm14, %vm1960_vm12  ;;  %v1972_v35 = vmul.f32 %v8151_v36, %v1971_v48 }
 0x301   : > { %v3202_v52 = vsel %vm3074_vm10, %v3138_v42, %v3010_v21  ;;  %v1962_v12 = vsel %vm8198_vm1, %v8122_v44, %v1958_v32  ;;  %v3206_v11 = vsel %vm3078_vm11, %v3142_v37, %v3014_v3  ;;  %v8211_v61 = vadd.f32 %v755_v45, %v5220_v62  ;;  %v9440_v21 = vld [vmem:[#allocation111_spill] sm:$0xff]  ;;  %v804_v45 = vpop.f32.mrf.mxu3  ;;  %vm8271_vm9 = vmor %vm1524_vm15, %vm1525_vm13 }
 0x302   : > { %v3266_v4 = vadd.f32 1.0, %v3202_v52  ;;  %vm1584_vm2 = vweird.f32 %v9436_v43  ;;  %v3038_v38 = vsub.f32 1.0, %v8187_v34  ;;  %vm1964_vm3 = vcmp.eq.f32.partialorder %v1963_v1, 8.507059e+37  ;;  %v8215_v10 = vpop.eup %4802  ;;  %v659_v52 = vpop.f32.mrf.mxu0 }
 0x303   : > { %9435 = vst [vmem:[#allocation36_spill] sm:$0xff] %v8211_v61  ;;  %v1966_v2 = vor.u32 1.1754944e-38, %v1965_v23  ;;  %v3270_v49 = vadd.f32 1.0, %v3206_v11  ;;  %v9437_v9 = vand.u32 2147483647, %v9431_v15  ;;  %v2399_v28 = vmul.f32 %v2335_v56, %v8131_v46  ;;  %v9443_v23 = vld [vmem:[#allocation62_spill] sm:$0xff]  ;;  %vm8298_vm12 = vmor %vm1584_vm2, %vm1585_vm0 }
 0x304   : > { %vm1974_vm5 = vweird.f32 %v8105_v47  ;;  %vm1975_vm6 = vweird.f32 %v8151_v36  ;;  %v1980_v50 = vand.u32 2147483648, %v8105_v47  ;;  %v1973_v48 = vadd.f32 %v8151_v36, %v1972_v35 }
 0x305   : > { %vm8219_vm4 = vcmp.eq.f32.partialorder %v9437_v9, 8.507059e+37  ;;  %v8227_v31 = vsel %vm1964_vm3, %v1966_v2, %v1962_v12  ;;  %v3330_v32 = vmul.f32 %v3266_v4, %v9440_v21  ;;  %v3334_v3 = vmul.f32 %v3270_v49, %v9441_v8  ;;  %v708_v12 = vpop.f32.mrf.mxu1  ;;  %vm8257_vm8 = vmor %vm1974_vm5, %vm1975_vm6  ;;  %v9452_v21 = vld [vmem:[#allocation143_spill] sm:$0xff]  ;;  %v9461_v4 = vld [vmem:[#allocation168_spill] sm:$0xff] }
 0x306   : > { %v8233_v34 = vmul.f32 %v3291_v33, %v7974_v26  ;;  %v8236_v1 = vmul.f32 0.5, %v7680_v30  ;;  %vm3102_vm7 = vcmp.lt.f32.partialorder %v9443_v23, 0.0  ;;  %v8240_v42 = vmul.f32 0.70710677, %v8211_v61  ;;  %v9456_v23 = vld [vmem:[#allocation142_spill] sm:$0xff] }
 0x307   : > { %v3166_v56 = vsub.f32 0.0, %v3038_v38  ;;  %v1978_v37 = vand.u32 2147483647, %v8105_v47  ;;  %v1985_v60 = vmul.f32 %v8215_v10, %v8163_v14  ;;  %v3398_v35 = vpack.c.bf16 %v3334_v3, %v3330_v32  ;;  %v9462_v47 = vld [vmem:[#allocation169_spill] sm:$0xff] }
 0x308   : > { %9442 = vst [vmem:[#allocation21_spill] sm:$0xff] %v8233_v34  ;;  %v8247_v26 = vsub.f32 0.0, %v8954_v24  ;;  %v8250_v30 = vmul.f32 0.5, %v7840_v19  ;;  %v2463_v33 = vadd.f32 -0.28449672, %v2399_v28  ;;  %v8262_v2 = vmul.f32 %v3293_v54, %v7987_v25 }
 0x309   : > { %9444 = vst [vmem:[#allocation44_spill] sm:$0xff] %v8240_v42  ;;  %v2144_v11 = vmul.f32 1.0614054, %v8227_v31  ;;  %v2901_v49 = vmul.f32 1.442695, %v2783_v40  ;;  %v1977_v19 = vsel %vm8257_vm8, %v8151_v36, %v1973_v48  ;;  %v1981_v9 = vor.u32 1.1754944e-38, %v1980_v50  ;;  %3745 = vmatmul.bf16.gmra.mxu1 %v3398_v35  ;;  %v806_v34 = vpop.f32.mrf.mxu3 }
 0x30a   : > { %v8276_v28 = vand.u32 2147483647, %v8240_v42  ;;  %v8279_v25 = vadd.f32 %v804_v45, %v5222_v0  ;;  %v8282_v54 = vadd.f32 %v659_v52, %v5213_v57  ;;  %v8285_v36 = vadd.f32 %v708_v12, %v5215_v59  ;;  %v9451_v50 = vld [vmem:[#allocation155_spill] sm:$0xff] }
 0x30b   : > { %v3230_v40 = vsel %vm3102_vm7, %v3166_v56, %v3038_v38  ;;  %vm1979_vm10 = vcmp.eq.f32.partialorder %v1978_v37, 8.507059e+37  ;;  %v1986_v15 = vsub.f32 1.0, %v1985_v60  ;;  %v1527_v48 = vsel %vm8271_vm9, %v9430_v58, %v9451_v50  ;;  %v9457_v56 = vld [vmem:[#allocation172_spill] sm:$0xff]  ;;  %v9458_v60 = vld [vmem:[#allocation134_spill] sm:$0xff] }
 0x30c   : > { %9449 = vst [vmem:[#allocation149_spill] sm:$0xff] %v8279_v25  ;;  %vm1540_vm11 = vweird.f32 %v9452_v21  ;;  %v2527_v59 = vmul.f32 %v2463_v33, %v8131_v46  ;;  %v2208_v38 = vadd.f32 -1.4531521, %v2144_v11  ;;  %v8303_v32 = vsel %vm1979_vm10, %v1981_v9, %v1977_v19 }
 0x30d   : > { %9450 = vst [vmem:[#allocation46_spill] sm:$0xff] %v8285_v36  ;;  %v2721_v8 = vmul.f32 %v8072_v13, %v8072_v13  ;;  %v8308_v58 = vmul.f32 0.70710677, %v8282_v54  ;;  %v8311_v3 = vmul.f32 0.70710677, %v8285_v36  ;;  %v8316_v45 = vsel %vm8219_vm4, %v9456_v23, %v1527_v48 }
 0x30e   : > { %v1587_v37 = vsel %vm8298_vm12, %v9432_v39, %v9457_v56  ;;  %vm1539_vm13 = vweird.f32 %v9458_v60  ;;  %v2720_v13 = vmul.f32 %v8021_v27, %v8021_v27  ;;  %v1059_v35 = vmul.f32 0.3275911, %v8276_v28 }
 0x30f   : > { %9455 = vst [vmem:[#allocation33_spill] sm:$0xff] %v8311_v3  ;;  %v8327_v52 = vmul.f32 0.70710677, %v8279_v25  ;;  %v2115_v12 = vmul.f32 1.0614054, %v8316_v45  ;;  %v1987_v44 = vmul.f32 %v8215_v10, %v1986_v15  ;;  %vm1600_vm15 = vweird.f32 %v9461_v4  ;;  %vm8384_vm5 = vmor %vm1539_vm13, %vm1540_vm11 }
 0x310   : > { %v8332_v33 = vand.u32 2147483647, %v8308_v58  ;;  %v8335_v11 = vand.u32 2147483647, %v8311_v3  ;;  %v9460_v39 = vand.u32 2147483647, %v9436_v43  ;;  %v2272_v27 = vmul.f32 %v2208_v38, %v8227_v31 }
 0x311   : > { %9459 = vst [vmem:[#allocation24_spill] sm:$0xff] %v8327_v52  ;;  %v2145_v19 = vmul.f32 1.0614054, %v8303_v32  ;;  %v2785_v9 = vsub.f32 0.0, %v2721_v8  ;;  %v2591_v15 = vadd.f32 0.2548296, %v2527_v59  ;;  %vm1989_vm0 = vweird.f32 %v8163_v14 }
 0x312   : > { %vm1589_vm14 = vcmp.eq.f32.partialorder %v9460_v39, 8.507059e+37  ;;  %v1061_v48 = vmul.f32 0.3275911, %v8332_v33  ;;  %v1062_v57 = vmul.f32 0.3275911, %v8335_v11  ;;  %v9466_v38 = vld [vmem:[#allocation164_spill] sm:$0xff]  ;;  %vm1990_vm3 = vweird.f32 %v8215_v10 }
 0x313   : > { %v8343_v50 = vsel %vm1589_vm14, %v9462_v47, %v1587_v37  ;;  %v9463_v43 = vand.u32 2147483647, %v9458_v60  ;;  %vm1599_vm2 = vweird.f32 %v9466_v38  ;;  %v8356_v8 = vadd.f32 1.0, %v1059_v35  ;;  %vm8374_vm4 = vmor %vm1989_vm0, %vm1990_vm3  ;;  %v9471_v60 = vld [vmem:[#allocation162_spill] sm:$0xff]  ;;  %v9479_v3 = vld [vmem:[#allocation109_spill] sm:$0xff] }
 0x314   : > { %v2119_v59 = vmul.f32 1.0614054, %v8343_v50  ;;  %v2179_v56 = vadd.f32 -1.4531521, %v2115_v12  ;;  %v1988_v37 = vadd.f32 %v8215_v10, %v1987_v44  ;;  %v8361_v39 = vand.u32 2147483647, %v8327_v52  ;;  %vm8415_vm7 = vmor %vm1599_vm2, %vm1600_vm15 }
 0x315   : > { %vm8350_vm1 = vcmp.eq.f32.partialorder %v9463_v43, 8.507059e+37  ;;  %v8363_v47 = vadd.f32 1.0, %v1061_v48  ;;  %v8365_v43 = vadd.f32 1.0, %v1062_v57  ;;  %4804 = vpow2.f32 %v2901_v49 }
 0x316   : > { %v2336_v24 = vadd.f32 1.4214138, %v2272_v27  ;;  %v2209_v25 = vadd.f32 -1.4531521, %v2145_v19  ;;  %v1995_v61 = vand.u32 2147483648, %v8163_v14  ;;  %v3294_v20 = vadd.f32 1.0, %v3230_v40 }
 0x317   : > { %v2784_v35 = vsub.f32 0.0, %v2720_v13  ;;  %v1993_v36 = vand.u32 2147483647, %v8163_v14  ;;  %4806 = vrcp.f32 %v8363_v47  ;;  %v2905_v12 = vmul.f32 1.442695, %v2785_v9  ;;  %v9476_v40 = vld [vmem:[#allocation175_spill] sm:$0xff] }
 0x318   : > { %4808 = vrcp.f32 %v8356_v8  ;;  %v2183_v49 = vadd.f32 -1.4531521, %v2119_v59  ;;  %v2243_v27 = vmul.f32 %v2179_v56, %v8316_v45  ;;  %v2655_v13 = vmul.f32 %v2591_v15, %v8131_v46 }
 0x319   : > { %v1992_v14 = vsel %vm8374_vm4, %v8215_v10, %v1988_v37  ;;  %v1060_v19 = vmul.f32 0.3275911, %v8361_v39  ;;  %4810 = vrcp.f32 %v8365_v43  ;;  %v2400_v9 = vmul.f32 %v2336_v24, %v8227_v31 }
 0x31a   : > { %v2273_v48 = vmul.f32 %v2209_v25, %v8303_v32  ;;  %v1996_v57 = vor.u32 1.1754944e-38, %v1995_v61  ;;  %v1542_v59 = vsel %vm8384_vm5, %v9452_v21, %v9471_v60  ;;  %v8401_v46 = vmul.f32 %v3294_v20, %v8236_v1  ;;  %v9475_v21 = vld [vmem:[#allocation150_spill] sm:$0xff] }
 0x31b   : > { %v8403_v15 = vmul.f32 1.442695, %v2784_v35  ;;  %v8406_v10 = vmul.f32 0.5, %v8013_v5  ;;  %vm1994_vm6 = vcmp.eq.f32.partialorder %v1993_v36, 8.507059e+37  ;;  %v4805_v56 = vpop.eup %4804  ;;  %4812 = vpow2.f32 %v2905_v12  ;;  %v9478_v20 = vld [vmem:[#allocation170_spill] sm:$0xff] }
 0x31c   : > { %v8408_v24 = vsel %vm1994_vm6, %v1996_v57, %v1992_v14  ;;  %v2247_v61 = vmul.f32 %v2183_v49, %v8343_v50  ;;  %v2307_v25 = vadd.f32 1.4214138, %v2243_v27  ;;  %v8419_v1 = vmul.f32 %v4805_v56, %v2655_v13 }
 0x31d   : > { %9472 = vst [vmem:[#allocation35_spill] sm:$0xff] %v8406_v10  ;;  %v4807_v37 = vpop.eup %4806  ;;  %v8423_v5 = vmul.f32 %v8134_v17, %v8134_v17  ;;  %v8425_v36 = vadd.f32 1.0, %v1060_v19  ;;  %v8430_v35 = vsel %vm8350_vm1, %v9475_v21, %v1542_v59  ;;  %v2464_v44 = vadd.f32 -0.28449672, %v2400_v9 }
 0x31e   : > { %v8432_v12 = vpop.eup %4808  ;;  %v2337_v49 = vadd.f32 1.4214138, %v2273_v48  ;;  %v2030_v27 = vmul.f32 %v4807_v37, %v8363_v47  ;;  %v1602_v13 = vsel %vm8415_vm7, %v9461_v4, %v9476_v40  ;;  %v2146_v14 = vmul.f32 1.0614054, %v8408_v24 }
 0x31f   : > { %v8439_v17 = vpop.eup %4810  ;;  %v2311_v19 = vadd.f32 1.4214138, %v2247_v61  ;;  %v2371_v23 = vmul.f32 %v2307_v25, %v8316_v45  ;;  %v2116_v57 = vmul.f32 1.0614054, %v8430_v35  ;;  %v2040_v9 = vand.u32 2147483648, %v8363_v47 }
 0x320   : > { %v2031_v60 = vsub.f32 1.0, %v2030_v27  ;;  %v2045_v48 = vmul.f32 %v8439_v17, %v8365_v43  ;;  %v9477_v59 = vand.u32 2147483647, %v9466_v38  ;;  %4814 = vrcp.f32 %v8425_v36 }
 0x321   : > { %v2375_v4 = vmul.f32 %v2311_v19, %v8343_v50  ;;  %v2435_v56 = vadd.f32 -0.28449672, %v2371_v23  ;;  %v8454_v25 = vpop.eup %4812  ;;  %v2000_v21 = vmul.f32 %v8432_v12, %v8356_v8  ;;  %vm2035_vm9 = vweird.f32 %v4807_v37 }
 0x322   : > { %vm1604_vm8 = vcmp.eq.f32.partialorder %v9477_v59, 8.507059e+37  ;;  %v2032_v27 = vmul.f32 %v4807_v37, %v2031_v60  ;;  %v2038_v40 = vand.u32 2147483647, %v8363_v47  ;;  %v2180_v42 = vadd.f32 -1.4531521, %v2116_v57 }
 0x323   : > { %v8452_v61 = vsel %vm1604_vm8, %v9478_v20, %v1602_v13  ;;  %v2439_v52 = vadd.f32 -0.28449672, %v2375_v4  ;;  %v2499_v38 = vmul.f32 %v2435_v56, %v8316_v45  ;;  %vm2034_vm10 = vweird.f32 %v8363_v47 }
 0x324   : > { %v2120_v59 = vmul.f32 1.0614054, %v8452_v61  ;;  %v2033_v19 = vadd.f32 %v4807_v37, %v2032_v27  ;;  %v2041_v13 = vor.u32 1.1754944e-38, %v2040_v9  ;;  %v2046_v23 = vsub.f32 1.0, %v2045_v48  ;;  %vm2036_vm11 = vmor %vm2034_vm10, %vm2035_vm9  ;;  %v9480_v48 = vld [vmem:[#allocation145_spill] sm:$0xff] }
 0x325   : > { %v2503_v20 = vmul.f32 %v2439_v52, %v8343_v50  ;;  %v2563_v16 = vadd.f32 0.2548296, %v2499_v38  ;;  %v2244_v60 = vmul.f32 %v2180_v42, %v8430_v35  ;;  %vm3075_vm12 = vcmp.lt.f32.partialorder %v9479_v3, 0.0 }
 0x326   : > { %v2184_v22 = vadd.f32 -1.4531521, %v2120_v59  ;;  %v2001_v56 = vsub.f32 1.0, %v2000_v21  ;;  %v2037_v10 = vsel %vm2036_vm11, %v4807_v37, %v2033_v19  ;;  %vm2039_vm13 = vcmp.eq.f32.partialorder %v2038_v40, 8.507059e+37  ;;  %v8466_v57 = vpop.eup %4814  ;;  %v9481_v59 = vld [vmem:[#allocation148_spill] sm:$0xff] }
 0x327   : > { %v8468_v27 = vsel %vm2039_vm13, %v2041_v13, %v2037_v10  ;;  %v2567_v47 = vadd.f32 0.2548296, %v2503_v20  ;;  %v2627_v9 = vmul.f32 %v2563_v16, %v8316_v45  ;;  %vm3079_vm14 = vcmp.lt.f32.partialorder %v9480_v48, 0.0  ;;  %v9487_v48 = vld [vmem:[#allocation117_spill] sm:$0xff] }
 0x328   : > { %v2248_v52 = vmul.f32 %v2184_v22, %v8452_v61  ;;  %v8475_v38 = vmul.f32 %v2464_v44, %v8227_v31  ;;  %v2401_v21 = vmul.f32 %v2337_v49, %v8303_v32  ;;  %v2047_v37 = vmul.f32 %v8439_v17, %v2046_v23  ;;  %v9482_v44 = vld [vmem:[#allocation173_spill] sm:$0xff] }
 0x329   : > { %v2210_v40 = vadd.f32 -1.4531521, %v2146_v14  ;;  %v2631_v10 = vmul.f32 %v2567_v47, %v8343_v50  ;;  %v2947_v19 = vmul.f32 %v9481_v59, %v2627_v9  ;;  %v2308_v13 = vadd.f32 1.4214138, %v2244_v60 }
 0x32a   : > { %v2002_v16 = vmul.f32 %v8432_v12, %v2001_v56  ;;  %vm2005_vm15 = vweird.f32 %v8432_v12  ;;  %v2010_v22 = vand.u32 2147483648, %v8356_v8  ;;  %v2149_v45 = vmul.f32 1.0614054, %v8468_v27 }
 0x32b   : > { %v2951_v20 = vmul.f32 %v9482_v44, %v2631_v10  ;;  %v3011_v42 = vsub.f32 1.0, %v2947_v19  ;;  %v2312_v49 = vadd.f32 1.4214138, %v2248_v52  ;;  %v2372_v23 = vmul.f32 %v2308_v13, %v8430_v35 }
 0x32c   : > { %v2015_v50 = vmul.f32 %v8466_v57, %v8425_v36  ;;  %v2048_v14 = vadd.f32 %v8439_v17, %v2047_v37  ;;  %vm2050_vm0 = vweird.f32 %v8439_v17  ;;  %v2055_v60 = vand.u32 2147483648, %v8365_v43 }
 0x32d   : > { %v3015_v56 = vsub.f32 1.0, %v2951_v20  ;;  %v3139_v47 = vsub.f32 0.0, %v3011_v42  ;;  %v2376_v9 = vmul.f32 %v2312_v49, %v8452_v61  ;;  %v2436_v59 = vadd.f32 -0.28449672, %v2372_v23 }
 0x32e   : > { %v2003_v10 = vadd.f32 %v8432_v12, %v2002_v16  ;;  %v2213_v19 = vadd.f32 -1.4531521, %v2149_v45  ;;  %vm2049_vm1 = vweird.f32 %v8365_v43  ;;  %v2053_v52 = vand.u32 2147483647, %v8365_v43 }
 0x32f   : > { %vm8496_vm2 = vmor %vm2049_vm1, %vm2050_vm0  ;;  %v3143_v37 = vsub.f32 0.0, %v3015_v56  ;;  %v3203_v44 = vsel %vm3075_vm12, %v3139_v47, %v3011_v42  ;;  %v2440_v20 = vadd.f32 -0.28449672, %v2376_v9  ;;  %v2500_v4 = vmul.f32 %v2436_v59, %v8430_v35 }
 0x330   : > { %vm2004_vm3 = vweird.f32 %v8356_v8  ;;  %v2008_v16 = vand.u32 2147483647, %v8356_v8  ;;  %v2011_v45 = vor.u32 1.1754944e-38, %v2010_v22  ;;  %v2052_v43 = vsel %vm8496_vm2, %v8439_v17, %v2048_v14  ;;  %v757_v14 = vpop.f32.mrf.mxu2 }
 0x331   : > { %vm8510_vm4 = vmor %vm2004_vm3, %vm2005_vm15  ;;  %v2056_v3 = vor.u32 1.1754944e-38, %v2055_v60  ;;  %v3207_v42 = vsel %vm3079_vm14, %v3143_v37, %v3015_v56  ;;  %v3267_v23 = vadd.f32 1.0, %v3203_v44  ;;  %v2504_v47 = vmul.f32 %v2440_v20, %v8452_v61  ;;  %v9488_v56 = vld [vmem:[#allocation153_spill] sm:$0xff]  ;;  %v9489_v44 = vld [vmem:[#allocation123_spill] sm:$0xff] }
 0x332   : > { %v2007_v8 = vsel %vm8510_vm4, %v8432_v12, %v2003_v10  ;;  %v2016_v22 = vsub.f32 1.0, %v2015_v50  ;;  %vm2054_vm5 = vcmp.eq.f32.partialorder %v2053_v52, 8.507059e+37  ;;  %v3271_v17 = vadd.f32 1.0, %v3207_v42  ;;  %v9490_v12 = vld [vmem:[#allocation152_spill] sm:$0xff] }
 0x333   : > { %v2277_v9 = vmul.f32 %v2213_v19, %v8468_v27  ;;  %v8521_v59 = vsel %vm2054_vm5, %v2056_v3, %v2052_v43  ;;  %v2564_v13 = vadd.f32 0.2548296, %v2500_v4  ;;  %v2568_v60 = vadd.f32 0.2548296, %v2504_v47  ;;  %v9492_v47 = vld [vmem:[#allocation174_spill] sm:$0xff] }
 0x334   : > { %vm3076_vm6 = vcmp.lt.f32.partialorder %v9487_v48, 0.0  ;;  %vm3080_vm7 = vcmp.lt.f32.partialorder %v9488_v56, 0.0  ;;  %v2465_v37 = vadd.f32 -0.28449672, %v2401_v21  ;;  %vm2009_vm8 = vcmp.eq.f32.partialorder %v2008_v16, 8.507059e+37 }
 0x335   : > { %v3331_v20 = vmul.f32 %v3267_v23, %v9489_v44  ;;  %v3335_v50 = vmul.f32 %v3271_v17, %v9490_v12  ;;  %v8527_v10 = vsel %vm2009_vm8, %v2011_v45, %v2007_v8  ;;  %v2628_v52 = vmul.f32 %v2564_v13, %v8430_v35  ;;  %v9491_v45 = vld [vmem:[#allocation159_spill] sm:$0xff]  ;;  %v9494_v17 = vld [vmem:[#allocation16_spill] sm:$0xff] }
 0x336   : > { %v2632_v19 = vmul.f32 %v2568_v60, %v8452_v61  ;;  %v8532_v4 = vadd.f32 %v757_v14, %v5220_v62  ;;  %v2017_v43 = vmul.f32 %v8466_v57, %v2016_v22  ;;  %v2150_v49 = vmul.f32 1.0614054, %v8521_v59 }
 0x337   : > { %v3399_v3 = vpack.c.bf16 %v3335_v50, %v3331_v20  ;;  %v8537_v21 = vadd.f32 %v806_v34, %v5222_v0  ;;  %v2274_v16 = vmul.f32 %v2210_v40, %v8408_v24  ;;  %v2341_v42 = vadd.f32 1.4214138, %v2277_v9  ;;  %v9493_v40 = vld [vmem:[#allocation176_spill] sm:$0xff] }
 0x338   : > { %v2948_v23 = vmul.f32 %v9491_v45, %v2628_v52  ;;  %v2952_v35 = vmul.f32 %v9492_v47, %v2632_v19  ;;  %v2529_v61 = vmul.f32 %v2465_v37, %v8303_v32  ;;  %v2147_v62 = vmul.f32 1.0614054, %v8527_v10 }
 0x339   : > { %vm2019_vm9 = vweird.f32 %v8425_v36  ;;  %3794 = vmatmul.bf16.gmra.mxu2 %v3399_v3  ;;  %v8546_v8 = vmul.f32 0.70710677, %v8532_v4  ;;  %v8549_v34 = vmul.f32 0.70710677, %v8537_v21  ;;  %v3401_v14 = vpack.c.bf16 %v9494_v17, %v9493_v40 }
 0x33a   : > { %v3012_v22 = vsub.f32 1.0, %v2948_v23  ;;  %v3016_v0 = vsub.f32 1.0, %v2952_v35  ;;  %v2018_v9 = vadd.f32 %v8466_v57, %v2017_v43  ;;  %vm2020_vm10 = vweird.f32 %v8466_v57 }
 0x33b   : > { %v2214_v13 = vadd.f32 -1.4531521, %v2150_v49  ;;  %v8556_v60 = vand.u32 2147483647, %v8546_v8  ;;  %v2405_v37 = vmul.f32 %v2341_v42, %v8468_v27  ;;  %v8560_v12 = vand.u32 2147483647, %v8549_v34  ;;  %3701 = vmatmul.bf16.gmra.mxu0 %v3401_v14  ;;  %vm8569_vm11 = vmor %vm2019_vm9, %vm2020_vm10 }
 0x33c   : > { %v3140_v44 = vsub.f32 0.0, %v3012_v22  ;;  %v3144_v20 = vsub.f32 0.0, %v3016_v0  ;;  %v2023_v50 = vand.u32 2147483647, %v8425_v36  ;;  %v2025_v52 = vand.u32 2147483648, %v8425_v36 }
 0x33d   : > { %v2725_v19 = vmul.f32 %v8332_v33, %v8332_v33  ;;  %v1063_v43 = vmul.f32 0.3275911, %v8556_v60  ;;  %v2211_v49 = vadd.f32 -1.4531521, %v2147_v62  ;;  %v1064_v23 = vmul.f32 0.3275911, %v8560_v12 }
 0x33e   : > { %v3204_v42 = vsel %vm3076_vm6, %v3140_v44, %v3012_v22  ;;  %v3208_v45 = vsel %vm3080_vm7, %v3144_v20, %v3016_v0  ;;  %v2338_v47 = vadd.f32 1.4214138, %v2274_v16  ;;  %v2022_v33 = vsel %vm8569_vm11, %v8466_v57, %v2018_v9  ;;  %v9497_v0 = vld [vmem:[#allocation133_spill] sm:$0xff]  ;;  %v9498_v16 = vld [vmem:[#allocation156_spill] sm:$0xff] }
 0x33f   : > { %v3268_v35 = vadd.f32 1.0, %v3204_v42  ;;  %v3272_v62 = vadd.f32 1.0, %v3208_v45  ;;  %vm3103_vm12 = vcmp.lt.f32.partialorder %v7857_v51, 0.0  ;;  %v2469_v36 = vadd.f32 -0.28449672, %v2405_v37 }
 0x340   : > { %v2278_v40 = vmul.f32 %v2214_v13, %v8521_v59  ;;  %v8583_v17 = vadd.f32 1.0, %v1063_v43  ;;  %v8585_v48 = vadd.f32 1.0, %v1064_v23  ;;  %v2026_v56 = vor.u32 1.1754944e-38, %v2025_v52 }
 0x341   : > { %v2789_v22 = vsub.f32 0.0, %v2725_v19  ;;  %v3332_v14 = vmul.f32 %v3268_v35, %v9497_v0  ;;  %v3336_v44 = vmul.f32 %v3272_v62, %v9498_v16  ;;  %v2593_v20 = vadd.f32 0.2548296, %v2529_v61  ;;  %v9502_v35 = vld [vmem:[#allocation23_spill] sm:$0xff]  ;;  %v9506_v16 = vld [vmem:[#allocation29_spill] sm:$0xff] }
 0x342   : > { %v2275_v57 = vmul.f32 %v2211_v49, %v8527_v10  ;;  %vm2024_vm13 = vcmp.eq.f32.partialorder %v2023_v50, 8.507059e+37  ;;  %4816 = vrcp.f32 %v8583_v17  ;;  %v2402_v9 = vmul.f32 %v2338_v47, %v8408_v24  ;;  %v9504_v0 = vld [vmem:[#allocation31_spill] sm:$0xff] }
 0x343   : > { %v2723_v13 = vmul.f32 %v8276_v28, %v8276_v28  ;;  %v8594_v37 = vsel %vm2024_vm13, %v2026_v56, %v2022_v33  ;;  %v3400_v43 = vpack.c.bf16 %v3336_v44, %v3332_v14  ;;  %v9499_v52 = vsub.f32 0.0, %v8423_v5  ;;  %v9501_v33 = vld [vmem:[#allocation118_spill] sm:$0xff] }
 0x344   : > { %v2533_v3 = vmul.f32 %v2469_v36, %v8468_v27  ;;  %v2342_v42 = vadd.f32 1.4214138, %v2278_v40  ;;  %4818 = vrcp.f32 %v8585_v48  ;;  %v9500_v61 = vsub.f32 1.0, %v8419_v1  ;;  %v9503_v56 = vld [vmem:[#allocation70_spill] sm:$0xff] }
 0x345   : > { %v2907_v19 = vmul.f32 1.442695, %v9499_v52  ;;  %v2592_v49 = vadd.f32 0.2548296, %v8475_v38  ;;  %v2913_v45 = vmul.f32 1.442695, %v2789_v22  ;;  %v2726_v28 = vmul.f32 %v8335_v11, %v8335_v11  ;;  %3843 = vmatmul.bf16.gmra.mxu3 %v3400_v43 }
 0x346   : > { %v3167_v50 = vsub.f32 0.0, %v9500_v61  ;;  %v2657_v23 = vmul.f32 %v2593_v20, %v8303_v32  ;;  %v2339_v47 = vadd.f32 1.4214138, %v2275_v57  ;;  %v2148_v5 = vmul.f32 1.0614054, %v8594_v37  ;;  %v9505_v32 = vld [vmem:[#allocation17_spill] sm:$0xff] }
 0x347   : > { %v3402_v62 = vpack.c.bf16 %v9502_v35, %v9501_v33  ;;  %4820 = vpow2.f32 %v8403_v15  ;;  %v2466_v36 = vadd.f32 -0.28449672, %v2402_v9  ;;  %v2787_v40 = vsub.f32 0.0, %v2723_v13 }
 0x348   : > { %v3403_v38 = vpack.c.bf16 %v9504_v0, %v9503_v56  ;;  %v4817_v22 = vpop.eup %4816  ;;  %4822 = vpow2.f32 %v2907_v19  ;;  %v2597_v14 = vadd.f32 0.2548296, %v2533_v3  ;;  %v2406_v11 = vmul.f32 %v2342_v42, %v8521_v59 }
 0x349   : > { %3750 = vmatmul.bf16.gmra.mxu1 %v3402_v62  ;;  %v3405_v44 = vpack.c.bf16 %v9506_v16, %v9505_v32  ;;  %v9507_v20 = vmov %v9500_v61  ;;  %4824 = vpow2.f32 %v2913_v45  ;;  %v2790_v15 = vsub.f32 0.0, %v2726_v28  ;;  %v9509_v16 = vld [vmem:[#allocation57_spill] sm:$0xff] }
 0x34a   : > { %v8619_v57 = vsel %vm3103_vm12, %v3167_v50, %v9507_v20  ;;  %v2060_v9 = vmul.f32 %v4817_v22, %v8583_v17  ;;  %3799 = vmatmul.bf16.gmra.mxu2 %v3403_v38  ;;  %v4819_v13 = vpop.eup %4818  ;;  %v8623_v43 = vmul.f32 %v2592_v49, %v8227_v31  ;;  %v8626_v52 = vmul.f32 %v8454_v25, %v2657_v23 }
 0x34b   : > { %v2403_v19 = vmul.f32 %v2339_v47, %v8527_v10  ;;  %v2212_v3 = vadd.f32 -1.4531521, %v2148_v5  ;;  %v2530_v1 = vmul.f32 %v2466_v36, %v8408_v24  ;;  %v8630_v51 = vmul.f32 1.442695, %v2787_v40  ;;  %3706 = vmatmul.bf16.gmra.mxu0 %v3405_v44 }
 0x34c   : > { %v2061_v42 = vsub.f32 1.0, %v2060_v9  ;;  %v2075_v61 = vmul.f32 %v4819_v13, %v8585_v48  ;;  %v2661_v50 = vmul.f32 %v2597_v14, %v8468_v27  ;;  %v2470_v45 = vadd.f32 -0.28449672, %v2406_v11 }
 0x34d   : > { %v2068_v28 = vand.u32 2147483647, %v8583_v17  ;;  %v2070_v31 = vand.u32 2147483648, %v8583_v17  ;;  %v4821_v25 = vpop.eup %4820  ;;  %v2915_v49 = vmul.f32 1.442695, %v2790_v15  ;;  %vm2065_vm14 = vweird.f32 %v4817_v22 }
 0x34e   : > { %v2062_v23 = vmul.f32 %v4817_v22, %v2061_v42  ;;  %v2076_v47 = vsub.f32 1.0, %v2075_v61  ;;  %v8636_v5 = vpop.eup %4822  ;;  %v2467_v33 = vadd.f32 -0.28449672, %v2403_v19  ;;  %v2276_v35 = vmul.f32 %v2212_v3, %v8594_v37 }
 0x34f   : > { %vm2064_vm15 = vweird.f32 %v8583_v17  ;;  %v2085_v27 = vand.u32 2147483648, %v8585_v48  ;;  %v4825_v62 = vpop.eup %4824  ;;  %vm2080_vm0 = vweird.f32 %v4819_v13  ;;  %v2083_v56 = vand.u32 2147483647, %v8585_v48  ;;  %v9508_v17 = vld [vmem:[#allocation32_spill] sm:$0xff] }
 0x350   : > { %v2063_v36 = vadd.f32 %v4817_v22, %v2062_v23  ;;  %v2077_v40 = vmul.f32 %v4819_v13, %v2076_v47  ;;  %v8642_v0 = vmul.f32 %v4825_v62, %v2661_v50  ;;  %v2534_v38 = vmul.f32 %v2470_v45, %v8521_v59  ;;  %vm2066_vm1 = vmor %vm2064_vm15, %vm2065_vm14  ;;  %v9510_v50 = vld [vmem:[#allocation20_spill] sm:$0xff] }
 0x351   : > { %vm2069_vm2 = vcmp.eq.f32.partialorder %v2068_v28, 8.507059e+37  ;;  %v2071_v14 = vor.u32 1.1754944e-38, %v2070_v31  ;;  %vm2079_vm3 = vweird.f32 %v8585_v48  ;;  %v3404_v44 = vpack.c.bf16 %v9509_v16, %v9508_v17  ;;  %v9512_v16 = vld [vmem:[#allocation125_spill] sm:$0xff] }
 0x352   : > { %v2067_v11 = vsel %vm2066_vm1, %v4817_v22, %v2063_v36  ;;  %v2078_v32 = vadd.f32 %v4819_v13, %v2077_v40  ;;  %4826 = vpow2.f32 %v2915_v49  ;;  %v2727_v15 = vmul.f32 %v8556_v60, %v8556_v60  ;;  %vm2081_vm4 = vmor %vm2079_vm3, %vm2080_vm0  ;;  %v9511_v49 = vld [vmem:[#allocation25_spill] sm:$0xff] }
 0x353   : > { %v8648_v20 = vsel %vm2069_vm2, %v2071_v14, %v2067_v11  ;;  %v2086_v9 = vor.u32 1.1754944e-38, %v2085_v27  ;;  %v2340_v19 = vadd.f32 1.4214138, %v2276_v35  ;;  %vm2084_vm5 = vcmp.eq.f32.partialorder %v2083_v56, 8.507059e+37 }
 0x354   : > { %v2151_v3 = vmul.f32 1.0614054, %v8648_v20  ;;  %v2082_v42 = vsel %vm2081_vm4, %v4819_v13, %v2078_v32  ;;  %v2531_v22 = vmul.f32 %v2467_v33, %v8527_v10  ;;  %v2598_v61 = vadd.f32 0.2548296, %v2534_v38 }
 0x355   : > { %v8654_v48 = vsel %vm2084_vm5, %v2086_v9, %v2082_v42  ;;  %v3406_v45 = vpack.c.bf16 %v7940_v29, %v9510_v50  ;;  %vm3105_vm6 = vcmp.lt.f32.partialorder %v8045_v63, 0.0  ;;  %v3045_v28 = vsub.f32 1.0, %v8642_v0  ;;  %3848 = vmatmul.bf16.gmra.mxu3 %v3404_v44 }
 0x356   : > { %v2215_v60 = vadd.f32 -1.4531521, %v2151_v3  ;;  %v2152_v31 = vmul.f32 1.0614054, %v8654_v48  ;;  %v3407_v13 = vpack.c.bf16 %v7962_v53, %v9511_v49  ;;  %v3041_v23 = vsub.f32 1.0, %v8626_v52 }
 0x357   : > { %v2594_v47 = vadd.f32 0.2548296, %v2530_v1  ;;  %v2724_v33 = vmul.f32 %v8361_v39, %v8361_v39  ;;  %v2791_v35 = vsub.f32 0.0, %v2727_v15  ;;  %v2404_v29 = vmul.f32 %v2340_v19, %v8594_v37 }
 0x358   : > { %v2279_v27 = vmul.f32 %v2215_v60, %v8648_v20  ;;  %v2216_v62 = vadd.f32 -1.4531521, %v2152_v31  ;;  %v2728_v36 = vmul.f32 %v8560_v12, %v8560_v12  ;;  %v4827_v40 = vpop.eup %4826  ;;  %v8671_v56 = vmul.f32 %v4821_v25, %v8623_v43 }
 0x359   : > { %v2595_v53 = vadd.f32 0.2548296, %v2531_v22  ;;  %v2662_v52 = vmul.f32 %v2598_v61, %v8521_v59  ;;  %3755 = vmatmul.bf16.gmra.mxu1 %v3406_v45  ;;  %v3409_v39 = vpack.c.bf16 %v8262_v2, %v8032_v41  ;;  %4828 = vpow2.f32 %v8630_v51 }
 0x35a   : > { %v3173_v1 = vsub.f32 0.0, %v3045_v28  ;;  %v2343_v0 = vadd.f32 1.4214138, %v2279_v27  ;;  %v2280_v38 = vmul.f32 %v2216_v62, %v8654_v48  ;;  %3804 = vmatmul.bf16.gmra.mxu2 %v3407_v13  ;;  %v3169_v14 = vsub.f32 0.0, %v3041_v23 }
 0x35b   : > { %v2658_v12 = vmul.f32 %v2594_v47, %v8408_v24  ;;  %v2788_v11 = vsub.f32 0.0, %v2724_v33  ;;  %v2917_v43 = vmul.f32 1.442695, %v2791_v35  ;;  %v2468_v25 = vadd.f32 -0.28449672, %v2404_v29  ;;  %3711 = vmatmul.bf16.gmra.mxu0 %v3409_v39  ;;  %v3682_v39 = vpop.f32.mrf.mxu0 }
 0x35c   : > { %v2407_v32 = vmul.f32 %v2343_v0, %v8648_v20  ;;  %v2344_v59 = vadd.f32 1.4214138, %v2280_v38  ;;  %v2792_v17 = vsub.f32 0.0, %v2728_v36  ;;  %vm3100_vm7 = vcmp.lt.f32.partialorder %v9512_v16, 0.0  ;;  %v9516_v0 = vld [vmem:[#allocation38_spill] sm:$0xff] }
 0x35d   : > { %v3295_v41 = vadd.f32 1.0, %v8619_v57  ;;  %v2659_v2 = vmul.f32 %v2595_v53, %v8527_v10  ;;  %vm3109_vm8 = vcmp.lt.f32.partialorder %v8308_v58, 0.0  ;;  %v2982_v51 = vmul.f32 %v4827_v40, %v2662_v52 }
 0x35e   : > { %v3040_v44 = vsub.f32 1.0, %v8671_v56  ;;  %v3237_v24 = vsel %vm3109_vm8, %v3173_v1, %v3045_v28  ;;  %v2471_v15 = vadd.f32 -0.28449672, %v2407_v32  ;;  %v2408_v9 = vmul.f32 %v2344_v59, %v8654_v48  ;;  %v3731_v1 = vpop.f32.mrf.mxu1 }
 0x35f   : > { %v3233_v19 = vsel %vm3105_vm6, %v3169_v14, %v3041_v23  ;;  %v8689_v3 = vmul.f32 %v8636_v5, %v2658_v12  ;;  %v2911_v42 = vmul.f32 1.442695, %v2788_v11  ;;  %4830 = vpow2.f32 %v2917_v43  ;;  %v4829_v57 = vpop.eup %4828  ;;  %v9513_v5 = vld [vmem:[#allocation37_spill] sm:$0xff]  ;;  %v9517_v12 = vld [vmem:[#allocation35_spill] sm:$0xff] }
 0x360   : > { %v2532_v10 = vmul.f32 %v2468_v25, %v8594_v37  ;;  %v2535_v58 = vmul.f32 %v2471_v15, %v8648_v20  ;;  %v2472_v22 = vadd.f32 -0.28449672, %v2408_v9  ;;  %v2919_v61 = vmul.f32 1.442695, %v2792_v17  ;;  %v295_v9 = vld [vmem:[%s5191_s11] sm:$0xff]  }
 0x361   : > { %v3359_v50 = vmul.f32 %v3295_v41, %v8250_v30  ;;  %v2979_v45 = vmul.f32 %v4829_v57, %v2659_v2  ;;  %v3301_v28 = vadd.f32 1.0, %v3237_v24  ;;  %v3046_v60 = vsub.f32 1.0, %v2982_v51  ;;  %v9519_v51 = vld [vmem:[#allocation22_spill] sm:$0xff] }
 0x362   : > { %v3168_v31 = vsub.f32 0.0, %v3040_v44  ;;  %v2599_v63 = vadd.f32 0.2548296, %v2535_v58  ;;  %v2536_v49 = vmul.f32 %v2472_v22, %v8654_v48  ;;  %v3408_v13 = vpack.c.bf16 %v7971_v18, %v9513_v5 }
 0x363   : > { %v3297_v23 = vadd.f32 1.0, %v3233_v19  ;;  %v3042_v47 = vsub.f32 1.0, %v8689_v3  ;;  %4832 = vpow2.f32 %v2911_v42  ;;  %v869_v33 = vmul.f32 0.5, %v8282_v54  ;;  %v9521_v19 = vld [vmem:[#allocation44_spill] sm:$0xff]  ;;  %v3684_v5 = vpop.f32.mrf.mxu0 }
 0x364   : > { %v2596_v35 = vadd.f32 0.2548296, %v2532_v10  ;;  %v2663_v29 = vmul.f32 %v2599_v63, %v8648_v20  ;;  %v2600_v30 = vadd.f32 0.2548296, %v2536_v49  ;;  %4834 = vpow2.f32 %v2919_v61  ;;  %v9515_v20 = vld [vmem:[#allocation21_spill] sm:$0xff]  ;;  %v9522_v63 = vld [vmem:[#allocation46_spill] sm:$0xff] }
 0x365   : > { %v4831_v27 = vpop.eup %4830  ;;  %v3043_v62 = vsub.f32 1.0, %v2979_v45  ;;  %v3365_v36 = vmul.f32 %v3301_v28, %v869_v33  ;;  %v3174_v40 = vsub.f32 0.0, %v3046_v60  ;;  %v3410_v56 = vpack.c.bf16 %v8401_v46, %v8047_v6  ;;  %3853 = vmatmul.bf16.gmra.mxu3 %v3408_v13  ;;  %v3829_v46 = vpop.f32.mrf.mxu3  ;;  %v8722_v45 = vld [vmem:[%s8804_s4] ss:$0 sm:$0xff] }
 0x366   : > { %v9514_v18 = vsub.f32 1.0, %v8170_v55  ;;  %vm3104_vm9 = vcmp.lt.f32.partialorder %v7990_v7, 0.0  ;;  %v2983_v54 = vmul.f32 %v4831_v27, %v2663_v29  ;;  %v3411_v52 = vpack.c.bf16 %v3359_v50, %v9515_v20  ;;  %v3780_v55 = vpop.f32.mrf.mxu2  ;;  %v9518_v7 = vld [vmem:[#allocation33_spill] sm:$0xff]  ;;  %v3733_v13 = vpop.f32.mrf.mxu1 }
 0x367   : > { %v860_v38 = vmul.f32 0.5, %v9516_v0  ;;  %v3232_v14 = vsel %vm3104_vm9, %v3168_v31, %v3040_v44  ;;  %v3361_v11 = vmul.f32 %v3297_v23, %v9517_v12  ;;  %v2664_v6 = vmul.f32 %v2600_v30, %v8654_v48  ;;  %v9520_v48 = vld [vmem:[#allocation48_spill] sm:$0xff]  ;;  %v9523_v23 = vld [vmem:[#allocation131_spill] sm:$0xff] }
 0x368   : > { %v3228_v53 = vsel %vm3100_vm7, %v8247_v26, %v9514_v18  ;;  %v3170_v43 = vsub.f32 0.0, %v3042_v47  ;;  %v2660_v26 = vmul.f32 %v2596_v35, %v8594_v37  ;;  %vm3110_vm10 = vcmp.lt.f32.partialorder %v9518_v7, 0.0 }
 0x369   : > { %v3047_v25 = vsub.f32 1.0, %v2983_v54  ;;  %v4833_v32 = vpop.eup %4832  ;;  %v3292_v59 = vadd.f32 1.0, %v3228_v53  ;;  %v3171_v17 = vsub.f32 0.0, %v3043_v62  ;;  %v3238_v16 = vsel %vm3110_vm10, %v3174_v40, %v3046_v60  ;;  %3760 = vmatmul.bf16.gmra.mxu1 %v3410_v56 }
 0x36a   : > { %v3413_v41 = vpack.c.bf16 %v3365_v36, %v3361_v11  ;;  %v4835_v2 = vpop.eup %4834  ;;  %v864_v44 = vmul.f32 0.5, %v9519_v51  ;;  %v3296_v24 = vadd.f32 1.0, %v3232_v14  ;;  %vm3106_vm11 = vcmp.lt.f32.partialorder %v9520_v48, 0.0  ;;  %3809 = vmatmul.bf16.gmra.mxu2 %v3411_v52  ;;  %v9524_v52 = vld [vmem:[#allocation36_spill] sm:$0xff] }
 0x36b   : > { %v3175_v15 = vsub.f32 0.0, %v3047_v25  ;;  %vm3107_vm12 = vcmp.lt.f32.partialorder %v9521_v19, 0.0  ;;  %vm3111_vm13 = vcmp.lt.f32.partialorder %v8546_v8, 0.0  ;;  %v2984_v37 = vmul.f32 %v4835_v2, %v2664_v6  ;;  %v9526_v19 = vld [vmem:[#allocation149_spill] sm:$0xff] }
 0x36c   : > { %v3732_v3 = vadd.f32 %v3731_v1, %v3682_v39  ;;  %v3234_v42 = vsel %vm3106_vm11, %v3170_v43, %v3042_v47  ;;  %v2980_v57 = vmul.f32 %v4833_v32, %v2660_v26  ;;  %v3302_v10 = vadd.f32 1.0, %v3238_v16  ;;  %3716 = vmatmul.bf16.gmra.mxu0 %v3413_v41  ;;  %v9525_v16 = vld [vmem:[#allocation24_spill] sm:$0xff] }
 0x36d   : > { %v3239_v58 = vsel %vm3111_vm13, %v3175_v15, %v3047_v25  ;;  %v3235_v22 = vsel %vm3107_vm12, %v3171_v17, %v3043_v62  ;;  %v311_v50 = vunpack.c.l.bf16 %v295_v9  ;;  %v312_v28 = vunpack.c.h.bf16 %v295_v9  ;;  %v3831_v27 = vpop.f32.mrf.mxu3 }
 0x36e   : > { %v3781_v61 = vadd.f32 %v3780_v55, %v3732_v3  ;;  %v3356_v60 = vmul.f32 %v3292_v59, %v860_v38  ;;  %v3360_v31 = vmul.f32 %v3296_v24, %v864_v44  ;;  %v870_v8 = vmul.f32 0.5, %v9522_v63  ;;  %v3782_v30 = vpop.f32.mrf.mxu2  ;;  %v3736_v7 = vpop.f32.mrf.mxu1 }
 0x36f   : > { %v3303_v49 = vadd.f32 1.0, %v3239_v58  ;;  %v866_v47 = vmul.f32 0.5, %v9523_v23  ;;  %v3298_v33 = vadd.f32 1.0, %v3234_v42  ;;  %v3048_v35 = vsub.f32 1.0, %v2984_v37 }
 0x370   : > { %v3734_v29 = vadd.f32 %v3733_v13, %v3684_v5  ;;  %v3299_v62 = vadd.f32 1.0, %v3235_v22  ;;  %v3044_v36 = vsub.f32 1.0, %v2980_v57  ;;  %v3366_v40 = vmul.f32 %v3302_v10, %v870_v8 }
 0x371   : > { %v871_v56 = vmul.f32 0.5, %v8532_v4  ;;  %v331_v18 = vadd.f32 %v8722_v45, %v311_v50  ;;  %v3830_v53 = vadd.f32 %v3829_v46, %v3781_v61  ;;  %v332_v20 = vadd.f32 %v8722_v45, %v312_v28  ;;  %v3687_v46 = vpop.f32.mrf.mxu0 }
 0x372   : > { %v3783_v54 = vadd.f32 %v3782_v30, %v3734_v29  ;;  %v867_v39 = vmul.f32 0.5, %v9524_v52  ;;  %v3412_v0 = vpack.c.bf16 %v3360_v31, %v3356_v60  ;;  %v3362_v38 = vmul.f32 %v3298_v33, %v866_v47 }
 0x373   : > { %v3367_v1 = vmul.f32 %v3303_v49, %v871_v56  ;;  %v3176_v14 = vsub.f32 0.0, %v3048_v35  ;;  %v3172_v6 = vsub.f32 0.0, %v3044_v36  ;;  %v3869_v43 = vadd.f32 %v3830_v53, %v331_v18 }
 0x374   : > { %v3832_v12 = vadd.f32 %v3831_v27, %v3783_v54  ;;  %v3363_v11 = vmul.f32 %v3299_v62, %v867_v39  ;;  %v3414_v55 = vpack.c.bf16 %v3366_v40, %v3362_v38  ;;  %vm3112_vm14 = vcmp.lt.f32.partialorder %v8549_v34, 0.0  ;;  %v297_v34 = vld [vmem:[%s5191_s11 + $0x8] sm:$0xff]  }
 0x375   : > { %3858 = vmatmul.bf16.gmra.mxu3 %v3412_v0  ;;  %v3240_v25 = vsel %vm3112_vm14, %v3176_v14, %v3048_v35  ;;  %v3834_v17 = vpop.f32.mrf.mxu3  ;;  %vm3108_vm15 = vcmp.lt.f32.partialorder %v9525_v16, 0.0  ;;  %v3737_v51 = vadd.f32 %v3736_v7, %v3687_v46  ;;  %v872_v24 = vmul.f32 0.5, %v8537_v21  ;;  %v299_v35 = vld [vmem:[%s5191_s11 + $0x10] sm:$0xff]   ;;  %v301_v7 = vld [vmem:[%s5191_s11 + $0x18] sm:$0xff]  }
 0x376   : > { %v3870_v26 = vadd.f32 %v3832_v12, %v332_v20  ;;  %v3415_v4 = vpack.c.bf16 %v3367_v1, %v3363_v11  ;;  %v3785_v59 = vpop.f32.mrf.mxu2  ;;  %v3236_v41 = vsel %vm3108_vm15, %v3172_v6, %v3044_v36  ;;  %v3304_v2 = vadd.f32 1.0, %v3240_v25  ;;  %v3738_v57 = vpop.f32.mrf.mxu1 }
 0x377   : > { %v3300_v44 = vadd.f32 1.0, %v3236_v41  ;;  %v3786_v48 = vadd.f32 %v3785_v59, %v3737_v51  ;;  %v313_v15 = vunpack.c.l.bf16 %v297_v34  ;;  %v314_v9 = vunpack.c.h.bf16 %v297_v34 }
 0x378   : > { %v4452_v32 = vpack.c.bf16 %v3870_v26, %v3869_v43  ;;  %v868_v37 = vmul.f32 0.5, %v9526_v19  ;;  %v3368_v3 = vmul.f32 %v3304_v2, %v872_v24  ;;  %v315_v27 = vunpack.c.l.bf16 %v299_v35 }
 0x379   : > { %3765 = vmatmul.bf16.gmra.mxu1 %v3414_v55  ;;  %v3689_v42 = vpop.f32.mrf.mxu0  ;;  %v333_v50 = vadd.f32 %v8722_v45, %v313_v15  ;;  %v3835_v28 = vadd.f32 %v3834_v17, %v3786_v48  ;;  %v334_v21 = vadd.f32 %v8722_v45, %v314_v9  ;;  %v316_v62 = vunpack.c.h.bf16 %v299_v35 }
 0x37a   : > { %4453 = vst [vmem:[%s8734_s28] sm:$0xff] %v4452_v32   ;;  %3814 = vmatmul.bf16.gmra.mxu2 %v3415_v4  ;;  %v3739_v10 = vadd.f32 %v3738_v57, %v3689_v42  ;;  %v3364_v61 = vmul.f32 %v3300_v44, %v868_v37  ;;  %v335_v53 = vadd.f32 %v8722_v45, %v315_v27  ;;  %v317_v16 = vunpack.c.l.bf16 %v301_v7 }
 0x37b   : > { %v3871_v8 = vadd.f32 %v3835_v28, %v333_v50  ;;  %v336_v52 = vadd.f32 %v8722_v45, %v316_v62  ;;  %v318_v41 = vunpack.c.h.bf16 %v301_v7 }
 0x37c   : > { %v3416_v31 = vpack.c.bf16 %v3368_v3, %v3364_v61  ;;  %v337_v24 = vadd.f32 %v8722_v45, %v317_v16 }
 0x37d   : > { %v3836_v22 = vpop.f32.mrf.mxu3  ;;  %v338_v15 = vadd.f32 %v8722_v45, %v318_v41 }
 0x37e   : > { %v3787_v58 = vpop.f32.mrf.mxu2  ;;  %v3741_v13 = vpop.f32.mrf.mxu1 }
 0x37f   : > { %v3788_v60 = vadd.f32 %v3787_v58, %v3739_v10 }
 0x381   : > { %v3837_v63 = vadd.f32 %v3836_v22, %v3788_v60  ;;  %v3692_v5 = vpop.f32.mrf.mxu0  ;;  %v303_v22 = vld [vmem:[%s5191_s11 + $0x20] sm:$0xff]  }
 0x382   : > { %v3742_v29 = vadd.f32 %v3741_v13, %v3692_v5 }
 0x383   : > { %v3872_v49 = vadd.f32 %v3837_v63, %v334_v21  ;;  %v319_v21 = vunpack.c.l.bf16 %v303_v22 }
 0x385   : > { %3863 = vmatmul.bf16.gmra.mxu3 %v3416_v31  ;;  %v4457_v23 = vpack.c.bf16 %v3872_v49, %v3871_v8  ;;  %v3839_v33 = vpop.f32.mrf.mxu3  ;;  %v320_v31 = vunpack.c.h.bf16 %v303_v22  ;;  %v339_v49 = vadd.f32 %v8722_v45, %v319_v21  ;;  %v309_v22 = vld [vmem:[%s5191_s11 + $0x38] sm:$0xff]  }
 0x386   : > { %v3790_v47 = vpop.f32.mrf.mxu2  ;;  %v3743_v40 = vpop.f32.mrf.mxu1 }
 0x387   : > { %4489 = vst [vmem:[%s8734_s28 + $0x8] sm:$0xff] %v4457_v23   ;;  %v3791_v30 = vadd.f32 %v3790_v47, %v3742_v29  ;;  %v340_v13 = vadd.f32 %v8722_v45, %v320_v31  ;;  %v325_v31 = vunpack.c.l.bf16 %v309_v22 }
 0x389   : > { %v3694_v36 = vpop.f32.mrf.mxu0  ;;  %v3840_v54 = vadd.f32 %v3839_v33, %v3791_v30 }
 0x38a   : > { %v3744_v56 = vadd.f32 %v3743_v40, %v3694_v36  ;;  %v305_v36 = vld [vmem:[%s5191_s11 + $0x28] sm:$0xff]  }
 0x38b   : > { %v3873_v0 = vadd.f32 %v3840_v54, %v335_v53 }
 0x38d   : > { %v3841_v39 = vpop.f32.mrf.mxu3 }
 0x38e   : > { %v3792_v18 = vpop.f32.mrf.mxu2  ;;  %v3746_v11 = vpop.f32.mrf.mxu1 }
 0x38f   : > { %v3793_v20 = vadd.f32 %v3792_v18, %v3744_v56 }
 0x391   : > { %v3842_v1 = vadd.f32 %v3841_v39, %v3793_v20  ;;  %v3697_v12 = vpop.f32.mrf.mxu0  ;;  %v322_v39 = vunpack.c.h.bf16 %v305_v36 }
 0x392   : > { %v3747_v32 = vadd.f32 %v3746_v11, %v3697_v12 }
 0x393   : > { %v3874_v38 = vadd.f32 %v3842_v1, %v336_v52  ;;  %v321_v52 = vunpack.c.l.bf16 %v305_v36  ;;  %v342_v12 = vadd.f32 %v8722_v45, %v322_v39 }
 0x395   : > { %v4462_v14 = vpack.c.bf16 %v3874_v38, %v3873_v0  ;;  %v341_v38 = vadd.f32 %v8722_v45, %v321_v52 }
 0x396   : > { %v3748_v55 = vpop.f32.mrf.mxu1 }
 0x397   : > { %4490 = vst [vmem:[%s8734_s28 + $0x10] sm:$0xff] %v4462_v14  }
 0x399   : > { %v3699_v6 = vpop.f32.mrf.mxu0 }
 0x39a   : > { %v3749_v59 = vadd.f32 %v3748_v55, %v3699_v6 }
 0x3b8   : > { %v3702_v26 = vpop.f32.mrf.mxu0 }
 0x3bc   : > { %v3795_v43 = vpop.f32.mrf.mxu2 }
 0x3bd   : > { %v3796_v17 = vadd.f32 %v3795_v43, %v3747_v32 }
 0x3c0   : > { %v3704_v2 = vpop.f32.mrf.mxu0 }
 0x3c4   : > { %v3797_v4 = vpop.f32.mrf.mxu2 }
 0x3c5   : > { %v3798_v51 = vadd.f32 %v3797_v4, %v3749_v59 }
 0x3c6   : > { %v3751_v46 = vpop.f32.mrf.mxu1 }
 0x3c7   : > { %v3752_v50 = vadd.f32 %v3751_v46, %v3702_v26 }
 0x3c8   : > { %v3844_v25 = vpop.f32.mrf.mxu3  ;;  %v3707_v10 = vpop.f32.mrf.mxu0 }
 0x3c9   : > { %v3845_v48 = vadd.f32 %v3844_v25, %v3796_v17  ;;  %v307_v25 = vld [vmem:[%s5191_s11 + $0x30] sm:$0xff]  }
 0x3ca   : > { %v323_v41 = vunpack.c.l.bf16 %v307_v25 }
 0x3cb   : > { %v3875_v37 = vadd.f32 %v3845_v48, %v337_v24 }
 0x3cc   : > { %v343_v24 = vadd.f32 %v8722_v45, %v323_v41 }
 0x3cd   : > { %v3800_v34 = vpop.f32.mrf.mxu2 }
 0x3ce   : > { %v3753_v44 = vpop.f32.mrf.mxu1  ;;  %v3801_v60 = vadd.f32 %v3800_v34, %v3752_v50 }
 0x3cf   : > { %v3754_v28 = vadd.f32 %v3753_v44, %v3704_v2  ;;  %v324_v2 = vunpack.c.h.bf16 %v307_v25 }
 0x3d0   : > { %v3846_v9 = vpop.f32.mrf.mxu3  ;;  %v3709_v23 = vpop.f32.mrf.mxu0 }
 0x3d1   : > { %v3847_v19 = vadd.f32 %v3846_v9, %v3798_v51 }
 0x3d3   : > { %v3876_v3 = vadd.f32 %v3847_v19, %v338_v15  ;;  %v344_v15 = vadd.f32 %v8722_v45, %v324_v2 }
 0x3d5   : > { %v3802_v42 = vpop.f32.mrf.mxu2  ;;  %v4467_v57 = vpack.c.bf16 %v3876_v3, %v3875_v37 }
 0x3d6   : > { %v3756_v58 = vpop.f32.mrf.mxu1  ;;  %v3803_v8 = vadd.f32 %v3802_v42, %v3754_v28 }
 0x3d7   : > { %4491 = vst [vmem:[%s8734_s28 + $0x18] sm:$0xff] %v4467_v57   ;;  %v3757_v56 = vadd.f32 %v3756_v58, %v3707_v10 }
 0x3d8   : > { %v3849_v61 = vpop.f32.mrf.mxu3  ;;  %v3712_v18 = vpop.f32.mrf.mxu0 }
 0x3d9   : > { %v3850_v5 = vadd.f32 %v3849_v61, %v3801_v60 }
 0x3db   : > { %v3877_v29 = vadd.f32 %v3850_v5, %v339_v49  ;;  %v345_v49 = vadd.f32 %v8722_v45, %v325_v31 }
 0x3dd   : > { %v3805_v63 = vpop.f32.mrf.mxu2 }
 0x3de   : > { %v3758_v33 = vpop.f32.mrf.mxu1  ;;  %v3806_v20 = vadd.f32 %v3805_v63, %v3757_v56  ;;  %v326_v63 = vunpack.c.h.bf16 %v309_v22 }
 0x3df   : > { %v3759_v54 = vadd.f32 %v3758_v33, %v3709_v23 }
 0x3e0   : > { %v3851_v47 = vpop.f32.mrf.mxu3  ;;  %v3714_v26 = vpop.f32.mrf.mxu0 }
 0x3e1   : > { %v3852_v35 = vadd.f32 %v3851_v47, %v3803_v8 }
 0x3e3   : > { %v3878_v30 = vadd.f32 %v3852_v35, %v340_v13  ;;  %v346_v13 = vadd.f32 %v8722_v45, %v326_v63 }
 0x3e5   : > { %v3807_v27 = vpop.f32.mrf.mxu2  ;;  %v4472_v62 = vpack.c.bf16 %v3878_v30, %v3877_v29 }
 0x3e6   : > { %v3761_v53 = vpop.f32.mrf.mxu1  ;;  %v3808_v0 = vadd.f32 %v3807_v27, %v3759_v54 }
 0x3e7   : > { %4492 = vst [vmem:[%s8734_s28 + $0x20] sm:$0xff] %v4472_v62   ;;  %v3762_v59 = vadd.f32 %v3761_v53, %v3712_v18 }
 0x3e8   : > { %v3854_v40 = vpop.f32.mrf.mxu3 }
 0x3e9   : > { %v3855_v14 = vadd.f32 %v3854_v40, %v3806_v20  ;;  %v3717_v34 = vpop.f32.mrf.mxu0 }
 0x3eb   : > { %v3879_v55 = vadd.f32 %v3855_v14, %v341_v38 }
 0x3ed   : > { %v3810_v1 = vpop.f32.mrf.mxu2 }
 0x3ee   : > { %v3763_v4 = vpop.f32.mrf.mxu1  ;;  %v3811_v16 = vadd.f32 %v3810_v1, %v3762_v59 }
 0x3ef   : > { %v3764_v17 = vadd.f32 %v3763_v4, %v3714_v26 }
 0x3f0   : > { %v3856_v11 = vpop.f32.mrf.mxu3 }
 0x3f1   : > { %v3857_v6 = vadd.f32 %v3856_v11, %v3808_v0  ;;  %v3719_v10 = vpop.f32.mrf.mxu0 }
 0x3f3   : > { %v3880_v43 = vadd.f32 %v3857_v6, %v342_v12 }
 0x3f5   : > { %v4477_v46 = vpack.c.bf16 %v3880_v43, %v3879_v55  ;;  %v3812_v7 = vpop.f32.mrf.mxu2 }
 0x3f6   : > { %v3813_v51 = vadd.f32 %v3812_v7, %v3764_v17  ;;  %v3766_v44 = vpop.f32.mrf.mxu1 }
 0x3f7   : > { %4493 = vst [vmem:[%s8734_s28 + $0x28] sm:$0xff] %v4477_v46   ;;  %v3767_v50 = vadd.f32 %v3766_v44, %v3717_v34 }
 0x3f8   : > { %v3859_v32 = vpop.f32.mrf.mxu3 }
 0x3f9   : > { %v3860_v48 = vadd.f32 %v3859_v32, %v3811_v16 }
 0x3fb   : > { %v3881_v3 = vadd.f32 %v3860_v48, %v343_v24 }
 0x3fd   : > { %v3815_v19 = vpop.f32.mrf.mxu2 }
 0x3fe   : > { %v3768_v58 = vpop.f32.mrf.mxu1  ;;  %v3816_v21 = vadd.f32 %v3815_v19, %v3767_v50 }
 0x3ff   : > { %v3769_v60 = vadd.f32 %v3768_v58, %v3719_v10 }
 0x400   : > { %v3861_v9 = vpop.f32.mrf.mxu3 }
 0x401   : > { %v3862_v37 = vadd.f32 %v3861_v9, %v3813_v51 }
 0x403   : > { %v3882_v42 = vadd.f32 %v3862_v37, %v344_v15 }
 0x405   : > { %v4482_v57 = vpack.c.bf16 %v3882_v42, %v3881_v3  ;;  %v3817_v28 = vpop.f32.mrf.mxu2 }
 0x406   : > { %v3818_v8 = vadd.f32 %v3817_v28, %v3769_v60 }
 0x407   : > { %4494 = vst [vmem:[%s8734_s28 + $0x30] sm:$0xff] %v4482_v57  }
 0x408   : > { %v3864_v61 = vpop.f32.mrf.mxu3 }
 0x409   : > { %v3865_v5 = vadd.f32 %v3864_v61, %v3816_v21 }
 0x40b   : > { %v3883_v33 = vadd.f32 %v3865_v5, %v345_v49 }
 0x410   : > { %v3866_v23 = vpop.f32.mrf.mxu3 }
 0x411   : > { %v3867_v47 = vadd.f32 %v3866_v23, %v3818_v8 }
 0x413   : > { %v3884_v35 = vadd.f32 %v3867_v47, %v346_v13 }
 0x415   : > { %v4487_v29 = vpack.c.bf16 %v3884_v35, %v3883_v33 }
 0x417   : > { %4495 = vst [vmem:[%s8734_s28 + $0x38] sm:$0xff] %v4487_v29  }
 0x418   : > { %4983 = shalt.err (!%p4980_p10)
}
 0x419   : > { %s5039_s17 = smov 64   ;;  %s5040_s29 = smov 4  }
 0x41a   : > { %4510 = dma.vmem_to_hbm [thread:$0]  (%p5155_p0), %s3963_s13, 1024, %s3965_s12, %s3950_s22, %s5039_s17, %s5039_s17, %s5040_s29  }
 0x41b PF: > { %p4537_p11 = scmp.ge.s32.totalorder %s5030_s21, 2  ;;  %s3979_s28 = sand.u32 1, %s5018_s18  }
 0x41c   : > { %s3980_s16 = scalar_lea.sflag [#allocation5], %s3979_s28 }
 0x41d   : > { %p4527_p12 = pnand %p4537_p11, %p5106_p6 }
 0x41f   : > { %p4528_p13 = pneg %p4527_p12 }
 0x421   : > { %5013 = dma.done.wait (%p4528_p13), %s3980_s16, 1024  }
 0x422   : > { %5015 = vsyncadd (%p4528_p13), %s3980_s16, 4294966272  ;;  %p20_p3 = scmp.ge.s32.totalorder %s5142_s30, 6   ;;  %s9527_s18 = smov %s5022_s19 }
 0x423   : > { %s9528_s19 = smov %s5026_s20  ;;  %s9529_s20 = smov %s5151_s9 }
 0x424   : > { %s9530_s21 = smov %s5142_s30  ;;  %22 = sbr.rel (!%p20_p3) target bundleno = 7 (0x7), region = 97 }
 0x429   :  { %3986 = vsyncpa [#allocation4], 1 }
 0x42a   :  { %3988 = vsyncpa [#allocation4 + $0x1], 1 }
 0x42b   :  { %3989 = vsyncpa [#allocation7], 1 }
 0x42c   :  { %3990 = vsyncpa [#allocation10], 1 }
 0x42d   :  { %3991 = vsyncpa [#allocation5], 1 }
 0x42e   :  { %3993 = vsyncpa [#allocation5 + $0x1], 1 }

</bundles_post_ra>
